<compile_context>
chip_gen: v5e
topology: v5e:2x2
jax: 0.10.0
libtpu: 0.0.40
codegen_flags: <defaults>
</compile_context>

<pallas_src>
import functools

import jax
import jax.numpy as jnp
from jax import lax
from jax.experimental import pallas as pl
from jax.experimental.pallas import tpu as pltpu


def _sigmoid(x):
    return 1.0 / (1.0 + jnp.exp(-x))


def _make_fused_gru_kernel(seq, batch, hidden, num_layers):
    """Build the fused kernel closure for static (seq, batch, H, L)."""
    H = hidden

    def gru_step(gi, h_prev, w_h, b_h):
        """One GRU cell update. `gi` already contains x@W_i + b_i, gate order [r|z|n]."""
        gh = jnp.dot(h_prev, w_h, preferred_element_type=jnp.float32) + b_h
        r = _sigmoid(gi[:, 0:H] + gh[:, 0:H])
        z = _sigmoid(gi[:, H:2 * H] + gh[:, H:2 * H])
        n = jnp.tanh(gi[:, 2 * H:3 * H] + r * gh[:, 2 * H:3 * H])
        return (1.0 - z) * n + z * h_prev

    def kernel(x_ref, wi0_ref, bi0_ref, wh0_ref, bh0_ref,
               wiR_ref, biR_ref, whR_ref, bhR_ref, out_ref, act_ref):
        # x_ref:   (seq*batch, in0)        time-major, flattened
        # wi0_ref: (in0, 6H),  bi0_ref: (1, 6H)        layer 0, [fwd | bwd] gates
        # wh0_ref: (2, H, 3H), bh0_ref: (2, 1, 3H)     layer 0, dir-indexed
        # wiR_ref: (L-1, 2H, 6H), biR_ref: (L-1, 1, 6H)
        # whR_ref: (L-1, 2, H, 3H), bhR_ref: (L-1, 2, 1, 3H)
        # out_ref: (batch, 2H)             == output[:, -1, :]
        # act_ref: (seq*batch, 2H) VMEM scratch: current layer's bidir output
        h0 = jnp.zeros((batch, H), jnp.float32)

        for layer in range(num_layers):
            last = layer == num_layers - 1

            # ---- hoisted input projection: whole sequence, both directions ----
            if layer == 0:
                x_val = x_ref[...].astype(jnp.float32)            # (seq*batch, in0)
                w_i, b_i = wi0_ref[...], bi0_ref[...]
            else:
                x_val = act_ref[...]                              # (seq*batch, 2H)
                w_i, b_i = wiR_ref[layer - 1], biR_ref[layer - 1]
            gi_all = jnp.dot(x_val, w_i,
                             preferred_element_type=jnp.float32) + b_i
            # gi_all columns: [0:3H] -> forward gates, [3H:6H] -> backward gates

            if layer == 0:
                wh_f, wh_b = wh0_ref[0], wh0_ref[1]
                bh_f, bh_b = bh0_ref[0], bh0_ref[1]
            else:
                wh_f, wh_b = whR_ref[layer - 1, 0], whR_ref[layer - 1, 1]
                bh_f, bh_b = bhR_ref[layer - 1, 0], bhR_ref[layer - 1, 1]

            if not last:
                # Full bidirectional recurrence. The time loop is statically
                # unrolled (seq is small & static), forward/backward steps are
                # interleaved, and each writes its lane-half of act_ref.
                h_f, h_b = h0, h0
                for t in range(seq):
                    rf = slice(t * batch, (t + 1) * batch)
                    h_f = gru_step(gi_all[rf, 0:3 * H], h_f, wh_f, bh_f)
                    act_ref[rf, 0:H] = h_f

                    rt = seq - 1 - t                       # reversed time index
                    rb = slice(rt * batch, (rt + 1) * batch)
                    h_b = gru_step(gi_all[rb, 3 * H:6 * H], h_b, wh_b, bh_b)
                    act_ref[rb, H:2 * H] = h_b
            else:
                # Only output[:, -1, :] is consumed downstream:
                #   forward half  = final forward state (needs the full loop)
                #   backward half = backward state at position seq-1, i.e. one
                #                   single GRU step from the zero initial state.
                h_f = h0
                for t in range(seq):
                    rf = slice(t * batch, (t + 1) * batch)
                    h_f = gru_step(gi_all[rf, 0:3 * H], h_f, wh_f, bh_f)
                rb = slice((seq - 1) * batch, seq * batch)
                h_b = gru_step(gi_all[rb, 3 * H:6 * H], h0, wh_b, bh_b)
                out_ref[...] = jnp.concatenate([h_f, h_b],
                                               axis=1).astype(out_ref.dtype)

    return kernel


def gru_feature_extractor(x, packed):
    """Forward pass of GRUFeatureExtractor (attention=False).

    x: (batch, seq, input_size)  ->  (batch, 2*hidden_size)
    """
    batch, seq, in_size = x.shape
    H = packed["wh0"].shape[1]
    num_layers = 1 + packed["whR"].shape[0]

    # Time-major and flattened to 2D so every in-kernel matmul is a plain 2D dot.
    x2d = jnp.transpose(x, (1, 0, 2)).reshape(seq * batch, in_size)

    kernel = _make_fused_gru_kernel(seq, batch, H, num_layers)
    return pl.pallas_call(
        kernel,
        out_shape=jax.ShapeDtypeStruct((batch, 2 * H), x.dtype),
        scratch_shapes=[pltpu.VMEM((seq * batch, 2 * H), jnp.float32)],
    )(x2d, packed["wi0"], packed["bi0"], packed["wh0"], packed["bh0"],
      packed["wiR"], packed["biR"], packed["whR"], packed["bhR"])


def init_params(key, input_size, hidden_size, num_layers):
    """Deterministic init mirroring init_weights: orthogonal gate blocks, zero biases.

    Per layer, per direction: w_i (in_dim, 3H), w_h (H, 3H), b_i (1, 3H),
    b_h (1, 3H); gate (column) order is PyTorch's [r | z | n].
    """
    ortho = jax.nn.initializers.orthogonal()
    H = hidden_size
    layers = []
    for layer_idx in range(num_layers):
        in_dim = input_size if layer_idx == 0 else 2 * H
        dirs = []
        for _direction in range(2):  # forward, backward
            gates_i, gates_h = [], []
            for _gate in range(3):   # r, z, n
                key, k1 = jax.random.split(key)
                gates_i.append(ortho(k1, (in_dim, H), jnp.float32))
                key, k2 = jax.random.split(key)
                gates_h.append(ortho(k2, (H, H), jnp.float32))
            dirs.append(dict(
                w_i=jnp.concatenate(gates_i, axis=1),   # (in_dim, 3H)
                w_h=jnp.concatenate(gates_h, axis=1),   # (H, 3H)
                b_i=jnp.zeros((1, 3 * H), jnp.float32),
                b_h=jnp.zeros((1, 3 * H), jnp.float32),
            ))
        layers.append(dirs)
    return layers


def pack_params(layers):
    """Pack per-layer/per-direction GRU weights into the fused kernel's layout."""
    assert len(layers) >= 2, "fused kernel packing assumes num_layers >= 2"
    fwd0, bwd0 = layers[0]
    packed = dict(
        wi0=jnp.concatenate([fwd0["w_i"], bwd0["w_i"]], axis=1),   # (in0, 6H)
        bi0=jnp.concatenate([fwd0["b_i"], bwd0["b_i"]], axis=1),   # (1, 6H)
        wh0=jnp.stack([fwd0["w_h"], bwd0["w_h"]]),                 # (2, H, 3H)
        bh0=jnp.stack([fwd0["b_h"], bwd0["b_h"]]),                 # (2, 1, 3H)
    )
    wiR, biR, whR, bhR = [], [], [], []
    for fwd, bwd in layers[1:]:
        wiR.append(jnp.concatenate([fwd["w_i"], bwd["w_i"]], axis=1))
        biR.append(jnp.concatenate([fwd["b_i"], bwd["b_i"]], axis=1))
        whR.append(jnp.stack([fwd["w_h"], bwd["w_h"]]))
        bhR.append(jnp.stack([fwd["b_h"], bwd["b_h"]]))
    packed.update(
        wiR=jnp.stack(wiR),   # (L-1, 2H, 6H)
        biR=jnp.stack(biR),   # (L-1, 1, 6H)
        whR=jnp.stack(whR),   # (L-1, 2, H, 3H)
        bhR=jnp.stack(bhR),   # (L-1, 2, 1, 3H)
    )
    return packed


def gru_reference(x, layers):
    """Pure-JAX reference of the same forward pass (eval-mode nn.GRU math)."""
    H = layers[0][0]["w_h"].shape[0]
    h_seq = jnp.transpose(x, (1, 0, 2))           # (seq, batch, in)

    def run_direction(p, xs):
        def step(h, x_t):
            gi = jnp.dot(x_t, p["w_i"]) + p["b_i"]
            gh = jnp.dot(h, p["w_h"]) + p["b_h"]
            r = jax.nn.sigmoid(gi[:, :H] + gh[:, :H])
            z = jax.nn.sigmoid(gi[:, H:2 * H] + gh[:, H:2 * H])
            n = jnp.tanh(gi[:, 2 * H:] + r * gh[:, 2 * H:])
            h = (1.0 - z) * n + z * h
            return h, h
        h0 = jnp.zeros((xs.shape[1], H), jnp.float32)
        _, ys = lax.scan(step, h0, xs)
        return ys

    for fwd, bwd in layers:
        out_f = run_direction(fwd, h_seq)
        out_b = run_direction(bwd, h_seq[::-1])[::-1]
        h_seq = jnp.concatenate([out_f, out_b], axis=-1)
    return h_seq[-1]                               # (batch, 2H)


if __name__ == "__main__":
    batch, seq = 2, 8
    input_size, hidden_size, num_layers = 16, 32, 4

    key = jax.random.PRNGKey(0)
    kx, kp = jax.random.split(key)
    x = jax.random.normal(kx, (batch, seq, input_size), dtype=jnp.float32)
    layers = init_params(kp, input_size, hidden_size, num_layers)
    packed = pack_params(layers)

    fwd_fn = jax.jit(functools.partial(gru_feature_extractor, packed=packed))
    out = fwd_fn(x)
    jax.block_until_ready(out)

    assert out.shape == (batch, 2 * hidden_size), out.shape
    assert bool(jnp.all(jnp.isfinite(out)))

    # Correctness check against a pure-JAX reference (full-precision matmuls).
    with jax.default_matmul_precision("float32"):
        ref = jax.jit(functools.partial(gru_reference, layers=layers))(x)
    jax.block_until_ready(ref)
    max_err = float(jnp.max(jnp.abs(out - ref)))
    assert max_err < 1e-2, f"mismatch vs reference: max |diff| = {max_err}"

    print("KERNEL_OK")
</pallas_src>

<mosaic_0001>
module attributes {stable_mosaic.version = 11 : i64} {
  func.func @kernel(%arg0: memref<16x16xf32, #tpu.memory_space<vmem>>, %arg1: memref<16x192xf32, #tpu.memory_space<vmem>>, %arg2: memref<1x192xf32, #tpu.memory_space<vmem>>, %arg3: memref<2x32x96xf32, #tpu.memory_space<vmem>>, %arg4: memref<2x1x96xf32, #tpu.memory_space<vmem>>, %arg5: memref<3x64x192xf32, #tpu.memory_space<vmem>>, %arg6: memref<3x1x192xf32, #tpu.memory_space<vmem>>, %arg7: memref<3x2x32x96xf32, #tpu.memory_space<vmem>>, %arg8: memref<3x2x1x96xf32, #tpu.memory_space<vmem>>, %arg9: memref<2x64xf32, #tpu.memory_space<vmem>>, %arg10: memref<16x64xf32, #tpu.memory_space<vmem>>) attributes {dimension_semantics = [], scalar_prefetch = 0 : i64, scratch_operands = 1 : i64, tpu.core_type = #tpu.core_type<tc>} {
    %cst = arith.constant 0.000000e+00 : f32
    %0 = vector.broadcast %cst : f32 to vector<2x32xf32>
    %c0 = arith.constant 0 : index
    %c0_0 = arith.constant 0 : index
    %1 = vector.load %arg0[%c0, %c0_0] : memref<16x16xf32, #tpu.memory_space<vmem>>, vector<16x16xf32>
    %c0_1 = arith.constant 0 : index
    %c0_2 = arith.constant 0 : index
    %2 = vector.load %arg1[%c0_1, %c0_2] : memref<16x192xf32, #tpu.memory_space<vmem>>, vector<16x192xf32>
    %c0_3 = arith.constant 0 : index
    %c0_4 = arith.constant 0 : index
    %3 = vector.load %arg2[%c0_3, %c0_4] : memref<1x192xf32, #tpu.memory_space<vmem>>, vector<1x192xf32>
    %cst_5 = arith.constant dense<0.000000e+00> : vector<16x192xf32>
    %4 = tpu.matmul %1, %2, %cst_5 {dimension_numbers = #tpu.dot_dimension_numbers<[1], [0], [0], [1], [0, 0, 1, 1], [], []>} : vector<16x16xf32>, vector<16x192xf32>, vector<16x192xf32> -> vector<16x192xf32>
    %5 = vector.broadcast %3 : vector<1x192xf32> to vector<16x192xf32>
    %6 = arith.addf %4, %5 : vector<16x192xf32>
    %c0_6 = arith.constant 0 : index
    %c0_7 = arith.constant 0 : index
    %c0_8 = arith.constant 0 : index
    %7 = vector.load %arg3[%c0_6, %c0_7, %c0_8] : memref<2x32x96xf32, #tpu.memory_space<vmem>>, vector<1x32x96xf32>
    %8 = vector.shape_cast %7 : vector<1x32x96xf32> to vector<32x96xf32>
    %c1 = arith.constant 1 : index
    %c0_9 = arith.constant 0 : index
    %c0_10 = arith.constant 0 : index
    %9 = vector.load %arg3[%c1, %c0_9, %c0_10] : memref<2x32x96xf32, #tpu.memory_space<vmem>>, vector<1x32x96xf32>
    %10 = vector.shape_cast %9 : vector<1x32x96xf32> to vector<32x96xf32>
    %c0_11 = arith.constant 0 : index
    %c0_12 = arith.constant 0 : index
    %c0_13 = arith.constant 0 : index
    %11 = vector.load %arg4[%c0_11, %c0_12, %c0_13] : memref<2x1x96xf32, #tpu.memory_space<vmem>>, vector<1x1x96xf32>
    %12 = vector.shape_cast %11 : vector<1x1x96xf32> to vector<1x96xf32>
    %c1_14 = arith.constant 1 : index
    %c0_15 = arith.constant 0 : index
    %c0_16 = arith.constant 0 : index
    %13 = vector.load %arg4[%c1_14, %c0_15, %c0_16] : memref<2x1x96xf32, #tpu.memory_space<vmem>>, vector<1x1x96xf32>
    %14 = vector.shape_cast %13 : vector<1x1x96xf32> to vector<1x96xf32>
    %15 = vector.extract_strided_slice %6 {offsets = [0, 0], sizes = [2, 96], strides = [1, 1]} : vector<16x192xf32> to vector<2x96xf32>
    %cst_17 = arith.constant dense<0.000000e+00> : vector<2x96xf32>
    %16 = tpu.matmul %0, %8, %cst_17 {dimension_numbers = #tpu.dot_dimension_numbers<[1], [0], [0], [1], [0, 0, 1, 1], [], []>} : vector<2x32xf32>, vector<32x96xf32>, vector<2x96xf32> -> vector<2x96xf32>
    %17 = vector.broadcast %12 : vector<1x96xf32> to vector<2x96xf32>
    %18 = arith.addf %16, %17 : vector<2x96xf32>
    %19 = vector.extract_strided_slice %15 {offsets = [0, 0], sizes = [2, 32], strides = [1, 1]} : vector<2x96xf32> to vector<2x32xf32>
    %20 = vector.extract_strided_slice %18 {offsets = [0, 0], sizes = [2, 32], strides = [1, 1]} : vector<2x96xf32> to vector<2x32xf32>
    %21 = arith.addf %19, %20 : vector<2x32xf32>
    %cst_18 = arith.constant 0.000000e+00 : f32
    %22 = vector.broadcast %cst_18 : f32 to vector<2x32xf32>
    %23 = arith.subf %22, %21 : vector<2x32xf32>
    %24 = math.exp %23 : vector<2x32xf32>
    %cst_19 = arith.constant 1.000000e+00 : f32
    %25 = vector.broadcast %cst_19 : f32 to vector<2x32xf32>
    %26 = arith.addf %25, %24 : vector<2x32xf32>
    %cst_20 = arith.constant 1.000000e+00 : f32
    %27 = vector.broadcast %cst_20 : f32 to vector<2x32xf32>
    %28 = arith.divf %27, %26 : vector<2x32xf32>
    %29 = vector.extract_strided_slice %15 {offsets = [0, 32], sizes = [2, 32], strides = [1, 1]} : vector<2x96xf32> to vector<2x32xf32>
    %30 = vector.extract_strided_slice %18 {offsets = [0, 32], sizes = [2, 32], strides = [1, 1]} : vector<2x96xf32> to vector<2x32xf32>
    %31 = arith.addf %29, %30 : vector<2x32xf32>
    %cst_21 = arith.constant 0.000000e+00 : f32
    %32 = vector.broadcast %cst_21 : f32 to vector<2x32xf32>
    %33 = arith.subf %32, %31 : vector<2x32xf32>
    %34 = math.exp %33 : vector<2x32xf32>
    %cst_22 = arith.constant 1.000000e+00 : f32
    %35 = vector.broadcast %cst_22 : f32 to vector<2x32xf32>
    %36 = arith.addf %35, %34 : vector<2x32xf32>
    %cst_23 = arith.constant 1.000000e+00 : f32
    %37 = vector.broadcast %cst_23 : f32 to vector<2x32xf32>
    %38 = arith.divf %37, %36 : vector<2x32xf32>
    %39 = vector.extract_strided_slice %15 {offsets = [0, 64], sizes = [2, 32], strides = [1, 1]} : vector<2x96xf32> to vector<2x32xf32>
    %40 = vector.extract_strided_slice %18 {offsets = [0, 64], sizes = [2, 32], strides = [1, 1]} : vector<2x96xf32> to vector<2x32xf32>
    %41 = arith.mulf %28, %40 : vector<2x32xf32>
    %42 = arith.addf %39, %41 : vector<2x32xf32>
    %43 = math.tanh %42 : vector<2x32xf32>
    %cst_24 = arith.constant 1.000000e+00 : f32
    %44 = vector.broadcast %cst_24 : f32 to vector<2x32xf32>
    %45 = arith.subf %44, %38 : vector<2x32xf32>
    %46 = arith.mulf %45, %43 : vector<2x32xf32>
    %47 = arith.mulf %38, %0 : vector<2x32xf32>
    %48 = arith.addf %46, %47 : vector<2x32xf32>
    %c0_25 = arith.constant 0 : index
    %c0_26 = arith.constant 0 : index
    %49 = vector.load %arg10[%c0_25, %c0_26] : memref<16x64xf32, #tpu.memory_space<vmem>>, vector<2x32xf32>
    tpu.vector_store %arg10[%c0_25, %c0_26], %48 {strides = array<i32>} : memref<16x64xf32, #tpu.memory_space<vmem>>, vector<2x32xf32>,
    %50 = vector.extract_strided_slice %6 {offsets = [14, 96], sizes = [2, 96], strides = [1, 1]} : vector<16x192xf32> to vector<2x96xf32>
    %cst_27 = arith.constant dense<0.000000e+00> : vector<2x96xf32>
    %51 = tpu.matmul %0, %10, %cst_27 {dimension_numbers = #tpu.dot_dimension_numbers<[1], [0], [0], [1], [0, 0, 1, 1], [], []>} : vector<2x32xf32>, vector<32x96xf32>, vector<2x96xf32> -> vector<2x96xf32>
    %52 = vector.broadcast %14 : vector<1x96xf32> to vector<2x96xf32>
    %53 = arith.addf %51, %52 : vector<2x96xf32>
    %54 = vector.extract_strided_slice %50 {offsets = [0, 0], sizes = [2, 32], strides = [1, 1]} : vector<2x96xf32> to vector<2x32xf32>
    %55 = vector.extract_strided_slice %53 {offsets = [0, 0], sizes = [2, 32], strides = [1, 1]} : vector<2x96xf32> to vector<2x32xf32>
    %56 = arith.addf %54, %55 : vector<2x32xf32>
    %cst_28 = arith.constant 0.000000e+00 : f32
    %57 = vector.broadcast %cst_28 : f32 to vector<2x32xf32>
    %58 = arith.subf %57, %56 : vector<2x32xf32>
    %59 = math.exp %58 : vector<2x32xf32>
    %cst_29 = arith.constant 1.000000e+00 : f32
    %60 = vector.broadcast %cst_29 : f32 to vector<2x32xf32>
    %61 = arith.addf %60, %59 : vector<2x32xf32>
    %cst_30 = arith.constant 1.000000e+00 : f32
    %62 = vector.broadcast %cst_30 : f32 to vector<2x32xf32>
    %63 = arith.divf %62, %61 : vector<2x32xf32>
    %64 = vector.extract_strided_slice %50 {offsets = [0, 32], sizes = [2, 32], strides = [1, 1]} : vector<2x96xf32> to vector<2x32xf32>
    %65 = vector.extract_strided_slice %53 {offsets = [0, 32], sizes = [2, 32], strides = [1, 1]} : vector<2x96xf32> to vector<2x32xf32>
    %66 = arith.addf %64, %65 : vector<2x32xf32>
    %cst_31 = arith.constant 0.000000e+00 : f32
    %67 = vector.broadcast %cst_31 : f32 to vector<2x32xf32>
    %68 = arith.subf %67, %66 : vector<2x32xf32>
    %69 = math.exp %68 : vector<2x32xf32>
    %cst_32 = arith.constant 1.000000e+00 : f32
    %70 = vector.broadcast %cst_32 : f32 to vector<2x32xf32>
    %71 = arith.addf %70, %69 : vector<2x32xf32>
    %cst_33 = arith.constant 1.000000e+00 : f32
    %72 = vector.broadcast %cst_33 : f32 to vector<2x32xf32>
    %73 = arith.divf %72, %71 : vector<2x32xf32>
    %74 = vector.extract_strided_slice %50 {offsets = [0, 64], sizes = [2, 32], strides = [1, 1]} : vector<2x96xf32> to vector<2x32xf32>
    %75 = vector.extract_strided_slice %53 {offsets = [0, 64], sizes = [2, 32], strides = [1, 1]} : vector<2x96xf32> to vector<2x32xf32>
    %76 = arith.mulf %63, %75 : vector<2x32xf32>
    %77 = arith.addf %74, %76 : vector<2x32xf32>
    %78 = math.tanh %77 : vector<2x32xf32>
    %cst_34 = arith.constant 1.000000e+00 : f32
    %79 = vector.broadcast %cst_34 : f32 to vector<2x32xf32>
    %80 = arith.subf %79, %73 : vector<2x32xf32>
    %81 = arith.mulf %80, %78 : vector<2x32xf32>
    %82 = arith.mulf %73, %0 : vector<2x32xf32>
    %83 = arith.addf %81, %82 : vector<2x32xf32>
    %c14 = arith.constant 14 : index
    %c32 = arith.constant 32 : index
    %84 = vector.load %arg10[%c14, %c32] : memref<16x64xf32, #tpu.memory_space<vmem>>, vector<2x32xf32>
    tpu.vector_store %arg10[%c14, %c32], %83 {strides = array<i32>} : memref<16x64xf32, #tpu.memory_space<vmem>>, vector<2x32xf32>,
    %85 = vector.extract_strided_slice %6 {offsets = [2, 0], sizes = [2, 96], strides = [1, 1]} : vector<16x192xf32> to vector<2x96xf32>
    %cst_35 = arith.constant dense<0.000000e+00> : vector<2x96xf32>
    %86 = tpu.matmul %48, %8, %cst_35 {dimension_numbers = #tpu.dot_dimension_numbers<[1], [0], [0], [1], [0, 0, 1, 1], [], []>} : vector<2x32xf32>, vector<32x96xf32>, vector<2x96xf32> -> vector<2x96xf32>
    %87 = vector.broadcast %12 : vector<1x96xf32> to vector<2x96xf32>
    %88 = arith.addf %86, %87 : vector<2x96xf32>
    %89 = vector.extract_strided_slice %85 {offsets = [0, 0], sizes = [2, 32], strides = [1, 1]} : vector<2x96xf32> to vector<2x32xf32>
    %90 = vector.extract_strided_slice %88 {offsets = [0, 0], sizes = [2, 32], strides = [1, 1]} : vector<2x96xf32> to vector<2x32xf32>
    %91 = arith.addf %89, %90 : vector<2x32xf32>
    %cst_36 = arith.constant 0.000000e+00 : f32
    %92 = vector.broadcast %cst_36 : f32 to vector<2x32xf32>
    %93 = arith.subf %92, %91 : vector<2x32xf32>
    %94 = math.exp %93 : vector<2x32xf32>
    %cst_37 = arith.constant 1.000000e+00 : f32
    %95 = vector.broadcast %cst_37 : f32 to vector<2x32xf32>
    %96 = arith.addf %95, %94 : vector<2x32xf32>
    %cst_38 = arith.constant 1.000000e+00 : f32
    %97 = vector.broadcast %cst_38 : f32 to vector<2x32xf32>
    %98 = arith.divf %97, %96 : vector<2x32xf32>
    %99 = vector.extract_strided_slice %85 {offsets = [0, 32], sizes = [2, 32], strides = [1, 1]} : vector<2x96xf32> to vector<2x32xf32>
    %100 = vector.extract_strided_slice %88 {offsets = [0, 32], sizes = [2, 32], strides = [1, 1]} : vector<2x96xf32> to vector<2x32xf32>
    %101 = arith.addf %99, %100 : vector<2x32xf32>
    %cst_39 = arith.constant 0.000000e+00 : f32
    %102 = vector.broadcast %cst_39 : f32 to vector<2x32xf32>
    %103 = arith.subf %102, %101 : vector<2x32xf32>
    %104 = math.exp %103 : vector<2x32xf32>
    %cst_40 = arith.constant 1.000000e+00 : f32
    %105 = vector.broadcast %cst_40 : f32 to vector<2x32xf32>
    %106 = arith.addf %105, %104 : vector<2x32xf32>
    %cst_41 = arith.constant 1.000000e+00 : f32
    %107 = vector.broadcast %cst_41 : f32 to vector<2x32xf32>
    %108 = arith.divf %107, %106 : vector<2x32xf32>
    %109 = vector.extract_strided_slice %85 {offsets = [0, 64], sizes = [2, 32], strides = [1, 1]} : vector<2x96xf32> to vector<2x32xf32>
    %110 = vector.extract_strided_slice %88 {offsets = [0, 64], sizes = [2, 32], strides = [1, 1]} : vector<2x96xf32> to vector<2x32xf32>
    %111 = arith.mulf %98, %110 : vector<2x32xf32>
    %112 = arith.addf %109, %111 : vector<2x32xf32>
    %113 = math.tanh %112 : vector<2x32xf32>
    %cst_42 = arith.constant 1.000000e+00 : f32
    %114 = vector.broadcast %cst_42 : f32 to vector<2x32xf32>
    %115 = arith.subf %114, %108 : vector<2x32xf32>
    %116 = arith.mulf %115, %113 : vector<2x32xf32>
    %117 = arith.mulf %108, %48 : vector<2x32xf32>
    %118 = arith.addf %116, %117 : vector<2x32xf32>
    %c2 = arith.constant 2 : index
    %c0_43 = arith.constant 0 : index
    %119 = vector.load %arg10[%c2, %c0_43] : memref<16x64xf32, #tpu.memory_space<vmem>>, vector<2x32xf32>
    tpu.vector_store %arg10[%c2, %c0_43], %118 {strides = array<i32>} : memref<16x64xf32, #tpu.memory_space<vmem>>, vector<2x32xf32>,
    %120 = vector.extract_strided_slice %6 {offsets = [12, 96], sizes = [2, 96], strides = [1, 1]} : vector<16x192xf32> to vector<2x96xf32>
    %cst_44 = arith.constant dense<0.000000e+00> : vector<2x96xf32>
    %121 = tpu.matmul %83, %10, %cst_44 {dimension_numbers = #tpu.dot_dimension_numbers<[1], [0], [0], [1], [0, 0, 1, 1], [], []>} : vector<2x32xf32>, vector<32x96xf32>, vector<2x96xf32> -> vector<2x96xf32>
    %122 = vector.broadcast %14 : vector<1x96xf32> to vector<2x96xf32>
    %123 = arith.addf %121, %122 : vector<2x96xf32>
    %124 = vector.extract_strided_slice %120 {offsets = [0, 0], sizes = [2, 32], strides = [1, 1]} : vector<2x96xf32> to vector<2x32xf32>
    %125 = vector.extract_strided_slice %123 {offsets = [0, 0], sizes = [2, 32], strides = [1, 1]} : vector<2x96xf32> to vector<2x32xf32>
    %126 = arith.addf %124, %125 : vector<2x32xf32>
    %cst_45 = arith.constant 0.000000e+00 : f32
    %127 = vector.broadcast %cst_45 : f32 to vector<2x32xf32>
    %128 = arith.subf %127, %126 : vector<2x32xf32>
    %129 = math.exp %128 : vector<2x32xf32>
    %cst_46 = arith.constant 1.000000e+00 : f32
    %130 = vector.broadcast %cst_46 : f32 to vector<2x32xf32>
    %131 = arith.addf %130, %129 : vector<2x32xf32>
    %cst_47 = arith.constant 1.000000e+00 : f32
    %132 = vector.broadcast %cst_47 : f32 to vector<2x32xf32>
    %133 = arith.divf %132, %131 : vector<2x32xf32>
    %134 = vector.extract_strided_slice %120 {offsets = [0, 32], sizes = [2, 32], strides = [1, 1]} : vector<2x96xf32> to vector<2x32xf32>
    %135 = vector.extract_strided_slice %123 {offsets = [0, 32], sizes = [2, 32], strides = [1, 1]} : vector<2x96xf32> to vector<2x32xf32>
    %136 = arith.addf %134, %135 : vector<2x32xf32>
    %cst_48 = arith.constant 0.000000e+00 : f32
    %137 = vector.broadcast %cst_48 : f32 to vector<2x32xf32>
    %138 = arith.subf %137, %136 : vector<2x32xf32>
    %139 = math.exp %138 : vector<2x32xf32>
    %cst_49 = arith.constant 1.000000e+00 : f32
    %140 = vector.broadcast %cst_49 : f32 to vector<2x32xf32>
    %141 = arith.addf %140, %139 : vector<2x32xf32>
    %cst_50 = arith.constant 1.000000e+00 : f32
    %142 = vector.broadcast %cst_50 : f32 to vector<2x32xf32>
    %143 = arith.divf %142, %141 : vector<2x32xf32>
    %144 = vector.extract_strided_slice %120 {offsets = [0, 64], sizes = [2, 32], strides = [1, 1]} : vector<2x96xf32> to vector<2x32xf32>
    %145 = vector.extract_strided_slice %123 {offsets = [0, 64], sizes = [2, 32], strides = [1, 1]} : vector<2x96xf32> to vector<2x32xf32>
    %146 = arith.mulf %133, %145 : vector<2x32xf32>
    %147 = arith.addf %144, %146 : vector<2x32xf32>
    %148 = math.tanh %147 : vector<2x32xf32>
    %cst_51 = arith.constant 1.000000e+00 : f32
    %149 = vector.broadcast %cst_51 : f32 to vector<2x32xf32>
    %150 = arith.subf %149, %143 : vector<2x32xf32>
    %151 = arith.mulf %150, %148 : vector<2x32xf32>
    %152 = arith.mulf %143, %83 : vector<2x32xf32>
    %153 = arith.addf %151, %152 : vector<2x32xf32>
    %c12 = arith.constant 12 : index
    %c32_52 = arith.constant 32 : index
    %154 = vector.load %arg10[%c12, %c32_52] : memref<16x64xf32, #tpu.memory_space<vmem>>, vector<2x32xf32>
    tpu.vector_store %arg10[%c12, %c32_52], %153 {strides = array<i32>} : memref<16x64xf32, #tpu.memory_space<vmem>>, vector<2x32xf32>,
    %155 = vector.extract_strided_slice %6 {offsets = [4, 0], sizes = [2, 96], strides = [1, 1]} : vector<16x192xf32> to vector<2x96xf32>
    %cst_53 = arith.constant dense<0.000000e+00> : vector<2x96xf32>
    %156 = tpu.matmul %118, %8, %cst_53 {dimension_numbers = #tpu.dot_dimension_numbers<[1], [0], [0], [1], [0, 0, 1, 1], [], []>} : vector<2x32xf32>, vector<32x96xf32>, vector<2x96xf32> -> vector<2x96xf32>
    %157 = vector.broadcast %12 : vector<1x96xf32> to vector<2x96xf32>
    %158 = arith.addf %156, %157 : vector<2x96xf32>
    %159 = vector.extract_strided_slice %155 {offsets = [0, 0], sizes = [2, 32], strides = [1, 1]} : vector<2x96xf32> to vector<2x32xf32>
    %160 = vector.extract_strided_slice %158 {offsets = [0, 0], sizes = [2, 32], strides = [1, 1]} : vector<2x96xf32> to vector<2x32xf32>
    %161 = arith.addf %159, %160 : vector<2x32xf32>
    %cst_54 = arith.constant 0.000000e+00 : f32
    %162 = vector.broadcast %cst_54 : f32 to vector<2x32xf32>
    %163 = arith.subf %162, %161 : vector<2x32xf32>
    %164 = math.exp %163 : vector<2x32xf32>
    %cst_55 = arith.constant 1.000000e+00 : f32
    %165 = vector.broadcast %cst_55 : f32 to vector<2x32xf32>
    %166 = arith.addf %165, %164 : vector<2x32xf32>
    %cst_56 = arith.constant 1.000000e+00 : f32
    %167 = vector.broadcast %cst_56 : f32 to vector<2x32xf32>
    %168 = arith.divf %167, %166 : vector<2x32xf32>
    %169 = vector.extract_strided_slice %155 {offsets = [0, 32], sizes = [2, 32], strides = [1, 1]} : vector<2x96xf32> to vector<2x32xf32>
    %170 = vector.extract_strided_slice %158 {offsets = [0, 32], sizes = [2, 32], strides = [1, 1]} : vector<2x96xf32> to vector<2x32xf32>
    %171 = arith.addf %169, %170 : vector<2x32xf32>
    %cst_57 = arith.constant 0.000000e+00 : f32
    %172 = vector.broadcast %cst_57 : f32 to vector<2x32xf32>
    %173 = arith.subf %172, %171 : vector<2x32xf32>
    %174 = math.exp %173 : vector<2x32xf32>
    %cst_58 = arith.constant 1.000000e+00 : f32
    %175 = vector.broadcast %cst_58 : f32 to vector<2x32xf32>
    %176 = arith.addf %175, %174 : vector<2x32xf32>
    %cst_59 = arith.constant 1.000000e+00 : f32
    %177 = vector.broadcast %cst_59 : f32 to vector<2x32xf32>
    %178 = arith.divf %177, %176 : vector<2x32xf32>
    %179 = vector.extract_strided_slice %155 {offsets = [0, 64], sizes = [2, 32], strides = [1, 1]} : vector<2x96xf32> to vector<2x32xf32>
    %180 = vector.extract_strided_slice %158 {offsets = [0, 64], sizes = [2, 32], strides = [1, 1]} : vector<2x96xf32> to vector<2x32xf32>
    %181 = arith.mulf %168, %180 : vector<2x32xf32>
    %182 = arith.addf %179, %181 : vector<2x32xf32>
    %183 = math.tanh %182 : vector<2x32xf32>
    %cst_60 = arith.constant 1.000000e+00 : f32
    %184 = vector.broadcast %cst_60 : f32 to vector<2x32xf32>
    %185 = arith.subf %184, %178 : vector<2x32xf32>
    %186 = arith.mulf %185, %183 : vector<2x32xf32>
    %187 = arith.mulf %178, %118 : vector<2x32xf32>
    %188 = arith.addf %186, %187 : vector<2x32xf32>
    %c4 = arith.constant 4 : index
    %c0_61 = arith.constant 0 : index
    %189 = vector.load %arg10[%c4, %c0_61] : memref<16x64xf32, #tpu.memory_space<vmem>>, vector<2x32xf32>
    tpu.vector_store %arg10[%c4, %c0_61], %188 {strides = array<i32>} : memref<16x64xf32, #tpu.memory_space<vmem>>, vector<2x32xf32>,
    %190 = vector.extract_strided_slice %6 {offsets = [10, 96], sizes = [2, 96], strides = [1, 1]} : vector<16x192xf32> to vector<2x96xf32>
    %cst_62 = arith.constant dense<0.000000e+00> : vector<2x96xf32>
    %191 = tpu.matmul %153, %10, %cst_62 {dimension_numbers = #tpu.dot_dimension_numbers<[1], [0], [0], [1], [0, 0, 1, 1], [], []>} : vector<2x32xf32>, vector<32x96xf32>, vector<2x96xf32> -> vector<2x96xf32>
    %192 = vector.broadcast %14 : vector<1x96xf32> to vector<2x96xf32>
    %193 = arith.addf %191, %192 : vector<2x96xf32>
    %194 = vector.extract_strided_slice %190 {offsets = [0, 0], sizes = [2, 32], strides = [1, 1]} : vector<2x96xf32> to vector<2x32xf32>
    %195 = vector.extract_strided_slice %193 {offsets = [0, 0], sizes = [2, 32], strides = [1, 1]} : vector<2x96xf32> to vector<2x32xf32>
    %196 = arith.addf %194, %195 : vector<2x32xf32>
    %cst_63 = arith.constant 0.000000e+00 : f32
    %197 = vector.broadcast %cst_63 : f32 to vector<2x32xf32>
    %198 = arith.subf %197, %196 : vector<2x32xf32>
    %199 = math.exp %198 : vector<2x32xf32>
    %cst_64 = arith.constant 1.000000e+00 : f32
    %200 = vector.broadcast %cst_64 : f32 to vector<2x32xf32>
    %201 = arith.addf %200, %199 : vector<2x32xf32>
    %cst_65 = arith.constant 1.000000e+00 : f32
    %202 = vector.broadcast %cst_65 : f32 to vector<2x32xf32>
    %203 = arith.divf %202, %201 : vector<2x32xf32>
    %204 = vector.extract_strided_slice %190 {offsets = [0, 32], sizes = [2, 32], strides = [1, 1]} : vector<2x96xf32> to vector<2x32xf32>
    %205 = vector.extract_strided_slice %193 {offsets = [0, 32], sizes = [2, 32], strides = [1, 1]} : vector<2x96xf32> to vector<2x32xf32>
    %206 = arith.addf %204, %205 : vector<2x32xf32>
    %cst_66 = arith.constant 0.000000e+00 : f32
    %207 = vector.broadcast %cst_66 : f32 to vector<2x32xf32>
    %208 = arith.subf %207, %206 : vector<2x32xf32>
    %209 = math.exp %208 : vector<2x32xf32>
    %cst_67 = arith.constant 1.000000e+00 : f32
    %210 = vector.broadcast %cst_67 : f32 to vector<2x32xf32>
    %211 = arith.addf %210, %209 : vector<2x32xf32>
    %cst_68 = arith.constant 1.000000e+00 : f32
    %212 = vector.broadcast %cst_68 : f32 to vector<2x32xf32>
    %213 = arith.divf %212, %211 : vector<2x32xf32>
    %214 = vector.extract_strided_slice %190 {offsets = [0, 64], sizes = [2, 32], strides = [1, 1]} : vector<2x96xf32> to vector<2x32xf32>
    %215 = vector.extract_strided_slice %193 {offsets = [0, 64], sizes = [2, 32], strides = [1, 1]} : vector<2x96xf32> to vector<2x32xf32>
    %216 = arith.mulf %203, %215 : vector<2x32xf32>
    %217 = arith.addf %214, %216 : vector<2x32xf32>
    %218 = math.tanh %217 : vector<2x32xf32>
    %cst_69 = arith.constant 1.000000e+00 : f32
    %219 = vector.broadcast %cst_69 : f32 to vector<2x32xf32>
    %220 = arith.subf %219, %213 : vector<2x32xf32>
    %221 = arith.mulf %220, %218 : vector<2x32xf32>
    %222 = arith.mulf %213, %153 : vector<2x32xf32>
    %223 = arith.addf %221, %222 : vector<2x32xf32>
    %c10 = arith.constant 10 : index
    %c32_70 = arith.constant 32 : index
    %224 = vector.load %arg10[%c10, %c32_70] : memref<16x64xf32, #tpu.memory_space<vmem>>, vector<2x32xf32>
    tpu.vector_store %arg10[%c10, %c32_70], %223 {strides = array<i32>} : memref<16x64xf32, #tpu.memory_space<vmem>>, vector<2x32xf32>,
    %225 = vector.extract_strided_slice %6 {offsets = [6, 0], sizes = [2, 96], strides = [1, 1]} : vector<16x192xf32> to vector<2x96xf32>
    %cst_71 = arith.constant dense<0.000000e+00> : vector<2x96xf32>
    %226 = tpu.matmul %188, %8, %cst_71 {dimension_numbers = #tpu.dot_dimension_numbers<[1], [0], [0], [1], [0, 0, 1, 1], [], []>} : vector<2x32xf32>, vector<32x96xf32>, vector<2x96xf32> -> vector<2x96xf32>
    %227 = vector.broadcast %12 : vector<1x96xf32> to vector<2x96xf32>
    %228 = arith.addf %226, %227 : vector<2x96xf32>
    %229 = vector.extract_strided_slice %225 {offsets = [0, 0], sizes = [2, 32], strides = [1, 1]} : vector<2x96xf32> to vector<2x32xf32>
    %230 = vector.extract_strided_slice %228 {offsets = [0, 0], sizes = [2, 32], strides = [1, 1]} : vector<2x96xf32> to vector<2x32xf32>
    %231 = arith.addf %229, %230 : vector<2x32xf32>
    %cst_72 = arith.constant 0.000000e+00 : f32
    %232 = vector.broadcast %cst_72 : f32 to vector<2x32xf32>
    %233 = arith.subf %232, %231 : vector<2x32xf32>
    %234 = math.exp %233 : vector<2x32xf32>
    %cst_73 = arith.constant 1.000000e+00 : f32
    %235 = vector.broadcast %cst_73 : f32 to vector<2x32xf32>
    %236 = arith.addf %235, %234 : vector<2x32xf32>
    %cst_74 = arith.constant 1.000000e+00 : f32
    %237 = vector.broadcast %cst_74 : f32 to vector<2x32xf32>
    %238 = arith.divf %237, %236 : vector<2x32xf32>
    %239 = vector.extract_strided_slice %225 {offsets = [0, 32], sizes = [2, 32], strides = [1, 1]} : vector<2x96xf32> to vector<2x32xf32>
    %240 = vector.extract_strided_slice %228 {offsets = [0, 32], sizes = [2, 32], strides = [1, 1]} : vector<2x96xf32> to vector<2x32xf32>
    %241 = arith.addf %239, %240 : vector<2x32xf32>
    %cst_75 = arith.constant 0.000000e+00 : f32
    %242 = vector.broadcast %cst_75 : f32 to vector<2x32xf32>
    %243 = arith.subf %242, %241 : vector<2x32xf32>
    %244 = math.exp %243 : vector<2x32xf32>
    %cst_76 = arith.constant 1.000000e+00 : f32
    %245 = vector.broadcast %cst_76 : f32 to vector<2x32xf32>
    %246 = arith.addf %245, %244 : vector<2x32xf32>
    %cst_77 = arith.constant 1.000000e+00 : f32
    %247 = vector.broadcast %cst_77 : f32 to vector<2x32xf32>
    %248 = arith.divf %247, %246 : vector<2x32xf32>
    %249 = vector.extract_strided_slice %225 {offsets = [0, 64], sizes = [2, 32], strides = [1, 1]} : vector<2x96xf32> to vector<2x32xf32>
    %250 = vector.extract_strided_slice %228 {offsets = [0, 64], sizes = [2, 32], strides = [1, 1]} : vector<2x96xf32> to vector<2x32xf32>
    %251 = arith.mulf %238, %250 : vector<2x32xf32>
    %252 = arith.addf %249, %251 : vector<2x32xf32>
    %253 = math.tanh %252 : vector<2x32xf32>
    %cst_78 = arith.constant 1.000000e+00 : f32
    %254 = vector.broadcast %cst_78 : f32 to vector<2x32xf32>
    %255 = arith.subf %254, %248 : vector<2x32xf32>
    %256 = arith.mulf %255, %253 : vector<2x32xf32>
    %257 = arith.mulf %248, %188 : vector<2x32xf32>
    %258 = arith.addf %256, %257 : vector<2x32xf32>
    %c6 = arith.constant 6 : index
    %c0_79 = arith.constant 0 : index
    %259 = vector.load %arg10[%c6, %c0_79] : memref<16x64xf32, #tpu.memory_space<vmem>>, vector<2x32xf32>
    tpu.vector_store %arg10[%c6, %c0_79], %258 {strides = array<i32>} : memref<16x64xf32, #tpu.memory_space<vmem>>, vector<2x32xf32>,
    %260 = vector.extract_strided_slice %6 {offsets = [8, 96], sizes = [2, 96], strides = [1, 1]} : vector<16x192xf32> to vector<2x96xf32>
    %cst_80 = arith.constant dense<0.000000e+00> : vector<2x96xf32>
    %261 = tpu.matmul %223, %10, %cst_80 {dimension_numbers = #tpu.dot_dimension_numbers<[1], [0], [0], [1], [0, 0, 1, 1], [], []>} : vector<2x32xf32>, vector<32x96xf32>, vector<2x96xf32> -> vector<2x96xf32>
    %262 = vector.broadcast %14 : vector<1x96xf32> to vector<2x96xf32>
    %263 = arith.addf %261, %262 : vector<2x96xf32>
    %264 = vector.extract_strided_slice %260 {offsets = [0, 0], sizes = [2, 32], strides = [1, 1]} : vector<2x96xf32> to vector<2x32xf32>
    %265 = vector.extract_strided_slice %263 {offsets = [0, 0], sizes = [2, 32], strides = [1, 1]} : vector<2x96xf32> to vector<2x32xf32>
    %266 = arith.addf %264, %265 : vector<2x32xf32>
    %cst_81 = arith.constant 0.000000e+00 : f32
    %267 = vector.broadcast %cst_81 : f32 to vector<2x32xf32>
    %268 = arith.subf %267, %266 : vector<2x32xf32>
    %269 = math.exp %268 : vector<2x32xf32>
    %cst_82 = arith.constant 1.000000e+00 : f32
    %270 = vector.broadcast %cst_82 : f32 to vector<2x32xf32>
    %271 = arith.addf %270, %269 : vector<2x32xf32>
    %cst_83 = arith.constant 1.000000e+00 : f32
    %272 = vector.broadcast %cst_83 : f32 to vector<2x32xf32>
    %273 = arith.divf %272, %271 : vector<2x32xf32>
    %274 = vector.extract_strided_slice %260 {offsets = [0, 32], sizes = [2, 32], strides = [1, 1]} : vector<2x96xf32> to vector<2x32xf32>
    %275 = vector.extract_strided_slice %263 {offsets = [0, 32], sizes = [2, 32], strides = [1, 1]} : vector<2x96xf32> to vector<2x32xf32>
    %276 = arith.addf %274, %275 : vector<2x32xf32>
    %cst_84 = arith.constant 0.000000e+00 : f32
    %277 = vector.broadcast %cst_84 : f32 to vector<2x32xf32>
    %278 = arith.subf %277, %276 : vector<2x32xf32>
    %279 = math.exp %278 : vector<2x32xf32>
    %cst_85 = arith.constant 1.000000e+00 : f32
    %280 = vector.broadcast %cst_85 : f32 to vector<2x32xf32>
    %281 = arith.addf %280, %279 : vector<2x32xf32>
    %cst_86 = arith.constant 1.000000e+00 : f32
    %282 = vector.broadcast %cst_86 : f32 to vector<2x32xf32>
    %283 = arith.divf %282, %281 : vector<2x32xf32>
    %284 = vector.extract_strided_slice %260 {offsets = [0, 64], sizes = [2, 32], strides = [1, 1]} : vector<2x96xf32> to vector<2x32xf32>
    %285 = vector.extract_strided_slice %263 {offsets = [0, 64], sizes = [2, 32], strides = [1, 1]} : vector<2x96xf32> to vector<2x32xf32>
    %286 = arith.mulf %273, %285 : vector<2x32xf32>
    %287 = arith.addf %284, %286 : vector<2x32xf32>
    %288 = math.tanh %287 : vector<2x32xf32>
    %cst_87 = arith.constant 1.000000e+00 : f32
    %289 = vector.broadcast %cst_87 : f32 to vector<2x32xf32>
    %290 = arith.subf %289, %283 : vector<2x32xf32>
    %291 = arith.mulf %290, %288 : vector<2x32xf32>
    %292 = arith.mulf %283, %223 : vector<2x32xf32>
    %293 = arith.addf %291, %292 : vector<2x32xf32>
    %c8 = arith.constant 8 : index
    %c32_88 = arith.constant 32 : index
    %294 = vector.load %arg10[%c8, %c32_88] : memref<16x64xf32, #tpu.memory_space<vmem>>, vector<2x32xf32>
    tpu.vector_store %arg10[%c8, %c32_88], %293 {strides = array<i32>} : memref<16x64xf32, #tpu.memory_space<vmem>>, vector<2x32xf32>,
    %295 = vector.extract_strided_slice %6 {offsets = [8, 0], sizes = [2, 96], strides = [1, 1]} : vector<16x192xf32> to vector<2x96xf32>
    %cst_89 = arith.constant dense<0.000000e+00> : vector<2x96xf32>
    %296 = tpu.matmul %258, %8, %cst_89 {dimension_numbers = #tpu.dot_dimension_numbers<[1], [0], [0], [1], [0, 0, 1, 1], [], []>} : vector<2x32xf32>, vector<32x96xf32>, vector<2x96xf32> -> vector<2x96xf32>
    %297 = vector.broadcast %12 : vector<1x96xf32> to vector<2x96xf32>
    %298 = arith.addf %296, %297 : vector<2x96xf32>
    %299 = vector.extract_strided_slice %295 {offsets = [0, 0], sizes = [2, 32], strides = [1, 1]} : vector<2x96xf32> to vector<2x32xf32>
    %300 = vector.extract_strided_slice %298 {offsets = [0, 0], sizes = [2, 32], strides = [1, 1]} : vector<2x96xf32> to vector<2x32xf32>
    %301 = arith.addf %299, %300 : vector<2x32xf32>
    %cst_90 = arith.constant 0.000000e+00 : f32
    %302 = vector.broadcast %cst_90 : f32 to vector<2x32xf32>
    %303 = arith.subf %302, %301 : vector<2x32xf32>
    %304 = math.exp %303 : vector<2x32xf32>
    %cst_91 = arith.constant 1.000000e+00 : f32
    %305 = vector.broadcast %cst_91 : f32 to vector<2x32xf32>
    %306 = arith.addf %305, %304 : vector<2x32xf32>
    %cst_92 = arith.constant 1.000000e+00 : f32
    %307 = vector.broadcast %cst_92 : f32 to vector<2x32xf32>
    %308 = arith.divf %307, %306 : vector<2x32xf32>
    %309 = vector.extract_strided_slice %295 {offsets = [0, 32], sizes = [2, 32], strides = [1, 1]} : vector<2x96xf32> to vector<2x32xf32>
    %310 = vector.extract_strided_slice %298 {offsets = [0, 32], sizes = [2, 32], strides = [1, 1]} : vector<2x96xf32> to vector<2x32xf32>
    %311 = arith.addf %309, %310 : vector<2x32xf32>
    %cst_93 = arith.constant 0.000000e+00 : f32
    %312 = vector.broadcast %cst_93 : f32 to vector<2x32xf32>
    %313 = arith.subf %312, %311 : vector<2x32xf32>
    %314 = math.exp %313 : vector<2x32xf32>
    %cst_94 = arith.constant 1.000000e+00 : f32
    %315 = vector.broadcast %cst_94 : f32 to vector<2x32xf32>
    %316 = arith.addf %315, %314 : vector<2x32xf32>
    %cst_95 = arith.constant 1.000000e+00 : f32
    %317 = vector.broadcast %cst_95 : f32 to vector<2x32xf32>
    %318 = arith.divf %317, %316 : vector<2x32xf32>
    %319 = vector.extract_strided_slice %295 {offsets = [0, 64], sizes = [2, 32], strides = [1, 1]} : vector<2x96xf32> to vector<2x32xf32>
    %320 = vector.extract_strided_slice %298 {offsets = [0, 64], sizes = [2, 32], strides = [1, 1]} : vector<2x96xf32> to vector<2x32xf32>
    %321 = arith.mulf %308, %320 : vector<2x32xf32>
    %322 = arith.addf %319, %321 : vector<2x32xf32>
    %323 = math.tanh %322 : vector<2x32xf32>
    %cst_96 = arith.constant 1.000000e+00 : f32
    %324 = vector.broadcast %cst_96 : f32 to vector<2x32xf32>
    %325 = arith.subf %324, %318 : vector<2x32xf32>
    %326 = arith.mulf %325, %323 : vector<2x32xf32>
    %327 = arith.mulf %318, %258 : vector<2x32xf32>
    %328 = arith.addf %326, %327 : vector<2x32xf32>
    %c8_97 = arith.constant 8 : index
    %c0_98 = arith.constant 0 : index
    %329 = vector.load %arg10[%c8_97, %c0_98] : memref<16x64xf32, #tpu.memory_space<vmem>>, vector<2x32xf32>
    tpu.vector_store %arg10[%c8_97, %c0_98], %328 {strides = array<i32>} : memref<16x64xf32, #tpu.memory_space<vmem>>, vector<2x32xf32>,
    %330 = vector.extract_strided_slice %6 {offsets = [6, 96], sizes = [2, 96], strides = [1, 1]} : vector<16x192xf32> to vector<2x96xf32>
    %cst_99 = arith.constant dense<0.000000e+00> : vector<2x96xf32>
    %331 = tpu.matmul %293, %10, %cst_99 {dimension_numbers = #tpu.dot_dimension_numbers<[1], [0], [0], [1], [0, 0, 1, 1], [], []>} : vector<2x32xf32>, vector<32x96xf32>, vector<2x96xf32> -> vector<2x96xf32>
    %332 = vector.broadcast %14 : vector<1x96xf32> to vector<2x96xf32>
    %333 = arith.addf %331, %332 : vector<2x96xf32>
    %334 = vector.extract_strided_slice %330 {offsets = [0, 0], sizes = [2, 32], strides = [1, 1]} : vector<2x96xf32> to vector<2x32xf32>
    %335 = vector.extract_strided_slice %333 {offsets = [0, 0], sizes = [2, 32], strides = [1, 1]} : vector<2x96xf32> to vector<2x32xf32>
    %336 = arith.addf %334, %335 : vector<2x32xf32>
    %cst_100 = arith.constant 0.000000e+00 : f32
    %337 = vector.broadcast %cst_100 : f32 to vector<2x32xf32>
    %338 = arith.subf %337, %336 : vector<2x32xf32>
    %339 = math.exp %338 : vector<2x32xf32>
    %cst_101 = arith.constant 1.000000e+00 : f32
    %340 = vector.broadcast %cst_101 : f32 to vector<2x32xf32>
    %341 = arith.addf %340, %339 : vector<2x32xf32>
    %cst_102 = arith.constant 1.000000e+00 : f32
    %342 = vector.broadcast %cst_102 : f32 to vector<2x32xf32>
    %343 = arith.divf %342, %341 : vector<2x32xf32>
    %344 = vector.extract_strided_slice %330 {offsets = [0, 32], sizes = [2, 32], strides = [1, 1]} : vector<2x96xf32> to vector<2x32xf32>
    %345 = vector.extract_strided_slice %333 {offsets = [0, 32], sizes = [2, 32], strides = [1, 1]} : vector<2x96xf32> to vector<2x32xf32>
    %346 = arith.addf %344, %345 : vector<2x32xf32>
    %cst_103 = arith.constant 0.000000e+00 : f32
    %347 = vector.broadcast %cst_103 : f32 to vector<2x32xf32>
    %348 = arith.subf %347, %346 : vector<2x32xf32>
    %349 = math.exp %348 : vector<2x32xf32>
    %cst_104 = arith.constant 1.000000e+00 : f32
    %350 = vector.broadcast %cst_104 : f32 to vector<2x32xf32>
    %351 = arith.addf %350, %349 : vector<2x32xf32>
    %cst_105 = arith.constant 1.000000e+00 : f32
    %352 = vector.broadcast %cst_105 : f32 to vector<2x32xf32>
    %353 = arith.divf %352, %351 : vector<2x32xf32>
    %354 = vector.extract_strided_slice %330 {offsets = [0, 64], sizes = [2, 32], strides = [1, 1]} : vector<2x96xf32> to vector<2x32xf32>
    %355 = vector.extract_strided_slice %333 {offsets = [0, 64], sizes = [2, 32], strides = [1, 1]} : vector<2x96xf32> to vector<2x32xf32>
    %356 = arith.mulf %343, %355 : vector<2x32xf32>
    %357 = arith.addf %354, %356 : vector<2x32xf32>
    %358 = math.tanh %357 : vector<2x32xf32>
    %cst_106 = arith.constant 1.000000e+00 : f32
    %359 = vector.broadcast %cst_106 : f32 to vector<2x32xf32>
    %360 = arith.subf %359, %353 : vector<2x32xf32>
    %361 = arith.mulf %360, %358 : vector<2x32xf32>
    %362 = arith.mulf %353, %293 : vector<2x32xf32>
    %363 = arith.addf %361, %362 : vector<2x32xf32>
    %c6_107 = arith.constant 6 : index
    %c32_108 = arith.constant 32 : index
    %364 = vector.load %arg10[%c6_107, %c32_108] : memref<16x64xf32, #tpu.memory_space<vmem>>, vector<2x32xf32>
    tpu.vector_store %arg10[%c6_107, %c32_108], %363 {strides = array<i32>} : memref<16x64xf32, #tpu.memory_space<vmem>>, vector<2x32xf32>,
    %365 = vector.extract_strided_slice %6 {offsets = [10, 0], sizes = [2, 96], strides = [1, 1]} : vector<16x192xf32> to vector<2x96xf32>
    %cst_109 = arith.constant dense<0.000000e+00> : vector<2x96xf32>
    %366 = tpu.matmul %328, %8, %cst_109 {dimension_numbers = #tpu.dot_dimension_numbers<[1], [0], [0], [1], [0, 0, 1, 1], [], []>} : vector<2x32xf32>, vector<32x96xf32>, vector<2x96xf32> -> vector<2x96xf32>
    %367 = vector.broadcast %12 : vector<1x96xf32> to vector<2x96xf32>
    %368 = arith.addf %366, %367 : vector<2x96xf32>
    %369 = vector.extract_strided_slice %365 {offsets = [0, 0], sizes = [2, 32], strides = [1, 1]} : vector<2x96xf32> to vector<2x32xf32>
    %370 = vector.extract_strided_slice %368 {offsets = [0, 0], sizes = [2, 32], strides = [1, 1]} : vector<2x96xf32> to vector<2x32xf32>
    %371 = arith.addf %369, %370 : vector<2x32xf32>
    %cst_110 = arith.constant 0.000000e+00 : f32
    %372 = vector.broadcast %cst_110 : f32 to vector<2x32xf32>
    %373 = arith.subf %372, %371 : vector<2x32xf32>
    %374 = math.exp %373 : vector<2x32xf32>
    %cst_111 = arith.constant 1.000000e+00 : f32
    %375 = vector.broadcast %cst_111 : f32 to vector<2x32xf32>
    %376 = arith.addf %375, %374 : vector<2x32xf32>
    %cst_112 = arith.constant 1.000000e+00 : f32
    %377 = vector.broadcast %cst_112 : f32 to vector<2x32xf32>
    %378 = arith.divf %377, %376 : vector<2x32xf32>
    %379 = vector.extract_strided_slice %365 {offsets = [0, 32], sizes = [2, 32], strides = [1, 1]} : vector<2x96xf32> to vector<2x32xf32>
    %380 = vector.extract_strided_slice %368 {offsets = [0, 32], sizes = [2, 32], strides = [1, 1]} : vector<2x96xf32> to vector<2x32xf32>
    %381 = arith.addf %379, %380 : vector<2x32xf32>
    %cst_113 = arith.constant 0.000000e+00 : f32
    %382 = vector.broadcast %cst_113 : f32 to vector<2x32xf32>
    %383 = arith.subf %382, %381 : vector<2x32xf32>
    %384 = math.exp %383 : vector<2x32xf32>
    %cst_114 = arith.constant 1.000000e+00 : f32
    %385 = vector.broadcast %cst_114 : f32 to vector<2x32xf32>
    %386 = arith.addf %385, %384 : vector<2x32xf32>
    %cst_115 = arith.constant 1.000000e+00 : f32
    %387 = vector.broadcast %cst_115 : f32 to vector<2x32xf32>
    %388 = arith.divf %387, %386 : vector<2x32xf32>
    %389 = vector.extract_strided_slice %365 {offsets = [0, 64], sizes = [2, 32], strides = [1, 1]} : vector<2x96xf32> to vector<2x32xf32>
    %390 = vector.extract_strided_slice %368 {offsets = [0, 64], sizes = [2, 32], strides = [1, 1]} : vector<2x96xf32> to vector<2x32xf32>
    %391 = arith.mulf %378, %390 : vector<2x32xf32>
    %392 = arith.addf %389, %391 : vector<2x32xf32>
    %393 = math.tanh %392 : vector<2x32xf32>
    %cst_116 = arith.constant 1.000000e+00 : f32
    %394 = vector.broadcast %cst_116 : f32 to vector<2x32xf32>
    %395 = arith.subf %394, %388 : vector<2x32xf32>
    %396 = arith.mulf %395, %393 : vector<2x32xf32>
    %397 = arith.mulf %388, %328 : vector<2x32xf32>
    %398 = arith.addf %396, %397 : vector<2x32xf32>
    %c10_117 = arith.constant 10 : index
    %c0_118 = arith.constant 0 : index
    %399 = vector.load %arg10[%c10_117, %c0_118] : memref<16x64xf32, #tpu.memory_space<vmem>>, vector<2x32xf32>
    tpu.vector_store %arg10[%c10_117, %c0_118], %398 {strides = array<i32>} : memref<16x64xf32, #tpu.memory_space<vmem>>, vector<2x32xf32>,
    %400 = vector.extract_strided_slice %6 {offsets = [4, 96], sizes = [2, 96], strides = [1, 1]} : vector<16x192xf32> to vector<2x96xf32>
    %cst_119 = arith.constant dense<0.000000e+00> : vector<2x96xf32>
    %401 = tpu.matmul %363, %10, %cst_119 {dimension_numbers = #tpu.dot_dimension_numbers<[1], [0], [0], [1], [0, 0, 1, 1], [], []>} : vector<2x32xf32>, vector<32x96xf32>, vector<2x96xf32> -> vector<2x96xf32>
    %402 = vector.broadcast %14 : vector<1x96xf32> to vector<2x96xf32>
    %403 = arith.addf %401, %402 : vector<2x96xf32>
    %404 = vector.extract_strided_slice %400 {offsets = [0, 0], sizes = [2, 32], strides = [1, 1]} : vector<2x96xf32> to vector<2x32xf32>
    %405 = vector.extract_strided_slice %403 {offsets = [0, 0], sizes = [2, 32], strides = [1, 1]} : vector<2x96xf32> to vector<2x32xf32>
    %406 = arith.addf %404, %405 : vector<2x32xf32>
    %cst_120 = arith.constant 0.000000e+00 : f32
    %407 = vector.broadcast %cst_120 : f32 to vector<2x32xf32>
    %408 = arith.subf %407, %406 : vector<2x32xf32>
    %409 = math.exp %408 : vector<2x32xf32>
    %cst_121 = arith.constant 1.000000e+00 : f32
    %410 = vector.broadcast %cst_121 : f32 to vector<2x32xf32>
    %411 = arith.addf %410, %409 : vector<2x32xf32>
    %cst_122 = arith.constant 1.000000e+00 : f32
    %412 = vector.broadcast %cst_122 : f32 to vector<2x32xf32>
    %413 = arith.divf %412, %411 : vector<2x32xf32>
    %414 = vector.extract_strided_slice %400 {offsets = [0, 32], sizes = [2, 32], strides = [1, 1]} : vector<2x96xf32> to vector<2x32xf32>
    %415 = vector.extract_strided_slice %403 {offsets = [0, 32], sizes = [2, 32], strides = [1, 1]} : vector<2x96xf32> to vector<2x32xf32>
    %416 = arith.addf %414, %415 : vector<2x32xf32>
    %cst_123 = arith.constant 0.000000e+00 : f32
    %417 = vector.broadcast %cst_123 : f32 to vector<2x32xf32>
    %418 = arith.subf %417, %416 : vector<2x32xf32>
    %419 = math.exp %418 : vector<2x32xf32>
    %cst_124 = arith.constant 1.000000e+00 : f32
    %420 = vector.broadcast %cst_124 : f32 to vector<2x32xf32>
    %421 = arith.addf %420, %419 : vector<2x32xf32>
    %cst_125 = arith.constant 1.000000e+00 : f32
    %422 = vector.broadcast %cst_125 : f32 to vector<2x32xf32>
    %423 = arith.divf %422, %421 : vector<2x32xf32>
    %424 = vector.extract_strided_slice %400 {offsets = [0, 64], sizes = [2, 32], strides = [1, 1]} : vector<2x96xf32> to vector<2x32xf32>
    %425 = vector.extract_strided_slice %403 {offsets = [0, 64], sizes = [2, 32], strides = [1, 1]} : vector<2x96xf32> to vector<2x32xf32>
    %426 = arith.mulf %413, %425 : vector<2x32xf32>
    %427 = arith.addf %424, %426 : vector<2x32xf32>
    %428 = math.tanh %427 : vector<2x32xf32>
    %cst_126 = arith.constant 1.000000e+00 : f32
    %429 = vector.broadcast %cst_126 : f32 to vector<2x32xf32>
    %430 = arith.subf %429, %423 : vector<2x32xf32>
    %431 = arith.mulf %430, %428 : vector<2x32xf32>
    %432 = arith.mulf %423, %363 : vector<2x32xf32>
    %433 = arith.addf %431, %432 : vector<2x32xf32>
    %c4_127 = arith.constant 4 : index
    %c32_128 = arith.constant 32 : index
    %434 = vector.load %arg10[%c4_127, %c32_128] : memref<16x64xf32, #tpu.memory_space<vmem>>, vector<2x32xf32>
    tpu.vector_store %arg10[%c4_127, %c32_128], %433 {strides = array<i32>} : memref<16x64xf32, #tpu.memory_space<vmem>>, vector<2x32xf32>,
    %435 = vector.extract_strided_slice %6 {offsets = [12, 0], sizes = [2, 96], strides = [1, 1]} : vector<16x192xf32> to vector<2x96xf32>
    %cst_129 = arith.constant dense<0.000000e+00> : vector<2x96xf32>
    %436 = tpu.matmul %398, %8, %cst_129 {dimension_numbers = #tpu.dot_dimension_numbers<[1], [0], [0], [1], [0, 0, 1, 1], [], []>} : vector<2x32xf32>, vector<32x96xf32>, vector<2x96xf32> -> vector<2x96xf32>
    %437 = vector.broadcast %12 : vector<1x96xf32> to vector<2x96xf32>
    %438 = arith.addf %436, %437 : vector<2x96xf32>
    %439 = vector.extract_strided_slice %435 {offsets = [0, 0], sizes = [2, 32], strides = [1, 1]} : vector<2x96xf32> to vector<2x32xf32>
    %440 = vector.extract_strided_slice %438 {offsets = [0, 0], sizes = [2, 32], strides = [1, 1]} : vector<2x96xf32> to vector<2x32xf32>
    %441 = arith.addf %439, %440 : vector<2x32xf32>
    %cst_130 = arith.constant 0.000000e+00 : f32
    %442 = vector.broadcast %cst_130 : f32 to vector<2x32xf32>
    %443 = arith.subf %442, %441 : vector<2x32xf32>
    %444 = math.exp %443 : vector<2x32xf32>
    %cst_131 = arith.constant 1.000000e+00 : f32
    %445 = vector.broadcast %cst_131 : f32 to vector<2x32xf32>
    %446 = arith.addf %445, %444 : vector<2x32xf32>
    %cst_132 = arith.constant 1.000000e+00 : f32
    %447 = vector.broadcast %cst_132 : f32 to vector<2x32xf32>
    %448 = arith.divf %447, %446 : vector<2x32xf32>
    %449 = vector.extract_strided_slice %435 {offsets = [0, 32], sizes = [2, 32], strides = [1, 1]} : vector<2x96xf32> to vector<2x32xf32>
    %450 = vector.extract_strided_slice %438 {offsets = [0, 32], sizes = [2, 32], strides = [1, 1]} : vector<2x96xf32> to vector<2x32xf32>
    %451 = arith.addf %449, %450 : vector<2x32xf32>
    %cst_133 = arith.constant 0.000000e+00 : f32
    %452 = vector.broadcast %cst_133 : f32 to vector<2x32xf32>
    %453 = arith.subf %452, %451 : vector<2x32xf32>
    %454 = math.exp %453 : vector<2x32xf32>
    %cst_134 = arith.constant 1.000000e+00 : f32
    %455 = vector.broadcast %cst_134 : f32 to vector<2x32xf32>
    %456 = arith.addf %455, %454 : vector<2x32xf32>
    %cst_135 = arith.constant 1.000000e+00 : f32
    %457 = vector.broadcast %cst_135 : f32 to vector<2x32xf32>
    %458 = arith.divf %457, %456 : vector<2x32xf32>
    %459 = vector.extract_strided_slice %435 {offsets = [0, 64], sizes = [2, 32], strides = [1, 1]} : vector<2x96xf32> to vector<2x32xf32>
    %460 = vector.extract_strided_slice %438 {offsets = [0, 64], sizes = [2, 32], strides = [1, 1]} : vector<2x96xf32> to vector<2x32xf32>
    %461 = arith.mulf %448, %460 : vector<2x32xf32>
    %462 = arith.addf %459, %461 : vector<2x32xf32>
    %463 = math.tanh %462 : vector<2x32xf32>
    %cst_136 = arith.constant 1.000000e+00 : f32
    %464 = vector.broadcast %cst_136 : f32 to vector<2x32xf32>
    %465 = arith.subf %464, %458 : vector<2x32xf32>
    %466 = arith.mulf %465, %463 : vector<2x32xf32>
    %467 = arith.mulf %458, %398 : vector<2x32xf32>
    %468 = arith.addf %466, %467 : vector<2x32xf32>
    %c12_137 = arith.constant 12 : index
    %c0_138 = arith.constant 0 : index
    %469 = vector.load %arg10[%c12_137, %c0_138] : memref<16x64xf32, #tpu.memory_space<vmem>>, vector<2x32xf32>
    tpu.vector_store %arg10[%c12_137, %c0_138], %468 {strides = array<i32>} : memref<16x64xf32, #tpu.memory_space<vmem>>, vector<2x32xf32>,
    %470 = vector.extract_strided_slice %6 {offsets = [2, 96], sizes = [2, 96], strides = [1, 1]} : vector<16x192xf32> to vector<2x96xf32>
    %cst_139 = arith.constant dense<0.000000e+00> : vector<2x96xf32>
    %471 = tpu.matmul %433, %10, %cst_139 {dimension_numbers = #tpu.dot_dimension_numbers<[1], [0], [0], [1], [0, 0, 1, 1], [], []>} : vector<2x32xf32>, vector<32x96xf32>, vector<2x96xf32> -> vector<2x96xf32>
    %472 = vector.broadcast %14 : vector<1x96xf32> to vector<2x96xf32>
    %473 = arith.addf %471, %472 : vector<2x96xf32>
    %474 = vector.extract_strided_slice %470 {offsets = [0, 0], sizes = [2, 32], strides = [1, 1]} : vector<2x96xf32> to vector<2x32xf32>
    %475 = vector.extract_strided_slice %473 {offsets = [0, 0], sizes = [2, 32], strides = [1, 1]} : vector<2x96xf32> to vector<2x32xf32>
    %476 = arith.addf %474, %475 : vector<2x32xf32>
    %cst_140 = arith.constant 0.000000e+00 : f32
    %477 = vector.broadcast %cst_140 : f32 to vector<2x32xf32>
    %478 = arith.subf %477, %476 : vector<2x32xf32>
    %479 = math.exp %478 : vector<2x32xf32>
    %cst_141 = arith.constant 1.000000e+00 : f32
    %480 = vector.broadcast %cst_141 : f32 to vector<2x32xf32>
    %481 = arith.addf %480, %479 : vector<2x32xf32>
    %cst_142 = arith.constant 1.000000e+00 : f32
    %482 = vector.broadcast %cst_142 : f32 to vector<2x32xf32>
    %483 = arith.divf %482, %481 : vector<2x32xf32>
    %484 = vector.extract_strided_slice %470 {offsets = [0, 32], sizes = [2, 32], strides = [1, 1]} : vector<2x96xf32> to vector<2x32xf32>
    %485 = vector.extract_strided_slice %473 {offsets = [0, 32], sizes = [2, 32], strides = [1, 1]} : vector<2x96xf32> to vector<2x32xf32>
    %486 = arith.addf %484, %485 : vector<2x32xf32>
    %cst_143 = arith.constant 0.000000e+00 : f32
    %487 = vector.broadcast %cst_143 : f32 to vector<2x32xf32>
    %488 = arith.subf %487, %486 : vector<2x32xf32>
    %489 = math.exp %488 : vector<2x32xf32>
    %cst_144 = arith.constant 1.000000e+00 : f32
    %490 = vector.broadcast %cst_144 : f32 to vector<2x32xf32>
    %491 = arith.addf %490, %489 : vector<2x32xf32>
    %cst_145 = arith.constant 1.000000e+00 : f32
    %492 = vector.broadcast %cst_145 : f32 to vector<2x32xf32>
    %493 = arith.divf %492, %491 : vector<2x32xf32>
    %494 = vector.extract_strided_slice %470 {offsets = [0, 64], sizes = [2, 32], strides = [1, 1]} : vector<2x96xf32> to vector<2x32xf32>
    %495 = vector.extract_strided_slice %473 {offsets = [0, 64], sizes = [2, 32], strides = [1, 1]} : vector<2x96xf32> to vector<2x32xf32>
    %496 = arith.mulf %483, %495 : vector<2x32xf32>
    %497 = arith.addf %494, %496 : vector<2x32xf32>
    %498 = math.tanh %497 : vector<2x32xf32>
    %cst_146 = arith.constant 1.000000e+00 : f32
    %499 = vector.broadcast %cst_146 : f32 to vector<2x32xf32>
    %500 = arith.subf %499, %493 : vector<2x32xf32>
    %501 = arith.mulf %500, %498 : vector<2x32xf32>
    %502 = arith.mulf %493, %433 : vector<2x32xf32>
    %503 = arith.addf %501, %502 : vector<2x32xf32>
    %c2_147 = arith.constant 2 : index
    %c32_148 = arith.constant 32 : index
    %504 = vector.load %arg10[%c2_147, %c32_148] : memref<16x64xf32, #tpu.memory_space<vmem>>, vector<2x32xf32>
    tpu.vector_store %arg10[%c2_147, %c32_148], %503 {strides = array<i32>} : memref<16x64xf32, #tpu.memory_space<vmem>>, vector<2x32xf32>,
    %505 = vector.extract_strided_slice %6 {offsets = [14, 0], sizes = [2, 96], strides = [1, 1]} : vector<16x192xf32> to vector<2x96xf32>
    %cst_149 = arith.constant dense<0.000000e+00> : vector<2x96xf32>
    %506 = tpu.matmul %468, %8, %cst_149 {dimension_numbers = #tpu.dot_dimension_numbers<[1], [0], [0], [1], [0, 0, 1, 1], [], []>} : vector<2x32xf32>, vector<32x96xf32>, vector<2x96xf32> -> vector<2x96xf32>
    %507 = vector.broadcast %12 : vector<1x96xf32> to vector<2x96xf32>
    %508 = arith.addf %506, %507 : vector<2x96xf32>
    %509 = vector.extract_strided_slice %505 {offsets = [0, 0], sizes = [2, 32], strides = [1, 1]} : vector<2x96xf32> to vector<2x32xf32>
    %510 = vector.extract_strided_slice %508 {offsets = [0, 0], sizes = [2, 32], strides = [1, 1]} : vector<2x96xf32> to vector<2x32xf32>
    %511 = arith.addf %509, %510 : vector<2x32xf32>
    %cst_150 = arith.constant 0.000000e+00 : f32
    %512 = vector.broadcast %cst_150 : f32 to vector<2x32xf32>
    %513 = arith.subf %512, %511 : vector<2x32xf32>
    %514 = math.exp %513 : vector<2x32xf32>
    %cst_151 = arith.constant 1.000000e+00 : f32
    %515 = vector.broadcast %cst_151 : f32 to vector<2x32xf32>
    %516 = arith.addf %515, %514 : vector<2x32xf32>
    %cst_152 = arith.constant 1.000000e+00 : f32
    %517 = vector.broadcast %cst_152 : f32 to vector<2x32xf32>
    %518 = arith.divf %517, %516 : vector<2x32xf32>
    %519 = vector.extract_strided_slice %505 {offsets = [0, 32], sizes = [2, 32], strides = [1, 1]} : vector<2x96xf32> to vector<2x32xf32>
    %520 = vector.extract_strided_slice %508 {offsets = [0, 32], sizes = [2, 32], strides = [1, 1]} : vector<2x96xf32> to vector<2x32xf32>
    %521 = arith.addf %519, %520 : vector<2x32xf32>
    %cst_153 = arith.constant 0.000000e+00 : f32
    %522 = vector.broadcast %cst_153 : f32 to vector<2x32xf32>
    %523 = arith.subf %522, %521 : vector<2x32xf32>
    %524 = math.exp %523 : vector<2x32xf32>
    %cst_154 = arith.constant 1.000000e+00 : f32
    %525 = vector.broadcast %cst_154 : f32 to vector<2x32xf32>
    %526 = arith.addf %525, %524 : vector<2x32xf32>
    %cst_155 = arith.constant 1.000000e+00 : f32
    %527 = vector.broadcast %cst_155 : f32 to vector<2x32xf32>
    %528 = arith.divf %527, %526 : vector<2x32xf32>
    %529 = vector.extract_strided_slice %505 {offsets = [0, 64], sizes = [2, 32], strides = [1, 1]} : vector<2x96xf32> to vector<2x32xf32>
    %530 = vector.extract_strided_slice %508 {offsets = [0, 64], sizes = [2, 32], strides = [1, 1]} : vector<2x96xf32> to vector<2x32xf32>
    %531 = arith.mulf %518, %530 : vector<2x32xf32>
    %532 = arith.addf %529, %531 : vector<2x32xf32>
    %533 = math.tanh %532 : vector<2x32xf32>
    %cst_156 = arith.constant 1.000000e+00 : f32
    %534 = vector.broadcast %cst_156 : f32 to vector<2x32xf32>
    %535 = arith.subf %534, %528 : vector<2x32xf32>
    %536 = arith.mulf %535, %533 : vector<2x32xf32>
    %537 = arith.mulf %528, %468 : vector<2x32xf32>
    %538 = arith.addf %536, %537 : vector<2x32xf32>
    %c14_157 = arith.constant 14 : index
    %c0_158 = arith.constant 0 : index
    %539 = vector.load %arg10[%c14_157, %c0_158] : memref<16x64xf32, #tpu.memory_space<vmem>>, vector<2x32xf32>
    tpu.vector_store %arg10[%c14_157, %c0_158], %538 {strides = array<i32>} : memref<16x64xf32, #tpu.memory_space<vmem>>, vector<2x32xf32>,
    %540 = vector.extract_strided_slice %6 {offsets = [0, 96], sizes = [2, 96], strides = [1, 1]} : vector<16x192xf32> to vector<2x96xf32>
    %cst_159 = arith.constant dense<0.000000e+00> : vector<2x96xf32>
    %541 = tpu.matmul %503, %10, %cst_159 {dimension_numbers = #tpu.dot_dimension_numbers<[1], [0], [0], [1], [0, 0, 1, 1], [], []>} : vector<2x32xf32>, vector<32x96xf32>, vector<2x96xf32> -> vector<2x96xf32>
    %542 = vector.broadcast %14 : vector<1x96xf32> to vector<2x96xf32>
    %543 = arith.addf %541, %542 : vector<2x96xf32>
    %544 = vector.extract_strided_slice %540 {offsets = [0, 0], sizes = [2, 32], strides = [1, 1]} : vector<2x96xf32> to vector<2x32xf32>
    %545 = vector.extract_strided_slice %543 {offsets = [0, 0], sizes = [2, 32], strides = [1, 1]} : vector<2x96xf32> to vector<2x32xf32>
    %546 = arith.addf %544, %545 : vector<2x32xf32>
    %cst_160 = arith.constant 0.000000e+00 : f32
    %547 = vector.broadcast %cst_160 : f32 to vector<2x32xf32>
    %548 = arith.subf %547, %546 : vector<2x32xf32>
    %549 = math.exp %548 : vector<2x32xf32>
    %cst_161 = arith.constant 1.000000e+00 : f32
    %550 = vector.broadcast %cst_161 : f32 to vector<2x32xf32>
    %551 = arith.addf %550, %549 : vector<2x32xf32>
    %cst_162 = arith.constant 1.000000e+00 : f32
    %552 = vector.broadcast %cst_162 : f32 to vector<2x32xf32>
    %553 = arith.divf %552, %551 : vector<2x32xf32>
    %554 = vector.extract_strided_slice %540 {offsets = [0, 32], sizes = [2, 32], strides = [1, 1]} : vector<2x96xf32> to vector<2x32xf32>
    %555 = vector.extract_strided_slice %543 {offsets = [0, 32], sizes = [2, 32], strides = [1, 1]} : vector<2x96xf32> to vector<2x32xf32>
    %556 = arith.addf %554, %555 : vector<2x32xf32>
    %cst_163 = arith.constant 0.000000e+00 : f32
    %557 = vector.broadcast %cst_163 : f32 to vector<2x32xf32>
    %558 = arith.subf %557, %556 : vector<2x32xf32>
    %559 = math.exp %558 : vector<2x32xf32>
    %cst_164 = arith.constant 1.000000e+00 : f32
    %560 = vector.broadcast %cst_164 : f32 to vector<2x32xf32>
    %561 = arith.addf %560, %559 : vector<2x32xf32>
    %cst_165 = arith.constant 1.000000e+00 : f32
    %562 = vector.broadcast %cst_165 : f32 to vector<2x32xf32>
    %563 = arith.divf %562, %561 : vector<2x32xf32>
    %564 = vector.extract_strided_slice %540 {offsets = [0, 64], sizes = [2, 32], strides = [1, 1]} : vector<2x96xf32> to vector<2x32xf32>
    %565 = vector.extract_strided_slice %543 {offsets = [0, 64], sizes = [2, 32], strides = [1, 1]} : vector<2x96xf32> to vector<2x32xf32>
    %566 = arith.mulf %553, %565 : vector<2x32xf32>
    %567 = arith.addf %564, %566 : vector<2x32xf32>
    %568 = math.tanh %567 : vector<2x32xf32>
    %cst_166 = arith.constant 1.000000e+00 : f32
    %569 = vector.broadcast %cst_166 : f32 to vector<2x32xf32>
    %570 = arith.subf %569, %563 : vector<2x32xf32>
    %571 = arith.mulf %570, %568 : vector<2x32xf32>
    %572 = arith.mulf %563, %503 : vector<2x32xf32>
    %573 = arith.addf %571, %572 : vector<2x32xf32>
    %c0_167 = arith.constant 0 : index
    %c32_168 = arith.constant 32 : index
    %574 = vector.load %arg10[%c0_167, %c32_168] : memref<16x64xf32, #tpu.memory_space<vmem>>, vector<2x32xf32>
    tpu.vector_store %arg10[%c0_167, %c32_168], %573 {strides = array<i32>} : memref<16x64xf32, #tpu.memory_space<vmem>>, vector<2x32xf32>,
    %c0_169 = arith.constant 0 : index
    %c0_170 = arith.constant 0 : index
    %575 = vector.load %arg10[%c0_169, %c0_170] : memref<16x64xf32, #tpu.memory_space<vmem>>, vector<16x64xf32>
    %c0_171 = arith.constant 0 : index
    %c0_172 = arith.constant 0 : index
    %c0_173 = arith.constant 0 : index
    %576 = vector.load %arg5[%c0_171, %c0_172, %c0_173] : memref<3x64x192xf32, #tpu.memory_space<vmem>>, vector<1x64x192xf32>
    %577 = vector.shape_cast %576 : vector<1x64x192xf32> to vector<64x192xf32>
    %c0_174 = arith.constant 0 : index
    %c0_175 = arith.constant 0 : index
    %c0_176 = arith.constant 0 : index
    %578 = vector.load %arg6[%c0_174, %c0_175, %c0_176] : memref<3x1x192xf32, #tpu.memory_space<vmem>>, vector<1x1x192xf32>
    %579 = vector.shape_cast %578 : vector<1x1x192xf32> to vector<1x192xf32>
    %cst_177 = arith.constant dense<0.000000e+00> : vector<16x192xf32>
    %580 = tpu.matmul %575, %577, %cst_177 {dimension_numbers = #tpu.dot_dimension_numbers<[1], [0], [0], [1], [0, 0, 1, 1], [], []>} : vector<16x64xf32>, vector<64x192xf32>, vector<16x192xf32> -> vector<16x192xf32>
    %581 = vector.broadcast %579 : vector<1x192xf32> to vector<16x192xf32>
    %582 = arith.addf %580, %581 : vector<16x192xf32>
    %c0_178 = arith.constant 0 : index
    %c0_179 = arith.constant 0 : index
    %c0_180 = arith.constant 0 : index
    %c0_181 = arith.constant 0 : index
    %583 = vector.load %arg7[%c0_178, %c0_179, %c0_180, %c0_181] : memref<3x2x32x96xf32, #tpu.memory_space<vmem>>, vector<1x1x32x96xf32>
    %584 = vector.shape_cast %583 : vector<1x1x32x96xf32> to vector<32x96xf32>
    %c0_182 = arith.constant 0 : index
    %c1_183 = arith.constant 1 : index
    %c0_184 = arith.constant 0 : index
    %c0_185 = arith.constant 0 : index
    %585 = vector.load %arg7[%c0_182, %c1_183, %c0_184, %c0_185] : memref<3x2x32x96xf32, #tpu.memory_space<vmem>>, vector<1x1x32x96xf32>
    %586 = vector.shape_cast %585 : vector<1x1x32x96xf32> to vector<32x96xf32>
    %c0_186 = arith.constant 0 : index
    %c0_187 = arith.constant 0 : index
    %c0_188 = arith.constant 0 : index
    %c0_189 = arith.constant 0 : index
    %587 = vector.load %arg8[%c0_186, %c0_187, %c0_188, %c0_189] : memref<3x2x1x96xf32, #tpu.memory_space<vmem>>, vector<1x1x1x96xf32>
    %588 = vector.shape_cast %587 : vector<1x1x1x96xf32> to vector<1x96xf32>
    %c0_190 = arith.constant 0 : index
    %c1_191 = arith.constant 1 : index
    %c0_192 = arith.constant 0 : index
    %c0_193 = arith.constant 0 : index
    %589 = vector.load %arg8[%c0_190, %c1_191, %c0_192, %c0_193] : memref<3x2x1x96xf32, #tpu.memory_space<vmem>>, vector<1x1x1x96xf32>
    %590 = vector.shape_cast %589 : vector<1x1x1x96xf32> to vector<1x96xf32>
    %591 = vector.extract_strided_slice %582 {offsets = [0, 0], sizes = [2, 96], strides = [1, 1]} : vector<16x192xf32> to vector<2x96xf32>
    %cst_194 = arith.constant dense<0.000000e+00> : vector<2x96xf32>
    %592 = tpu.matmul %0, %584, %cst_194 {dimension_numbers = #tpu.dot_dimension_numbers<[1], [0], [0], [1], [0, 0, 1, 1], [], []>} : vector<2x32xf32>, vector<32x96xf32>, vector<2x96xf32> -> vector<2x96xf32>
    %593 = vector.broadcast %588 : vector<1x96xf32> to vector<2x96xf32>
    %594 = arith.addf %592, %593 : vector<2x96xf32>
    %595 = vector.extract_strided_slice %591 {offsets = [0, 0], sizes = [2, 32], strides = [1, 1]} : vector<2x96xf32> to vector<2x32xf32>
    %596 = vector.extract_strided_slice %594 {offsets = [0, 0], sizes = [2, 32], strides = [1, 1]} : vector<2x96xf32> to vector<2x32xf32>
    %597 = arith.addf %595, %596 : vector<2x32xf32>
    %cst_195 = arith.constant 0.000000e+00 : f32
    %598 = vector.broadcast %cst_195 : f32 to vector<2x32xf32>
    %599 = arith.subf %598, %597 : vector<2x32xf32>
    %600 = math.exp %599 : vector<2x32xf32>
    %cst_196 = arith.constant 1.000000e+00 : f32
    %601 = vector.broadcast %cst_196 : f32 to vector<2x32xf32>
    %602 = arith.addf %601, %600 : vector<2x32xf32>
    %cst_197 = arith.constant 1.000000e+00 : f32
    %603 = vector.broadcast %cst_197 : f32 to vector<2x32xf32>
    %604 = arith.divf %603, %602 : vector<2x32xf32>
    %605 = vector.extract_strided_slice %591 {offsets = [0, 32], sizes = [2, 32], strides = [1, 1]} : vector<2x96xf32> to vector<2x32xf32>
    %606 = vector.extract_strided_slice %594 {offsets = [0, 32], sizes = [2, 32], strides = [1, 1]} : vector<2x96xf32> to vector<2x32xf32>
    %607 = arith.addf %605, %606 : vector<2x32xf32>
    %cst_198 = arith.constant 0.000000e+00 : f32
    %608 = vector.broadcast %cst_198 : f32 to vector<2x32xf32>
    %609 = arith.subf %608, %607 : vector<2x32xf32>
    %610 = math.exp %609 : vector<2x32xf32>
    %cst_199 = arith.constant 1.000000e+00 : f32
    %611 = vector.broadcast %cst_199 : f32 to vector<2x32xf32>
    %612 = arith.addf %611, %610 : vector<2x32xf32>
    %cst_200 = arith.constant 1.000000e+00 : f32
    %613 = vector.broadcast %cst_200 : f32 to vector<2x32xf32>
    %614 = arith.divf %613, %612 : vector<2x32xf32>
    %615 = vector.extract_strided_slice %591 {offsets = [0, 64], sizes = [2, 32], strides = [1, 1]} : vector<2x96xf32> to vector<2x32xf32>
    %616 = vector.extract_strided_slice %594 {offsets = [0, 64], sizes = [2, 32], strides = [1, 1]} : vector<2x96xf32> to vector<2x32xf32>
    %617 = arith.mulf %604, %616 : vector<2x32xf32>
    %618 = arith.addf %615, %617 : vector<2x32xf32>
    %619 = math.tanh %618 : vector<2x32xf32>
    %cst_201 = arith.constant 1.000000e+00 : f32
    %620 = vector.broadcast %cst_201 : f32 to vector<2x32xf32>
    %621 = arith.subf %620, %614 : vector<2x32xf32>
    %622 = arith.mulf %621, %619 : vector<2x32xf32>
    %623 = arith.mulf %614, %0 : vector<2x32xf32>
    %624 = arith.addf %622, %623 : vector<2x32xf32>
    %c0_202 = arith.constant 0 : index
    %c0_203 = arith.constant 0 : index
    %625 = vector.load %arg10[%c0_202, %c0_203] : memref<16x64xf32, #tpu.memory_space<vmem>>, vector<2x32xf32>
    tpu.vector_store %arg10[%c0_202, %c0_203], %624 {strides = array<i32>} : memref<16x64xf32, #tpu.memory_space<vmem>>, vector<2x32xf32>,
    %626 = vector.extract_strided_slice %582 {offsets = [14, 96], sizes = [2, 96], strides = [1, 1]} : vector<16x192xf32> to vector<2x96xf32>
    %cst_204 = arith.constant dense<0.000000e+00> : vector<2x96xf32>
    %627 = tpu.matmul %0, %586, %cst_204 {dimension_numbers = #tpu.dot_dimension_numbers<[1], [0], [0], [1], [0, 0, 1, 1], [], []>} : vector<2x32xf32>, vector<32x96xf32>, vector<2x96xf32> -> vector<2x96xf32>
    %628 = vector.broadcast %590 : vector<1x96xf32> to vector<2x96xf32>
    %629 = arith.addf %627, %628 : vector<2x96xf32>
    %630 = vector.extract_strided_slice %626 {offsets = [0, 0], sizes = [2, 32], strides = [1, 1]} : vector<2x96xf32> to vector<2x32xf32>
    %631 = vector.extract_strided_slice %629 {offsets = [0, 0], sizes = [2, 32], strides = [1, 1]} : vector<2x96xf32> to vector<2x32xf32>
    %632 = arith.addf %630, %631 : vector<2x32xf32>
    %cst_205 = arith.constant 0.000000e+00 : f32
    %633 = vector.broadcast %cst_205 : f32 to vector<2x32xf32>
    %634 = arith.subf %633, %632 : vector<2x32xf32>
    %635 = math.exp %634 : vector<2x32xf32>
    %cst_206 = arith.constant 1.000000e+00 : f32
    %636 = vector.broadcast %cst_206 : f32 to vector<2x32xf32>
    %637 = arith.addf %636, %635 : vector<2x32xf32>
    %cst_207 = arith.constant 1.000000e+00 : f32
    %638 = vector.broadcast %cst_207 : f32 to vector<2x32xf32>
    %639 = arith.divf %638, %637 : vector<2x32xf32>
    %640 = vector.extract_strided_slice %626 {offsets = [0, 32], sizes = [2, 32], strides = [1, 1]} : vector<2x96xf32> to vector<2x32xf32>
    %641 = vector.extract_strided_slice %629 {offsets = [0, 32], sizes = [2, 32], strides = [1, 1]} : vector<2x96xf32> to vector<2x32xf32>
    %642 = arith.addf %640, %641 : vector<2x32xf32>
    %cst_208 = arith.constant 0.000000e+00 : f32
    %643 = vector.broadcast %cst_208 : f32 to vector<2x32xf32>
    %644 = arith.subf %643, %642 : vector<2x32xf32>
    %645 = math.exp %644 : vector<2x32xf32>
    %cst_209 = arith.constant 1.000000e+00 : f32
    %646 = vector.broadcast %cst_209 : f32 to vector<2x32xf32>
    %647 = arith.addf %646, %645 : vector<2x32xf32>
    %cst_210 = arith.constant 1.000000e+00 : f32
    %648 = vector.broadcast %cst_210 : f32 to vector<2x32xf32>
    %649 = arith.divf %648, %647 : vector<2x32xf32>
    %650 = vector.extract_strided_slice %626 {offsets = [0, 64], sizes = [2, 32], strides = [1, 1]} : vector<2x96xf32> to vector<2x32xf32>
    %651 = vector.extract_strided_slice %629 {offsets = [0, 64], sizes = [2, 32], strides = [1, 1]} : vector<2x96xf32> to vector<2x32xf32>
    %652 = arith.mulf %639, %651 : vector<2x32xf32>
    %653 = arith.addf %650, %652 : vector<2x32xf32>
    %654 = math.tanh %653 : vector<2x32xf32>
    %cst_211 = arith.constant 1.000000e+00 : f32
    %655 = vector.broadcast %cst_211 : f32 to vector<2x32xf32>
    %656 = arith.subf %655, %649 : vector<2x32xf32>
    %657 = arith.mulf %656, %654 : vector<2x32xf32>
    %658 = arith.mulf %649, %0 : vector<2x32xf32>
    %659 = arith.addf %657, %658 : vector<2x32xf32>
    %c14_212 = arith.constant 14 : index
    %c32_213 = arith.constant 32 : index
    %660 = vector.load %arg10[%c14_212, %c32_213] : memref<16x64xf32, #tpu.memory_space<vmem>>, vector<2x32xf32>
    tpu.vector_store %arg10[%c14_212, %c32_213], %659 {strides = array<i32>} : memref<16x64xf32, #tpu.memory_space<vmem>>, vector<2x32xf32>,
    %661 = vector.extract_strided_slice %582 {offsets = [2, 0], sizes = [2, 96], strides = [1, 1]} : vector<16x192xf32> to vector<2x96xf32>
    %cst_214 = arith.constant dense<0.000000e+00> : vector<2x96xf32>
    %662 = tpu.matmul %624, %584, %cst_214 {dimension_numbers = #tpu.dot_dimension_numbers<[1], [0], [0], [1], [0, 0, 1, 1], [], []>} : vector<2x32xf32>, vector<32x96xf32>, vector<2x96xf32> -> vector<2x96xf32>
    %663 = vector.broadcast %588 : vector<1x96xf32> to vector<2x96xf32>
    %664 = arith.addf %662, %663 : vector<2x96xf32>
    %665 = vector.extract_strided_slice %661 {offsets = [0, 0], sizes = [2, 32], strides = [1, 1]} : vector<2x96xf32> to vector<2x32xf32>
    %666 = vector.extract_strided_slice %664 {offsets = [0, 0], sizes = [2, 32], strides = [1, 1]} : vector<2x96xf32> to vector<2x32xf32>
    %667 = arith.addf %665, %666 : vector<2x32xf32>
    %cst_215 = arith.constant 0.000000e+00 : f32
    %668 = vector.broadcast %cst_215 : f32 to vector<2x32xf32>
    %669 = arith.subf %668, %667 : vector<2x32xf32>
    %670 = math.exp %669 : vector<2x32xf32>
    %cst_216 = arith.constant 1.000000e+00 : f32
    %671 = vector.broadcast %cst_216 : f32 to vector<2x32xf32>
    %672 = arith.addf %671, %670 : vector<2x32xf32>
    %cst_217 = arith.constant 1.000000e+00 : f32
    %673 = vector.broadcast %cst_217 : f32 to vector<2x32xf32>
    %674 = arith.divf %673, %672 : vector<2x32xf32>
    %675 = vector.extract_strided_slice %661 {offsets = [0, 32], sizes = [2, 32], strides = [1, 1]} : vector<2x96xf32> to vector<2x32xf32>
    %676 = vector.extract_strided_slice %664 {offsets = [0, 32], sizes = [2, 32], strides = [1, 1]} : vector<2x96xf32> to vector<2x32xf32>
    %677 = arith.addf %675, %676 : vector<2x32xf32>
    %cst_218 = arith.constant 0.000000e+00 : f32
    %678 = vector.broadcast %cst_218 : f32 to vector<2x32xf32>
    %679 = arith.subf %678, %677 : vector<2x32xf32>
    %680 = math.exp %679 : vector<2x32xf32>
    %cst_219 = arith.constant 1.000000e+00 : f32
    %681 = vector.broadcast %cst_219 : f32 to vector<2x32xf32>
    %682 = arith.addf %681, %680 : vector<2x32xf32>
    %cst_220 = arith.constant 1.000000e+00 : f32
    %683 = vector.broadcast %cst_220 : f32 to vector<2x32xf32>
    %684 = arith.divf %683, %682 : vector<2x32xf32>
    %685 = vector.extract_strided_slice %661 {offsets = [0, 64], sizes = [2, 32], strides = [1, 1]} : vector<2x96xf32> to vector<2x32xf32>
    %686 = vector.extract_strided_slice %664 {offsets = [0, 64], sizes = [2, 32], strides = [1, 1]} : vector<2x96xf32> to vector<2x32xf32>
    %687 = arith.mulf %674, %686 : vector<2x32xf32>
    %688 = arith.addf %685, %687 : vector<2x32xf32>
    %689 = math.tanh %688 : vector<2x32xf32>
    %cst_221 = arith.constant 1.000000e+00 : f32
    %690 = vector.broadcast %cst_221 : f32 to vector<2x32xf32>
    %691 = arith.subf %690, %684 : vector<2x32xf32>
    %692 = arith.mulf %691, %689 : vector<2x32xf32>
    %693 = arith.mulf %684, %624 : vector<2x32xf32>
    %694 = arith.addf %692, %693 : vector<2x32xf32>
    %c2_222 = arith.constant 2 : index
    %c0_223 = arith.constant 0 : index
    %695 = vector.load %arg10[%c2_222, %c0_223] : memref<16x64xf32, #tpu.memory_space<vmem>>, vector<2x32xf32>
    tpu.vector_store %arg10[%c2_222, %c0_223], %694 {strides = array<i32>} : memref<16x64xf32, #tpu.memory_space<vmem>>, vector<2x32xf32>,
    %696 = vector.extract_strided_slice %582 {offsets = [12, 96], sizes = [2, 96], strides = [1, 1]} : vector<16x192xf32> to vector<2x96xf32>
    %cst_224 = arith.constant dense<0.000000e+00> : vector<2x96xf32>
    %697 = tpu.matmul %659, %586, %cst_224 {dimension_numbers = #tpu.dot_dimension_numbers<[1], [0], [0], [1], [0, 0, 1, 1], [], []>} : vector<2x32xf32>, vector<32x96xf32>, vector<2x96xf32> -> vector<2x96xf32>
    %698 = vector.broadcast %590 : vector<1x96xf32> to vector<2x96xf32>
    %699 = arith.addf %697, %698 : vector<2x96xf32>
    %700 = vector.extract_strided_slice %696 {offsets = [0, 0], sizes = [2, 32], strides = [1, 1]} : vector<2x96xf32> to vector<2x32xf32>
    %701 = vector.extract_strided_slice %699 {offsets = [0, 0], sizes = [2, 32], strides = [1, 1]} : vector<2x96xf32> to vector<2x32xf32>
    %702 = arith.addf %700, %701 : vector<2x32xf32>
    %cst_225 = arith.constant 0.000000e+00 : f32
    %703 = vector.broadcast %cst_225 : f32 to vector<2x32xf32>
    %704 = arith.subf %703, %702 : vector<2x32xf32>
    %705 = math.exp %704 : vector<2x32xf32>
    %cst_226 = arith.constant 1.000000e+00 : f32
    %706 = vector.broadcast %cst_226 : f32 to vector<2x32xf32>
    %707 = arith.addf %706, %705 : vector<2x32xf32>
    %cst_227 = arith.constant 1.000000e+00 : f32
    %708 = vector.broadcast %cst_227 : f32 to vector<2x32xf32>
    %709 = arith.divf %708, %707 : vector<2x32xf32>
    %710 = vector.extract_strided_slice %696 {offsets = [0, 32], sizes = [2, 32], strides = [1, 1]} : vector<2x96xf32> to vector<2x32xf32>
    %711 = vector.extract_strided_slice %699 {offsets = [0, 32], sizes = [2, 32], strides = [1, 1]} : vector<2x96xf32> to vector<2x32xf32>
    %712 = arith.addf %710, %711 : vector<2x32xf32>
    %cst_228 = arith.constant 0.000000e+00 : f32
    %713 = vector.broadcast %cst_228 : f32 to vector<2x32xf32>
    %714 = arith.subf %713, %712 : vector<2x32xf32>
    %715 = math.exp %714 : vector<2x32xf32>
    %cst_229 = arith.constant 1.000000e+00 : f32
    %716 = vector.broadcast %cst_229 : f32 to vector<2x32xf32>
    %717 = arith.addf %716, %715 : vector<2x32xf32>
    %cst_230 = arith.constant 1.000000e+00 : f32
    %718 = vector.broadcast %cst_230 : f32 to vector<2x32xf32>
    %719 = arith.divf %718, %717 : vector<2x32xf32>
    %720 = vector.extract_strided_slice %696 {offsets = [0, 64], sizes = [2, 32], strides = [1, 1]} : vector<2x96xf32> to vector<2x32xf32>
    %721 = vector.extract_strided_slice %699 {offsets = [0, 64], sizes = [2, 32], strides = [1, 1]} : vector<2x96xf32> to vector<2x32xf32>
    %722 = arith.mulf %709, %721 : vector<2x32xf32>
    %723 = arith.addf %720, %722 : vector<2x32xf32>
    %724 = math.tanh %723 : vector<2x32xf32>
    %cst_231 = arith.constant 1.000000e+00 : f32
    %725 = vector.broadcast %cst_231 : f32 to vector<2x32xf32>
    %726 = arith.subf %725, %719 : vector<2x32xf32>
    %727 = arith.mulf %726, %724 : vector<2x32xf32>
    %728 = arith.mulf %719, %659 : vector<2x32xf32>
    %729 = arith.addf %727, %728 : vector<2x32xf32>
    %c12_232 = arith.constant 12 : index
    %c32_233 = arith.constant 32 : index
    %730 = vector.load %arg10[%c12_232, %c32_233] : memref<16x64xf32, #tpu.memory_space<vmem>>, vector<2x32xf32>
    tpu.vector_store %arg10[%c12_232, %c32_233], %729 {strides = array<i32>} : memref<16x64xf32, #tpu.memory_space<vmem>>, vector<2x32xf32>,
    %731 = vector.extract_strided_slice %582 {offsets = [4, 0], sizes = [2, 96], strides = [1, 1]} : vector<16x192xf32> to vector<2x96xf32>
    %cst_234 = arith.constant dense<0.000000e+00> : vector<2x96xf32>
    %732 = tpu.matmul %694, %584, %cst_234 {dimension_numbers = #tpu.dot_dimension_numbers<[1], [0], [0], [1], [0, 0, 1, 1], [], []>} : vector<2x32xf32>, vector<32x96xf32>, vector<2x96xf32> -> vector<2x96xf32>
    %733 = vector.broadcast %588 : vector<1x96xf32> to vector<2x96xf32>
    %734 = arith.addf %732, %733 : vector<2x96xf32>
    %735 = vector.extract_strided_slice %731 {offsets = [0, 0], sizes = [2, 32], strides = [1, 1]} : vector<2x96xf32> to vector<2x32xf32>
    %736 = vector.extract_strided_slice %734 {offsets = [0, 0], sizes = [2, 32], strides = [1, 1]} : vector<2x96xf32> to vector<2x32xf32>
    %737 = arith.addf %735, %736 : vector<2x32xf32>
    %cst_235 = arith.constant 0.000000e+00 : f32
    %738 = vector.broadcast %cst_235 : f32 to vector<2x32xf32>
    %739 = arith.subf %738, %737 : vector<2x32xf32>
    %740 = math.exp %739 : vector<2x32xf32>
    %cst_236 = arith.constant 1.000000e+00 : f32
    %741 = vector.broadcast %cst_236 : f32 to vector<2x32xf32>
    %742 = arith.addf %741, %740 : vector<2x32xf32>
    %cst_237 = arith.constant 1.000000e+00 : f32
    %743 = vector.broadcast %cst_237 : f32 to vector<2x32xf32>
    %744 = arith.divf %743, %742 : vector<2x32xf32>
    %745 = vector.extract_strided_slice %731 {offsets = [0, 32], sizes = [2, 32], strides = [1, 1]} : vector<2x96xf32> to vector<2x32xf32>
    %746 = vector.extract_strided_slice %734 {offsets = [0, 32], sizes = [2, 32], strides = [1, 1]} : vector<2x96xf32> to vector<2x32xf32>
    %747 = arith.addf %745, %746 : vector<2x32xf32>
    %cst_238 = arith.constant 0.000000e+00 : f32
    %748 = vector.broadcast %cst_238 : f32 to vector<2x32xf32>
    %749 = arith.subf %748, %747 : vector<2x32xf32>
    %750 = math.exp %749 : vector<2x32xf32>
    %cst_239 = arith.constant 1.000000e+00 : f32
    %751 = vector.broadcast %cst_239 : f32 to vector<2x32xf32>
    %752 = arith.addf %751, %750 : vector<2x32xf32>
    %cst_240 = arith.constant 1.000000e+00 : f32
    %753 = vector.broadcast %cst_240 : f32 to vector<2x32xf32>
    %754 = arith.divf %753, %752 : vector<2x32xf32>
    %755 = vector.extract_strided_slice %731 {offsets = [0, 64], sizes = [2, 32], strides = [1, 1]} : vector<2x96xf32> to vector<2x32xf32>
    %756 = vector.extract_strided_slice %734 {offsets = [0, 64], sizes = [2, 32], strides = [1, 1]} : vector<2x96xf32> to vector<2x32xf32>
    %757 = arith.mulf %744, %756 : vector<2x32xf32>
    %758 = arith.addf %755, %757 : vector<2x32xf32>
    %759 = math.tanh %758 : vector<2x32xf32>
    %cst_241 = arith.constant 1.000000e+00 : f32
    %760 = vector.broadcast %cst_241 : f32 to vector<2x32xf32>
    %761 = arith.subf %760, %754 : vector<2x32xf32>
    %762 = arith.mulf %761, %759 : vector<2x32xf32>
    %763 = arith.mulf %754, %694 : vector<2x32xf32>
    %764 = arith.addf %762, %763 : vector<2x32xf32>
    %c4_242 = arith.constant 4 : index
    %c0_243 = arith.constant 0 : index
    %765 = vector.load %arg10[%c4_242, %c0_243] : memref<16x64xf32, #tpu.memory_space<vmem>>, vector<2x32xf32>
    tpu.vector_store %arg10[%c4_242, %c0_243], %764 {strides = array<i32>} : memref<16x64xf32, #tpu.memory_space<vmem>>, vector<2x32xf32>,
    %766 = vector.extract_strided_slice %582 {offsets = [10, 96], sizes = [2, 96], strides = [1, 1]} : vector<16x192xf32> to vector<2x96xf32>
    %cst_244 = arith.constant dense<0.000000e+00> : vector<2x96xf32>
    %767 = tpu.matmul %729, %586, %cst_244 {dimension_numbers = #tpu.dot_dimension_numbers<[1], [0], [0], [1], [0, 0, 1, 1], [], []>} : vector<2x32xf32>, vector<32x96xf32>, vector<2x96xf32> -> vector<2x96xf32>
    %768 = vector.broadcast %590 : vector<1x96xf32> to vector<2x96xf32>
    %769 = arith.addf %767, %768 : vector<2x96xf32>
    %770 = vector.extract_strided_slice %766 {offsets = [0, 0], sizes = [2, 32], strides = [1, 1]} : vector<2x96xf32> to vector<2x32xf32>
    %771 = vector.extract_strided_slice %769 {offsets = [0, 0], sizes = [2, 32], strides = [1, 1]} : vector<2x96xf32> to vector<2x32xf32>
    %772 = arith.addf %770, %771 : vector<2x32xf32>
    %cst_245 = arith.constant 0.000000e+00 : f32
    %773 = vector.broadcast %cst_245 : f32 to vector<2x32xf32>
    %774 = arith.subf %773, %772 : vector<2x32xf32>
    %775 = math.exp %774 : vector<2x32xf32>
    %cst_246 = arith.constant 1.000000e+00 : f32
    %776 = vector.broadcast %cst_246 : f32 to vector<2x32xf32>
    %777 = arith.addf %776, %775 : vector<2x32xf32>
    %cst_247 = arith.constant 1.000000e+00 : f32
    %778 = vector.broadcast %cst_247 : f32 to vector<2x32xf32>
    %779 = arith.divf %778, %777 : vector<2x32xf32>
    %780 = vector.extract_strided_slice %766 {offsets = [0, 32], sizes = [2, 32], strides = [1, 1]} : vector<2x96xf32> to vector<2x32xf32>
    %781 = vector.extract_strided_slice %769 {offsets = [0, 32], sizes = [2, 32], strides = [1, 1]} : vector<2x96xf32> to vector<2x32xf32>
    %782 = arith.addf %780, %781 : vector<2x32xf32>
    %cst_248 = arith.constant 0.000000e+00 : f32
    %783 = vector.broadcast %cst_248 : f32 to vector<2x32xf32>
    %784 = arith.subf %783, %782 : vector<2x32xf32>
    %785 = math.exp %784 : vector<2x32xf32>
    %cst_249 = arith.constant 1.000000e+00 : f32
    %786 = vector.broadcast %cst_249 : f32 to vector<2x32xf32>
    %787 = arith.addf %786, %785 : vector<2x32xf32>
    %cst_250 = arith.constant 1.000000e+00 : f32
    %788 = vector.broadcast %cst_250 : f32 to vector<2x32xf32>
    %789 = arith.divf %788, %787 : vector<2x32xf32>
    %790 = vector.extract_strided_slice %766 {offsets = [0, 64], sizes = [2, 32], strides = [1, 1]} : vector<2x96xf32> to vector<2x32xf32>
    %791 = vector.extract_strided_slice %769 {offsets = [0, 64], sizes = [2, 32], strides = [1, 1]} : vector<2x96xf32> to vector<2x32xf32>
    %792 = arith.mulf %779, %791 : vector<2x32xf32>
    %793 = arith.addf %790, %792 : vector<2x32xf32>
    %794 = math.tanh %793 : vector<2x32xf32>
    %cst_251 = arith.constant 1.000000e+00 : f32
    %795 = vector.broadcast %cst_251 : f32 to vector<2x32xf32>
    %796 = arith.subf %795, %789 : vector<2x32xf32>
    %797 = arith.mulf %796, %794 : vector<2x32xf32>
    %798 = arith.mulf %789, %729 : vector<2x32xf32>
    %799 = arith.addf %797, %798 : vector<2x32xf32>
    %c10_252 = arith.constant 10 : index
    %c32_253 = arith.constant 32 : index
    %800 = vector.load %arg10[%c10_252, %c32_253] : memref<16x64xf32, #tpu.memory_space<vmem>>, vector<2x32xf32>
    tpu.vector_store %arg10[%c10_252, %c32_253], %799 {strides = array<i32>} : memref<16x64xf32, #tpu.memory_space<vmem>>, vector<2x32xf32>,
    %801 = vector.extract_strided_slice %582 {offsets = [6, 0], sizes = [2, 96], strides = [1, 1]} : vector<16x192xf32> to vector<2x96xf32>
    %cst_254 = arith.constant dense<0.000000e+00> : vector<2x96xf32>
    %802 = tpu.matmul %764, %584, %cst_254 {dimension_numbers = #tpu.dot_dimension_numbers<[1], [0], [0], [1], [0, 0, 1, 1], [], []>} : vector<2x32xf32>, vector<32x96xf32>, vector<2x96xf32> -> vector<2x96xf32>
    %803 = vector.broadcast %588 : vector<1x96xf32> to vector<2x96xf32>
    %804 = arith.addf %802, %803 : vector<2x96xf32>
    %805 = vector.extract_strided_slice %801 {offsets = [0, 0], sizes = [2, 32], strides = [1, 1]} : vector<2x96xf32> to vector<2x32xf32>
    %806 = vector.extract_strided_slice %804 {offsets = [0, 0], sizes = [2, 32], strides = [1, 1]} : vector<2x96xf32> to vector<2x32xf32>
    %807 = arith.addf %805, %806 : vector<2x32xf32>
    %cst_255 = arith.constant 0.000000e+00 : f32
    %808 = vector.broadcast %cst_255 : f32 to vector<2x32xf32>
    %809 = arith.subf %808, %807 : vector<2x32xf32>
    %810 = math.exp %809 : vector<2x32xf32>
    %cst_256 = arith.constant 1.000000e+00 : f32
    %811 = vector.broadcast %cst_256 : f32 to vector<2x32xf32>
    %812 = arith.addf %811, %810 : vector<2x32xf32>
    %cst_257 = arith.constant 1.000000e+00 : f32
    %813 = vector.broadcast %cst_257 : f32 to vector<2x32xf32>
    %814 = arith.divf %813, %812 : vector<2x32xf32>
    %815 = vector.extract_strided_slice %801 {offsets = [0, 32], sizes = [2, 32], strides = [1, 1]} : vector<2x96xf32> to vector<2x32xf32>
    %816 = vector.extract_strided_slice %804 {offsets = [0, 32], sizes = [2, 32], strides = [1, 1]} : vector<2x96xf32> to vector<2x32xf32>
    %817 = arith.addf %815, %816 : vector<2x32xf32>
    %cst_258 = arith.constant 0.000000e+00 : f32
    %818 = vector.broadcast %cst_258 : f32 to vector<2x32xf32>
    %819 = arith.subf %818, %817 : vector<2x32xf32>
    %820 = math.exp %819 : vector<2x32xf32>
    %cst_259 = arith.constant 1.000000e+00 : f32
    %821 = vector.broadcast %cst_259 : f32 to vector<2x32xf32>
    %822 = arith.addf %821, %820 : vector<2x32xf32>
    %cst_260 = arith.constant 1.000000e+00 : f32
    %823 = vector.broadcast %cst_260 : f32 to vector<2x32xf32>
    %824 = arith.divf %823, %822 : vector<2x32xf32>
    %825 = vector.extract_strided_slice %801 {offsets = [0, 64], sizes = [2, 32], strides = [1, 1]} : vector<2x96xf32> to vector<2x32xf32>
    %826 = vector.extract_strided_slice %804 {offsets = [0, 64], sizes = [2, 32], strides = [1, 1]} : vector<2x96xf32> to vector<2x32xf32>
    %827 = arith.mulf %814, %826 : vector<2x32xf32>
    %828 = arith.addf %825, %827 : vector<2x32xf32>
    %829 = math.tanh %828 : vector<2x32xf32>
    %cst_261 = arith.constant 1.000000e+00 : f32
    %830 = vector.broadcast %cst_261 : f32 to vector<2x32xf32>
    %831 = arith.subf %830, %824 : vector<2x32xf32>
    %832 = arith.mulf %831, %829 : vector<2x32xf32>
    %833 = arith.mulf %824, %764 : vector<2x32xf32>
    %834 = arith.addf %832, %833 : vector<2x32xf32>
    %c6_262 = arith.constant 6 : index
    %c0_263 = arith.constant 0 : index
    %835 = vector.load %arg10[%c6_262, %c0_263] : memref<16x64xf32, #tpu.memory_space<vmem>>, vector<2x32xf32>
    tpu.vector_store %arg10[%c6_262, %c0_263], %834 {strides = array<i32>} : memref<16x64xf32, #tpu.memory_space<vmem>>, vector<2x32xf32>,
    %836 = vector.extract_strided_slice %582 {offsets = [8, 96], sizes = [2, 96], strides = [1, 1]} : vector<16x192xf32> to vector<2x96xf32>
    %cst_264 = arith.constant dense<0.000000e+00> : vector<2x96xf32>
    %837 = tpu.matmul %799, %586, %cst_264 {dimension_numbers = #tpu.dot_dimension_numbers<[1], [0], [0], [1], [0, 0, 1, 1], [], []>} : vector<2x32xf32>, vector<32x96xf32>, vector<2x96xf32> -> vector<2x96xf32>
    %838 = vector.broadcast %590 : vector<1x96xf32> to vector<2x96xf32>
    %839 = arith.addf %837, %838 : vector<2x96xf32>
    %840 = vector.extract_strided_slice %836 {offsets = [0, 0], sizes = [2, 32], strides = [1, 1]} : vector<2x96xf32> to vector<2x32xf32>
    %841 = vector.extract_strided_slice %839 {offsets = [0, 0], sizes = [2, 32], strides = [1, 1]} : vector<2x96xf32> to vector<2x32xf32>
    %842 = arith.addf %840, %841 : vector<2x32xf32>
    %cst_265 = arith.constant 0.000000e+00 : f32
    %843 = vector.broadcast %cst_265 : f32 to vector<2x32xf32>
    %844 = arith.subf %843, %842 : vector<2x32xf32>
    %845 = math.exp %844 : vector<2x32xf32>
    %cst_266 = arith.constant 1.000000e+00 : f32
    %846 = vector.broadcast %cst_266 : f32 to vector<2x32xf32>
    %847 = arith.addf %846, %845 : vector<2x32xf32>
    %cst_267 = arith.constant 1.000000e+00 : f32
    %848 = vector.broadcast %cst_267 : f32 to vector<2x32xf32>
    %849 = arith.divf %848, %847 : vector<2x32xf32>
    %850 = vector.extract_strided_slice %836 {offsets = [0, 32], sizes = [2, 32], strides = [1, 1]} : vector<2x96xf32> to vector<2x32xf32>
    %851 = vector.extract_strided_slice %839 {offsets = [0, 32], sizes = [2, 32], strides = [1, 1]} : vector<2x96xf32> to vector<2x32xf32>
    %852 = arith.addf %850, %851 : vector<2x32xf32>
    %cst_268 = arith.constant 0.000000e+00 : f32
    %853 = vector.broadcast %cst_268 : f32 to vector<2x32xf32>
    %854 = arith.subf %853, %852 : vector<2x32xf32>
    %855 = math.exp %854 : vector<2x32xf32>
    %cst_269 = arith.constant 1.000000e+00 : f32
    %856 = vector.broadcast %cst_269 : f32 to vector<2x32xf32>
    %857 = arith.addf %856, %855 : vector<2x32xf32>
    %cst_270 = arith.constant 1.000000e+00 : f32
    %858 = vector.broadcast %cst_270 : f32 to vector<2x32xf32>
    %859 = arith.divf %858, %857 : vector<2x32xf32>
    %860 = vector.extract_strided_slice %836 {offsets = [0, 64], sizes = [2, 32], strides = [1, 1]} : vector<2x96xf32> to vector<2x32xf32>
    %861 = vector.extract_strided_slice %839 {offsets = [0, 64], sizes = [2, 32], strides = [1, 1]} : vector<2x96xf32> to vector<2x32xf32>
    %862 = arith.mulf %849, %861 : vector<2x32xf32>
    %863 = arith.addf %860, %862 : vector<2x32xf32>
    %864 = math.tanh %863 : vector<2x32xf32>
    %cst_271 = arith.constant 1.000000e+00 : f32
    %865 = vector.broadcast %cst_271 : f32 to vector<2x32xf32>
    %866 = arith.subf %865, %859 : vector<2x32xf32>
    %867 = arith.mulf %866, %864 : vector<2x32xf32>
    %868 = arith.mulf %859, %799 : vector<2x32xf32>
    %869 = arith.addf %867, %868 : vector<2x32xf32>
    %c8_272 = arith.constant 8 : index
    %c32_273 = arith.constant 32 : index
    %870 = vector.load %arg10[%c8_272, %c32_273] : memref<16x64xf32, #tpu.memory_space<vmem>>, vector<2x32xf32>
    tpu.vector_store %arg10[%c8_272, %c32_273], %869 {strides = array<i32>} : memref<16x64xf32, #tpu.memory_space<vmem>>, vector<2x32xf32>,
    %871 = vector.extract_strided_slice %582 {offsets = [8, 0], sizes = [2, 96], strides = [1, 1]} : vector<16x192xf32> to vector<2x96xf32>
    %cst_274 = arith.constant dense<0.000000e+00> : vector<2x96xf32>
    %872 = tpu.matmul %834, %584, %cst_274 {dimension_numbers = #tpu.dot_dimension_numbers<[1], [0], [0], [1], [0, 0, 1, 1], [], []>} : vector<2x32xf32>, vector<32x96xf32>, vector<2x96xf32> -> vector<2x96xf32>
    %873 = vector.broadcast %588 : vector<1x96xf32> to vector<2x96xf32>
    %874 = arith.addf %872, %873 : vector<2x96xf32>
    %875 = vector.extract_strided_slice %871 {offsets = [0, 0], sizes = [2, 32], strides = [1, 1]} : vector<2x96xf32> to vector<2x32xf32>
    %876 = vector.extract_strided_slice %874 {offsets = [0, 0], sizes = [2, 32], strides = [1, 1]} : vector<2x96xf32> to vector<2x32xf32>
    %877 = arith.addf %875, %876 : vector<2x32xf32>
    %cst_275 = arith.constant 0.000000e+00 : f32
    %878 = vector.broadcast %cst_275 : f32 to vector<2x32xf32>
    %879 = arith.subf %878, %877 : vector<2x32xf32>
    %880 = math.exp %879 : vector<2x32xf32>
    %cst_276 = arith.constant 1.000000e+00 : f32
    %881 = vector.broadcast %cst_276 : f32 to vector<2x32xf32>
    %882 = arith.addf %881, %880 : vector<2x32xf32>
    %cst_277 = arith.constant 1.000000e+00 : f32
    %883 = vector.broadcast %cst_277 : f32 to vector<2x32xf32>
    %884 = arith.divf %883, %882 : vector<2x32xf32>
    %885 = vector.extract_strided_slice %871 {offsets = [0, 32], sizes = [2, 32], strides = [1, 1]} : vector<2x96xf32> to vector<2x32xf32>
    %886 = vector.extract_strided_slice %874 {offsets = [0, 32], sizes = [2, 32], strides = [1, 1]} : vector<2x96xf32> to vector<2x32xf32>
    %887 = arith.addf %885, %886 : vector<2x32xf32>
    %cst_278 = arith.constant 0.000000e+00 : f32
    %888 = vector.broadcast %cst_278 : f32 to vector<2x32xf32>
    %889 = arith.subf %888, %887 : vector<2x32xf32>
    %890 = math.exp %889 : vector<2x32xf32>
    %cst_279 = arith.constant 1.000000e+00 : f32
    %891 = vector.broadcast %cst_279 : f32 to vector<2x32xf32>
    %892 = arith.addf %891, %890 : vector<2x32xf32>
    %cst_280 = arith.constant 1.000000e+00 : f32
    %893 = vector.broadcast %cst_280 : f32 to vector<2x32xf32>
    %894 = arith.divf %893, %892 : vector<2x32xf32>
    %895 = vector.extract_strided_slice %871 {offsets = [0, 64], sizes = [2, 32], strides = [1, 1]} : vector<2x96xf32> to vector<2x32xf32>
    %896 = vector.extract_strided_slice %874 {offsets = [0, 64], sizes = [2, 32], strides = [1, 1]} : vector<2x96xf32> to vector<2x32xf32>
    %897 = arith.mulf %884, %896 : vector<2x32xf32>
    %898 = arith.addf %895, %897 : vector<2x32xf32>
    %899 = math.tanh %898 : vector<2x32xf32>
    %cst_281 = arith.constant 1.000000e+00 : f32
    %900 = vector.broadcast %cst_281 : f32 to vector<2x32xf32>
    %901 = arith.subf %900, %894 : vector<2x32xf32>
    %902 = arith.mulf %901, %899 : vector<2x32xf32>
    %903 = arith.mulf %894, %834 : vector<2x32xf32>
    %904 = arith.addf %902, %903 : vector<2x32xf32>
    %c8_282 = arith.constant 8 : index
    %c0_283 = arith.constant 0 : index
    %905 = vector.load %arg10[%c8_282, %c0_283] : memref<16x64xf32, #tpu.memory_space<vmem>>, vector<2x32xf32>
    tpu.vector_store %arg10[%c8_282, %c0_283], %904 {strides = array<i32>} : memref<16x64xf32, #tpu.memory_space<vmem>>, vector<2x32xf32>,
    %906 = vector.extract_strided_slice %582 {offsets = [6, 96], sizes = [2, 96], strides = [1, 1]} : vector<16x192xf32> to vector<2x96xf32>
    %cst_284 = arith.constant dense<0.000000e+00> : vector<2x96xf32>
    %907 = tpu.matmul %869, %586, %cst_284 {dimension_numbers = #tpu.dot_dimension_numbers<[1], [0], [0], [1], [0, 0, 1, 1], [], []>} : vector<2x32xf32>, vector<32x96xf32>, vector<2x96xf32> -> vector<2x96xf32>
    %908 = vector.broadcast %590 : vector<1x96xf32> to vector<2x96xf32>
    %909 = arith.addf %907, %908 : vector<2x96xf32>
    %910 = vector.extract_strided_slice %906 {offsets = [0, 0], sizes = [2, 32], strides = [1, 1]} : vector<2x96xf32> to vector<2x32xf32>
    %911 = vector.extract_strided_slice %909 {offsets = [0, 0], sizes = [2, 32], strides = [1, 1]} : vector<2x96xf32> to vector<2x32xf32>
    %912 = arith.addf %910, %911 : vector<2x32xf32>
    %cst_285 = arith.constant 0.000000e+00 : f32
    %913 = vector.broadcast %cst_285 : f32 to vector<2x32xf32>
    %914 = arith.subf %913, %912 : vector<2x32xf32>
    %915 = math.exp %914 : vector<2x32xf32>
    %cst_286 = arith.constant 1.000000e+00 : f32
    %916 = vector.broadcast %cst_286 : f32 to vector<2x32xf32>
    %917 = arith.addf %916, %915 : vector<2x32xf32>
    %cst_287 = arith.constant 1.000000e+00 : f32
    %918 = vector.broadcast %cst_287 : f32 to vector<2x32xf32>
    %919 = arith.divf %918, %917 : vector<2x32xf32>
    %920 = vector.extract_strided_slice %906 {offsets = [0, 32], sizes = [2, 32], strides = [1, 1]} : vector<2x96xf32> to vector<2x32xf32>
    %921 = vector.extract_strided_slice %909 {offsets = [0, 32], sizes = [2, 32], strides = [1, 1]} : vector<2x96xf32> to vector<2x32xf32>
    %922 = arith.addf %920, %921 : vector<2x32xf32>
    %cst_288 = arith.constant 0.000000e+00 : f32
    %923 = vector.broadcast %cst_288 : f32 to vector<2x32xf32>
    %924 = arith.subf %923, %922 : vector<2x32xf32>
    %925 = math.exp %924 : vector<2x32xf32>
    %cst_289 = arith.constant 1.000000e+00 : f32
    %926 = vector.broadcast %cst_289 : f32 to vector<2x32xf32>
    %927 = arith.addf %926, %925 : vector<2x32xf32>
    %cst_290 = arith.constant 1.000000e+00 : f32
    %928 = vector.broadcast %cst_290 : f32 to vector<2x32xf32>
    %929 = arith.divf %928, %927 : vector<2x32xf32>
    %930 = vector.extract_strided_slice %906 {offsets = [0, 64], sizes = [2, 32], strides = [1, 1]} : vector<2x96xf32> to vector<2x32xf32>
    %931 = vector.extract_strided_slice %909 {offsets = [0, 64], sizes = [2, 32], strides = [1, 1]} : vector<2x96xf32> to vector<2x32xf32>
    %932 = arith.mulf %919, %931 : vector<2x32xf32>
    %933 = arith.addf %930, %932 : vector<2x32xf32>
    %934 = math.tanh %933 : vector<2x32xf32>
    %cst_291 = arith.constant 1.000000e+00 : f32
    %935 = vector.broadcast %cst_291 : f32 to vector<2x32xf32>
    %936 = arith.subf %935, %929 : vector<2x32xf32>
    %937 = arith.mulf %936, %934 : vector<2x32xf32>
    %938 = arith.mulf %929, %869 : vector<2x32xf32>
    %939 = arith.addf %937, %938 : vector<2x32xf32>
    %c6_292 = arith.constant 6 : index
    %c32_293 = arith.constant 32 : index
    %940 = vector.load %arg10[%c6_292, %c32_293] : memref<16x64xf32, #tpu.memory_space<vmem>>, vector<2x32xf32>
    tpu.vector_store %arg10[%c6_292, %c32_293], %939 {strides = array<i32>} : memref<16x64xf32, #tpu.memory_space<vmem>>, vector<2x32xf32>,
    %941 = vector.extract_strided_slice %582 {offsets = [10, 0], sizes = [2, 96], strides = [1, 1]} : vector<16x192xf32> to vector<2x96xf32>
    %cst_294 = arith.constant dense<0.000000e+00> : vector<2x96xf32>
    %942 = tpu.matmul %904, %584, %cst_294 {dimension_numbers = #tpu.dot_dimension_numbers<[1], [0], [0], [1], [0, 0, 1, 1], [], []>} : vector<2x32xf32>, vector<32x96xf32>, vector<2x96xf32> -> vector<2x96xf32>
    %943 = vector.broadcast %588 : vector<1x96xf32> to vector<2x96xf32>
    %944 = arith.addf %942, %943 : vector<2x96xf32>
    %945 = vector.extract_strided_slice %941 {offsets = [0, 0], sizes = [2, 32], strides = [1, 1]} : vector<2x96xf32> to vector<2x32xf32>
    %946 = vector.extract_strided_slice %944 {offsets = [0, 0], sizes = [2, 32], strides = [1, 1]} : vector<2x96xf32> to vector<2x32xf32>
    %947 = arith.addf %945, %946 : vector<2x32xf32>
    %cst_295 = arith.constant 0.000000e+00 : f32
    %948 = vector.broadcast %cst_295 : f32 to vector<2x32xf32>
    %949 = arith.subf %948, %947 : vector<2x32xf32>
    %950 = math.exp %949 : vector<2x32xf32>
    %cst_296 = arith.constant 1.000000e+00 : f32
    %951 = vector.broadcast %cst_296 : f32 to vector<2x32xf32>
    %952 = arith.addf %951, %950 : vector<2x32xf32>
    %cst_297 = arith.constant 1.000000e+00 : f32
    %953 = vector.broadcast %cst_297 : f32 to vector<2x32xf32>
    %954 = arith.divf %953, %952 : vector<2x32xf32>
    %955 = vector.extract_strided_slice %941 {offsets = [0, 32], sizes = [2, 32], strides = [1, 1]} : vector<2x96xf32> to vector<2x32xf32>
    %956 = vector.extract_strided_slice %944 {offsets = [0, 32], sizes = [2, 32], strides = [1, 1]} : vector<2x96xf32> to vector<2x32xf32>
    %957 = arith.addf %955, %956 : vector<2x32xf32>
    %cst_298 = arith.constant 0.000000e+00 : f32
    %958 = vector.broadcast %cst_298 : f32 to vector<2x32xf32>
    %959 = arith.subf %958, %957 : vector<2x32xf32>
    %960 = math.exp %959 : vector<2x32xf32>
    %cst_299 = arith.constant 1.000000e+00 : f32
    %961 = vector.broadcast %cst_299 : f32 to vector<2x32xf32>
    %962 = arith.addf %961, %960 : vector<2x32xf32>
    %cst_300 = arith.constant 1.000000e+00 : f32
    %963 = vector.broadcast %cst_300 : f32 to vector<2x32xf32>
    %964 = arith.divf %963, %962 : vector<2x32xf32>
    %965 = vector.extract_strided_slice %941 {offsets = [0, 64], sizes = [2, 32], strides = [1, 1]} : vector<2x96xf32> to vector<2x32xf32>
    %966 = vector.extract_strided_slice %944 {offsets = [0, 64], sizes = [2, 32], strides = [1, 1]} : vector<2x96xf32> to vector<2x32xf32>
    %967 = arith.mulf %954, %966 : vector<2x32xf32>
    %968 = arith.addf %965, %967 : vector<2x32xf32>
    %969 = math.tanh %968 : vector<2x32xf32>
    %cst_301 = arith.constant 1.000000e+00 : f32
    %970 = vector.broadcast %cst_301 : f32 to vector<2x32xf32>
    %971 = arith.subf %970, %964 : vector<2x32xf32>
    %972 = arith.mulf %971, %969 : vector<2x32xf32>
    %973 = arith.mulf %964, %904 : vector<2x32xf32>
    %974 = arith.addf %972, %973 : vector<2x32xf32>
    %c10_302 = arith.constant 10 : index
    %c0_303 = arith.constant 0 : index
    %975 = vector.load %arg10[%c10_302, %c0_303] : memref<16x64xf32, #tpu.memory_space<vmem>>, vector<2x32xf32>
    tpu.vector_store %arg10[%c10_302, %c0_303], %974 {strides = array<i32>} : memref<16x64xf32, #tpu.memory_space<vmem>>, vector<2x32xf32>,
    %976 = vector.extract_strided_slice %582 {offsets = [4, 96], sizes = [2, 96], strides = [1, 1]} : vector<16x192xf32> to vector<2x96xf32>
    %cst_304 = arith.constant dense<0.000000e+00> : vector<2x96xf32>
    %977 = tpu.matmul %939, %586, %cst_304 {dimension_numbers = #tpu.dot_dimension_numbers<[1], [0], [0], [1], [0, 0, 1, 1], [], []>} : vector<2x32xf32>, vector<32x96xf32>, vector<2x96xf32> -> vector<2x96xf32>
    %978 = vector.broadcast %590 : vector<1x96xf32> to vector<2x96xf32>
    %979 = arith.addf %977, %978 : vector<2x96xf32>
    %980 = vector.extract_strided_slice %976 {offsets = [0, 0], sizes = [2, 32], strides = [1, 1]} : vector<2x96xf32> to vector<2x32xf32>
    %981 = vector.extract_strided_slice %979 {offsets = [0, 0], sizes = [2, 32], strides = [1, 1]} : vector<2x96xf32> to vector<2x32xf32>
    %982 = arith.addf %980, %981 : vector<2x32xf32>
    %cst_305 = arith.constant 0.000000e+00 : f32
    %983 = vector.broadcast %cst_305 : f32 to vector<2x32xf32>
    %984 = arith.subf %983, %982 : vector<2x32xf32>
    %985 = math.exp %984 : vector<2x32xf32>
    %cst_306 = arith.constant 1.000000e+00 : f32
    %986 = vector.broadcast %cst_306 : f32 to vector<2x32xf32>
    %987 = arith.addf %986, %985 : vector<2x32xf32>
    %cst_307 = arith.constant 1.000000e+00 : f32
    %988 = vector.broadcast %cst_307 : f32 to vector<2x32xf32>
    %989 = arith.divf %988, %987 : vector<2x32xf32>
    %990 = vector.extract_strided_slice %976 {offsets = [0, 32], sizes = [2, 32], strides = [1, 1]} : vector<2x96xf32> to vector<2x32xf32>
    %991 = vector.extract_strided_slice %979 {offsets = [0, 32], sizes = [2, 32], strides = [1, 1]} : vector<2x96xf32> to vector<2x32xf32>
    %992 = arith.addf %990, %991 : vector<2x32xf32>
    %cst_308 = arith.constant 0.000000e+00 : f32
    %993 = vector.broadcast %cst_308 : f32 to vector<2x32xf32>
    %994 = arith.subf %993, %992 : vector<2x32xf32>
    %995 = math.exp %994 : vector<2x32xf32>
    %cst_309 = arith.constant 1.000000e+00 : f32
    %996 = vector.broadcast %cst_309 : f32 to vector<2x32xf32>
    %997 = arith.addf %996, %995 : vector<2x32xf32>
    %cst_310 = arith.constant 1.000000e+00 : f32
    %998 = vector.broadcast %cst_310 : f32 to vector<2x32xf32>
    %999 = arith.divf %998, %997 : vector<2x32xf32>
    %1000 = vector.extract_strided_slice %976 {offsets = [0, 64], sizes = [2, 32], strides = [1, 1]} : vector<2x96xf32> to vector<2x32xf32>
    %1001 = vector.extract_strided_slice %979 {offsets = [0, 64], sizes = [2, 32], strides = [1, 1]} : vector<2x96xf32> to vector<2x32xf32>
    %1002 = arith.mulf %989, %1001 : vector<2x32xf32>
    %1003 = arith.addf %1000, %1002 : vector<2x32xf32>
    %1004 = math.tanh %1003 : vector<2x32xf32>
    %cst_311 = arith.constant 1.000000e+00 : f32
    %1005 = vector.broadcast %cst_311 : f32 to vector<2x32xf32>
    %1006 = arith.subf %1005, %999 : vector<2x32xf32>
    %1007 = arith.mulf %1006, %1004 : vector<2x32xf32>
    %1008 = arith.mulf %999, %939 : vector<2x32xf32>
    %1009 = arith.addf %1007, %1008 : vector<2x32xf32>
    %c4_312 = arith.constant 4 : index
    %c32_313 = arith.constant 32 : index
    %1010 = vector.load %arg10[%c4_312, %c32_313] : memref<16x64xf32, #tpu.memory_space<vmem>>, vector<2x32xf32>
    tpu.vector_store %arg10[%c4_312, %c32_313], %1009 {strides = array<i32>} : memref<16x64xf32, #tpu.memory_space<vmem>>, vector<2x32xf32>,
    %1011 = vector.extract_strided_slice %582 {offsets = [12, 0], sizes = [2, 96], strides = [1, 1]} : vector<16x192xf32> to vector<2x96xf32>
    %cst_314 = arith.constant dense<0.000000e+00> : vector<2x96xf32>
    %1012 = tpu.matmul %974, %584, %cst_314 {dimension_numbers = #tpu.dot_dimension_numbers<[1], [0], [0], [1], [0, 0, 1, 1], [], []>} : vector<2x32xf32>, vector<32x96xf32>, vector<2x96xf32> -> vector<2x96xf32>
    %1013 = vector.broadcast %588 : vector<1x96xf32> to vector<2x96xf32>
    %1014 = arith.addf %1012, %1013 : vector<2x96xf32>
    %1015 = vector.extract_strided_slice %1011 {offsets = [0, 0], sizes = [2, 32], strides = [1, 1]} : vector<2x96xf32> to vector<2x32xf32>
    %1016 = vector.extract_strided_slice %1014 {offsets = [0, 0], sizes = [2, 32], strides = [1, 1]} : vector<2x96xf32> to vector<2x32xf32>
    %1017 = arith.addf %1015, %1016 : vector<2x32xf32>
    %cst_315 = arith.constant 0.000000e+00 : f32
    %1018 = vector.broadcast %cst_315 : f32 to vector<2x32xf32>
    %1019 = arith.subf %1018, %1017 : vector<2x32xf32>
    %1020 = math.exp %1019 : vector<2x32xf32>
    %cst_316 = arith.constant 1.000000e+00 : f32
    %1021 = vector.broadcast %cst_316 : f32 to vector<2x32xf32>
    %1022 = arith.addf %1021, %1020 : vector<2x32xf32>
    %cst_317 = arith.constant 1.000000e+00 : f32
    %1023 = vector.broadcast %cst_317 : f32 to vector<2x32xf32>
    %1024 = arith.divf %1023, %1022 : vector<2x32xf32>
    %1025 = vector.extract_strided_slice %1011 {offsets = [0, 32], sizes = [2, 32], strides = [1, 1]} : vector<2x96xf32> to vector<2x32xf32>
    %1026 = vector.extract_strided_slice %1014 {offsets = [0, 32], sizes = [2, 32], strides = [1, 1]} : vector<2x96xf32> to vector<2x32xf32>
    %1027 = arith.addf %1025, %1026 : vector<2x32xf32>
    %cst_318 = arith.constant 0.000000e+00 : f32
    %1028 = vector.broadcast %cst_318 : f32 to vector<2x32xf32>
    %1029 = arith.subf %1028, %1027 : vector<2x32xf32>
    %1030 = math.exp %1029 : vector<2x32xf32>
    %cst_319 = arith.constant 1.000000e+00 : f32
    %1031 = vector.broadcast %cst_319 : f32 to vector<2x32xf32>
    %1032 = arith.addf %1031, %1030 : vector<2x32xf32>
    %cst_320 = arith.constant 1.000000e+00 : f32
    %1033 = vector.broadcast %cst_320 : f32 to vector<2x32xf32>
    %1034 = arith.divf %1033, %1032 : vector<2x32xf32>
    %1035 = vector.extract_strided_slice %1011 {offsets = [0, 64], sizes = [2, 32], strides = [1, 1]} : vector<2x96xf32> to vector<2x32xf32>
    %1036 = vector.extract_strided_slice %1014 {offsets = [0, 64], sizes = [2, 32], strides = [1, 1]} : vector<2x96xf32> to vector<2x32xf32>
    %1037 = arith.mulf %1024, %1036 : vector<2x32xf32>
    %1038 = arith.addf %1035, %1037 : vector<2x32xf32>
    %1039 = math.tanh %1038 : vector<2x32xf32>
    %cst_321 = arith.constant 1.000000e+00 : f32
    %1040 = vector.broadcast %cst_321 : f32 to vector<2x32xf32>
    %1041 = arith.subf %1040, %1034 : vector<2x32xf32>
    %1042 = arith.mulf %1041, %1039 : vector<2x32xf32>
    %1043 = arith.mulf %1034, %974 : vector<2x32xf32>
    %1044 = arith.addf %1042, %1043 : vector<2x32xf32>
    %c12_322 = arith.constant 12 : index
    %c0_323 = arith.constant 0 : index
    %1045 = vector.load %arg10[%c12_322, %c0_323] : memref<16x64xf32, #tpu.memory_space<vmem>>, vector<2x32xf32>
    tpu.vector_store %arg10[%c12_322, %c0_323], %1044 {strides = array<i32>} : memref<16x64xf32, #tpu.memory_space<vmem>>, vector<2x32xf32>,
    %1046 = vector.extract_strided_slice %582 {offsets = [2, 96], sizes = [2, 96], strides = [1, 1]} : vector<16x192xf32> to vector<2x96xf32>
    %cst_324 = arith.constant dense<0.000000e+00> : vector<2x96xf32>
    %1047 = tpu.matmul %1009, %586, %cst_324 {dimension_numbers = #tpu.dot_dimension_numbers<[1], [0], [0], [1], [0, 0, 1, 1], [], []>} : vector<2x32xf32>, vector<32x96xf32>, vector<2x96xf32> -> vector<2x96xf32>
    %1048 = vector.broadcast %590 : vector<1x96xf32> to vector<2x96xf32>
    %1049 = arith.addf %1047, %1048 : vector<2x96xf32>
    %1050 = vector.extract_strided_slice %1046 {offsets = [0, 0], sizes = [2, 32], strides = [1, 1]} : vector<2x96xf32> to vector<2x32xf32>
    %1051 = vector.extract_strided_slice %1049 {offsets = [0, 0], sizes = [2, 32], strides = [1, 1]} : vector<2x96xf32> to vector<2x32xf32>
    %1052 = arith.addf %1050, %1051 : vector<2x32xf32>
    %cst_325 = arith.constant 0.000000e+00 : f32
    %1053 = vector.broadcast %cst_325 : f32 to vector<2x32xf32>
    %1054 = arith.subf %1053, %1052 : vector<2x32xf32>
    %1055 = math.exp %1054 : vector<2x32xf32>
    %cst_326 = arith.constant 1.000000e+00 : f32
    %1056 = vector.broadcast %cst_326 : f32 to vector<2x32xf32>
    %1057 = arith.addf %1056, %1055 : vector<2x32xf32>
    %cst_327 = arith.constant 1.000000e+00 : f32
    %1058 = vector.broadcast %cst_327 : f32 to vector<2x32xf32>
    %1059 = arith.divf %1058, %1057 : vector<2x32xf32>
    %1060 = vector.extract_strided_slice %1046 {offsets = [0, 32], sizes = [2, 32], strides = [1, 1]} : vector<2x96xf32> to vector<2x32xf32>
    %1061 = vector.extract_strided_slice %1049 {offsets = [0, 32], sizes = [2, 32], strides = [1, 1]} : vector<2x96xf32> to vector<2x32xf32>
    %1062 = arith.addf %1060, %1061 : vector<2x32xf32>
    %cst_328 = arith.constant 0.000000e+00 : f32
    %1063 = vector.broadcast %cst_328 : f32 to vector<2x32xf32>
    %1064 = arith.subf %1063, %1062 : vector<2x32xf32>
    %1065 = math.exp %1064 : vector<2x32xf32>
    %cst_329 = arith.constant 1.000000e+00 : f32
    %1066 = vector.broadcast %cst_329 : f32 to vector<2x32xf32>
    %1067 = arith.addf %1066, %1065 : vector<2x32xf32>
    %cst_330 = arith.constant 1.000000e+00 : f32
    %1068 = vector.broadcast %cst_330 : f32 to vector<2x32xf32>
    %1069 = arith.divf %1068, %1067 : vector<2x32xf32>
    %1070 = vector.extract_strided_slice %1046 {offsets = [0, 64], sizes = [2, 32], strides = [1, 1]} : vector<2x96xf32> to vector<2x32xf32>
    %1071 = vector.extract_strided_slice %1049 {offsets = [0, 64], sizes = [2, 32], strides = [1, 1]} : vector<2x96xf32> to vector<2x32xf32>
    %1072 = arith.mulf %1059, %1071 : vector<2x32xf32>
    %1073 = arith.addf %1070, %1072 : vector<2x32xf32>
    %1074 = math.tanh %1073 : vector<2x32xf32>
    %cst_331 = arith.constant 1.000000e+00 : f32
    %1075 = vector.broadcast %cst_331 : f32 to vector<2x32xf32>
    %1076 = arith.subf %1075, %1069 : vector<2x32xf32>
    %1077 = arith.mulf %1076, %1074 : vector<2x32xf32>
    %1078 = arith.mulf %1069, %1009 : vector<2x32xf32>
    %1079 = arith.addf %1077, %1078 : vector<2x32xf32>
    %c2_332 = arith.constant 2 : index
    %c32_333 = arith.constant 32 : index
    %1080 = vector.load %arg10[%c2_332, %c32_333] : memref<16x64xf32, #tpu.memory_space<vmem>>, vector<2x32xf32>
    tpu.vector_store %arg10[%c2_332, %c32_333], %1079 {strides = array<i32>} : memref<16x64xf32, #tpu.memory_space<vmem>>, vector<2x32xf32>,
    %1081 = vector.extract_strided_slice %582 {offsets = [14, 0], sizes = [2, 96], strides = [1, 1]} : vector<16x192xf32> to vector<2x96xf32>
    %cst_334 = arith.constant dense<0.000000e+00> : vector<2x96xf32>
    %1082 = tpu.matmul %1044, %584, %cst_334 {dimension_numbers = #tpu.dot_dimension_numbers<[1], [0], [0], [1], [0, 0, 1, 1], [], []>} : vector<2x32xf32>, vector<32x96xf32>, vector<2x96xf32> -> vector<2x96xf32>
    %1083 = vector.broadcast %588 : vector<1x96xf32> to vector<2x96xf32>
    %1084 = arith.addf %1082, %1083 : vector<2x96xf32>
    %1085 = vector.extract_strided_slice %1081 {offsets = [0, 0], sizes = [2, 32], strides = [1, 1]} : vector<2x96xf32> to vector<2x32xf32>
    %1086 = vector.extract_strided_slice %1084 {offsets = [0, 0], sizes = [2, 32], strides = [1, 1]} : vector<2x96xf32> to vector<2x32xf32>
    %1087 = arith.addf %1085, %1086 : vector<2x32xf32>
    %cst_335 = arith.constant 0.000000e+00 : f32
    %1088 = vector.broadcast %cst_335 : f32 to vector<2x32xf32>
    %1089 = arith.subf %1088, %1087 : vector<2x32xf32>
    %1090 = math.exp %1089 : vector<2x32xf32>
    %cst_336 = arith.constant 1.000000e+00 : f32
    %1091 = vector.broadcast %cst_336 : f32 to vector<2x32xf32>
    %1092 = arith.addf %1091, %1090 : vector<2x32xf32>
    %cst_337 = arith.constant 1.000000e+00 : f32
    %1093 = vector.broadcast %cst_337 : f32 to vector<2x32xf32>
    %1094 = arith.divf %1093, %1092 : vector<2x32xf32>
    %1095 = vector.extract_strided_slice %1081 {offsets = [0, 32], sizes = [2, 32], strides = [1, 1]} : vector<2x96xf32> to vector<2x32xf32>
    %1096 = vector.extract_strided_slice %1084 {offsets = [0, 32], sizes = [2, 32], strides = [1, 1]} : vector<2x96xf32> to vector<2x32xf32>
    %1097 = arith.addf %1095, %1096 : vector<2x32xf32>
    %cst_338 = arith.constant 0.000000e+00 : f32
    %1098 = vector.broadcast %cst_338 : f32 to vector<2x32xf32>
    %1099 = arith.subf %1098, %1097 : vector<2x32xf32>
    %1100 = math.exp %1099 : vector<2x32xf32>
    %cst_339 = arith.constant 1.000000e+00 : f32
    %1101 = vector.broadcast %cst_339 : f32 to vector<2x32xf32>
    %1102 = arith.addf %1101, %1100 : vector<2x32xf32>
    %cst_340 = arith.constant 1.000000e+00 : f32
    %1103 = vector.broadcast %cst_340 : f32 to vector<2x32xf32>
    %1104 = arith.divf %1103, %1102 : vector<2x32xf32>
    %1105 = vector.extract_strided_slice %1081 {offsets = [0, 64], sizes = [2, 32], strides = [1, 1]} : vector<2x96xf32> to vector<2x32xf32>
    %1106 = vector.extract_strided_slice %1084 {offsets = [0, 64], sizes = [2, 32], strides = [1, 1]} : vector<2x96xf32> to vector<2x32xf32>
    %1107 = arith.mulf %1094, %1106 : vector<2x32xf32>
    %1108 = arith.addf %1105, %1107 : vector<2x32xf32>
    %1109 = math.tanh %1108 : vector<2x32xf32>
    %cst_341 = arith.constant 1.000000e+00 : f32
    %1110 = vector.broadcast %cst_341 : f32 to vector<2x32xf32>
    %1111 = arith.subf %1110, %1104 : vector<2x32xf32>
    %1112 = arith.mulf %1111, %1109 : vector<2x32xf32>
    %1113 = arith.mulf %1104, %1044 : vector<2x32xf32>
    %1114 = arith.addf %1112, %1113 : vector<2x32xf32>
    %c14_342 = arith.constant 14 : index
    %c0_343 = arith.constant 0 : index
    %1115 = vector.load %arg10[%c14_342, %c0_343] : memref<16x64xf32, #tpu.memory_space<vmem>>, vector<2x32xf32>
    tpu.vector_store %arg10[%c14_342, %c0_343], %1114 {strides = array<i32>} : memref<16x64xf32, #tpu.memory_space<vmem>>, vector<2x32xf32>,
    %1116 = vector.extract_strided_slice %582 {offsets = [0, 96], sizes = [2, 96], strides = [1, 1]} : vector<16x192xf32> to vector<2x96xf32>
    %cst_344 = arith.constant dense<0.000000e+00> : vector<2x96xf32>
    %1117 = tpu.matmul %1079, %586, %cst_344 {dimension_numbers = #tpu.dot_dimension_numbers<[1], [0], [0], [1], [0, 0, 1, 1], [], []>} : vector<2x32xf32>, vector<32x96xf32>, vector<2x96xf32> -> vector<2x96xf32>
    %1118 = vector.broadcast %590 : vector<1x96xf32> to vector<2x96xf32>
    %1119 = arith.addf %1117, %1118 : vector<2x96xf32>
    %1120 = vector.extract_strided_slice %1116 {offsets = [0, 0], sizes = [2, 32], strides = [1, 1]} : vector<2x96xf32> to vector<2x32xf32>
    %1121 = vector.extract_strided_slice %1119 {offsets = [0, 0], sizes = [2, 32], strides = [1, 1]} : vector<2x96xf32> to vector<2x32xf32>
    %1122 = arith.addf %1120, %1121 : vector<2x32xf32>
    %cst_345 = arith.constant 0.000000e+00 : f32
    %1123 = vector.broadcast %cst_345 : f32 to vector<2x32xf32>
    %1124 = arith.subf %1123, %1122 : vector<2x32xf32>
    %1125 = math.exp %1124 : vector<2x32xf32>
    %cst_346 = arith.constant 1.000000e+00 : f32
    %1126 = vector.broadcast %cst_346 : f32 to vector<2x32xf32>
    %1127 = arith.addf %1126, %1125 : vector<2x32xf32>
    %cst_347 = arith.constant 1.000000e+00 : f32
    %1128 = vector.broadcast %cst_347 : f32 to vector<2x32xf32>
    %1129 = arith.divf %1128, %1127 : vector<2x32xf32>
    %1130 = vector.extract_strided_slice %1116 {offsets = [0, 32], sizes = [2, 32], strides = [1, 1]} : vector<2x96xf32> to vector<2x32xf32>
    %1131 = vector.extract_strided_slice %1119 {offsets = [0, 32], sizes = [2, 32], strides = [1, 1]} : vector<2x96xf32> to vector<2x32xf32>
    %1132 = arith.addf %1130, %1131 : vector<2x32xf32>
    %cst_348 = arith.constant 0.000000e+00 : f32
    %1133 = vector.broadcast %cst_348 : f32 to vector<2x32xf32>
    %1134 = arith.subf %1133, %1132 : vector<2x32xf32>
    %1135 = math.exp %1134 : vector<2x32xf32>
    %cst_349 = arith.constant 1.000000e+00 : f32
    %1136 = vector.broadcast %cst_349 : f32 to vector<2x32xf32>
    %1137 = arith.addf %1136, %1135 : vector<2x32xf32>
    %cst_350 = arith.constant 1.000000e+00 : f32
    %1138 = vector.broadcast %cst_350 : f32 to vector<2x32xf32>
    %1139 = arith.divf %1138, %1137 : vector<2x32xf32>
    %1140 = vector.extract_strided_slice %1116 {offsets = [0, 64], sizes = [2, 32], strides = [1, 1]} : vector<2x96xf32> to vector<2x32xf32>
    %1141 = vector.extract_strided_slice %1119 {offsets = [0, 64], sizes = [2, 32], strides = [1, 1]} : vector<2x96xf32> to vector<2x32xf32>
    %1142 = arith.mulf %1129, %1141 : vector<2x32xf32>
    %1143 = arith.addf %1140, %1142 : vector<2x32xf32>
    %1144 = math.tanh %1143 : vector<2x32xf32>
    %cst_351 = arith.constant 1.000000e+00 : f32
    %1145 = vector.broadcast %cst_351 : f32 to vector<2x32xf32>
    %1146 = arith.subf %1145, %1139 : vector<2x32xf32>
    %1147 = arith.mulf %1146, %1144 : vector<2x32xf32>
    %1148 = arith.mulf %1139, %1079 : vector<2x32xf32>
    %1149 = arith.addf %1147, %1148 : vector<2x32xf32>
    %c0_352 = arith.constant 0 : index
    %c32_353 = arith.constant 32 : index
    %1150 = vector.load %arg10[%c0_352, %c32_353] : memref<16x64xf32, #tpu.memory_space<vmem>>, vector<2x32xf32>
    tpu.vector_store %arg10[%c0_352, %c32_353], %1149 {strides = array<i32>} : memref<16x64xf32, #tpu.memory_space<vmem>>, vector<2x32xf32>,
    %c0_354 = arith.constant 0 : index
    %c0_355 = arith.constant 0 : index
    %1151 = vector.load %arg10[%c0_354, %c0_355] : memref<16x64xf32, #tpu.memory_space<vmem>>, vector<16x64xf32>
    %c1_356 = arith.constant 1 : index
    %c0_357 = arith.constant 0 : index
    %c0_358 = arith.constant 0 : index
    %1152 = vector.load %arg5[%c1_356, %c0_357, %c0_358] : memref<3x64x192xf32, #tpu.memory_space<vmem>>, vector<1x64x192xf32>
    %1153 = vector.shape_cast %1152 : vector<1x64x192xf32> to vector<64x192xf32>
    %c1_359 = arith.constant 1 : index
    %c0_360 = arith.constant 0 : index
    %c0_361 = arith.constant 0 : index
    %1154 = vector.load %arg6[%c1_359, %c0_360, %c0_361] : memref<3x1x192xf32, #tpu.memory_space<vmem>>, vector<1x1x192xf32>
    %1155 = vector.shape_cast %1154 : vector<1x1x192xf32> to vector<1x192xf32>
    %cst_362 = arith.constant dense<0.000000e+00> : vector<16x192xf32>
    %1156 = tpu.matmul %1151, %1153, %cst_362 {dimension_numbers = #tpu.dot_dimension_numbers<[1], [0], [0], [1], [0, 0, 1, 1], [], []>} : vector<16x64xf32>, vector<64x192xf32>, vector<16x192xf32> -> vector<16x192xf32>
    %1157 = vector.broadcast %1155 : vector<1x192xf32> to vector<16x192xf32>
    %1158 = arith.addf %1156, %1157 : vector<16x192xf32>
    %c1_363 = arith.constant 1 : index
    %c0_364 = arith.constant 0 : index
    %c0_365 = arith.constant 0 : index
    %c0_366 = arith.constant 0 : index
    %1159 = vector.load %arg7[%c1_363, %c0_364, %c0_365, %c0_366] : memref<3x2x32x96xf32, #tpu.memory_space<vmem>>, vector<1x1x32x96xf32>
    %1160 = vector.shape_cast %1159 : vector<1x1x32x96xf32> to vector<32x96xf32>
    %c1_367 = arith.constant 1 : index
    %c1_368 = arith.constant 1 : index
    %c0_369 = arith.constant 0 : index
    %c0_370 = arith.constant 0 : index
    %1161 = vector.load %arg7[%c1_367, %c1_368, %c0_369, %c0_370] : memref<3x2x32x96xf32, #tpu.memory_space<vmem>>, vector<1x1x32x96xf32>
    %1162 = vector.shape_cast %1161 : vector<1x1x32x96xf32> to vector<32x96xf32>
    %c1_371 = arith.constant 1 : index
    %c0_372 = arith.constant 0 : index
    %c0_373 = arith.constant 0 : index
    %c0_374 = arith.constant 0 : index
    %1163 = vector.load %arg8[%c1_371, %c0_372, %c0_373, %c0_374] : memref<3x2x1x96xf32, #tpu.memory_space<vmem>>, vector<1x1x1x96xf32>
    %1164 = vector.shape_cast %1163 : vector<1x1x1x96xf32> to vector<1x96xf32>
    %c1_375 = arith.constant 1 : index
    %c1_376 = arith.constant 1 : index
    %c0_377 = arith.constant 0 : index
    %c0_378 = arith.constant 0 : index
    %1165 = vector.load %arg8[%c1_375, %c1_376, %c0_377, %c0_378] : memref<3x2x1x96xf32, #tpu.memory_space<vmem>>, vector<1x1x1x96xf32>
    %1166 = vector.shape_cast %1165 : vector<1x1x1x96xf32> to vector<1x96xf32>
    %1167 = vector.extract_strided_slice %1158 {offsets = [0, 0], sizes = [2, 96], strides = [1, 1]} : vector<16x192xf32> to vector<2x96xf32>
    %cst_379 = arith.constant dense<0.000000e+00> : vector<2x96xf32>
    %1168 = tpu.matmul %0, %1160, %cst_379 {dimension_numbers = #tpu.dot_dimension_numbers<[1], [0], [0], [1], [0, 0, 1, 1], [], []>} : vector<2x32xf32>, vector<32x96xf32>, vector<2x96xf32> -> vector<2x96xf32>
    %1169 = vector.broadcast %1164 : vector<1x96xf32> to vector<2x96xf32>
    %1170 = arith.addf %1168, %1169 : vector<2x96xf32>
    %1171 = vector.extract_strided_slice %1167 {offsets = [0, 0], sizes = [2, 32], strides = [1, 1]} : vector<2x96xf32> to vector<2x32xf32>
    %1172 = vector.extract_strided_slice %1170 {offsets = [0, 0], sizes = [2, 32], strides = [1, 1]} : vector<2x96xf32> to vector<2x32xf32>
    %1173 = arith.addf %1171, %1172 : vector<2x32xf32>
    %cst_380 = arith.constant 0.000000e+00 : f32
    %1174 = vector.broadcast %cst_380 : f32 to vector<2x32xf32>
    %1175 = arith.subf %1174, %1173 : vector<2x32xf32>
    %1176 = math.exp %1175 : vector<2x32xf32>
    %cst_381 = arith.constant 1.000000e+00 : f32
    %1177 = vector.broadcast %cst_381 : f32 to vector<2x32xf32>
    %1178 = arith.addf %1177, %1176 : vector<2x32xf32>
    %cst_382 = arith.constant 1.000000e+00 : f32
    %1179 = vector.broadcast %cst_382 : f32 to vector<2x32xf32>
    %1180 = arith.divf %1179, %1178 : vector<2x32xf32>
    %1181 = vector.extract_strided_slice %1167 {offsets = [0, 32], sizes = [2, 32], strides = [1, 1]} : vector<2x96xf32> to vector<2x32xf32>
    %1182 = vector.extract_strided_slice %1170 {offsets = [0, 32], sizes = [2, 32], strides = [1, 1]} : vector<2x96xf32> to vector<2x32xf32>
    %1183 = arith.addf %1181, %1182 : vector<2x32xf32>
    %cst_383 = arith.constant 0.000000e+00 : f32
    %1184 = vector.broadcast %cst_383 : f32 to vector<2x32xf32>
    %1185 = arith.subf %1184, %1183 : vector<2x32xf32>
    %1186 = math.exp %1185 : vector<2x32xf32>
    %cst_384 = arith.constant 1.000000e+00 : f32
    %1187 = vector.broadcast %cst_384 : f32 to vector<2x32xf32>
    %1188 = arith.addf %1187, %1186 : vector<2x32xf32>
    %cst_385 = arith.constant 1.000000e+00 : f32
    %1189 = vector.broadcast %cst_385 : f32 to vector<2x32xf32>
    %1190 = arith.divf %1189, %1188 : vector<2x32xf32>
    %1191 = vector.extract_strided_slice %1167 {offsets = [0, 64], sizes = [2, 32], strides = [1, 1]} : vector<2x96xf32> to vector<2x32xf32>
    %1192 = vector.extract_strided_slice %1170 {offsets = [0, 64], sizes = [2, 32], strides = [1, 1]} : vector<2x96xf32> to vector<2x32xf32>
    %1193 = arith.mulf %1180, %1192 : vector<2x32xf32>
    %1194 = arith.addf %1191, %1193 : vector<2x32xf32>
    %1195 = math.tanh %1194 : vector<2x32xf32>
    %cst_386 = arith.constant 1.000000e+00 : f32
    %1196 = vector.broadcast %cst_386 : f32 to vector<2x32xf32>
    %1197 = arith.subf %1196, %1190 : vector<2x32xf32>
    %1198 = arith.mulf %1197, %1195 : vector<2x32xf32>
    %1199 = arith.mulf %1190, %0 : vector<2x32xf32>
    %1200 = arith.addf %1198, %1199 : vector<2x32xf32>
    %c0_387 = arith.constant 0 : index
    %c0_388 = arith.constant 0 : index
    %1201 = vector.load %arg10[%c0_387, %c0_388] : memref<16x64xf32, #tpu.memory_space<vmem>>, vector<2x32xf32>
    tpu.vector_store %arg10[%c0_387, %c0_388], %1200 {strides = array<i32>} : memref<16x64xf32, #tpu.memory_space<vmem>>, vector<2x32xf32>,
    %1202 = vector.extract_strided_slice %1158 {offsets = [14, 96], sizes = [2, 96], strides = [1, 1]} : vector<16x192xf32> to vector<2x96xf32>
    %cst_389 = arith.constant dense<0.000000e+00> : vector<2x96xf32>
    %1203 = tpu.matmul %0, %1162, %cst_389 {dimension_numbers = #tpu.dot_dimension_numbers<[1], [0], [0], [1], [0, 0, 1, 1], [], []>} : vector<2x32xf32>, vector<32x96xf32>, vector<2x96xf32> -> vector<2x96xf32>
    %1204 = vector.broadcast %1166 : vector<1x96xf32> to vector<2x96xf32>
    %1205 = arith.addf %1203, %1204 : vector<2x96xf32>
    %1206 = vector.extract_strided_slice %1202 {offsets = [0, 0], sizes = [2, 32], strides = [1, 1]} : vector<2x96xf32> to vector<2x32xf32>
    %1207 = vector.extract_strided_slice %1205 {offsets = [0, 0], sizes = [2, 32], strides = [1, 1]} : vector<2x96xf32> to vector<2x32xf32>
    %1208 = arith.addf %1206, %1207 : vector<2x32xf32>
    %cst_390 = arith.constant 0.000000e+00 : f32
    %1209 = vector.broadcast %cst_390 : f32 to vector<2x32xf32>
    %1210 = arith.subf %1209, %1208 : vector<2x32xf32>
    %1211 = math.exp %1210 : vector<2x32xf32>
    %cst_391 = arith.constant 1.000000e+00 : f32
    %1212 = vector.broadcast %cst_391 : f32 to vector<2x32xf32>
    %1213 = arith.addf %1212, %1211 : vector<2x32xf32>
    %cst_392 = arith.constant 1.000000e+00 : f32
    %1214 = vector.broadcast %cst_392 : f32 to vector<2x32xf32>
    %1215 = arith.divf %1214, %1213 : vector<2x32xf32>
    %1216 = vector.extract_strided_slice %1202 {offsets = [0, 32], sizes = [2, 32], strides = [1, 1]} : vector<2x96xf32> to vector<2x32xf32>
    %1217 = vector.extract_strided_slice %1205 {offsets = [0, 32], sizes = [2, 32], strides = [1, 1]} : vector<2x96xf32> to vector<2x32xf32>
    %1218 = arith.addf %1216, %1217 : vector<2x32xf32>
    %cst_393 = arith.constant 0.000000e+00 : f32
    %1219 = vector.broadcast %cst_393 : f32 to vector<2x32xf32>
    %1220 = arith.subf %1219, %1218 : vector<2x32xf32>
    %1221 = math.exp %1220 : vector<2x32xf32>
    %cst_394 = arith.constant 1.000000e+00 : f32
    %1222 = vector.broadcast %cst_394 : f32 to vector<2x32xf32>
    %1223 = arith.addf %1222, %1221 : vector<2x32xf32>
    %cst_395 = arith.constant 1.000000e+00 : f32
    %1224 = vector.broadcast %cst_395 : f32 to vector<2x32xf32>
    %1225 = arith.divf %1224, %1223 : vector<2x32xf32>
    %1226 = vector.extract_strided_slice %1202 {offsets = [0, 64], sizes = [2, 32], strides = [1, 1]} : vector<2x96xf32> to vector<2x32xf32>
    %1227 = vector.extract_strided_slice %1205 {offsets = [0, 64], sizes = [2, 32], strides = [1, 1]} : vector<2x96xf32> to vector<2x32xf32>
    %1228 = arith.mulf %1215, %1227 : vector<2x32xf32>
    %1229 = arith.addf %1226, %1228 : vector<2x32xf32>
    %1230 = math.tanh %1229 : vector<2x32xf32>
    %cst_396 = arith.constant 1.000000e+00 : f32
    %1231 = vector.broadcast %cst_396 : f32 to vector<2x32xf32>
    %1232 = arith.subf %1231, %1225 : vector<2x32xf32>
    %1233 = arith.mulf %1232, %1230 : vector<2x32xf32>
    %1234 = arith.mulf %1225, %0 : vector<2x32xf32>
    %1235 = arith.addf %1233, %1234 : vector<2x32xf32>
    %c14_397 = arith.constant 14 : index
    %c32_398 = arith.constant 32 : index
    %1236 = vector.load %arg10[%c14_397, %c32_398] : memref<16x64xf32, #tpu.memory_space<vmem>>, vector<2x32xf32>
    tpu.vector_store %arg10[%c14_397, %c32_398], %1235 {strides = array<i32>} : memref<16x64xf32, #tpu.memory_space<vmem>>, vector<2x32xf32>,
    %1237 = vector.extract_strided_slice %1158 {offsets = [2, 0], sizes = [2, 96], strides = [1, 1]} : vector<16x192xf32> to vector<2x96xf32>
    %cst_399 = arith.constant dense<0.000000e+00> : vector<2x96xf32>
    %1238 = tpu.matmul %1200, %1160, %cst_399 {dimension_numbers = #tpu.dot_dimension_numbers<[1], [0], [0], [1], [0, 0, 1, 1], [], []>} : vector<2x32xf32>, vector<32x96xf32>, vector<2x96xf32> -> vector<2x96xf32>
    %1239 = vector.broadcast %1164 : vector<1x96xf32> to vector<2x96xf32>
    %1240 = arith.addf %1238, %1239 : vector<2x96xf32>
    %1241 = vector.extract_strided_slice %1237 {offsets = [0, 0], sizes = [2, 32], strides = [1, 1]} : vector<2x96xf32> to vector<2x32xf32>
    %1242 = vector.extract_strided_slice %1240 {offsets = [0, 0], sizes = [2, 32], strides = [1, 1]} : vector<2x96xf32> to vector<2x32xf32>
    %1243 = arith.addf %1241, %1242 : vector<2x32xf32>
    %cst_400 = arith.constant 0.000000e+00 : f32
    %1244 = vector.broadcast %cst_400 : f32 to vector<2x32xf32>
    %1245 = arith.subf %1244, %1243 : vector<2x32xf32>
    %1246 = math.exp %1245 : vector<2x32xf32>
    %cst_401 = arith.constant 1.000000e+00 : f32
    %1247 = vector.broadcast %cst_401 : f32 to vector<2x32xf32>
    %1248 = arith.addf %1247, %1246 : vector<2x32xf32>
    %cst_402 = arith.constant 1.000000e+00 : f32
    %1249 = vector.broadcast %cst_402 : f32 to vector<2x32xf32>
    %1250 = arith.divf %1249, %1248 : vector<2x32xf32>
    %1251 = vector.extract_strided_slice %1237 {offsets = [0, 32], sizes = [2, 32], strides = [1, 1]} : vector<2x96xf32> to vector<2x32xf32>
    %1252 = vector.extract_strided_slice %1240 {offsets = [0, 32], sizes = [2, 32], strides = [1, 1]} : vector<2x96xf32> to vector<2x32xf32>
    %1253 = arith.addf %1251, %1252 : vector<2x32xf32>
    %cst_403 = arith.constant 0.000000e+00 : f32
    %1254 = vector.broadcast %cst_403 : f32 to vector<2x32xf32>
    %1255 = arith.subf %1254, %1253 : vector<2x32xf32>
    %1256 = math.exp %1255 : vector<2x32xf32>
    %cst_404 = arith.constant 1.000000e+00 : f32
    %1257 = vector.broadcast %cst_404 : f32 to vector<2x32xf32>
    %1258 = arith.addf %1257, %1256 : vector<2x32xf32>
    %cst_405 = arith.constant 1.000000e+00 : f32
    %1259 = vector.broadcast %cst_405 : f32 to vector<2x32xf32>
    %1260 = arith.divf %1259, %1258 : vector<2x32xf32>
    %1261 = vector.extract_strided_slice %1237 {offsets = [0, 64], sizes = [2, 32], strides = [1, 1]} : vector<2x96xf32> to vector<2x32xf32>
    %1262 = vector.extract_strided_slice %1240 {offsets = [0, 64], sizes = [2, 32], strides = [1, 1]} : vector<2x96xf32> to vector<2x32xf32>
    %1263 = arith.mulf %1250, %1262 : vector<2x32xf32>
    %1264 = arith.addf %1261, %1263 : vector<2x32xf32>
    %1265 = math.tanh %1264 : vector<2x32xf32>
    %cst_406 = arith.constant 1.000000e+00 : f32
    %1266 = vector.broadcast %cst_406 : f32 to vector<2x32xf32>
    %1267 = arith.subf %1266, %1260 : vector<2x32xf32>
    %1268 = arith.mulf %1267, %1265 : vector<2x32xf32>
    %1269 = arith.mulf %1260, %1200 : vector<2x32xf32>
    %1270 = arith.addf %1268, %1269 : vector<2x32xf32>
    %c2_407 = arith.constant 2 : index
    %c0_408 = arith.constant 0 : index
    %1271 = vector.load %arg10[%c2_407, %c0_408] : memref<16x64xf32, #tpu.memory_space<vmem>>, vector<2x32xf32>
    tpu.vector_store %arg10[%c2_407, %c0_408], %1270 {strides = array<i32>} : memref<16x64xf32, #tpu.memory_space<vmem>>, vector<2x32xf32>,
    %1272 = vector.extract_strided_slice %1158 {offsets = [12, 96], sizes = [2, 96], strides = [1, 1]} : vector<16x192xf32> to vector<2x96xf32>
    %cst_409 = arith.constant dense<0.000000e+00> : vector<2x96xf32>
    %1273 = tpu.matmul %1235, %1162, %cst_409 {dimension_numbers = #tpu.dot_dimension_numbers<[1], [0], [0], [1], [0, 0, 1, 1], [], []>} : vector<2x32xf32>, vector<32x96xf32>, vector<2x96xf32> -> vector<2x96xf32>
    %1274 = vector.broadcast %1166 : vector<1x96xf32> to vector<2x96xf32>
    %1275 = arith.addf %1273, %1274 : vector<2x96xf32>
    %1276 = vector.extract_strided_slice %1272 {offsets = [0, 0], sizes = [2, 32], strides = [1, 1]} : vector<2x96xf32> to vector<2x32xf32>
    %1277 = vector.extract_strided_slice %1275 {offsets = [0, 0], sizes = [2, 32], strides = [1, 1]} : vector<2x96xf32> to vector<2x32xf32>
    %1278 = arith.addf %1276, %1277 : vector<2x32xf32>
    %cst_410 = arith.constant 0.000000e+00 : f32
    %1279 = vector.broadcast %cst_410 : f32 to vector<2x32xf32>
    %1280 = arith.subf %1279, %1278 : vector<2x32xf32>
    %1281 = math.exp %1280 : vector<2x32xf32>
    %cst_411 = arith.constant 1.000000e+00 : f32
    %1282 = vector.broadcast %cst_411 : f32 to vector<2x32xf32>
    %1283 = arith.addf %1282, %1281 : vector<2x32xf32>
    %cst_412 = arith.constant 1.000000e+00 : f32
    %1284 = vector.broadcast %cst_412 : f32 to vector<2x32xf32>
    %1285 = arith.divf %1284, %1283 : vector<2x32xf32>
    %1286 = vector.extract_strided_slice %1272 {offsets = [0, 32], sizes = [2, 32], strides = [1, 1]} : vector<2x96xf32> to vector<2x32xf32>
    %1287 = vector.extract_strided_slice %1275 {offsets = [0, 32], sizes = [2, 32], strides = [1, 1]} : vector<2x96xf32> to vector<2x32xf32>
    %1288 = arith.addf %1286, %1287 : vector<2x32xf32>
    %cst_413 = arith.constant 0.000000e+00 : f32
    %1289 = vector.broadcast %cst_413 : f32 to vector<2x32xf32>
    %1290 = arith.subf %1289, %1288 : vector<2x32xf32>
    %1291 = math.exp %1290 : vector<2x32xf32>
    %cst_414 = arith.constant 1.000000e+00 : f32
    %1292 = vector.broadcast %cst_414 : f32 to vector<2x32xf32>
    %1293 = arith.addf %1292, %1291 : vector<2x32xf32>
    %cst_415 = arith.constant 1.000000e+00 : f32
    %1294 = vector.broadcast %cst_415 : f32 to vector<2x32xf32>
    %1295 = arith.divf %1294, %1293 : vector<2x32xf32>
    %1296 = vector.extract_strided_slice %1272 {offsets = [0, 64], sizes = [2, 32], strides = [1, 1]} : vector<2x96xf32> to vector<2x32xf32>
    %1297 = vector.extract_strided_slice %1275 {offsets = [0, 64], sizes = [2, 32], strides = [1, 1]} : vector<2x96xf32> to vector<2x32xf32>
    %1298 = arith.mulf %1285, %1297 : vector<2x32xf32>
    %1299 = arith.addf %1296, %1298 : vector<2x32xf32>
    %1300 = math.tanh %1299 : vector<2x32xf32>
    %cst_416 = arith.constant 1.000000e+00 : f32
    %1301 = vector.broadcast %cst_416 : f32 to vector<2x32xf32>
    %1302 = arith.subf %1301, %1295 : vector<2x32xf32>
    %1303 = arith.mulf %1302, %1300 : vector<2x32xf32>
    %1304 = arith.mulf %1295, %1235 : vector<2x32xf32>
    %1305 = arith.addf %1303, %1304 : vector<2x32xf32>
    %c12_417 = arith.constant 12 : index
    %c32_418 = arith.constant 32 : index
    %1306 = vector.load %arg10[%c12_417, %c32_418] : memref<16x64xf32, #tpu.memory_space<vmem>>, vector<2x32xf32>
    tpu.vector_store %arg10[%c12_417, %c32_418], %1305 {strides = array<i32>} : memref<16x64xf32, #tpu.memory_space<vmem>>, vector<2x32xf32>,
    %1307 = vector.extract_strided_slice %1158 {offsets = [4, 0], sizes = [2, 96], strides = [1, 1]} : vector<16x192xf32> to vector<2x96xf32>
    %cst_419 = arith.constant dense<0.000000e+00> : vector<2x96xf32>
    %1308 = tpu.matmul %1270, %1160, %cst_419 {dimension_numbers = #tpu.dot_dimension_numbers<[1], [0], [0], [1], [0, 0, 1, 1], [], []>} : vector<2x32xf32>, vector<32x96xf32>, vector<2x96xf32> -> vector<2x96xf32>
    %1309 = vector.broadcast %1164 : vector<1x96xf32> to vector<2x96xf32>
    %1310 = arith.addf %1308, %1309 : vector<2x96xf32>
    %1311 = vector.extract_strided_slice %1307 {offsets = [0, 0], sizes = [2, 32], strides = [1, 1]} : vector<2x96xf32> to vector<2x32xf32>
    %1312 = vector.extract_strided_slice %1310 {offsets = [0, 0], sizes = [2, 32], strides = [1, 1]} : vector<2x96xf32> to vector<2x32xf32>
    %1313 = arith.addf %1311, %1312 : vector<2x32xf32>
    %cst_420 = arith.constant 0.000000e+00 : f32
    %1314 = vector.broadcast %cst_420 : f32 to vector<2x32xf32>
    %1315 = arith.subf %1314, %1313 : vector<2x32xf32>
    %1316 = math.exp %1315 : vector<2x32xf32>
    %cst_421 = arith.constant 1.000000e+00 : f32
    %1317 = vector.broadcast %cst_421 : f32 to vector<2x32xf32>
    %1318 = arith.addf %1317, %1316 : vector<2x32xf32>
    %cst_422 = arith.constant 1.000000e+00 : f32
    %1319 = vector.broadcast %cst_422 : f32 to vector<2x32xf32>
    %1320 = arith.divf %1319, %1318 : vector<2x32xf32>
    %1321 = vector.extract_strided_slice %1307 {offsets = [0, 32], sizes = [2, 32], strides = [1, 1]} : vector<2x96xf32> to vector<2x32xf32>
    %1322 = vector.extract_strided_slice %1310 {offsets = [0, 32], sizes = [2, 32], strides = [1, 1]} : vector<2x96xf32> to vector<2x32xf32>
    %1323 = arith.addf %1321, %1322 : vector<2x32xf32>
    %cst_423 = arith.constant 0.000000e+00 : f32
    %1324 = vector.broadcast %cst_423 : f32 to vector<2x32xf32>
    %1325 = arith.subf %1324, %1323 : vector<2x32xf32>
    %1326 = math.exp %1325 : vector<2x32xf32>
    %cst_424 = arith.constant 1.000000e+00 : f32
    %1327 = vector.broadcast %cst_424 : f32 to vector<2x32xf32>
    %1328 = arith.addf %1327, %1326 : vector<2x32xf32>
    %cst_425 = arith.constant 1.000000e+00 : f32
    %1329 = vector.broadcast %cst_425 : f32 to vector<2x32xf32>
    %1330 = arith.divf %1329, %1328 : vector<2x32xf32>
    %1331 = vector.extract_strided_slice %1307 {offsets = [0, 64], sizes = [2, 32], strides = [1, 1]} : vector<2x96xf32> to vector<2x32xf32>
    %1332 = vector.extract_strided_slice %1310 {offsets = [0, 64], sizes = [2, 32], strides = [1, 1]} : vector<2x96xf32> to vector<2x32xf32>
    %1333 = arith.mulf %1320, %1332 : vector<2x32xf32>
    %1334 = arith.addf %1331, %1333 : vector<2x32xf32>
    %1335 = math.tanh %1334 : vector<2x32xf32>
    %cst_426 = arith.constant 1.000000e+00 : f32
    %1336 = vector.broadcast %cst_426 : f32 to vector<2x32xf32>
    %1337 = arith.subf %1336, %1330 : vector<2x32xf32>
    %1338 = arith.mulf %1337, %1335 : vector<2x32xf32>
    %1339 = arith.mulf %1330, %1270 : vector<2x32xf32>
    %1340 = arith.addf %1338, %1339 : vector<2x32xf32>
    %c4_427 = arith.constant 4 : index
    %c0_428 = arith.constant 0 : index
    %1341 = vector.load %arg10[%c4_427, %c0_428] : memref<16x64xf32, #tpu.memory_space<vmem>>, vector<2x32xf32>
    tpu.vector_store %arg10[%c4_427, %c0_428], %1340 {strides = array<i32>} : memref<16x64xf32, #tpu.memory_space<vmem>>, vector<2x32xf32>,
    %1342 = vector.extract_strided_slice %1158 {offsets = [10, 96], sizes = [2, 96], strides = [1, 1]} : vector<16x192xf32> to vector<2x96xf32>
    %cst_429 = arith.constant dense<0.000000e+00> : vector<2x96xf32>
    %1343 = tpu.matmul %1305, %1162, %cst_429 {dimension_numbers = #tpu.dot_dimension_numbers<[1], [0], [0], [1], [0, 0, 1, 1], [], []>} : vector<2x32xf32>, vector<32x96xf32>, vector<2x96xf32> -> vector<2x96xf32>
    %1344 = vector.broadcast %1166 : vector<1x96xf32> to vector<2x96xf32>
    %1345 = arith.addf %1343, %1344 : vector<2x96xf32>
    %1346 = vector.extract_strided_slice %1342 {offsets = [0, 0], sizes = [2, 32], strides = [1, 1]} : vector<2x96xf32> to vector<2x32xf32>
    %1347 = vector.extract_strided_slice %1345 {offsets = [0, 0], sizes = [2, 32], strides = [1, 1]} : vector<2x96xf32> to vector<2x32xf32>
    %1348 = arith.addf %1346, %1347 : vector<2x32xf32>
    %cst_430 = arith.constant 0.000000e+00 : f32
    %1349 = vector.broadcast %cst_430 : f32 to vector<2x32xf32>
    %1350 = arith.subf %1349, %1348 : vector<2x32xf32>
    %1351 = math.exp %1350 : vector<2x32xf32>
    %cst_431 = arith.constant 1.000000e+00 : f32
    %1352 = vector.broadcast %cst_431 : f32 to vector<2x32xf32>
    %1353 = arith.addf %1352, %1351 : vector<2x32xf32>
    %cst_432 = arith.constant 1.000000e+00 : f32
    %1354 = vector.broadcast %cst_432 : f32 to vector<2x32xf32>
    %1355 = arith.divf %1354, %1353 : vector<2x32xf32>
    %1356 = vector.extract_strided_slice %1342 {offsets = [0, 32], sizes = [2, 32], strides = [1, 1]} : vector<2x96xf32> to vector<2x32xf32>
    %1357 = vector.extract_strided_slice %1345 {offsets = [0, 32], sizes = [2, 32], strides = [1, 1]} : vector<2x96xf32> to vector<2x32xf32>
    %1358 = arith.addf %1356, %1357 : vector<2x32xf32>
    %cst_433 = arith.constant 0.000000e+00 : f32
    %1359 = vector.broadcast %cst_433 : f32 to vector<2x32xf32>
    %1360 = arith.subf %1359, %1358 : vector<2x32xf32>
    %1361 = math.exp %1360 : vector<2x32xf32>
    %cst_434 = arith.constant 1.000000e+00 : f32
    %1362 = vector.broadcast %cst_434 : f32 to vector<2x32xf32>
    %1363 = arith.addf %1362, %1361 : vector<2x32xf32>
    %cst_435 = arith.constant 1.000000e+00 : f32
    %1364 = vector.broadcast %cst_435 : f32 to vector<2x32xf32>
    %1365 = arith.divf %1364, %1363 : vector<2x32xf32>
    %1366 = vector.extract_strided_slice %1342 {offsets = [0, 64], sizes = [2, 32], strides = [1, 1]} : vector<2x96xf32> to vector<2x32xf32>
    %1367 = vector.extract_strided_slice %1345 {offsets = [0, 64], sizes = [2, 32], strides = [1, 1]} : vector<2x96xf32> to vector<2x32xf32>
    %1368 = arith.mulf %1355, %1367 : vector<2x32xf32>
    %1369 = arith.addf %1366, %1368 : vector<2x32xf32>
    %1370 = math.tanh %1369 : vector<2x32xf32>
    %cst_436 = arith.constant 1.000000e+00 : f32
    %1371 = vector.broadcast %cst_436 : f32 to vector<2x32xf32>
    %1372 = arith.subf %1371, %1365 : vector<2x32xf32>
    %1373 = arith.mulf %1372, %1370 : vector<2x32xf32>
    %1374 = arith.mulf %1365, %1305 : vector<2x32xf32>
    %1375 = arith.addf %1373, %1374 : vector<2x32xf32>
    %c10_437 = arith.constant 10 : index
    %c32_438 = arith.constant 32 : index
    %1376 = vector.load %arg10[%c10_437, %c32_438] : memref<16x64xf32, #tpu.memory_space<vmem>>, vector<2x32xf32>
    tpu.vector_store %arg10[%c10_437, %c32_438], %1375 {strides = array<i32>} : memref<16x64xf32, #tpu.memory_space<vmem>>, vector<2x32xf32>,
    %1377 = vector.extract_strided_slice %1158 {offsets = [6, 0], sizes = [2, 96], strides = [1, 1]} : vector<16x192xf32> to vector<2x96xf32>
    %cst_439 = arith.constant dense<0.000000e+00> : vector<2x96xf32>
    %1378 = tpu.matmul %1340, %1160, %cst_439 {dimension_numbers = #tpu.dot_dimension_numbers<[1], [0], [0], [1], [0, 0, 1, 1], [], []>} : vector<2x32xf32>, vector<32x96xf32>, vector<2x96xf32> -> vector<2x96xf32>
    %1379 = vector.broadcast %1164 : vector<1x96xf32> to vector<2x96xf32>
    %1380 = arith.addf %1378, %1379 : vector<2x96xf32>
    %1381 = vector.extract_strided_slice %1377 {offsets = [0, 0], sizes = [2, 32], strides = [1, 1]} : vector<2x96xf32> to vector<2x32xf32>
    %1382 = vector.extract_strided_slice %1380 {offsets = [0, 0], sizes = [2, 32], strides = [1, 1]} : vector<2x96xf32> to vector<2x32xf32>
    %1383 = arith.addf %1381, %1382 : vector<2x32xf32>
    %cst_440 = arith.constant 0.000000e+00 : f32
    %1384 = vector.broadcast %cst_440 : f32 to vector<2x32xf32>
    %1385 = arith.subf %1384, %1383 : vector<2x32xf32>
    %1386 = math.exp %1385 : vector<2x32xf32>
    %cst_441 = arith.constant 1.000000e+00 : f32
    %1387 = vector.broadcast %cst_441 : f32 to vector<2x32xf32>
    %1388 = arith.addf %1387, %1386 : vector<2x32xf32>
    %cst_442 = arith.constant 1.000000e+00 : f32
    %1389 = vector.broadcast %cst_442 : f32 to vector<2x32xf32>
    %1390 = arith.divf %1389, %1388 : vector<2x32xf32>
    %1391 = vector.extract_strided_slice %1377 {offsets = [0, 32], sizes = [2, 32], strides = [1, 1]} : vector<2x96xf32> to vector<2x32xf32>
    %1392 = vector.extract_strided_slice %1380 {offsets = [0, 32], sizes = [2, 32], strides = [1, 1]} : vector<2x96xf32> to vector<2x32xf32>
    %1393 = arith.addf %1391, %1392 : vector<2x32xf32>
    %cst_443 = arith.constant 0.000000e+00 : f32
    %1394 = vector.broadcast %cst_443 : f32 to vector<2x32xf32>
    %1395 = arith.subf %1394, %1393 : vector<2x32xf32>
    %1396 = math.exp %1395 : vector<2x32xf32>
    %cst_444 = arith.constant 1.000000e+00 : f32
    %1397 = vector.broadcast %cst_444 : f32 to vector<2x32xf32>
    %1398 = arith.addf %1397, %1396 : vector<2x32xf32>
    %cst_445 = arith.constant 1.000000e+00 : f32
    %1399 = vector.broadcast %cst_445 : f32 to vector<2x32xf32>
    %1400 = arith.divf %1399, %1398 : vector<2x32xf32>
    %1401 = vector.extract_strided_slice %1377 {offsets = [0, 64], sizes = [2, 32], strides = [1, 1]} : vector<2x96xf32> to vector<2x32xf32>
    %1402 = vector.extract_strided_slice %1380 {offsets = [0, 64], sizes = [2, 32], strides = [1, 1]} : vector<2x96xf32> to vector<2x32xf32>
    %1403 = arith.mulf %1390, %1402 : vector<2x32xf32>
    %1404 = arith.addf %1401, %1403 : vector<2x32xf32>
    %1405 = math.tanh %1404 : vector<2x32xf32>
    %cst_446 = arith.constant 1.000000e+00 : f32
    %1406 = vector.broadcast %cst_446 : f32 to vector<2x32xf32>
    %1407 = arith.subf %1406, %1400 : vector<2x32xf32>
    %1408 = arith.mulf %1407, %1405 : vector<2x32xf32>
    %1409 = arith.mulf %1400, %1340 : vector<2x32xf32>
    %1410 = arith.addf %1408, %1409 : vector<2x32xf32>
    %c6_447 = arith.constant 6 : index
    %c0_448 = arith.constant 0 : index
    %1411 = vector.load %arg10[%c6_447, %c0_448] : memref<16x64xf32, #tpu.memory_space<vmem>>, vector<2x32xf32>
    tpu.vector_store %arg10[%c6_447, %c0_448], %1410 {strides = array<i32>} : memref<16x64xf32, #tpu.memory_space<vmem>>, vector<2x32xf32>,
    %1412 = vector.extract_strided_slice %1158 {offsets = [8, 96], sizes = [2, 96], strides = [1, 1]} : vector<16x192xf32> to vector<2x96xf32>
    %cst_449 = arith.constant dense<0.000000e+00> : vector<2x96xf32>
    %1413 = tpu.matmul %1375, %1162, %cst_449 {dimension_numbers = #tpu.dot_dimension_numbers<[1], [0], [0], [1], [0, 0, 1, 1], [], []>} : vector<2x32xf32>, vector<32x96xf32>, vector<2x96xf32> -> vector<2x96xf32>
    %1414 = vector.broadcast %1166 : vector<1x96xf32> to vector<2x96xf32>
    %1415 = arith.addf %1413, %1414 : vector<2x96xf32>
    %1416 = vector.extract_strided_slice %1412 {offsets = [0, 0], sizes = [2, 32], strides = [1, 1]} : vector<2x96xf32> to vector<2x32xf32>
    %1417 = vector.extract_strided_slice %1415 {offsets = [0, 0], sizes = [2, 32], strides = [1, 1]} : vector<2x96xf32> to vector<2x32xf32>
    %1418 = arith.addf %1416, %1417 : vector<2x32xf32>
    %cst_450 = arith.constant 0.000000e+00 : f32
    %1419 = vector.broadcast %cst_450 : f32 to vector<2x32xf32>
    %1420 = arith.subf %1419, %1418 : vector<2x32xf32>
    %1421 = math.exp %1420 : vector<2x32xf32>
    %cst_451 = arith.constant 1.000000e+00 : f32
    %1422 = vector.broadcast %cst_451 : f32 to vector<2x32xf32>
    %1423 = arith.addf %1422, %1421 : vector<2x32xf32>
    %cst_452 = arith.constant 1.000000e+00 : f32
    %1424 = vector.broadcast %cst_452 : f32 to vector<2x32xf32>
    %1425 = arith.divf %1424, %1423 : vector<2x32xf32>
    %1426 = vector.extract_strided_slice %1412 {offsets = [0, 32], sizes = [2, 32], strides = [1, 1]} : vector<2x96xf32> to vector<2x32xf32>
    %1427 = vector.extract_strided_slice %1415 {offsets = [0, 32], sizes = [2, 32], strides = [1, 1]} : vector<2x96xf32> to vector<2x32xf32>
    %1428 = arith.addf %1426, %1427 : vector<2x32xf32>
    %cst_453 = arith.constant 0.000000e+00 : f32
    %1429 = vector.broadcast %cst_453 : f32 to vector<2x32xf32>
    %1430 = arith.subf %1429, %1428 : vector<2x32xf32>
    %1431 = math.exp %1430 : vector<2x32xf32>
    %cst_454 = arith.constant 1.000000e+00 : f32
    %1432 = vector.broadcast %cst_454 : f32 to vector<2x32xf32>
    %1433 = arith.addf %1432, %1431 : vector<2x32xf32>
    %cst_455 = arith.constant 1.000000e+00 : f32
    %1434 = vector.broadcast %cst_455 : f32 to vector<2x32xf32>
    %1435 = arith.divf %1434, %1433 : vector<2x32xf32>
    %1436 = vector.extract_strided_slice %1412 {offsets = [0, 64], sizes = [2, 32], strides = [1, 1]} : vector<2x96xf32> to vector<2x32xf32>
    %1437 = vector.extract_strided_slice %1415 {offsets = [0, 64], sizes = [2, 32], strides = [1, 1]} : vector<2x96xf32> to vector<2x32xf32>
    %1438 = arith.mulf %1425, %1437 : vector<2x32xf32>
    %1439 = arith.addf %1436, %1438 : vector<2x32xf32>
    %1440 = math.tanh %1439 : vector<2x32xf32>
    %cst_456 = arith.constant 1.000000e+00 : f32
    %1441 = vector.broadcast %cst_456 : f32 to vector<2x32xf32>
    %1442 = arith.subf %1441, %1435 : vector<2x32xf32>
    %1443 = arith.mulf %1442, %1440 : vector<2x32xf32>
    %1444 = arith.mulf %1435, %1375 : vector<2x32xf32>
    %1445 = arith.addf %1443, %1444 : vector<2x32xf32>
    %c8_457 = arith.constant 8 : index
    %c32_458 = arith.constant 32 : index
    %1446 = vector.load %arg10[%c8_457, %c32_458] : memref<16x64xf32, #tpu.memory_space<vmem>>, vector<2x32xf32>
    tpu.vector_store %arg10[%c8_457, %c32_458], %1445 {strides = array<i32>} : memref<16x64xf32, #tpu.memory_space<vmem>>, vector<2x32xf32>,
    %1447 = vector.extract_strided_slice %1158 {offsets = [8, 0], sizes = [2, 96], strides = [1, 1]} : vector<16x192xf32> to vector<2x96xf32>
    %cst_459 = arith.constant dense<0.000000e+00> : vector<2x96xf32>
    %1448 = tpu.matmul %1410, %1160, %cst_459 {dimension_numbers = #tpu.dot_dimension_numbers<[1], [0], [0], [1], [0, 0, 1, 1], [], []>} : vector<2x32xf32>, vector<32x96xf32>, vector<2x96xf32> -> vector<2x96xf32>
    %1449 = vector.broadcast %1164 : vector<1x96xf32> to vector<2x96xf32>
    %1450 = arith.addf %1448, %1449 : vector<2x96xf32>
    %1451 = vector.extract_strided_slice %1447 {offsets = [0, 0], sizes = [2, 32], strides = [1, 1]} : vector<2x96xf32> to vector<2x32xf32>
    %1452 = vector.extract_strided_slice %1450 {offsets = [0, 0], sizes = [2, 32], strides = [1, 1]} : vector<2x96xf32> to vector<2x32xf32>
    %1453 = arith.addf %1451, %1452 : vector<2x32xf32>
    %cst_460 = arith.constant 0.000000e+00 : f32
    %1454 = vector.broadcast %cst_460 : f32 to vector<2x32xf32>
    %1455 = arith.subf %1454, %1453 : vector<2x32xf32>
    %1456 = math.exp %1455 : vector<2x32xf32>
    %cst_461 = arith.constant 1.000000e+00 : f32
    %1457 = vector.broadcast %cst_461 : f32 to vector<2x32xf32>
    %1458 = arith.addf %1457, %1456 : vector<2x32xf32>
    %cst_462 = arith.constant 1.000000e+00 : f32
    %1459 = vector.broadcast %cst_462 : f32 to vector<2x32xf32>
    %1460 = arith.divf %1459, %1458 : vector<2x32xf32>
    %1461 = vector.extract_strided_slice %1447 {offsets = [0, 32], sizes = [2, 32], strides = [1, 1]} : vector<2x96xf32> to vector<2x32xf32>
    %1462 = vector.extract_strided_slice %1450 {offsets = [0, 32], sizes = [2, 32], strides = [1, 1]} : vector<2x96xf32> to vector<2x32xf32>
    %1463 = arith.addf %1461, %1462 : vector<2x32xf32>
    %cst_463 = arith.constant 0.000000e+00 : f32
    %1464 = vector.broadcast %cst_463 : f32 to vector<2x32xf32>
    %1465 = arith.subf %1464, %1463 : vector<2x32xf32>
    %1466 = math.exp %1465 : vector<2x32xf32>
    %cst_464 = arith.constant 1.000000e+00 : f32
    %1467 = vector.broadcast %cst_464 : f32 to vector<2x32xf32>
    %1468 = arith.addf %1467, %1466 : vector<2x32xf32>
    %cst_465 = arith.constant 1.000000e+00 : f32
    %1469 = vector.broadcast %cst_465 : f32 to vector<2x32xf32>
    %1470 = arith.divf %1469, %1468 : vector<2x32xf32>
    %1471 = vector.extract_strided_slice %1447 {offsets = [0, 64], sizes = [2, 32], strides = [1, 1]} : vector<2x96xf32> to vector<2x32xf32>
    %1472 = vector.extract_strided_slice %1450 {offsets = [0, 64], sizes = [2, 32], strides = [1, 1]} : vector<2x96xf32> to vector<2x32xf32>
    %1473 = arith.mulf %1460, %1472 : vector<2x32xf32>
    %1474 = arith.addf %1471, %1473 : vector<2x32xf32>
    %1475 = math.tanh %1474 : vector<2x32xf32>
    %cst_466 = arith.constant 1.000000e+00 : f32
    %1476 = vector.broadcast %cst_466 : f32 to vector<2x32xf32>
    %1477 = arith.subf %1476, %1470 : vector<2x32xf32>
    %1478 = arith.mulf %1477, %1475 : vector<2x32xf32>
    %1479 = arith.mulf %1470, %1410 : vector<2x32xf32>
    %1480 = arith.addf %1478, %1479 : vector<2x32xf32>
    %c8_467 = arith.constant 8 : index
    %c0_468 = arith.constant 0 : index
    %1481 = vector.load %arg10[%c8_467, %c0_468] : memref<16x64xf32, #tpu.memory_space<vmem>>, vector<2x32xf32>
    tpu.vector_store %arg10[%c8_467, %c0_468], %1480 {strides = array<i32>} : memref<16x64xf32, #tpu.memory_space<vmem>>, vector<2x32xf32>,
    %1482 = vector.extract_strided_slice %1158 {offsets = [6, 96], sizes = [2, 96], strides = [1, 1]} : vector<16x192xf32> to vector<2x96xf32>
    %cst_469 = arith.constant dense<0.000000e+00> : vector<2x96xf32>
    %1483 = tpu.matmul %1445, %1162, %cst_469 {dimension_numbers = #tpu.dot_dimension_numbers<[1], [0], [0], [1], [0, 0, 1, 1], [], []>} : vector<2x32xf32>, vector<32x96xf32>, vector<2x96xf32> -> vector<2x96xf32>
    %1484 = vector.broadcast %1166 : vector<1x96xf32> to vector<2x96xf32>
    %1485 = arith.addf %1483, %1484 : vector<2x96xf32>
    %1486 = vector.extract_strided_slice %1482 {offsets = [0, 0], sizes = [2, 32], strides = [1, 1]} : vector<2x96xf32> to vector<2x32xf32>
    %1487 = vector.extract_strided_slice %1485 {offsets = [0, 0], sizes = [2, 32], strides = [1, 1]} : vector<2x96xf32> to vector<2x32xf32>
    %1488 = arith.addf %1486, %1487 : vector<2x32xf32>
    %cst_470 = arith.constant 0.000000e+00 : f32
    %1489 = vector.broadcast %cst_470 : f32 to vector<2x32xf32>
    %1490 = arith.subf %1489, %1488 : vector<2x32xf32>
    %1491 = math.exp %1490 : vector<2x32xf32>
    %cst_471 = arith.constant 1.000000e+00 : f32
    %1492 = vector.broadcast %cst_471 : f32 to vector<2x32xf32>
    %1493 = arith.addf %1492, %1491 : vector<2x32xf32>
    %cst_472 = arith.constant 1.000000e+00 : f32
    %1494 = vector.broadcast %cst_472 : f32 to vector<2x32xf32>
    %1495 = arith.divf %1494, %1493 : vector<2x32xf32>
    %1496 = vector.extract_strided_slice %1482 {offsets = [0, 32], sizes = [2, 32], strides = [1, 1]} : vector<2x96xf32> to vector<2x32xf32>
    %1497 = vector.extract_strided_slice %1485 {offsets = [0, 32], sizes = [2, 32], strides = [1, 1]} : vector<2x96xf32> to vector<2x32xf32>
    %1498 = arith.addf %1496, %1497 : vector<2x32xf32>
    %cst_473 = arith.constant 0.000000e+00 : f32
    %1499 = vector.broadcast %cst_473 : f32 to vector<2x32xf32>
    %1500 = arith.subf %1499, %1498 : vector<2x32xf32>
    %1501 = math.exp %1500 : vector<2x32xf32>
    %cst_474 = arith.constant 1.000000e+00 : f32
    %1502 = vector.broadcast %cst_474 : f32 to vector<2x32xf32>
    %1503 = arith.addf %1502, %1501 : vector<2x32xf32>
    %cst_475 = arith.constant 1.000000e+00 : f32
    %1504 = vector.broadcast %cst_475 : f32 to vector<2x32xf32>
    %1505 = arith.divf %1504, %1503 : vector<2x32xf32>
    %1506 = vector.extract_strided_slice %1482 {offsets = [0, 64], sizes = [2, 32], strides = [1, 1]} : vector<2x96xf32> to vector<2x32xf32>
    %1507 = vector.extract_strided_slice %1485 {offsets = [0, 64], sizes = [2, 32], strides = [1, 1]} : vector<2x96xf32> to vector<2x32xf32>
    %1508 = arith.mulf %1495, %1507 : vector<2x32xf32>
    %1509 = arith.addf %1506, %1508 : vector<2x32xf32>
    %1510 = math.tanh %1509 : vector<2x32xf32>
    %cst_476 = arith.constant 1.000000e+00 : f32
    %1511 = vector.broadcast %cst_476 : f32 to vector<2x32xf32>
    %1512 = arith.subf %1511, %1505 : vector<2x32xf32>
    %1513 = arith.mulf %1512, %1510 : vector<2x32xf32>
    %1514 = arith.mulf %1505, %1445 : vector<2x32xf32>
    %1515 = arith.addf %1513, %1514 : vector<2x32xf32>
    %c6_477 = arith.constant 6 : index
    %c32_478 = arith.constant 32 : index
    %1516 = vector.load %arg10[%c6_477, %c32_478] : memref<16x64xf32, #tpu.memory_space<vmem>>, vector<2x32xf32>
    tpu.vector_store %arg10[%c6_477, %c32_478], %1515 {strides = array<i32>} : memref<16x64xf32, #tpu.memory_space<vmem>>, vector<2x32xf32>,
    %1517 = vector.extract_strided_slice %1158 {offsets = [10, 0], sizes = [2, 96], strides = [1, 1]} : vector<16x192xf32> to vector<2x96xf32>
    %cst_479 = arith.constant dense<0.000000e+00> : vector<2x96xf32>
    %1518 = tpu.matmul %1480, %1160, %cst_479 {dimension_numbers = #tpu.dot_dimension_numbers<[1], [0], [0], [1], [0, 0, 1, 1], [], []>} : vector<2x32xf32>, vector<32x96xf32>, vector<2x96xf32> -> vector<2x96xf32>
    %1519 = vector.broadcast %1164 : vector<1x96xf32> to vector<2x96xf32>
    %1520 = arith.addf %1518, %1519 : vector<2x96xf32>
    %1521 = vector.extract_strided_slice %1517 {offsets = [0, 0], sizes = [2, 32], strides = [1, 1]} : vector<2x96xf32> to vector<2x32xf32>
    %1522 = vector.extract_strided_slice %1520 {offsets = [0, 0], sizes = [2, 32], strides = [1, 1]} : vector<2x96xf32> to vector<2x32xf32>
    %1523 = arith.addf %1521, %1522 : vector<2x32xf32>
    %cst_480 = arith.constant 0.000000e+00 : f32
    %1524 = vector.broadcast %cst_480 : f32 to vector<2x32xf32>
    %1525 = arith.subf %1524, %1523 : vector<2x32xf32>
    %1526 = math.exp %1525 : vector<2x32xf32>
    %cst_481 = arith.constant 1.000000e+00 : f32
    %1527 = vector.broadcast %cst_481 : f32 to vector<2x32xf32>
    %1528 = arith.addf %1527, %1526 : vector<2x32xf32>
    %cst_482 = arith.constant 1.000000e+00 : f32
    %1529 = vector.broadcast %cst_482 : f32 to vector<2x32xf32>
    %1530 = arith.divf %1529, %1528 : vector<2x32xf32>
    %1531 = vector.extract_strided_slice %1517 {offsets = [0, 32], sizes = [2, 32], strides = [1, 1]} : vector<2x96xf32> to vector<2x32xf32>
    %1532 = vector.extract_strided_slice %1520 {offsets = [0, 32], sizes = [2, 32], strides = [1, 1]} : vector<2x96xf32> to vector<2x32xf32>
    %1533 = arith.addf %1531, %1532 : vector<2x32xf32>
    %cst_483 = arith.constant 0.000000e+00 : f32
    %1534 = vector.broadcast %cst_483 : f32 to vector<2x32xf32>
    %1535 = arith.subf %1534, %1533 : vector<2x32xf32>
    %1536 = math.exp %1535 : vector<2x32xf32>
    %cst_484 = arith.constant 1.000000e+00 : f32
    %1537 = vector.broadcast %cst_484 : f32 to vector<2x32xf32>
    %1538 = arith.addf %1537, %1536 : vector<2x32xf32>
    %cst_485 = arith.constant 1.000000e+00 : f32
    %1539 = vector.broadcast %cst_485 : f32 to vector<2x32xf32>
    %1540 = arith.divf %1539, %1538 : vector<2x32xf32>
    %1541 = vector.extract_strided_slice %1517 {offsets = [0, 64], sizes = [2, 32], strides = [1, 1]} : vector<2x96xf32> to vector<2x32xf32>
    %1542 = vector.extract_strided_slice %1520 {offsets = [0, 64], sizes = [2, 32], strides = [1, 1]} : vector<2x96xf32> to vector<2x32xf32>
    %1543 = arith.mulf %1530, %1542 : vector<2x32xf32>
    %1544 = arith.addf %1541, %1543 : vector<2x32xf32>
    %1545 = math.tanh %1544 : vector<2x32xf32>
    %cst_486 = arith.constant 1.000000e+00 : f32
    %1546 = vector.broadcast %cst_486 : f32 to vector<2x32xf32>
    %1547 = arith.subf %1546, %1540 : vector<2x32xf32>
    %1548 = arith.mulf %1547, %1545 : vector<2x32xf32>
    %1549 = arith.mulf %1540, %1480 : vector<2x32xf32>
    %1550 = arith.addf %1548, %1549 : vector<2x32xf32>
    %c10_487 = arith.constant 10 : index
    %c0_488 = arith.constant 0 : index
    %1551 = vector.load %arg10[%c10_487, %c0_488] : memref<16x64xf32, #tpu.memory_space<vmem>>, vector<2x32xf32>
    tpu.vector_store %arg10[%c10_487, %c0_488], %1550 {strides = array<i32>} : memref<16x64xf32, #tpu.memory_space<vmem>>, vector<2x32xf32>,
    %1552 = vector.extract_strided_slice %1158 {offsets = [4, 96], sizes = [2, 96], strides = [1, 1]} : vector<16x192xf32> to vector<2x96xf32>
    %cst_489 = arith.constant dense<0.000000e+00> : vector<2x96xf32>
    %1553 = tpu.matmul %1515, %1162, %cst_489 {dimension_numbers = #tpu.dot_dimension_numbers<[1], [0], [0], [1], [0, 0, 1, 1], [], []>} : vector<2x32xf32>, vector<32x96xf32>, vector<2x96xf32> -> vector<2x96xf32>
    %1554 = vector.broadcast %1166 : vector<1x96xf32> to vector<2x96xf32>
    %1555 = arith.addf %1553, %1554 : vector<2x96xf32>
    %1556 = vector.extract_strided_slice %1552 {offsets = [0, 0], sizes = [2, 32], strides = [1, 1]} : vector<2x96xf32> to vector<2x32xf32>
    %1557 = vector.extract_strided_slice %1555 {offsets = [0, 0], sizes = [2, 32], strides = [1, 1]} : vector<2x96xf32> to vector<2x32xf32>
    %1558 = arith.addf %1556, %1557 : vector<2x32xf32>
    %cst_490 = arith.constant 0.000000e+00 : f32
    %1559 = vector.broadcast %cst_490 : f32 to vector<2x32xf32>
    %1560 = arith.subf %1559, %1558 : vector<2x32xf32>
    %1561 = math.exp %1560 : vector<2x32xf32>
    %cst_491 = arith.constant 1.000000e+00 : f32
    %1562 = vector.broadcast %cst_491 : f32 to vector<2x32xf32>
    %1563 = arith.addf %1562, %1561 : vector<2x32xf32>
    %cst_492 = arith.constant 1.000000e+00 : f32
    %1564 = vector.broadcast %cst_492 : f32 to vector<2x32xf32>
    %1565 = arith.divf %1564, %1563 : vector<2x32xf32>
    %1566 = vector.extract_strided_slice %1552 {offsets = [0, 32], sizes = [2, 32], strides = [1, 1]} : vector<2x96xf32> to vector<2x32xf32>
    %1567 = vector.extract_strided_slice %1555 {offsets = [0, 32], sizes = [2, 32], strides = [1, 1]} : vector<2x96xf32> to vector<2x32xf32>
    %1568 = arith.addf %1566, %1567 : vector<2x32xf32>
    %cst_493 = arith.constant 0.000000e+00 : f32
    %1569 = vector.broadcast %cst_493 : f32 to vector<2x32xf32>
    %1570 = arith.subf %1569, %1568 : vector<2x32xf32>
    %1571 = math.exp %1570 : vector<2x32xf32>
    %cst_494 = arith.constant 1.000000e+00 : f32
    %1572 = vector.broadcast %cst_494 : f32 to vector<2x32xf32>
    %1573 = arith.addf %1572, %1571 : vector<2x32xf32>
    %cst_495 = arith.constant 1.000000e+00 : f32
    %1574 = vector.broadcast %cst_495 : f32 to vector<2x32xf32>
    %1575 = arith.divf %1574, %1573 : vector<2x32xf32>
    %1576 = vector.extract_strided_slice %1552 {offsets = [0, 64], sizes = [2, 32], strides = [1, 1]} : vector<2x96xf32> to vector<2x32xf32>
    %1577 = vector.extract_strided_slice %1555 {offsets = [0, 64], sizes = [2, 32], strides = [1, 1]} : vector<2x96xf32> to vector<2x32xf32>
    %1578 = arith.mulf %1565, %1577 : vector<2x32xf32>
    %1579 = arith.addf %1576, %1578 : vector<2x32xf32>
    %1580 = math.tanh %1579 : vector<2x32xf32>
    %cst_496 = arith.constant 1.000000e+00 : f32
    %1581 = vector.broadcast %cst_496 : f32 to vector<2x32xf32>
    %1582 = arith.subf %1581, %1575 : vector<2x32xf32>
    %1583 = arith.mulf %1582, %1580 : vector<2x32xf32>
    %1584 = arith.mulf %1575, %1515 : vector<2x32xf32>
    %1585 = arith.addf %1583, %1584 : vector<2x32xf32>
    %c4_497 = arith.constant 4 : index
    %c32_498 = arith.constant 32 : index
    %1586 = vector.load %arg10[%c4_497, %c32_498] : memref<16x64xf32, #tpu.memory_space<vmem>>, vector<2x32xf32>
    tpu.vector_store %arg10[%c4_497, %c32_498], %1585 {strides = array<i32>} : memref<16x64xf32, #tpu.memory_space<vmem>>, vector<2x32xf32>,
    %1587 = vector.extract_strided_slice %1158 {offsets = [12, 0], sizes = [2, 96], strides = [1, 1]} : vector<16x192xf32> to vector<2x96xf32>
    %cst_499 = arith.constant dense<0.000000e+00> : vector<2x96xf32>
    %1588 = tpu.matmul %1550, %1160, %cst_499 {dimension_numbers = #tpu.dot_dimension_numbers<[1], [0], [0], [1], [0, 0, 1, 1], [], []>} : vector<2x32xf32>, vector<32x96xf32>, vector<2x96xf32> -> vector<2x96xf32>
    %1589 = vector.broadcast %1164 : vector<1x96xf32> to vector<2x96xf32>
    %1590 = arith.addf %1588, %1589 : vector<2x96xf32>
    %1591 = vector.extract_strided_slice %1587 {offsets = [0, 0], sizes = [2, 32], strides = [1, 1]} : vector<2x96xf32> to vector<2x32xf32>
    %1592 = vector.extract_strided_slice %1590 {offsets = [0, 0], sizes = [2, 32], strides = [1, 1]} : vector<2x96xf32> to vector<2x32xf32>
    %1593 = arith.addf %1591, %1592 : vector<2x32xf32>
    %cst_500 = arith.constant 0.000000e+00 : f32
    %1594 = vector.broadcast %cst_500 : f32 to vector<2x32xf32>
    %1595 = arith.subf %1594, %1593 : vector<2x32xf32>
    %1596 = math.exp %1595 : vector<2x32xf32>
    %cst_501 = arith.constant 1.000000e+00 : f32
    %1597 = vector.broadcast %cst_501 : f32 to vector<2x32xf32>
    %1598 = arith.addf %1597, %1596 : vector<2x32xf32>
    %cst_502 = arith.constant 1.000000e+00 : f32
    %1599 = vector.broadcast %cst_502 : f32 to vector<2x32xf32>
    %1600 = arith.divf %1599, %1598 : vector<2x32xf32>
    %1601 = vector.extract_strided_slice %1587 {offsets = [0, 32], sizes = [2, 32], strides = [1, 1]} : vector<2x96xf32> to vector<2x32xf32>
    %1602 = vector.extract_strided_slice %1590 {offsets = [0, 32], sizes = [2, 32], strides = [1, 1]} : vector<2x96xf32> to vector<2x32xf32>
    %1603 = arith.addf %1601, %1602 : vector<2x32xf32>
    %cst_503 = arith.constant 0.000000e+00 : f32
    %1604 = vector.broadcast %cst_503 : f32 to vector<2x32xf32>
    %1605 = arith.subf %1604, %1603 : vector<2x32xf32>
    %1606 = math.exp %1605 : vector<2x32xf32>
    %cst_504 = arith.constant 1.000000e+00 : f32
    %1607 = vector.broadcast %cst_504 : f32 to vector<2x32xf32>
    %1608 = arith.addf %1607, %1606 : vector<2x32xf32>
    %cst_505 = arith.constant 1.000000e+00 : f32
    %1609 = vector.broadcast %cst_505 : f32 to vector<2x32xf32>
    %1610 = arith.divf %1609, %1608 : vector<2x32xf32>
    %1611 = vector.extract_strided_slice %1587 {offsets = [0, 64], sizes = [2, 32], strides = [1, 1]} : vector<2x96xf32> to vector<2x32xf32>
    %1612 = vector.extract_strided_slice %1590 {offsets = [0, 64], sizes = [2, 32], strides = [1, 1]} : vector<2x96xf32> to vector<2x32xf32>
    %1613 = arith.mulf %1600, %1612 : vector<2x32xf32>
    %1614 = arith.addf %1611, %1613 : vector<2x32xf32>
    %1615 = math.tanh %1614 : vector<2x32xf32>
    %cst_506 = arith.constant 1.000000e+00 : f32
    %1616 = vector.broadcast %cst_506 : f32 to vector<2x32xf32>
    %1617 = arith.subf %1616, %1610 : vector<2x32xf32>
    %1618 = arith.mulf %1617, %1615 : vector<2x32xf32>
    %1619 = arith.mulf %1610, %1550 : vector<2x32xf32>
    %1620 = arith.addf %1618, %1619 : vector<2x32xf32>
    %c12_507 = arith.constant 12 : index
    %c0_508 = arith.constant 0 : index
    %1621 = vector.load %arg10[%c12_507, %c0_508] : memref<16x64xf32, #tpu.memory_space<vmem>>, vector<2x32xf32>
    tpu.vector_store %arg10[%c12_507, %c0_508], %1620 {strides = array<i32>} : memref<16x64xf32, #tpu.memory_space<vmem>>, vector<2x32xf32>,
    %1622 = vector.extract_strided_slice %1158 {offsets = [2, 96], sizes = [2, 96], strides = [1, 1]} : vector<16x192xf32> to vector<2x96xf32>
    %cst_509 = arith.constant dense<0.000000e+00> : vector<2x96xf32>
    %1623 = tpu.matmul %1585, %1162, %cst_509 {dimension_numbers = #tpu.dot_dimension_numbers<[1], [0], [0], [1], [0, 0, 1, 1], [], []>} : vector<2x32xf32>, vector<32x96xf32>, vector<2x96xf32> -> vector<2x96xf32>
    %1624 = vector.broadcast %1166 : vector<1x96xf32> to vector<2x96xf32>
    %1625 = arith.addf %1623, %1624 : vector<2x96xf32>
    %1626 = vector.extract_strided_slice %1622 {offsets = [0, 0], sizes = [2, 32], strides = [1, 1]} : vector<2x96xf32> to vector<2x32xf32>
    %1627 = vector.extract_strided_slice %1625 {offsets = [0, 0], sizes = [2, 32], strides = [1, 1]} : vector<2x96xf32> to vector<2x32xf32>
    %1628 = arith.addf %1626, %1627 : vector<2x32xf32>
    %cst_510 = arith.constant 0.000000e+00 : f32
    %1629 = vector.broadcast %cst_510 : f32 to vector<2x32xf32>
    %1630 = arith.subf %1629, %1628 : vector<2x32xf32>
    %1631 = math.exp %1630 : vector<2x32xf32>
    %cst_511 = arith.constant 1.000000e+00 : f32
    %1632 = vector.broadcast %cst_511 : f32 to vector<2x32xf32>
    %1633 = arith.addf %1632, %1631 : vector<2x32xf32>
    %cst_512 = arith.constant 1.000000e+00 : f32
    %1634 = vector.broadcast %cst_512 : f32 to vector<2x32xf32>
    %1635 = arith.divf %1634, %1633 : vector<2x32xf32>
    %1636 = vector.extract_strided_slice %1622 {offsets = [0, 32], sizes = [2, 32], strides = [1, 1]} : vector<2x96xf32> to vector<2x32xf32>
    %1637 = vector.extract_strided_slice %1625 {offsets = [0, 32], sizes = [2, 32], strides = [1, 1]} : vector<2x96xf32> to vector<2x32xf32>
    %1638 = arith.addf %1636, %1637 : vector<2x32xf32>
    %cst_513 = arith.constant 0.000000e+00 : f32
    %1639 = vector.broadcast %cst_513 : f32 to vector<2x32xf32>
    %1640 = arith.subf %1639, %1638 : vector<2x32xf32>
    %1641 = math.exp %1640 : vector<2x32xf32>
    %cst_514 = arith.constant 1.000000e+00 : f32
    %1642 = vector.broadcast %cst_514 : f32 to vector<2x32xf32>
    %1643 = arith.addf %1642, %1641 : vector<2x32xf32>
    %cst_515 = arith.constant 1.000000e+00 : f32
    %1644 = vector.broadcast %cst_515 : f32 to vector<2x32xf32>
    %1645 = arith.divf %1644, %1643 : vector<2x32xf32>
    %1646 = vector.extract_strided_slice %1622 {offsets = [0, 64], sizes = [2, 32], strides = [1, 1]} : vector<2x96xf32> to vector<2x32xf32>
    %1647 = vector.extract_strided_slice %1625 {offsets = [0, 64], sizes = [2, 32], strides = [1, 1]} : vector<2x96xf32> to vector<2x32xf32>
    %1648 = arith.mulf %1635, %1647 : vector<2x32xf32>
    %1649 = arith.addf %1646, %1648 : vector<2x32xf32>
    %1650 = math.tanh %1649 : vector<2x32xf32>
    %cst_516 = arith.constant 1.000000e+00 : f32
    %1651 = vector.broadcast %cst_516 : f32 to vector<2x32xf32>
    %1652 = arith.subf %1651, %1645 : vector<2x32xf32>
    %1653 = arith.mulf %1652, %1650 : vector<2x32xf32>
    %1654 = arith.mulf %1645, %1585 : vector<2x32xf32>
    %1655 = arith.addf %1653, %1654 : vector<2x32xf32>
    %c2_517 = arith.constant 2 : index
    %c32_518 = arith.constant 32 : index
    %1656 = vector.load %arg10[%c2_517, %c32_518] : memref<16x64xf32, #tpu.memory_space<vmem>>, vector<2x32xf32>
    tpu.vector_store %arg10[%c2_517, %c32_518], %1655 {strides = array<i32>} : memref<16x64xf32, #tpu.memory_space<vmem>>, vector<2x32xf32>,
    %1657 = vector.extract_strided_slice %1158 {offsets = [14, 0], sizes = [2, 96], strides = [1, 1]} : vector<16x192xf32> to vector<2x96xf32>
    %cst_519 = arith.constant dense<0.000000e+00> : vector<2x96xf32>
    %1658 = tpu.matmul %1620, %1160, %cst_519 {dimension_numbers = #tpu.dot_dimension_numbers<[1], [0], [0], [1], [0, 0, 1, 1], [], []>} : vector<2x32xf32>, vector<32x96xf32>, vector<2x96xf32> -> vector<2x96xf32>
    %1659 = vector.broadcast %1164 : vector<1x96xf32> to vector<2x96xf32>
    %1660 = arith.addf %1658, %1659 : vector<2x96xf32>
    %1661 = vector.extract_strided_slice %1657 {offsets = [0, 0], sizes = [2, 32], strides = [1, 1]} : vector<2x96xf32> to vector<2x32xf32>
    %1662 = vector.extract_strided_slice %1660 {offsets = [0, 0], sizes = [2, 32], strides = [1, 1]} : vector<2x96xf32> to vector<2x32xf32>
    %1663 = arith.addf %1661, %1662 : vector<2x32xf32>
    %cst_520 = arith.constant 0.000000e+00 : f32
    %1664 = vector.broadcast %cst_520 : f32 to vector<2x32xf32>
    %1665 = arith.subf %1664, %1663 : vector<2x32xf32>
    %1666 = math.exp %1665 : vector<2x32xf32>
    %cst_521 = arith.constant 1.000000e+00 : f32
    %1667 = vector.broadcast %cst_521 : f32 to vector<2x32xf32>
    %1668 = arith.addf %1667, %1666 : vector<2x32xf32>
    %cst_522 = arith.constant 1.000000e+00 : f32
    %1669 = vector.broadcast %cst_522 : f32 to vector<2x32xf32>
    %1670 = arith.divf %1669, %1668 : vector<2x32xf32>
    %1671 = vector.extract_strided_slice %1657 {offsets = [0, 32], sizes = [2, 32], strides = [1, 1]} : vector<2x96xf32> to vector<2x32xf32>
    %1672 = vector.extract_strided_slice %1660 {offsets = [0, 32], sizes = [2, 32], strides = [1, 1]} : vector<2x96xf32> to vector<2x32xf32>
    %1673 = arith.addf %1671, %1672 : vector<2x32xf32>
    %cst_523 = arith.constant 0.000000e+00 : f32
    %1674 = vector.broadcast %cst_523 : f32 to vector<2x32xf32>
    %1675 = arith.subf %1674, %1673 : vector<2x32xf32>
    %1676 = math.exp %1675 : vector<2x32xf32>
    %cst_524 = arith.constant 1.000000e+00 : f32
    %1677 = vector.broadcast %cst_524 : f32 to vector<2x32xf32>
    %1678 = arith.addf %1677, %1676 : vector<2x32xf32>
    %cst_525 = arith.constant 1.000000e+00 : f32
    %1679 = vector.broadcast %cst_525 : f32 to vector<2x32xf32>
    %1680 = arith.divf %1679, %1678 : vector<2x32xf32>
    %1681 = vector.extract_strided_slice %1657 {offsets = [0, 64], sizes = [2, 32], strides = [1, 1]} : vector<2x96xf32> to vector<2x32xf32>
    %1682 = vector.extract_strided_slice %1660 {offsets = [0, 64], sizes = [2, 32], strides = [1, 1]} : vector<2x96xf32> to vector<2x32xf32>
    %1683 = arith.mulf %1670, %1682 : vector<2x32xf32>
    %1684 = arith.addf %1681, %1683 : vector<2x32xf32>
    %1685 = math.tanh %1684 : vector<2x32xf32>
    %cst_526 = arith.constant 1.000000e+00 : f32
    %1686 = vector.broadcast %cst_526 : f32 to vector<2x32xf32>
    %1687 = arith.subf %1686, %1680 : vector<2x32xf32>
    %1688 = arith.mulf %1687, %1685 : vector<2x32xf32>
    %1689 = arith.mulf %1680, %1620 : vector<2x32xf32>
    %1690 = arith.addf %1688, %1689 : vector<2x32xf32>
    %c14_527 = arith.constant 14 : index
    %c0_528 = arith.constant 0 : index
    %1691 = vector.load %arg10[%c14_527, %c0_528] : memref<16x64xf32, #tpu.memory_space<vmem>>, vector<2x32xf32>
    tpu.vector_store %arg10[%c14_527, %c0_528], %1690 {strides = array<i32>} : memref<16x64xf32, #tpu.memory_space<vmem>>, vector<2x32xf32>,
    %1692 = vector.extract_strided_slice %1158 {offsets = [0, 96], sizes = [2, 96], strides = [1, 1]} : vector<16x192xf32> to vector<2x96xf32>
    %cst_529 = arith.constant dense<0.000000e+00> : vector<2x96xf32>
    %1693 = tpu.matmul %1655, %1162, %cst_529 {dimension_numbers = #tpu.dot_dimension_numbers<[1], [0], [0], [1], [0, 0, 1, 1], [], []>} : vector<2x32xf32>, vector<32x96xf32>, vector<2x96xf32> -> vector<2x96xf32>
    %1694 = vector.broadcast %1166 : vector<1x96xf32> to vector<2x96xf32>
    %1695 = arith.addf %1693, %1694 : vector<2x96xf32>
    %1696 = vector.extract_strided_slice %1692 {offsets = [0, 0], sizes = [2, 32], strides = [1, 1]} : vector<2x96xf32> to vector<2x32xf32>
    %1697 = vector.extract_strided_slice %1695 {offsets = [0, 0], sizes = [2, 32], strides = [1, 1]} : vector<2x96xf32> to vector<2x32xf32>
    %1698 = arith.addf %1696, %1697 : vector<2x32xf32>
    %cst_530 = arith.constant 0.000000e+00 : f32
    %1699 = vector.broadcast %cst_530 : f32 to vector<2x32xf32>
    %1700 = arith.subf %1699, %1698 : vector<2x32xf32>
    %1701 = math.exp %1700 : vector<2x32xf32>
    %cst_531 = arith.constant 1.000000e+00 : f32
    %1702 = vector.broadcast %cst_531 : f32 to vector<2x32xf32>
    %1703 = arith.addf %1702, %1701 : vector<2x32xf32>
    %cst_532 = arith.constant 1.000000e+00 : f32
    %1704 = vector.broadcast %cst_532 : f32 to vector<2x32xf32>
    %1705 = arith.divf %1704, %1703 : vector<2x32xf32>
    %1706 = vector.extract_strided_slice %1692 {offsets = [0, 32], sizes = [2, 32], strides = [1, 1]} : vector<2x96xf32> to vector<2x32xf32>
    %1707 = vector.extract_strided_slice %1695 {offsets = [0, 32], sizes = [2, 32], strides = [1, 1]} : vector<2x96xf32> to vector<2x32xf32>
    %1708 = arith.addf %1706, %1707 : vector<2x32xf32>
    %cst_533 = arith.constant 0.000000e+00 : f32
    %1709 = vector.broadcast %cst_533 : f32 to vector<2x32xf32>
    %1710 = arith.subf %1709, %1708 : vector<2x32xf32>
    %1711 = math.exp %1710 : vector<2x32xf32>
    %cst_534 = arith.constant 1.000000e+00 : f32
    %1712 = vector.broadcast %cst_534 : f32 to vector<2x32xf32>
    %1713 = arith.addf %1712, %1711 : vector<2x32xf32>
    %cst_535 = arith.constant 1.000000e+00 : f32
    %1714 = vector.broadcast %cst_535 : f32 to vector<2x32xf32>
    %1715 = arith.divf %1714, %1713 : vector<2x32xf32>
    %1716 = vector.extract_strided_slice %1692 {offsets = [0, 64], sizes = [2, 32], strides = [1, 1]} : vector<2x96xf32> to vector<2x32xf32>
    %1717 = vector.extract_strided_slice %1695 {offsets = [0, 64], sizes = [2, 32], strides = [1, 1]} : vector<2x96xf32> to vector<2x32xf32>
    %1718 = arith.mulf %1705, %1717 : vector<2x32xf32>
    %1719 = arith.addf %1716, %1718 : vector<2x32xf32>
    %1720 = math.tanh %1719 : vector<2x32xf32>
    %cst_536 = arith.constant 1.000000e+00 : f32
    %1721 = vector.broadcast %cst_536 : f32 to vector<2x32xf32>
    %1722 = arith.subf %1721, %1715 : vector<2x32xf32>
    %1723 = arith.mulf %1722, %1720 : vector<2x32xf32>
    %1724 = arith.mulf %1715, %1655 : vector<2x32xf32>
    %1725 = arith.addf %1723, %1724 : vector<2x32xf32>
    %c0_537 = arith.constant 0 : index
    %c32_538 = arith.constant 32 : index
    %1726 = vector.load %arg10[%c0_537, %c32_538] : memref<16x64xf32, #tpu.memory_space<vmem>>, vector<2x32xf32>
    tpu.vector_store %arg10[%c0_537, %c32_538], %1725 {strides = array<i32>} : memref<16x64xf32, #tpu.memory_space<vmem>>, vector<2x32xf32>,
    %c0_539 = arith.constant 0 : index
    %c0_540 = arith.constant 0 : index
    %1727 = vector.load %arg10[%c0_539, %c0_540] : memref<16x64xf32, #tpu.memory_space<vmem>>, vector<16x64xf32>
    %c2_541 = arith.constant 2 : index
    %c0_542 = arith.constant 0 : index
    %c0_543 = arith.constant 0 : index
    %1728 = vector.load %arg5[%c2_541, %c0_542, %c0_543] : memref<3x64x192xf32, #tpu.memory_space<vmem>>, vector<1x64x192xf32>
    %1729 = vector.shape_cast %1728 : vector<1x64x192xf32> to vector<64x192xf32>
    %c2_544 = arith.constant 2 : index
    %c0_545 = arith.constant 0 : index
    %c0_546 = arith.constant 0 : index
    %1730 = vector.load %arg6[%c2_544, %c0_545, %c0_546] : memref<3x1x192xf32, #tpu.memory_space<vmem>>, vector<1x1x192xf32>
    %1731 = vector.shape_cast %1730 : vector<1x1x192xf32> to vector<1x192xf32>
    %cst_547 = arith.constant dense<0.000000e+00> : vector<16x192xf32>
    %1732 = tpu.matmul %1727, %1729, %cst_547 {dimension_numbers = #tpu.dot_dimension_numbers<[1], [0], [0], [1], [0, 0, 1, 1], [], []>} : vector<16x64xf32>, vector<64x192xf32>, vector<16x192xf32> -> vector<16x192xf32>
    %1733 = vector.broadcast %1731 : vector<1x192xf32> to vector<16x192xf32>
    %1734 = arith.addf %1732, %1733 : vector<16x192xf32>
    %c2_548 = arith.constant 2 : index
    %c0_549 = arith.constant 0 : index
    %c0_550 = arith.constant 0 : index
    %c0_551 = arith.constant 0 : index
    %1735 = vector.load %arg7[%c2_548, %c0_549, %c0_550, %c0_551] : memref<3x2x32x96xf32, #tpu.memory_space<vmem>>, vector<1x1x32x96xf32>
    %1736 = vector.shape_cast %1735 : vector<1x1x32x96xf32> to vector<32x96xf32>
    %c2_552 = arith.constant 2 : index
    %c1_553 = arith.constant 1 : index
    %c0_554 = arith.constant 0 : index
    %c0_555 = arith.constant 0 : index
    %1737 = vector.load %arg7[%c2_552, %c1_553, %c0_554, %c0_555] : memref<3x2x32x96xf32, #tpu.memory_space<vmem>>, vector<1x1x32x96xf32>
    %1738 = vector.shape_cast %1737 : vector<1x1x32x96xf32> to vector<32x96xf32>
    %c2_556 = arith.constant 2 : index
    %c0_557 = arith.constant 0 : index
    %c0_558 = arith.constant 0 : index
    %c0_559 = arith.constant 0 : index
    %1739 = vector.load %arg8[%c2_556, %c0_557, %c0_558, %c0_559] : memref<3x2x1x96xf32, #tpu.memory_space<vmem>>, vector<1x1x1x96xf32>
    %1740 = vector.shape_cast %1739 : vector<1x1x1x96xf32> to vector<1x96xf32>
    %c2_560 = arith.constant 2 : index
    %c1_561 = arith.constant 1 : index
    %c0_562 = arith.constant 0 : index
    %c0_563 = arith.constant 0 : index
    %1741 = vector.load %arg8[%c2_560, %c1_561, %c0_562, %c0_563] : memref<3x2x1x96xf32, #tpu.memory_space<vmem>>, vector<1x1x1x96xf32>
    %1742 = vector.shape_cast %1741 : vector<1x1x1x96xf32> to vector<1x96xf32>
    %1743 = vector.extract_strided_slice %1734 {offsets = [0, 0], sizes = [2, 96], strides = [1, 1]} : vector<16x192xf32> to vector<2x96xf32>
    %cst_564 = arith.constant dense<0.000000e+00> : vector<2x96xf32>
    %1744 = tpu.matmul %0, %1736, %cst_564 {dimension_numbers = #tpu.dot_dimension_numbers<[1], [0], [0], [1], [0, 0, 1, 1], [], []>} : vector<2x32xf32>, vector<32x96xf32>, vector<2x96xf32> -> vector<2x96xf32>
    %1745 = vector.broadcast %1740 : vector<1x96xf32> to vector<2x96xf32>
    %1746 = arith.addf %1744, %1745 : vector<2x96xf32>
    %1747 = vector.extract_strided_slice %1743 {offsets = [0, 0], sizes = [2, 32], strides = [1, 1]} : vector<2x96xf32> to vector<2x32xf32>
    %1748 = vector.extract_strided_slice %1746 {offsets = [0, 0], sizes = [2, 32], strides = [1, 1]} : vector<2x96xf32> to vector<2x32xf32>
    %1749 = arith.addf %1747, %1748 : vector<2x32xf32>
    %cst_565 = arith.constant 0.000000e+00 : f32
    %1750 = vector.broadcast %cst_565 : f32 to vector<2x32xf32>
    %1751 = arith.subf %1750, %1749 : vector<2x32xf32>
    %1752 = math.exp %1751 : vector<2x32xf32>
    %cst_566 = arith.constant 1.000000e+00 : f32
    %1753 = vector.broadcast %cst_566 : f32 to vector<2x32xf32>
    %1754 = arith.addf %1753, %1752 : vector<2x32xf32>
    %cst_567 = arith.constant 1.000000e+00 : f32
    %1755 = vector.broadcast %cst_567 : f32 to vector<2x32xf32>
    %1756 = arith.divf %1755, %1754 : vector<2x32xf32>
    %1757 = vector.extract_strided_slice %1743 {offsets = [0, 32], sizes = [2, 32], strides = [1, 1]} : vector<2x96xf32> to vector<2x32xf32>
    %1758 = vector.extract_strided_slice %1746 {offsets = [0, 32], sizes = [2, 32], strides = [1, 1]} : vector<2x96xf32> to vector<2x32xf32>
    %1759 = arith.addf %1757, %1758 : vector<2x32xf32>
    %cst_568 = arith.constant 0.000000e+00 : f32
    %1760 = vector.broadcast %cst_568 : f32 to vector<2x32xf32>
    %1761 = arith.subf %1760, %1759 : vector<2x32xf32>
    %1762 = math.exp %1761 : vector<2x32xf32>
    %cst_569 = arith.constant 1.000000e+00 : f32
    %1763 = vector.broadcast %cst_569 : f32 to vector<2x32xf32>
    %1764 = arith.addf %1763, %1762 : vector<2x32xf32>
    %cst_570 = arith.constant 1.000000e+00 : f32
    %1765 = vector.broadcast %cst_570 : f32 to vector<2x32xf32>
    %1766 = arith.divf %1765, %1764 : vector<2x32xf32>
    %1767 = vector.extract_strided_slice %1743 {offsets = [0, 64], sizes = [2, 32], strides = [1, 1]} : vector<2x96xf32> to vector<2x32xf32>
    %1768 = vector.extract_strided_slice %1746 {offsets = [0, 64], sizes = [2, 32], strides = [1, 1]} : vector<2x96xf32> to vector<2x32xf32>
    %1769 = arith.mulf %1756, %1768 : vector<2x32xf32>
    %1770 = arith.addf %1767, %1769 : vector<2x32xf32>
    %1771 = math.tanh %1770 : vector<2x32xf32>
    %cst_571 = arith.constant 1.000000e+00 : f32
    %1772 = vector.broadcast %cst_571 : f32 to vector<2x32xf32>
    %1773 = arith.subf %1772, %1766 : vector<2x32xf32>
    %1774 = arith.mulf %1773, %1771 : vector<2x32xf32>
    %1775 = arith.mulf %1766, %0 : vector<2x32xf32>
    %1776 = arith.addf %1774, %1775 : vector<2x32xf32>
    %1777 = vector.extract_strided_slice %1734 {offsets = [2, 0], sizes = [2, 96], strides = [1, 1]} : vector<16x192xf32> to vector<2x96xf32>
    %cst_572 = arith.constant dense<0.000000e+00> : vector<2x96xf32>
    %1778 = tpu.matmul %1776, %1736, %cst_572 {dimension_numbers = #tpu.dot_dimension_numbers<[1], [0], [0], [1], [0, 0, 1, 1], [], []>} : vector<2x32xf32>, vector<32x96xf32>, vector<2x96xf32> -> vector<2x96xf32>
    %1779 = vector.broadcast %1740 : vector<1x96xf32> to vector<2x96xf32>
    %1780 = arith.addf %1778, %1779 : vector<2x96xf32>
    %1781 = vector.extract_strided_slice %1777 {offsets = [0, 0], sizes = [2, 32], strides = [1, 1]} : vector<2x96xf32> to vector<2x32xf32>
    %1782 = vector.extract_strided_slice %1780 {offsets = [0, 0], sizes = [2, 32], strides = [1, 1]} : vector<2x96xf32> to vector<2x32xf32>
    %1783 = arith.addf %1781, %1782 : vector<2x32xf32>
    %cst_573 = arith.constant 0.000000e+00 : f32
    %1784 = vector.broadcast %cst_573 : f32 to vector<2x32xf32>
    %1785 = arith.subf %1784, %1783 : vector<2x32xf32>
    %1786 = math.exp %1785 : vector<2x32xf32>
    %cst_574 = arith.constant 1.000000e+00 : f32
    %1787 = vector.broadcast %cst_574 : f32 to vector<2x32xf32>
    %1788 = arith.addf %1787, %1786 : vector<2x32xf32>
    %cst_575 = arith.constant 1.000000e+00 : f32
    %1789 = vector.broadcast %cst_575 : f32 to vector<2x32xf32>
    %1790 = arith.divf %1789, %1788 : vector<2x32xf32>
    %1791 = vector.extract_strided_slice %1777 {offsets = [0, 32], sizes = [2, 32], strides = [1, 1]} : vector<2x96xf32> to vector<2x32xf32>
    %1792 = vector.extract_strided_slice %1780 {offsets = [0, 32], sizes = [2, 32], strides = [1, 1]} : vector<2x96xf32> to vector<2x32xf32>
    %1793 = arith.addf %1791, %1792 : vector<2x32xf32>
    %cst_576 = arith.constant 0.000000e+00 : f32
    %1794 = vector.broadcast %cst_576 : f32 to vector<2x32xf32>
    %1795 = arith.subf %1794, %1793 : vector<2x32xf32>
    %1796 = math.exp %1795 : vector<2x32xf32>
    %cst_577 = arith.constant 1.000000e+00 : f32
    %1797 = vector.broadcast %cst_577 : f32 to vector<2x32xf32>
    %1798 = arith.addf %1797, %1796 : vector<2x32xf32>
    %cst_578 = arith.constant 1.000000e+00 : f32
    %1799 = vector.broadcast %cst_578 : f32 to vector<2x32xf32>
    %1800 = arith.divf %1799, %1798 : vector<2x32xf32>
    %1801 = vector.extract_strided_slice %1777 {offsets = [0, 64], sizes = [2, 32], strides = [1, 1]} : vector<2x96xf32> to vector<2x32xf32>
    %1802 = vector.extract_strided_slice %1780 {offsets = [0, 64], sizes = [2, 32], strides = [1, 1]} : vector<2x96xf32> to vector<2x32xf32>
    %1803 = arith.mulf %1790, %1802 : vector<2x32xf32>
    %1804 = arith.addf %1801, %1803 : vector<2x32xf32>
    %1805 = math.tanh %1804 : vector<2x32xf32>
    %cst_579 = arith.constant 1.000000e+00 : f32
    %1806 = vector.broadcast %cst_579 : f32 to vector<2x32xf32>
    %1807 = arith.subf %1806, %1800 : vector<2x32xf32>
    %1808 = arith.mulf %1807, %1805 : vector<2x32xf32>
    %1809 = arith.mulf %1800, %1776 : vector<2x32xf32>
    %1810 = arith.addf %1808, %1809 : vector<2x32xf32>
    %1811 = vector.extract_strided_slice %1734 {offsets = [4, 0], sizes = [2, 96], strides = [1, 1]} : vector<16x192xf32> to vector<2x96xf32>
    %cst_580 = arith.constant dense<0.000000e+00> : vector<2x96xf32>
    %1812 = tpu.matmul %1810, %1736, %cst_580 {dimension_numbers = #tpu.dot_dimension_numbers<[1], [0], [0], [1], [0, 0, 1, 1], [], []>} : vector<2x32xf32>, vector<32x96xf32>, vector<2x96xf32> -> vector<2x96xf32>
    %1813 = vector.broadcast %1740 : vector<1x96xf32> to vector<2x96xf32>
    %1814 = arith.addf %1812, %1813 : vector<2x96xf32>
    %1815 = vector.extract_strided_slice %1811 {offsets = [0, 0], sizes = [2, 32], strides = [1, 1]} : vector<2x96xf32> to vector<2x32xf32>
    %1816 = vector.extract_strided_slice %1814 {offsets = [0, 0], sizes = [2, 32], strides = [1, 1]} : vector<2x96xf32> to vector<2x32xf32>
    %1817 = arith.addf %1815, %1816 : vector<2x32xf32>
    %cst_581 = arith.constant 0.000000e+00 : f32
    %1818 = vector.broadcast %cst_581 : f32 to vector<2x32xf32>
    %1819 = arith.subf %1818, %1817 : vector<2x32xf32>
    %1820 = math.exp %1819 : vector<2x32xf32>
    %cst_582 = arith.constant 1.000000e+00 : f32
    %1821 = vector.broadcast %cst_582 : f32 to vector<2x32xf32>
    %1822 = arith.addf %1821, %1820 : vector<2x32xf32>
    %cst_583 = arith.constant 1.000000e+00 : f32
    %1823 = vector.broadcast %cst_583 : f32 to vector<2x32xf32>
    %1824 = arith.divf %1823, %1822 : vector<2x32xf32>
    %1825 = vector.extract_strided_slice %1811 {offsets = [0, 32], sizes = [2, 32], strides = [1, 1]} : vector<2x96xf32> to vector<2x32xf32>
    %1826 = vector.extract_strided_slice %1814 {offsets = [0, 32], sizes = [2, 32], strides = [1, 1]} : vector<2x96xf32> to vector<2x32xf32>
    %1827 = arith.addf %1825, %1826 : vector<2x32xf32>
    %cst_584 = arith.constant 0.000000e+00 : f32
    %1828 = vector.broadcast %cst_584 : f32 to vector<2x32xf32>
    %1829 = arith.subf %1828, %1827 : vector<2x32xf32>
    %1830 = math.exp %1829 : vector<2x32xf32>
    %cst_585 = arith.constant 1.000000e+00 : f32
    %1831 = vector.broadcast %cst_585 : f32 to vector<2x32xf32>
    %1832 = arith.addf %1831, %1830 : vector<2x32xf32>
    %cst_586 = arith.constant 1.000000e+00 : f32
    %1833 = vector.broadcast %cst_586 : f32 to vector<2x32xf32>
    %1834 = arith.divf %1833, %1832 : vector<2x32xf32>
    %1835 = vector.extract_strided_slice %1811 {offsets = [0, 64], sizes = [2, 32], strides = [1, 1]} : vector<2x96xf32> to vector<2x32xf32>
    %1836 = vector.extract_strided_slice %1814 {offsets = [0, 64], sizes = [2, 32], strides = [1, 1]} : vector<2x96xf32> to vector<2x32xf32>
    %1837 = arith.mulf %1824, %1836 : vector<2x32xf32>
    %1838 = arith.addf %1835, %1837 : vector<2x32xf32>
    %1839 = math.tanh %1838 : vector<2x32xf32>
    %cst_587 = arith.constant 1.000000e+00 : f32
    %1840 = vector.broadcast %cst_587 : f32 to vector<2x32xf32>
    %1841 = arith.subf %1840, %1834 : vector<2x32xf32>
    %1842 = arith.mulf %1841, %1839 : vector<2x32xf32>
    %1843 = arith.mulf %1834, %1810 : vector<2x32xf32>
    %1844 = arith.addf %1842, %1843 : vector<2x32xf32>
    %1845 = vector.extract_strided_slice %1734 {offsets = [6, 0], sizes = [2, 96], strides = [1, 1]} : vector<16x192xf32> to vector<2x96xf32>
    %cst_588 = arith.constant dense<0.000000e+00> : vector<2x96xf32>
    %1846 = tpu.matmul %1844, %1736, %cst_588 {dimension_numbers = #tpu.dot_dimension_numbers<[1], [0], [0], [1], [0, 0, 1, 1], [], []>} : vector<2x32xf32>, vector<32x96xf32>, vector<2x96xf32> -> vector<2x96xf32>
    %1847 = vector.broadcast %1740 : vector<1x96xf32> to vector<2x96xf32>
    %1848 = arith.addf %1846, %1847 : vector<2x96xf32>
    %1849 = vector.extract_strided_slice %1845 {offsets = [0, 0], sizes = [2, 32], strides = [1, 1]} : vector<2x96xf32> to vector<2x32xf32>
    %1850 = vector.extract_strided_slice %1848 {offsets = [0, 0], sizes = [2, 32], strides = [1, 1]} : vector<2x96xf32> to vector<2x32xf32>
    %1851 = arith.addf %1849, %1850 : vector<2x32xf32>
    %cst_589 = arith.constant 0.000000e+00 : f32
    %1852 = vector.broadcast %cst_589 : f32 to vector<2x32xf32>
    %1853 = arith.subf %1852, %1851 : vector<2x32xf32>
    %1854 = math.exp %1853 : vector<2x32xf32>
    %cst_590 = arith.constant 1.000000e+00 : f32
    %1855 = vector.broadcast %cst_590 : f32 to vector<2x32xf32>
    %1856 = arith.addf %1855, %1854 : vector<2x32xf32>
    %cst_591 = arith.constant 1.000000e+00 : f32
    %1857 = vector.broadcast %cst_591 : f32 to vector<2x32xf32>
    %1858 = arith.divf %1857, %1856 : vector<2x32xf32>
    %1859 = vector.extract_strided_slice %1845 {offsets = [0, 32], sizes = [2, 32], strides = [1, 1]} : vector<2x96xf32> to vector<2x32xf32>
    %1860 = vector.extract_strided_slice %1848 {offsets = [0, 32], sizes = [2, 32], strides = [1, 1]} : vector<2x96xf32> to vector<2x32xf32>
    %1861 = arith.addf %1859, %1860 : vector<2x32xf32>
    %cst_592 = arith.constant 0.000000e+00 : f32
    %1862 = vector.broadcast %cst_592 : f32 to vector<2x32xf32>
    %1863 = arith.subf %1862, %1861 : vector<2x32xf32>
    %1864 = math.exp %1863 : vector<2x32xf32>
    %cst_593 = arith.constant 1.000000e+00 : f32
    %1865 = vector.broadcast %cst_593 : f32 to vector<2x32xf32>
    %1866 = arith.addf %1865, %1864 : vector<2x32xf32>
    %cst_594 = arith.constant 1.000000e+00 : f32
    %1867 = vector.broadcast %cst_594 : f32 to vector<2x32xf32>
    %1868 = arith.divf %1867, %1866 : vector<2x32xf32>
    %1869 = vector.extract_strided_slice %1845 {offsets = [0, 64], sizes = [2, 32], strides = [1, 1]} : vector<2x96xf32> to vector<2x32xf32>
    %1870 = vector.extract_strided_slice %1848 {offsets = [0, 64], sizes = [2, 32], strides = [1, 1]} : vector<2x96xf32> to vector<2x32xf32>
    %1871 = arith.mulf %1858, %1870 : vector<2x32xf32>
    %1872 = arith.addf %1869, %1871 : vector<2x32xf32>
    %1873 = math.tanh %1872 : vector<2x32xf32>
    %cst_595 = arith.constant 1.000000e+00 : f32
    %1874 = vector.broadcast %cst_595 : f32 to vector<2x32xf32>
    %1875 = arith.subf %1874, %1868 : vector<2x32xf32>
    %1876 = arith.mulf %1875, %1873 : vector<2x32xf32>
    %1877 = arith.mulf %1868, %1844 : vector<2x32xf32>
    %1878 = arith.addf %1876, %1877 : vector<2x32xf32>
    %1879 = vector.extract_strided_slice %1734 {offsets = [8, 0], sizes = [2, 96], strides = [1, 1]} : vector<16x192xf32> to vector<2x96xf32>
    %cst_596 = arith.constant dense<0.000000e+00> : vector<2x96xf32>
    %1880 = tpu.matmul %1878, %1736, %cst_596 {dimension_numbers = #tpu.dot_dimension_numbers<[1], [0], [0], [1], [0, 0, 1, 1], [], []>} : vector<2x32xf32>, vector<32x96xf32>, vector<2x96xf32> -> vector<2x96xf32>
    %1881 = vector.broadcast %1740 : vector<1x96xf32> to vector<2x96xf32>
    %1882 = arith.addf %1880, %1881 : vector<2x96xf32>
    %1883 = vector.extract_strided_slice %1879 {offsets = [0, 0], sizes = [2, 32], strides = [1, 1]} : vector<2x96xf32> to vector<2x32xf32>
    %1884 = vector.extract_strided_slice %1882 {offsets = [0, 0], sizes = [2, 32], strides = [1, 1]} : vector<2x96xf32> to vector<2x32xf32>
    %1885 = arith.addf %1883, %1884 : vector<2x32xf32>
    %cst_597 = arith.constant 0.000000e+00 : f32
    %1886 = vector.broadcast %cst_597 : f32 to vector<2x32xf32>
    %1887 = arith.subf %1886, %1885 : vector<2x32xf32>
    %1888 = math.exp %1887 : vector<2x32xf32>
    %cst_598 = arith.constant 1.000000e+00 : f32
    %1889 = vector.broadcast %cst_598 : f32 to vector<2x32xf32>
    %1890 = arith.addf %1889, %1888 : vector<2x32xf32>
    %cst_599 = arith.constant 1.000000e+00 : f32
    %1891 = vector.broadcast %cst_599 : f32 to vector<2x32xf32>
    %1892 = arith.divf %1891, %1890 : vector<2x32xf32>
    %1893 = vector.extract_strided_slice %1879 {offsets = [0, 32], sizes = [2, 32], strides = [1, 1]} : vector<2x96xf32> to vector<2x32xf32>
    %1894 = vector.extract_strided_slice %1882 {offsets = [0, 32], sizes = [2, 32], strides = [1, 1]} : vector<2x96xf32> to vector<2x32xf32>
    %1895 = arith.addf %1893, %1894 : vector<2x32xf32>
    %cst_600 = arith.constant 0.000000e+00 : f32
    %1896 = vector.broadcast %cst_600 : f32 to vector<2x32xf32>
    %1897 = arith.subf %1896, %1895 : vector<2x32xf32>
    %1898 = math.exp %1897 : vector<2x32xf32>
    %cst_601 = arith.constant 1.000000e+00 : f32
    %1899 = vector.broadcast %cst_601 : f32 to vector<2x32xf32>
    %1900 = arith.addf %1899, %1898 : vector<2x32xf32>
    %cst_602 = arith.constant 1.000000e+00 : f32
    %1901 = vector.broadcast %cst_602 : f32 to vector<2x32xf32>
    %1902 = arith.divf %1901, %1900 : vector<2x32xf32>
    %1903 = vector.extract_strided_slice %1879 {offsets = [0, 64], sizes = [2, 32], strides = [1, 1]} : vector<2x96xf32> to vector<2x32xf32>
    %1904 = vector.extract_strided_slice %1882 {offsets = [0, 64], sizes = [2, 32], strides = [1, 1]} : vector<2x96xf32> to vector<2x32xf32>
    %1905 = arith.mulf %1892, %1904 : vector<2x32xf32>
    %1906 = arith.addf %1903, %1905 : vector<2x32xf32>
    %1907 = math.tanh %1906 : vector<2x32xf32>
    %cst_603 = arith.constant 1.000000e+00 : f32
    %1908 = vector.broadcast %cst_603 : f32 to vector<2x32xf32>
    %1909 = arith.subf %1908, %1902 : vector<2x32xf32>
    %1910 = arith.mulf %1909, %1907 : vector<2x32xf32>
    %1911 = arith.mulf %1902, %1878 : vector<2x32xf32>
    %1912 = arith.addf %1910, %1911 : vector<2x32xf32>
    %1913 = vector.extract_strided_slice %1734 {offsets = [10, 0], sizes = [2, 96], strides = [1, 1]} : vector<16x192xf32> to vector<2x96xf32>
    %cst_604 = arith.constant dense<0.000000e+00> : vector<2x96xf32>
    %1914 = tpu.matmul %1912, %1736, %cst_604 {dimension_numbers = #tpu.dot_dimension_numbers<[1], [0], [0], [1], [0, 0, 1, 1], [], []>} : vector<2x32xf32>, vector<32x96xf32>, vector<2x96xf32> -> vector<2x96xf32>
    %1915 = vector.broadcast %1740 : vector<1x96xf32> to vector<2x96xf32>
    %1916 = arith.addf %1914, %1915 : vector<2x96xf32>
    %1917 = vector.extract_strided_slice %1913 {offsets = [0, 0], sizes = [2, 32], strides = [1, 1]} : vector<2x96xf32> to vector<2x32xf32>
    %1918 = vector.extract_strided_slice %1916 {offsets = [0, 0], sizes = [2, 32], strides = [1, 1]} : vector<2x96xf32> to vector<2x32xf32>
    %1919 = arith.addf %1917, %1918 : vector<2x32xf32>
    %cst_605 = arith.constant 0.000000e+00 : f32
    %1920 = vector.broadcast %cst_605 : f32 to vector<2x32xf32>
    %1921 = arith.subf %1920, %1919 : vector<2x32xf32>
    %1922 = math.exp %1921 : vector<2x32xf32>
    %cst_606 = arith.constant 1.000000e+00 : f32
    %1923 = vector.broadcast %cst_606 : f32 to vector<2x32xf32>
    %1924 = arith.addf %1923, %1922 : vector<2x32xf32>
    %cst_607 = arith.constant 1.000000e+00 : f32
    %1925 = vector.broadcast %cst_607 : f32 to vector<2x32xf32>
    %1926 = arith.divf %1925, %1924 : vector<2x32xf32>
    %1927 = vector.extract_strided_slice %1913 {offsets = [0, 32], sizes = [2, 32], strides = [1, 1]} : vector<2x96xf32> to vector<2x32xf32>
    %1928 = vector.extract_strided_slice %1916 {offsets = [0, 32], sizes = [2, 32], strides = [1, 1]} : vector<2x96xf32> to vector<2x32xf32>
    %1929 = arith.addf %1927, %1928 : vector<2x32xf32>
    %cst_608 = arith.constant 0.000000e+00 : f32
    %1930 = vector.broadcast %cst_608 : f32 to vector<2x32xf32>
    %1931 = arith.subf %1930, %1929 : vector<2x32xf32>
    %1932 = math.exp %1931 : vector<2x32xf32>
    %cst_609 = arith.constant 1.000000e+00 : f32
    %1933 = vector.broadcast %cst_609 : f32 to vector<2x32xf32>
    %1934 = arith.addf %1933, %1932 : vector<2x32xf32>
    %cst_610 = arith.constant 1.000000e+00 : f32
    %1935 = vector.broadcast %cst_610 : f32 to vector<2x32xf32>
    %1936 = arith.divf %1935, %1934 : vector<2x32xf32>
    %1937 = vector.extract_strided_slice %1913 {offsets = [0, 64], sizes = [2, 32], strides = [1, 1]} : vector<2x96xf32> to vector<2x32xf32>
    %1938 = vector.extract_strided_slice %1916 {offsets = [0, 64], sizes = [2, 32], strides = [1, 1]} : vector<2x96xf32> to vector<2x32xf32>
    %1939 = arith.mulf %1926, %1938 : vector<2x32xf32>
    %1940 = arith.addf %1937, %1939 : vector<2x32xf32>
    %1941 = math.tanh %1940 : vector<2x32xf32>
    %cst_611 = arith.constant 1.000000e+00 : f32
    %1942 = vector.broadcast %cst_611 : f32 to vector<2x32xf32>
    %1943 = arith.subf %1942, %1936 : vector<2x32xf32>
    %1944 = arith.mulf %1943, %1941 : vector<2x32xf32>
    %1945 = arith.mulf %1936, %1912 : vector<2x32xf32>
    %1946 = arith.addf %1944, %1945 : vector<2x32xf32>
    %1947 = vector.extract_strided_slice %1734 {offsets = [12, 0], sizes = [2, 96], strides = [1, 1]} : vector<16x192xf32> to vector<2x96xf32>
    %cst_612 = arith.constant dense<0.000000e+00> : vector<2x96xf32>
    %1948 = tpu.matmul %1946, %1736, %cst_612 {dimension_numbers = #tpu.dot_dimension_numbers<[1], [0], [0], [1], [0, 0, 1, 1], [], []>} : vector<2x32xf32>, vector<32x96xf32>, vector<2x96xf32> -> vector<2x96xf32>
    %1949 = vector.broadcast %1740 : vector<1x96xf32> to vector<2x96xf32>
    %1950 = arith.addf %1948, %1949 : vector<2x96xf32>
    %1951 = vector.extract_strided_slice %1947 {offsets = [0, 0], sizes = [2, 32], strides = [1, 1]} : vector<2x96xf32> to vector<2x32xf32>
    %1952 = vector.extract_strided_slice %1950 {offsets = [0, 0], sizes = [2, 32], strides = [1, 1]} : vector<2x96xf32> to vector<2x32xf32>
    %1953 = arith.addf %1951, %1952 : vector<2x32xf32>
    %cst_613 = arith.constant 0.000000e+00 : f32
    %1954 = vector.broadcast %cst_613 : f32 to vector<2x32xf32>
    %1955 = arith.subf %1954, %1953 : vector<2x32xf32>
    %1956 = math.exp %1955 : vector<2x32xf32>
    %cst_614 = arith.constant 1.000000e+00 : f32
    %1957 = vector.broadcast %cst_614 : f32 to vector<2x32xf32>
    %1958 = arith.addf %1957, %1956 : vector<2x32xf32>
    %cst_615 = arith.constant 1.000000e+00 : f32
    %1959 = vector.broadcast %cst_615 : f32 to vector<2x32xf32>
    %1960 = arith.divf %1959, %1958 : vector<2x32xf32>
    %1961 = vector.extract_strided_slice %1947 {offsets = [0, 32], sizes = [2, 32], strides = [1, 1]} : vector<2x96xf32> to vector<2x32xf32>
    %1962 = vector.extract_strided_slice %1950 {offsets = [0, 32], sizes = [2, 32], strides = [1, 1]} : vector<2x96xf32> to vector<2x32xf32>
    %1963 = arith.addf %1961, %1962 : vector<2x32xf32>
    %cst_616 = arith.constant 0.000000e+00 : f32
    %1964 = vector.broadcast %cst_616 : f32 to vector<2x32xf32>
    %1965 = arith.subf %1964, %1963 : vector<2x32xf32>
    %1966 = math.exp %1965 : vector<2x32xf32>
    %cst_617 = arith.constant 1.000000e+00 : f32
    %1967 = vector.broadcast %cst_617 : f32 to vector<2x32xf32>
    %1968 = arith.addf %1967, %1966 : vector<2x32xf32>
    %cst_618 = arith.constant 1.000000e+00 : f32
    %1969 = vector.broadcast %cst_618 : f32 to vector<2x32xf32>
    %1970 = arith.divf %1969, %1968 : vector<2x32xf32>
    %1971 = vector.extract_strided_slice %1947 {offsets = [0, 64], sizes = [2, 32], strides = [1, 1]} : vector<2x96xf32> to vector<2x32xf32>
    %1972 = vector.extract_strided_slice %1950 {offsets = [0, 64], sizes = [2, 32], strides = [1, 1]} : vector<2x96xf32> to vector<2x32xf32>
    %1973 = arith.mulf %1960, %1972 : vector<2x32xf32>
    %1974 = arith.addf %1971, %1973 : vector<2x32xf32>
    %1975 = math.tanh %1974 : vector<2x32xf32>
    %cst_619 = arith.constant 1.000000e+00 : f32
    %1976 = vector.broadcast %cst_619 : f32 to vector<2x32xf32>
    %1977 = arith.subf %1976, %1970 : vector<2x32xf32>
    %1978 = arith.mulf %1977, %1975 : vector<2x32xf32>
    %1979 = arith.mulf %1970, %1946 : vector<2x32xf32>
    %1980 = arith.addf %1978, %1979 : vector<2x32xf32>
    %1981 = vector.extract_strided_slice %1734 {offsets = [14, 0], sizes = [2, 96], strides = [1, 1]} : vector<16x192xf32> to vector<2x96xf32>
    %cst_620 = arith.constant dense<0.000000e+00> : vector<2x96xf32>
    %1982 = tpu.matmul %1980, %1736, %cst_620 {dimension_numbers = #tpu.dot_dimension_numbers<[1], [0], [0], [1], [0, 0, 1, 1], [], []>} : vector<2x32xf32>, vector<32x96xf32>, vector<2x96xf32> -> vector<2x96xf32>
    %1983 = vector.broadcast %1740 : vector<1x96xf32> to vector<2x96xf32>
    %1984 = arith.addf %1982, %1983 : vector<2x96xf32>
    %1985 = vector.extract_strided_slice %1981 {offsets = [0, 0], sizes = [2, 32], strides = [1, 1]} : vector<2x96xf32> to vector<2x32xf32>
    %1986 = vector.extract_strided_slice %1984 {offsets = [0, 0], sizes = [2, 32], strides = [1, 1]} : vector<2x96xf32> to vector<2x32xf32>
    %1987 = arith.addf %1985, %1986 : vector<2x32xf32>
    %cst_621 = arith.constant 0.000000e+00 : f32
    %1988 = vector.broadcast %cst_621 : f32 to vector<2x32xf32>
    %1989 = arith.subf %1988, %1987 : vector<2x32xf32>
    %1990 = math.exp %1989 : vector<2x32xf32>
    %cst_622 = arith.constant 1.000000e+00 : f32
    %1991 = vector.broadcast %cst_622 : f32 to vector<2x32xf32>
    %1992 = arith.addf %1991, %1990 : vector<2x32xf32>
    %cst_623 = arith.constant 1.000000e+00 : f32
    %1993 = vector.broadcast %cst_623 : f32 to vector<2x32xf32>
    %1994 = arith.divf %1993, %1992 : vector<2x32xf32>
    %1995 = vector.extract_strided_slice %1981 {offsets = [0, 32], sizes = [2, 32], strides = [1, 1]} : vector<2x96xf32> to vector<2x32xf32>
    %1996 = vector.extract_strided_slice %1984 {offsets = [0, 32], sizes = [2, 32], strides = [1, 1]} : vector<2x96xf32> to vector<2x32xf32>
    %1997 = arith.addf %1995, %1996 : vector<2x32xf32>
    %cst_624 = arith.constant 0.000000e+00 : f32
    %1998 = vector.broadcast %cst_624 : f32 to vector<2x32xf32>
    %1999 = arith.subf %1998, %1997 : vector<2x32xf32>
    %2000 = math.exp %1999 : vector<2x32xf32>
    %cst_625 = arith.constant 1.000000e+00 : f32
    %2001 = vector.broadcast %cst_625 : f32 to vector<2x32xf32>
    %2002 = arith.addf %2001, %2000 : vector<2x32xf32>
    %cst_626 = arith.constant 1.000000e+00 : f32
    %2003 = vector.broadcast %cst_626 : f32 to vector<2x32xf32>
    %2004 = arith.divf %2003, %2002 : vector<2x32xf32>
    %2005 = vector.extract_strided_slice %1981 {offsets = [0, 64], sizes = [2, 32], strides = [1, 1]} : vector<2x96xf32> to vector<2x32xf32>
    %2006 = vector.extract_strided_slice %1984 {offsets = [0, 64], sizes = [2, 32], strides = [1, 1]} : vector<2x96xf32> to vector<2x32xf32>
    %2007 = arith.mulf %1994, %2006 : vector<2x32xf32>
    %2008 = arith.addf %2005, %2007 : vector<2x32xf32>
    %2009 = math.tanh %2008 : vector<2x32xf32>
    %cst_627 = arith.constant 1.000000e+00 : f32
    %2010 = vector.broadcast %cst_627 : f32 to vector<2x32xf32>
    %2011 = arith.subf %2010, %2004 : vector<2x32xf32>
    %2012 = arith.mulf %2011, %2009 : vector<2x32xf32>
    %2013 = arith.mulf %2004, %1980 : vector<2x32xf32>
    %2014 = arith.addf %2012, %2013 : vector<2x32xf32>
    %2015 = vector.extract_strided_slice %1734 {offsets = [14, 96], sizes = [2, 96], strides = [1, 1]} : vector<16x192xf32> to vector<2x96xf32>
    %cst_628 = arith.constant dense<0.000000e+00> : vector<2x96xf32>
    %2016 = tpu.matmul %0, %1738, %cst_628 {dimension_numbers = #tpu.dot_dimension_numbers<[1], [0], [0], [1], [0, 0, 1, 1], [], []>} : vector<2x32xf32>, vector<32x96xf32>, vector<2x96xf32> -> vector<2x96xf32>
    %2017 = vector.broadcast %1742 : vector<1x96xf32> to vector<2x96xf32>
    %2018 = arith.addf %2016, %2017 : vector<2x96xf32>
    %2019 = vector.extract_strided_slice %2015 {offsets = [0, 0], sizes = [2, 32], strides = [1, 1]} : vector<2x96xf32> to vector<2x32xf32>
    %2020 = vector.extract_strided_slice %2018 {offsets = [0, 0], sizes = [2, 32], strides = [1, 1]} : vector<2x96xf32> to vector<2x32xf32>
    %2021 = arith.addf %2019, %2020 : vector<2x32xf32>
    %cst_629 = arith.constant 0.000000e+00 : f32
    %2022 = vector.broadcast %cst_629 : f32 to vector<2x32xf32>
    %2023 = arith.subf %2022, %2021 : vector<2x32xf32>
    %2024 = math.exp %2023 : vector<2x32xf32>
    %cst_630 = arith.constant 1.000000e+00 : f32
    %2025 = vector.broadcast %cst_630 : f32 to vector<2x32xf32>
    %2026 = arith.addf %2025, %2024 : vector<2x32xf32>
    %cst_631 = arith.constant 1.000000e+00 : f32
    %2027 = vector.broadcast %cst_631 : f32 to vector<2x32xf32>
    %2028 = arith.divf %2027, %2026 : vector<2x32xf32>
    %2029 = vector.extract_strided_slice %2015 {offsets = [0, 32], sizes = [2, 32], strides = [1, 1]} : vector<2x96xf32> to vector<2x32xf32>
    %2030 = vector.extract_strided_slice %2018 {offsets = [0, 32], sizes = [2, 32], strides = [1, 1]} : vector<2x96xf32> to vector<2x32xf32>
    %2031 = arith.addf %2029, %2030 : vector<2x32xf32>
    %cst_632 = arith.constant 0.000000e+00 : f32
    %2032 = vector.broadcast %cst_632 : f32 to vector<2x32xf32>
    %2033 = arith.subf %2032, %2031 : vector<2x32xf32>
    %2034 = math.exp %2033 : vector<2x32xf32>
    %cst_633 = arith.constant 1.000000e+00 : f32
    %2035 = vector.broadcast %cst_633 : f32 to vector<2x32xf32>
    %2036 = arith.addf %2035, %2034 : vector<2x32xf32>
    %cst_634 = arith.constant 1.000000e+00 : f32
    %2037 = vector.broadcast %cst_634 : f32 to vector<2x32xf32>
    %2038 = arith.divf %2037, %2036 : vector<2x32xf32>
    %2039 = vector.extract_strided_slice %2015 {offsets = [0, 64], sizes = [2, 32], strides = [1, 1]} : vector<2x96xf32> to vector<2x32xf32>
    %2040 = vector.extract_strided_slice %2018 {offsets = [0, 64], sizes = [2, 32], strides = [1, 1]} : vector<2x96xf32> to vector<2x32xf32>
    %2041 = arith.mulf %2028, %2040 : vector<2x32xf32>
    %2042 = arith.addf %2039, %2041 : vector<2x32xf32>
    %2043 = math.tanh %2042 : vector<2x32xf32>
    %cst_635 = arith.constant 1.000000e+00 : f32
    %2044 = vector.broadcast %cst_635 : f32 to vector<2x32xf32>
    %2045 = arith.subf %2044, %2038 : vector<2x32xf32>
    %2046 = arith.mulf %2045, %2043 : vector<2x32xf32>
    %2047 = arith.mulf %2038, %0 : vector<2x32xf32>
    %2048 = arith.addf %2046, %2047 : vector<2x32xf32>
    %2049 = tpu.concatenate %2014, %2048 in 1 : vector<2x32xf32>, vector<2x32xf32> -> vector<2x64xf32>
    %c0_636 = arith.constant 0 : index
    %c0_637 = arith.constant 0 : index
    %2050 = vector.load %arg9[%c0_636, %c0_637] : memref<2x64xf32, #tpu.memory_space<vmem>>, vector<2x64xf32>
    tpu.vector_store %arg9[%c0_636, %c0_637], %2049 {strides = array<i32>} : memref<2x64xf32, #tpu.memory_space<vmem>>, vector<2x64xf32>,
    return
  }
}

</mosaic_0001>

<bundles_post_ra>
// kernel: gru_feature_extractor.1
= control target key start
LH: loop header
LB: loop body
LE: loop exit
PB: predicated region body
PF: predicated region fallthrough
CT: control target
= control target key end

     0   :  { %14 = vsyncpa [#allocation4], 0  ;;  %s7027_s0 = inlined_call_operand.vmem [shape: f32[16,16], index: 0, kind: input, shape index: {}]   ;;  %s7028_s1 = inlined_call_operand.vmem [shape: f32[16,192], index: 1, kind: input, shape index: {}]   ;;  %s7029_s2 = inlined_call_operand.vmem [shape: f32[1,192], index: 2, kind: input, shape index: {}]   ;;  %s7030_s3 = inlined_call_operand.hbm [shape: f32[2,32,96], index: 3, kind: input, shape index: {}]   ;;  %s7031_s4 = inlined_call_operand.vmem [shape: f32[2,1,96], index: 4, kind: input, shape index: {}]   ;;  %s7032_s5 = inlined_call_operand.hbm [shape: f32[3,64,192], index: 5, kind: input, shape index: {}]   ;;  %s7033_s6 = inlined_call_operand.vmem [shape: f32[3,1,192], index: 6, kind: input, shape index: {}]   ;;  %s7034_s7 = inlined_call_operand.hbm [shape: f32[3,2,32,96], index: 7, kind: input, shape index: {}]   ;;  %s7035_s8 = inlined_call_operand.vmem [shape: f32[3,2,1,96], index: 8, kind: input, shape index: {}]   ;;  %s7036_s9 = inlined_call_operand.hbm [shape: f32[2,64], index: 9, kind: output, shape index: {}]  }
   0x1   :  { %15 = vsyncpa [#allocation7], 0  ;;  %s42_s11 = sshll.u32 %s7032_s5, 4  ;;  %s43_s11 = int_to_ptr.hbm [resolvable:$true] %s42_s11 }
   0x2   :  { %16 = vsyncpa [#allocation5], 0  ;;  %s5662_s12 = smov [#allocation6]   ;;  %s27_s16 = sshll.u32 %s7030_s3, 4  ;;  %s28_s16 = int_to_ptr.hbm [resolvable:$true] %s27_s16 }
   0x3   :  { %s44_s13 = sshll.u32 %s5662_s12, 4  ;;  %s5663_s17 = smov 256   ;;  %s45_s13 = int_to_ptr.vmem [resolvable:$true] %s44_s13 }
   0x4   :  { %s5664_s18 = smov 16   ;;  %s5665_s19 = smov [#allocation3]  }
   0x5   :  { %50 = dma.hbm_to_vmem [thread:$0]  %s43_s11, 6144, %s45_s13, [#allocation7], %s5663_s17, %s5663_s17, %s5664_s18  }
   0x6   :  { %s29_s20 = sshll.u32 %s5665_s19, 4  ;;  %s5666_s21 = smov 128   ;;  %s30_s20 = int_to_ptr.vmem [resolvable:$true] %s29_s20 }
   0x7   :  { %s5667_s22 = smov 8   ;;  %s57_s24 = sshll.u32 %s7034_s7, 4  ;;  %s58_s24 = int_to_ptr.hbm [resolvable:$true] %s57_s24 }
   0x8   :  { %35 = dma.hbm_to_vmem [thread:$0]  %s28_s16, 1024, %s30_s20, [#allocation4], %s5666_s21, %s5666_s21, %s5667_s22  }
   0x9   :  { %s5668_s25 = smov [#allocation8]  }
   0xa   :  { %s59_s26 = sshll.u32 %s5668_s25, 4  ;;  %s60_s26 = int_to_ptr.vmem [resolvable:$true] %s59_s26 }
   0xb   :  { %65 = dma.hbm_to_vmem [thread:$0]  %s58_s24, 3072, %s60_s26, [#allocation7], %s5666_s21, %s5666_s21, %s5667_s22  }
   0xc   :  { %5656 = dma.done.wait [#allocation4], 1024  }
   0xd   :  { %5657 = vsyncadd [#allocation4], 4294966272 }
   0xe   :  { %5658 = dma.done.wait [#allocation7], 9216  }
   0xf   :  { %5659 = vsyncadd [#allocation7], 4294958080  ;;  %v5733_v0 = vld [vmem:[#allocation3 + $0x18] sm:$0xff]  ;;  %v5737_v2 = vld [vmem:[#allocation3 + $0x10] sm:$0xff]  ;;  %vm92_vm0 = vcmask 130048   ;;  %v5669_v13 = vmov 0.0  }
  0x10   :  { %v5735_v1 = vld [vmem:[#allocation3 + $0x38] sm:$0xff]  ;;  %176 = vmatpush.msra.mxu2 %v5733_v0  ;;  %v5741_v3 = vld [vmem:[#allocation3 + $0x30] sm:$0xff]  ;;  %v5743_v4 = vld [vmem:[#allocation3 + $0x8] sm:$0xff]  ;;  %s5670_s18 = smov 32   ;;  %s5672_s21 = smov 64   ;;  %vm160_vm13 = vcmask 261120  }
  0x11   :  { %244 = vmatpush.msra.mxu3 %v5735_v1  ;;  %v5745_v5 = vld [vmem:[#allocation3 + $0x28] sm:$0xff]  ;;  %v84_v6 = vld [vmem:[%s7028_s1 + $0x10] sm:$0xff]  ;;  %v82_v7 = vld [vmem:[%s7028_s1] sm:$0xff]  ;;  %vm7038_vm14 = vcmask 254976   ;;  %s5003_s7 = sshll.u32 %s7036_s9, 4  ;;  %s5004_s7 = int_to_ptr.hbm [resolvable:$true] %s5003_s7 }
  0x12   :  { %177 = vmatpush.msra.mxu2 %v5737_v2  ;;  %v85_v8 = vld [vmem:[%s7028_s1 + $0x18] sm:$0xff]  ;;  %v5758_v9 = vld [vmem:[#allocation3] sm:$0xff]  ;;  %113 = vmatpush.msra.mxu0 %v84_v6  ;;  %v83_v11 = vld [vmem:[%s7028_s1 + $0x8] sm:$0xff] }
  0x13   :  { %245 = vmatpush.msra.mxu3 %v5741_v3  ;;  %v5760_v10 = vld [vmem:[#allocation3 + $0x20] sm:$0xff]  ;;  %136 = vmatpush.msra.mxu1 %v85_v8  ;;  %v80_v12 = vld [vmem:[%s7027_s0] sm:$0xff]  ;;  %v81_v14 = vld [vmem:[%s7027_s0 + $0x8] sm:$0xff] }
  0x14   :  { %178 = vmatpush.msra.mxu2 %v5743_v4  ;;  %114 = vmatpush.msra.mxu0 %v82_v7  ;;  %v5816_v15 = vld [vmem:[%s7029_s2] sm:$0x3]  ;;  %s5671_s2 = smov 96  }
  0x15   :  { %246 = vmatpush.msra.mxu3 %v5745_v5  ;;  %137 = vmatpush.msra.mxu1 %v83_v11  ;;  %v89_v16 = vperm.slane %v5816_v15, 1  ;;  %v5826_v19 = vld [vmem:[%s7031_s4 + $0x1] ss:$0 sm:$0xff]  ;;  %v5834_v23 = vld [vmem:[%s7031_s4] ss:$0 sm:$0xff]  ;;  %v88_v26 = vperm.slane %v5816_v15, 0 }
  0x16   :  { %179 = vmatpush.msra.mxu2 %v5758_v9  ;;  %5014 = vmatmul.msk.f32.vlgmr.msra.gmra.mxu0 %vm92_vm0, %v80_v12 }
  0x17   :  { %247 = vmatpush.msra.mxu3 %v5760_v10  ;;  %180 = vmatmul.f32.vlgmr.msra.gmra.mxu2 %v5669_v13 }
  0x18   :  { %248 = vmatmul.f32.vlgmr.msra.gmra.mxu3 %v5669_v13  ;;  %5016 = vmatmul.msk.f32.vlgmr.msra.gmra.mxu1 %vm92_vm0, %v80_v12 }
  0x19   :  { %407 = vmatpush.msrb.mxu3 %v5735_v1  ;;  %335 = vmatpush.msrb.mxu2 %v5733_v0 }
  0x1a   :  { %575 = vmatpush.msrb.mxu1 %v5735_v1  ;;  %503 = vmatpush.msrb.mxu0 %v5733_v0 }
  0x1b   :  { %408 = vmatpush.msrb.mxu3 %v5741_v3  ;;  %336 = vmatpush.msrb.mxu2 %v5737_v2 }
  0x1c   :  { %576 = vmatpush.msrb.mxu1 %v5741_v3  ;;  %504 = vmatpush.msrb.mxu0 %v5737_v2 }
  0x1d   :  { %409 = vmatpush.msrb.mxu3 %v5745_v5  ;;  %337 = vmatpush.msrb.mxu2 %v5743_v4 }
  0x1e   :  { %577 = vmatpush.msrb.mxu1 %v5745_v5  ;;  %505 = vmatpush.msrb.mxu0 %v5743_v4 }
  0x1f   :  { %410 = vmatpush.msrb.mxu3 %v5760_v10  ;;  %338 = vmatpush.msrb.mxu2 %v5758_v9 }
  0x20   :  { %5015 = vmatmul.msk.f32.gmra.mxu0 %vm92_vm0, %v81_v14  ;;  %5017 = vmatmul.msk.f32.gmra.mxu1 %vm92_vm0, %v81_v14 }
  0x21   :  { %578 = vmatpush.msrb.mxu1 %v5760_v10  ;;  %506 = vmatpush.msrb.mxu0 %v5758_v9 }
  0x22   :  { %743 = vmatpush.msra.mxu3 %v5735_v1  ;;  %671 = vmatpush.msra.mxu2 %v5733_v0 }
  0x23   :  { %904 = vmatpush.msra.mxu1 %v5735_v1  ;;  %837 = vmatpush.msra.mxu0 %v5733_v0 }
  0x24   :  { %744 = vmatpush.msra.mxu3 %v5741_v3  ;;  %672 = vmatpush.msra.mxu2 %v5737_v2 }
  0x25   :  { %905 = vmatpush.msra.mxu1 %v5741_v3  ;;  %838 = vmatpush.msra.mxu0 %v5737_v2 }
  0x26   :  { %745 = vmatpush.msra.mxu3 %v5745_v5  ;;  %673 = vmatpush.msra.mxu2 %v5743_v4 }
  0x27   :  { %906 = vmatpush.msra.mxu1 %v5745_v5  ;;  %839 = vmatpush.msra.mxu0 %v5743_v4 }
  0x28   :  { %746 = vmatpush.msra.mxu3 %v5760_v10  ;;  %674 = vmatpush.msra.mxu2 %v5758_v9 }
  0x29   :  { %907 = vmatpush.msra.mxu1 %v5760_v10  ;;  %840 = vmatpush.msra.mxu0 %v5758_v9 }
  0x93   :  { %v116_v27 = vpop.f32.mrf.mxu0 }
  0x94   :  { %v5839_v28 = vadd.f32 %v116_v27, %v88_v26 }
  0x95   :  { %v139_v17 = vpop.f32.mrf.mxu1 }
  0x96   :  { %v5821_v18 = vadd.f32 %v139_v17, %v89_v16 }
  0x9a   :  { %v181_v24 = vpop.f32.mrf.mxu2 }
  0x9b   :  { %v249_v20 = vpop.f32.mrf.mxu3  ;;  %v182_v25 = vadd.f32 %v5834_v23, %v181_v24 }
  0x9c   :  { %v250_v21 = vadd.f32 %v5826_v19, %v249_v20 }
  0x9d   :  { %v184_v29 = vadd.f32 %v182_v25, %v5839_v28  ;;  %v119_v37 = vpop.f32.mrf.mxu0  ;;  %v142_v8 = vpop.f32.mrf.mxu1 }
  0x9e   :  { %v253_v22 = vrot.slane %v250_v21, 2  ;;  %v5842_v38 = vadd.f32 %v119_v37, %v88_v26  ;;  %v5849_v11 = vadd.f32 %v142_v8, %v89_v16 }
  0x9f   :  { %v185_v30 = vsub.f32 0.0, %v184_v29 }
  0xa0   :  { %297 = vrot.lane.b32.xlu1 %v253_v22, %s5670_s18  ;;  %254 = vrot.lane.b32.xlu0 %v253_v22, %s5671_s2 }
  0xa1   :  { %v186_v31 = vmul.f32 1.442695, %v185_v30 }
  0xa3   :  { %5107 = vpow2.f32 %v186_v31 }
  0xa8   :  { %205 = vrot.lane.b32.xlu0 %v182_v25, %s5672_s21 }
  0xa9   :  { %v5108_v32 = vpop.eup %5107 }
  0xaa   :  { %v188_v33 = vadd.f32 1.0, %v5108_v32 }
  0xac   :  { %5109 = vrcp.f32 %v188_v33  ;;  %vm194_vm1 = vweird.f32 %v188_v33  ;;  %v200_v43 = vand.u32 2147483648, %v188_v33  ;;  %v198_v45 = vand.u32 2147483647, %v188_v33 }
  0xae   :  { %v201_v48 = vor.u32 1.1754944e-38, %v200_v43  ;;  %vm199_vm4 = vcmp.eq.f32.partialorder %v198_v45, 8.507059e+37 }
  0xb2   :  { %v5110_v34 = vpop.eup %5109 }
  0xb3   :  { %v190_v35 = vmul.f32 %v5110_v34, %v188_v33  ;;  %vm195_vm2 = vweird.f32 %v5110_v34 }
  0xb4   :  { %vm196_vm3 = vmor %vm194_vm1, %vm195_vm2 }
  0xb5   :  { %v191_v36 = vsub.f32 1.0, %v190_v35 }
  0xb7   :  { %v192_v39 = vmul.f32 %v5110_v34, %v191_v36 }
  0xb9   :  { %v193_v42 = vadd.f32 %v5110_v34, %v192_v39 }
  0xbb   :  { %v197_v47 = vsel %vm196_vm3, %v5110_v34, %v193_v42 }
  0xbc   :  { %v202_v50 = vsel %vm199_vm4, %v201_v48, %v197_v47 }
  0xbd   :  { %v215_v29 = vsub.f32 1.0, %v202_v50  ;;  %v221_v32 = vmul.f32 0.0, %v202_v50 }
 0x112   :  { %v255_v40 = vpop.permute.xlu0 %254  ;;  %v298_v63 = vpop.permute.xlu1 %297 }
 0x113   :  { %v257_v41 = vadd.f32 %v255_v40, %v5842_v38  ;;  %v277_v24 = vadd.f32 %v255_v40, %v5849_v11 }
 0x115   :  { %v258_v44 = vsub.f32 0.0, %v257_v41  ;;  %v278_v25 = vsub.f32 0.0, %v277_v24 }
 0x117   :  { %v259_v46 = vmul.f32 1.442695, %v258_v44  ;;  %v279_v15 = vmul.f32 1.442695, %v278_v25 }
 0x119   :  { %5111 = vpow2.f32 %v259_v46 }
 0x11a   :  { %v206_v49 = vpop.permute.xlu0 %205 }
 0x11b   :  { %v208_v51 = vmul.f32 %v206_v49, %v202_v50 }
 0x11d   :  { %210 = vrot.lane.b32.xlu1 %v208_v51, %s5672_s21 }
 0x11f   :  { %v5112_v52 = vpop.eup %5111 }
 0x120   :  { %v261_v53 = vadd.f32 1.0, %v5112_v52 }
 0x122   :  { %5113 = vrcp.f32 %v261_v53  ;;  %v273_v57 = vand.u32 2147483648, %v261_v53  ;;  %v271_v59 = vand.u32 2147483647, %v261_v53  ;;  %vm267_vm6 = vweird.f32 %v261_v53 }
 0x124   :  { %v274_v61 = vor.u32 1.1754944e-38, %v273_v57  ;;  %vm272_vm8 = vcmp.eq.f32.partialorder %v271_v59, 8.507059e+37 }
 0x128   :  { %v5114_v54 = vpop.eup %5113 }
 0x129   :  { %v263_v55 = vmul.f32 %v5114_v54, %v261_v53  ;;  %vm268_vm5 = vweird.f32 %v5114_v54 }
 0x12a   :  { %vm269_vm7 = vmor %vm267_vm6, %vm268_vm5 }
 0x12b   :  { %v264_v56 = vsub.f32 1.0, %v263_v55 }
 0x12d   :  { %v265_v58 = vmul.f32 %v5114_v54, %v264_v56 }
 0x12f   :  { %v266_v60 = vadd.f32 %v5114_v54, %v265_v58 }
 0x131   :  { %v270_v62 = vsel %vm269_vm7, %v5114_v54, %v266_v60 }
 0x132   :  { %v275_v6 = vsel %vm272_vm8, %v274_v61, %v270_v62 }
 0x133   :  { %v300_v7 = vmul.f32 %v298_v63, %v275_v6 }
 0x135   :  { %302 = vrot.lane.b32.xlu2 %v300_v7, %s5672_s21 }
 0x18f   :  { %v303_v12 = vpop.permute.xlu2 %302  ;;  %v211_v14 = vpop.permute.xlu1 %210 }
 0x190   :  { %v305_v17 = vadd.f32 %v303_v12, %v5849_v11  ;;  %v213_v20 = vadd.f32 %v211_v14, %v5839_v28 }
 0x192   :  { %5115 = vtanh.f32 %v305_v17 }
 0x193   :  { %5117 = vtanh.f32 %v213_v20 }
 0x194   :  { %5119 = vpow2.f32 %v279_v15 }
 0x198   :  { %v5116_v21 = vpop.eup %5115 }
 0x199   :  { %v5118_v22 = vpop.eup %5117  ;;  %309 = vrot.lane.b32.xlu0 %v5116_v21, %s5671_s2 }
 0x19a   :  { %217 = vrot.lane.b32.xlu2 %v5118_v22, %s5671_s2  ;;  %v5120_v16 = vpop.eup %5119 }
 0x19b   :  { %v281_v26 = vadd.f32 1.0, %v5120_v16 }
 0x19d   :  { %5121 = vrcp.f32 %v281_v26  ;;  %v293_v39 = vand.u32 2147483648, %v281_v26  ;;  %vm287_vm10 = vweird.f32 %v281_v26  ;;  %v291_v40 = vand.u32 2147483647, %v281_v26 }
 0x19f   :  { %v294_v42 = vor.u32 1.1754944e-38, %v293_v39  ;;  %vm292_vm12 = vcmp.eq.f32.partialorder %v291_v40, 8.507059e+37 }
 0x1a3   :  { %v5122_v27 = vpop.eup %5121 }
 0x1a4   :  { %v283_v31 = vmul.f32 %v5122_v27, %v281_v26  ;;  %vm288_vm9 = vweird.f32 %v5122_v27 }
 0x1a5   :  { %vm289_vm11 = vmor %vm287_vm10, %vm288_vm9 }
 0x1a6   :  { %v284_v35 = vsub.f32 1.0, %v283_v31 }
 0x1a8   :  { %v285_v36 = vmul.f32 %v5122_v27, %v284_v35 }
 0x1aa   :  { %v286_v37 = vadd.f32 %v5122_v27, %v285_v36 }
 0x1ac   :  { %v290_v41 = vsel %vm289_vm11, %v5122_v27, %v286_v37 }
 0x1ad   :  { %v295_v43 = vsel %vm292_vm12, %v294_v42, %v290_v41 }
 0x1ae   :  { %v307_v44 = vsub.f32 1.0, %v295_v43  ;;  %v313_v46 = vmul.f32 0.0, %v295_v43 }
 0x1f4   :  { %v218_v30 = vpop.permute.xlu2 %217 }
 0x1f5   :  { %v220_v33 = vmul.f32 %v218_v30, %v215_v29 }
 0x1f7   :  { %v5856_v34 = vadd.f32 %v221_v32, %v220_v33 }
 0x1f9   :  { %224 = vrot.lane.b32.xlu1 %v5856_v34, %s5671_s2 }
 0x20b   :  { %v310_v45 = vpop.permute.xlu0 %309 }
 0x20c   :  { %v312_v47 = vmul.f32 %v310_v45, %v307_v44 }
 0x20e   :  { %v5860_v48 = vadd.f32 %v313_v46, %v312_v47 }
 0x210   :  { %v392_v49 = vrot.slane %v5860_v48, 6 }
 0x212   :  { %5020 = vmatmul.msk.f32.vlgmr.msrb.gmra.mxu3 %vm160_vm13, %v392_v49 }
 0x213   :  { %1067 = vmatpush.msrb.mxu3 %v5735_v1 }
 0x215   :  { %1068 = vmatpush.msrb.mxu3 %v5741_v3 }
 0x217   :  { %1069 = vmatpush.msrb.mxu3 %v5745_v5 }
 0x219   :  { %1070 = vmatpush.msrb.mxu3 %v5760_v10 }
 0x26b   :  { %v225_v50 = vpop.permute.xlu1 %224 }
 0x26c   :  { %228 = vst.msk [vmem:[#allocation2] sm:$0x3] %vm7038_vm14, %v225_v50  ;;  %5019 = vmatmul.msk.f32.vlgmr.msrb.gmra.mxu2 %vm160_vm13, %v225_v50 }
 0x26d   :  { %996 = vmatpush.msrb.mxu2 %v5733_v0 }
 0x26f   :  { %997 = vmatpush.msrb.mxu2 %v5737_v2 }
 0x271   :  { %998 = vmatpush.msrb.mxu2 %v5743_v4 }
 0x273   :  { %999 = vmatpush.msrb.mxu2 %v5758_v9 }
 0x295   :  { %v412_v51 = vpop.f32.mrf.mxu3 }
 0x296   :  { %v413_v52 = vadd.f32 %v5826_v19, %v412_v51 }
 0x298   :  { %v416_v53 = vrot.slane %v413_v52, 4 }
 0x29a   :  { %417 = vrot.lane.b32.xlu2 %v416_v53, %s5671_s2  ;;  %460 = vrot.lane.b32.xlu1 %v416_v53, %s5670_s18 }
 0x2ef   :  { %v340_v54 = vpop.f32.mrf.mxu2 }
 0x2f0   :  { %v341_v55 = vadd.f32 %v5834_v23, %v340_v54 }
 0x2f2   :  { %v344_v56 = vrot.slane %v341_v55, 6 }
 0x2f4   :  { %366 = vrot.lane.b32.xlu0 %v344_v56, %s5672_s21  ;;  %v418_v57 = vpop.permute.xlu2 %417  ;;  %v346_v15 = vadd.f32 %v344_v56, %v5839_v28 }
 0x2f5   :  { %v420_v58 = vadd.f32 %v418_v57, %v5842_v38  ;;  %v440_v47 = vadd.f32 %v418_v57, %v5849_v11 }
 0x2f6   :  { %v347_v16 = vsub.f32 0.0, %v346_v15 }
 0x2f7   :  { %v421_v59 = vsub.f32 0.0, %v420_v58  ;;  %v441_v49 = vsub.f32 0.0, %v440_v47 }
 0x2f8   :  { %v348_v26 = vmul.f32 1.442695, %v347_v16 }
 0x2f9   :  { %v422_v60 = vmul.f32 1.442695, %v421_v59  ;;  %v442_v50 = vmul.f32 1.442695, %v441_v49 }
 0x2fb   :  { %5123 = vpow2.f32 %v422_v60 }
 0x301   :  { %v5124_v61 = vpop.eup %5123 }
 0x302   :  { %v424_v62 = vadd.f32 1.0, %v5124_v61 }
 0x304   :  { %5125 = vrcp.f32 %v424_v62  ;;  %v436_v8 = vand.u32 2147483648, %v424_v62  ;;  %v434_v14 = vand.u32 2147483647, %v424_v62  ;;  %vm430_vm0 = vweird.f32 %v424_v62 }
 0x305   :  { %5127 = vpow2.f32 %v348_v26 }
 0x306   :  { %v437_v20 = vor.u32 1.1754944e-38, %v436_v8  ;;  %vm435_vm2 = vcmp.eq.f32.partialorder %v434_v14, 8.507059e+37 }
 0x30a   :  { %v5126_v63 = vpop.eup %5125 }
 0x30b   :  { %v426_v6 = vmul.f32 %v5126_v63, %v424_v62  ;;  %vm431_vm15 = vweird.f32 %v5126_v63  ;;  %v5128_v27 = vpop.eup %5127 }
 0x30c   :  { %vm432_vm1 = vmor %vm430_vm0, %vm431_vm15  ;;  %v461_v22 = vpop.permute.xlu1 %460  ;;  %v350_v29 = vadd.f32 1.0, %v5128_v27 }
 0x30d   :  { %v427_v7 = vsub.f32 1.0, %v426_v6 }
 0x30e   :  { %5129 = vrcp.f32 %v350_v29  ;;  %v362_v36 = vand.u32 2147483648, %v350_v29  ;;  %vm356_vm4 = vweird.f32 %v350_v29  ;;  %v360_v37 = vand.u32 2147483647, %v350_v29 }
 0x30f   :  { %v428_v12 = vmul.f32 %v5126_v63, %v427_v7 }
 0x310   :  { %v363_v40 = vor.u32 1.1754944e-38, %v362_v36  ;;  %vm361_vm6 = vcmp.eq.f32.partialorder %v360_v37, 8.507059e+37 }
 0x311   :  { %v429_v17 = vadd.f32 %v5126_v63, %v428_v12  ;;  %v476_v12 = vrot.slane %v5860_v48, 2 }
 0x313   :  { %v433_v21 = vsel %vm432_vm1, %v5126_v63, %v429_v17 }
 0x314   :  { %v438_v24 = vsel %vm435_vm2, %v437_v20, %v433_v21  ;;  %v5130_v30 = vpop.eup %5129 }
 0x315   :  { %v463_v25 = vmul.f32 %v461_v22, %v438_v24  ;;  %v352_v31 = vmul.f32 %v5130_v30, %v350_v29  ;;  %vm357_vm3 = vweird.f32 %v5130_v30  ;;  %v382_v24 = vrot.slane %v5856_v34, 6 }
 0x316   :  { %vm358_vm5 = vmor %vm356_vm4, %vm357_vm3 }
 0x317   :  { %465 = vrot.lane.b32.xlu0 %v463_v25, %s5672_s21  ;;  %v353_v32 = vsub.f32 1.0, %v352_v31 }
 0x319   :  { %v354_v33 = vmul.f32 %v5130_v30, %v353_v32 }
 0x31b   :  { %v355_v35 = vadd.f32 %v5130_v30, %v354_v33 }
 0x31d   :  { %v359_v39 = vsel %vm358_vm5, %v5130_v30, %v355_v35 }
 0x31e   :  { %v364_v42 = vsel %vm361_vm6, %v363_v40, %v359_v39 }
 0x31f   :  { %v376_v25 = vsub.f32 1.0, %v364_v42  ;;  %v384_v16 = vmul.f32 %v382_v24, %v364_v42 }
 0x366   :  { %v367_v41 = vpop.permute.xlu0 %366 }
 0x367   :  { %v369_v43 = vmul.f32 %v367_v41, %v364_v42 }
 0x369   :  { %371 = vrot.lane.b32.xlu2 %v369_v43, %s5672_s21 }
 0x389   :  { %v466_v44 = vpop.permute.xlu0 %465 }
 0x38a   :  { %v468_v45 = vadd.f32 %v466_v44, %v5849_v11 }
 0x38c   :  { %5131 = vtanh.f32 %v468_v45 }
 0x38d   :  { %5133 = vpow2.f32 %v442_v50 }
 0x392   :  { %v5132_v46 = vpop.eup %5131 }
 0x393   :  { %472 = vrot.lane.b32.xlu2 %v5132_v46, %s5671_s2  ;;  %v5134_v53 = vpop.eup %5133 }
 0x394   :  { %v444_v54 = vadd.f32 1.0, %v5134_v53 }
 0x396   :  { %v456_v57 = vand.u32 2147483648, %v444_v54  ;;  %vm450_vm8 = vweird.f32 %v444_v54  ;;  %v454_v62 = vand.u32 2147483647, %v444_v54 }
 0x398   :  { %v457_v6 = vor.u32 1.1754944e-38, %v456_v57  ;;  %vm455_vm10 = vcmp.eq.f32.partialorder %v454_v62, 8.507059e+37 }
 0x3c3   :  { %v372_v51 = vpop.permute.xlu2 %371 }
 0x3c4   :  { %v374_v52 = vadd.f32 %v372_v51, %v5839_v28 }
 0x3c6   :  { %5135 = vtanh.f32 %v374_v52 }
 0x3c7   :  { %5137 = vrcp.f32 %v444_v54 }
 0x3cc   :  { %v5136_v55 = vpop.eup %5135 }
 0x3cd   :  { %378 = vrot.lane.b32.xlu1 %v5136_v55, %s5671_s2  ;;  %v5138_v56 = vpop.eup %5137 }
 0x3ce   :  { %v446_v58 = vmul.f32 %v5138_v56, %v444_v54  ;;  %vm451_vm7 = vweird.f32 %v5138_v56 }
 0x3cf   :  { %vm452_vm9 = vmor %vm450_vm8, %vm451_vm7 }
 0x3d0   :  { %v447_v59 = vsub.f32 1.0, %v446_v58 }
 0x3d2   :  { %v448_v60 = vmul.f32 %v5138_v56, %v447_v59 }
 0x3d4   :  { %v449_v61 = vadd.f32 %v5138_v56, %v448_v60 }
 0x3d6   :  { %v453_v63 = vsel %vm452_vm9, %v5138_v56, %v449_v61 }
 0x3d7   :  { %v458_v7 = vsel %vm455_vm10, %v457_v6, %v453_v63 }
 0x3d8   :  { %v470_v8 = vsub.f32 1.0, %v458_v7  ;;  %v478_v17 = vmul.f32 %v476_v12, %v458_v7 }
 0x3ed   :  { %v473_v14 = vpop.permute.xlu2 %472 }
 0x3ee   :  { %v475_v20 = vmul.f32 %v473_v14, %v470_v8 }
 0x3f0   :  { %v5889_v21 = vadd.f32 %v478_v17, %v475_v20 }
 0x3f2   :  { %v560_v22 = vrot.slane %v5889_v21, 4 }
 0x3f4   :  { %5022 = vmatmul.msk.f32.vlgmr.msrb.gmra.mxu1 %vm160_vm13, %v560_v22 }
 0x3f5   :  { %1233 = vmatpush.msrb.mxu1 %v5735_v1 }
 0x3f7   :  { %1234 = vmatpush.msrb.mxu1 %v5741_v3 }
 0x3f9   :  { %1235 = vmatpush.msrb.mxu1 %v5745_v5 }
 0x3fb   :  { %1236 = vmatpush.msrb.mxu1 %v5760_v10 }
 0x43f   :  { %v379_v15 = vpop.permute.xlu1 %378 }
 0x440   :  { %v381_v26 = vmul.f32 %v379_v15, %v376_v25 }
 0x442   :  { %v5898_v27 = vadd.f32 %v384_v16, %v381_v26 }
 0x444   :  { %v486_v29 = vrot.slane %v5898_v27, 2 }
 0x446   :  { %487 = vrot.lane.b32.xlu0 %v486_v29, %s5671_s2 }
 0x471   :  { %v580_v30 = vpop.f32.mrf.mxu1 }
 0x472   :  { %v581_v31 = vadd.f32 %v5826_v19, %v580_v30 }
 0x474   :  { %v584_v32 = vrot.slane %v581_v31, 6 }
 0x476   :  { %628 = vrot.lane.b32.xlu2 %v584_v32, %s5670_s18  ;;  %585 = vrot.lane.b32.xlu1 %v584_v32, %s5671_s2 }
 0x4b8   :  { %v488_v33 = vpop.permute.xlu0 %487 }
 0x4b9   :  { %5021 = vmatmul.msk.f32.vlgmr.msrb.gmra.mxu0 %vm160_vm13, %v488_v33 }
 0x4ba   :  { %1162 = vmatpush.msrb.mxu0 %v5733_v0 }
 0x4bc   :  { %1163 = vmatpush.msrb.mxu0 %v5737_v2 }
 0x4be   :  { %1164 = vmatpush.msrb.mxu0 %v5743_v4 }
 0x4c0   :  { %1165 = vmatpush.msrb.mxu0 %v5758_v9 }
 0x4d0   :  { %v629_v51 = vpop.permute.xlu2 %628 }
 0x4e8   :  { %v586_v34 = vpop.permute.xlu1 %585 }
 0x4e9   :  { %v588_v35 = vadd.f32 %v586_v34, %v5842_v38  ;;  %v608_v29 = vadd.f32 %v586_v34, %v5849_v11 }
 0x4eb   :  { %v589_v36 = vsub.f32 0.0, %v588_v35  ;;  %v609_v30 = vsub.f32 0.0, %v608_v29 }
 0x4ed   :  { %v590_v37 = vmul.f32 1.442695, %v589_v36  ;;  %v610_v31 = vmul.f32 1.442695, %v609_v30 }
 0x4ef   :  { %5139 = vpow2.f32 %v590_v37 }
 0x4f5   :  { %v5140_v39 = vpop.eup %5139 }
 0x4f6   :  { %v592_v40 = vadd.f32 1.0, %v5140_v39 }
 0x4f8   :  { %5141 = vrcp.f32 %v592_v40  ;;  %v604_v44 = vand.u32 2147483648, %v592_v40  ;;  %v602_v46 = vand.u32 2147483647, %v592_v40  ;;  %vm598_vm12 = vweird.f32 %v592_v40 }
 0x4fa   :  { %v605_v49 = vor.u32 1.1754944e-38, %v604_v44  ;;  %vm603_vm0 = vcmp.eq.f32.partialorder %v602_v46, 8.507059e+37  ;;  %v644_v46 = vrot.slane %v5889_v21, 2 }
 0x4fe   :  { %v5142_v41 = vpop.eup %5141 }
 0x4ff   :  { %v594_v42 = vmul.f32 %v5142_v41, %v592_v40  ;;  %vm599_vm11 = vweird.f32 %v5142_v41 }
 0x500   :  { %vm600_vm15 = vmor %vm598_vm12, %vm599_vm11 }
 0x501   :  { %v595_v43 = vsub.f32 1.0, %v594_v42 }
 0x503   :  { %v596_v45 = vmul.f32 %v5142_v41, %v595_v43 }
 0x505   :  { %v597_v47 = vadd.f32 %v5142_v41, %v596_v45 }
 0x507   :  { %v601_v50 = vsel %vm600_vm15, %v5142_v41, %v597_v47 }
 0x508   :  { %v606_v52 = vsel %vm603_vm0, %v605_v49, %v601_v50 }
 0x509   :  { %v631_v53 = vmul.f32 %v629_v51, %v606_v52 }
 0x50b   :  { %633 = vrot.lane.b32.xlu1 %v631_v53, %s5672_s21 }
 0x536   :  { %v508_v54 = vpop.f32.mrf.mxu0 }
 0x537   :  { %v509_v55 = vadd.f32 %v5834_v23, %v508_v54 }
 0x539   :  { %v512_v56 = vrot.slane %v509_v55, 4 }
 0x53b   :  { %534 = vrot.lane.b32.xlu0 %v512_v56, %s5672_s21  ;;  %v514_v58 = vadd.f32 %v512_v56, %v5839_v28 }
 0x53d   :  { %v515_v59 = vsub.f32 0.0, %v514_v58 }
 0x53f   :  { %v516_v57 = vmul.f32 1.442695, %v515_v59 }
 0x57d   :  { %v634_v60 = vpop.permute.xlu1 %633 }
 0x57e   :  { %v636_v61 = vadd.f32 %v634_v60, %v5849_v11  ;;  %v550_v60 = vrot.slane %v5898_v27, 6 }
 0x580   :  { %5143 = vtanh.f32 %v636_v61 }
 0x581   :  { %5145 = vpow2.f32 %v516_v57 }
 0x586   :  { %v5144_v62 = vpop.eup %5143 }
 0x587   :  { %640 = vrot.lane.b32.xlu0 %v5144_v62, %s5671_s2  ;;  %v5146_v63 = vpop.eup %5145 }
 0x588   :  { %v518_v6 = vadd.f32 1.0, %v5146_v63 }
 0x58a   :  { %5147 = vrcp.f32 %v518_v6  ;;  %v530_v20 = vand.u32 2147483648, %v518_v6  ;;  %vm524_vm2 = vweird.f32 %v518_v6  ;;  %v528_v22 = vand.u32 2147483647, %v518_v6 }
 0x58b   :  { %5149 = vpow2.f32 %v610_v31 }
 0x58c   :  { %v531_v25 = vor.u32 1.1754944e-38, %v530_v20  ;;  %vm529_vm4 = vcmp.eq.f32.partialorder %v528_v22, 8.507059e+37 }
 0x590   :  { %v5148_v7 = vpop.eup %5147 }
 0x591   :  { %v520_v8 = vmul.f32 %v5148_v7, %v518_v6  ;;  %vm525_vm1 = vweird.f32 %v5148_v7  ;;  %v5150_v32 = vpop.eup %5149 }
 0x592   :  { %vm526_vm3 = vmor %vm524_vm2, %vm525_vm1  ;;  %v612_v33 = vadd.f32 1.0, %v5150_v32 }
 0x593   :  { %v521_v12 = vsub.f32 1.0, %v520_v8 }
 0x594   :  { %5151 = vrcp.f32 %v612_v33  ;;  %v624_v41 = vand.u32 2147483648, %v612_v33  ;;  %vm618_vm6 = vweird.f32 %v612_v33  ;;  %v622_v42 = vand.u32 2147483647, %v612_v33 }
 0x595   :  { %v522_v14 = vmul.f32 %v5148_v7, %v521_v12 }
 0x596   :  { %v625_v44 = vor.u32 1.1754944e-38, %v624_v41  ;;  %vm623_vm8 = vcmp.eq.f32.partialorder %v622_v42, 8.507059e+37 }
 0x597   :  { %v523_v17 = vadd.f32 %v5148_v7, %v522_v14 }
 0x599   :  { %v527_v24 = vsel %vm526_vm3, %v5148_v7, %v523_v17 }
 0x59a   :  { %v532_v16 = vsel %vm529_vm4, %v531_v25, %v527_v24  ;;  %v5152_v35 = vpop.eup %5151 }
 0x59b   :  { %v614_v36 = vmul.f32 %v5152_v35, %v612_v33  ;;  %vm619_vm5 = vweird.f32 %v5152_v35  ;;  %v544_v59 = vsub.f32 1.0, %v532_v16 }
 0x59c   :  { %vm620_vm7 = vmor %vm618_vm6, %vm619_vm5 }
 0x59d   :  { %v615_v37 = vsub.f32 1.0, %v614_v36 }
 0x59f   :  { %v616_v39 = vmul.f32 %v5152_v35, %v615_v37 }
 0x5a1   :  { %v617_v40 = vadd.f32 %v5152_v35, %v616_v39 }
 0x5a3   :  { %v621_v43 = vsel %vm620_vm7, %v5152_v35, %v617_v40 }
 0x5a4   :  { %v626_v34 = vsel %vm623_vm8, %v625_v44, %v621_v43 }
 0x5a5   :  { %v638_v45 = vsub.f32 1.0, %v626_v34  ;;  %v646_v49 = vmul.f32 %v644_v46, %v626_v34 }
 0x5ad   :  { %v535_v15 = vpop.permute.xlu0 %534 }
 0x5ae   :  { %v537_v26 = vmul.f32 %v535_v15, %v532_v16 }
 0x5b0   :  { %539 = vrot.lane.b32.xlu2 %v537_v26, %s5672_s21 }
 0x5f9   :  { %v641_v47 = vpop.permute.xlu0 %640 }
 0x5fa   :  { %v643_v50 = vmul.f32 %v641_v47, %v638_v45 }
 0x5fc   :  { %v5920_v51 = vadd.f32 %v646_v49, %v643_v50 }
 0x5fe   :  { %v728_v52 = vrot.slane %v5920_v51, 2 }
 0x600   :  { %5024 = vmatmul.msk.f32.vlgmr.msra.gmra.mxu3 %vm160_vm13, %v728_v52 }
 0x601   :  { %1399 = vmatpush.msra.mxu3 %v5735_v1 }
 0x603   :  { %1400 = vmatpush.msra.mxu3 %v5741_v3  ;;  %v552_v3 = vmul.f32 %v550_v60, %v532_v16 }
 0x605   :  { %1401 = vmatpush.msra.mxu3 %v5745_v5 }
 0x607   :  { %1402 = vmatpush.msra.mxu3 %v5760_v10 }
 0x60a   :  { %v540_v53 = vpop.permute.xlu2 %539 }
 0x60b   :  { %v542_v54 = vadd.f32 %v540_v53, %v5839_v28 }
 0x60d   :  { %5153 = vtanh.f32 %v542_v54 }
 0x613   :  { %v5154_v55 = vpop.eup %5153 }
 0x614   :  { %546 = vrot.lane.b32.xlu1 %v5154_v55, %s5671_s2 }
 0x683   :  { %v748_v56 = vpop.f32.mrf.mxu3 }
 0x684   :  { %v749_v58 = vadd.f32 %v5826_v19, %v748_v56 }
 0x686   :  { %v547_v1 = vpop.permute.xlu1 %546  ;;  %795 = vrot.lane.b32.xlu1 %v749_v58, %s5670_s18  ;;  %752 = vrot.lane.b32.xlu0 %v749_v58, %s5671_s2 }
 0x687   :  { %v549_v5 = vmul.f32 %v547_v1, %v544_v59 }
 0x689   :  { %v5936_v10 = vadd.f32 %v552_v3, %v549_v5 }
 0x68b   :  { %v654_v61 = vrot.slane %v5936_v10, 4 }
 0x68d   :  { %655 = vrot.lane.b32.xlu2 %v654_v61, %s5671_s2 }
 0x6e7   :  { %v656_v57 = vpop.permute.xlu2 %655 }
 0x6e8   :  { %5023 = vmatmul.msk.f32.vlgmr.msra.gmra.mxu2 %vm160_vm13, %v656_v57 }
 0x6e9   :  { %1328 = vmatpush.msra.mxu2 %v5733_v0 }
 0x6eb   :  { %1329 = vmatpush.msra.mxu2 %v5737_v2 }
 0x6ed   :  { %1330 = vmatpush.msra.mxu2 %v5743_v4 }
 0x6ef   :  { %1331 = vmatpush.msra.mxu2 %v5758_v9 }
 0x6f8   :  { %v753_v62 = vpop.permute.xlu0 %752  ;;  %v796_v15 = vpop.permute.xlu1 %795 }
 0x6f9   :  { %v755_v63 = vadd.f32 %v753_v62, %v5842_v38  ;;  %v775_v43 = vadd.f32 %v753_v62, %v5849_v11 }
 0x6fb   :  { %v756_v6 = vsub.f32 0.0, %v755_v63  ;;  %v776_v34 = vsub.f32 0.0, %v775_v43 }
 0x6fd   :  { %v757_v7 = vmul.f32 1.442695, %v756_v6  ;;  %v777_v46 = vmul.f32 1.442695, %v776_v34 }
 0x6ff   :  { %5155 = vpow2.f32 %v757_v7 }
 0x705   :  { %v5156_v8 = vpop.eup %5155 }
 0x706   :  { %v759_v12 = vadd.f32 1.0, %v5156_v8 }
 0x708   :  { %5157 = vrcp.f32 %v759_v12  ;;  %v771_v22 = vand.u32 2147483648, %v759_v12  ;;  %v769_v2 = vand.u32 2147483647, %v759_v12  ;;  %vm765_vm10 = vweird.f32 %v759_v12 }
 0x70a   :  { %v772_v4 = vor.u32 1.1754944e-38, %v771_v22  ;;  %vm770_vm12 = vcmp.eq.f32.partialorder %v769_v2, 8.507059e+37 }
 0x70e   :  { %v5158_v14 = vpop.eup %5157 }
 0x70f   :  { %v761_v17 = vmul.f32 %v5158_v14, %v759_v12  ;;  %vm766_vm9 = vweird.f32 %v5158_v14 }
 0x710   :  { %vm767_vm11 = vmor %vm765_vm10, %vm766_vm9 }
 0x711   :  { %v762_v20 = vsub.f32 1.0, %v761_v17 }
 0x713   :  { %v763_v0 = vmul.f32 %v5158_v14, %v762_v20 }
 0x715   :  { %v764_v24 = vadd.f32 %v5158_v14, %v763_v0 }
 0x717   :  { %v768_v9 = vsel %vm767_vm11, %v5158_v14, %v764_v24 }
 0x718   :  { %v773_v25 = vsel %vm770_vm12, %v772_v4, %v768_v9 }
 0x719   :  { %v798_v16 = vmul.f32 %v796_v15, %v773_v25  ;;  %v718_v25 = vrot.slane %v5936_v10, 6 }
 0x71b   :  { %800 = vrot.lane.b32.xlu0 %v798_v16, %s5672_s21 }
 0x76b   :  { %v676_v26 = vpop.f32.mrf.mxu2 }
 0x76c   :  { %v677_v29 = vadd.f32 %v5834_v23, %v676_v26 }
 0x76e   :  { %v680_v30 = vrot.slane %v677_v29, 2 }
 0x770   :  { %702 = vrot.lane.b32.xlu2 %v680_v30, %s5672_s21  ;;  %v682_v33 = vadd.f32 %v680_v30, %v5839_v28 }
 0x772   :  { %v683_v36 = vsub.f32 0.0, %v682_v33 }
 0x774   :  { %v684_v37 = vmul.f32 1.442695, %v683_v36 }
 0x78d   :  { %v801_v31 = vpop.permute.xlu0 %800 }
 0x78e   :  { %v803_v32 = vadd.f32 %v801_v31, %v5849_v11 }
 0x790   :  { %5159 = vtanh.f32 %v803_v32 }
 0x791   :  { %5161 = vpow2.f32 %v684_v37 }
 0x796   :  { %v5160_v35 = vpop.eup %5159 }
 0x797   :  { %807 = vrot.lane.b32.xlu2 %v5160_v35, %s5671_s2  ;;  %v5162_v39 = vpop.eup %5161 }
 0x798   :  { %v686_v40 = vadd.f32 1.0, %v5162_v39 }
 0x79a   :  { %5163 = vrcp.f32 %v686_v40  ;;  %v698_v49 = vand.u32 2147483648, %v686_v40  ;;  %vm692_vm0 = vweird.f32 %v686_v40  ;;  %v696_v50 = vand.u32 2147483647, %v686_v40 }
 0x79b   :  { %5165 = vpow2.f32 %v777_v46 }
 0x79c   :  { %v699_v54 = vor.u32 1.1754944e-38, %v698_v49  ;;  %vm697_vm2 = vcmp.eq.f32.partialorder %v696_v50, 8.507059e+37 }
 0x7a0   :  { %v5164_v41 = vpop.eup %5163 }
 0x7a1   :  { %v688_v42 = vmul.f32 %v5164_v41, %v686_v40  ;;  %vm693_vm15 = vweird.f32 %v5164_v41  ;;  %v5166_v55 = vpop.eup %5165 }
 0x7a2   :  { %vm694_vm1 = vmor %vm692_vm0, %vm693_vm15  ;;  %v779_v60 = vadd.f32 1.0, %v5166_v55 }
 0x7a3   :  { %v689_v44 = vsub.f32 1.0, %v688_v42 }
 0x7a4   :  { %5167 = vrcp.f32 %v779_v60  ;;  %v791_v57 = vand.u32 2147483648, %v779_v60  ;;  %vm785_vm4 = vweird.f32 %v779_v60  ;;  %v789_v62 = vand.u32 2147483647, %v779_v60 }
 0x7a5   :  { %v690_v45 = vmul.f32 %v5164_v41, %v689_v44 }
 0x7a6   :  { %v792_v6 = vor.u32 1.1754944e-38, %v791_v57  ;;  %vm790_vm6 = vcmp.eq.f32.partialorder %v789_v62, 8.507059e+37 }
 0x7a7   :  { %v691_v47 = vadd.f32 %v5164_v41, %v690_v45 }
 0x7a9   :  { %v695_v53 = vsel %vm694_vm1, %v5164_v41, %v691_v47 }
 0x7aa   :  { %v700_v58 = vsel %vm697_vm2, %v699_v54, %v695_v53  ;;  %v5168_v11 = vpop.eup %5167 }
 0x7ab   :  { %v781_v1 = vmul.f32 %v5168_v11, %v779_v60  ;;  %vm786_vm3 = vweird.f32 %v5168_v11  ;;  %v720_v16 = vmul.f32 %v718_v25, %v700_v58 }
 0x7ac   :  { %vm787_vm5 = vmor %vm785_vm4, %vm786_vm3 }
 0x7ad   :  { %v782_v3 = vsub.f32 1.0, %v781_v1 }
 0x7af   :  { %v783_v5 = vmul.f32 %v5168_v11, %v782_v3 }
 0x7b1   :  { %v784_v61 = vadd.f32 %v5168_v11, %v783_v5 }
 0x7b3   :  { %v788_v63 = vsel %vm787_vm5, %v5168_v11, %v784_v61 }
 0x7b4   :  { %v793_v7 = vsel %vm790_vm6, %v792_v6, %v788_v63 }
 0x7b5   :  { %v805_v8 = vsub.f32 1.0, %v793_v7  ;;  %v812_v14 = vmul.f32 %v793_v7, %v728_v52  ;;  %v712_v52 = vsub.f32 1.0, %v700_v58 }
 0x7ca   :  { %v703_v56 = vpop.permute.xlu2 %702 }
 0x7cb   :  { %v705_v59 = vmul.f32 %v703_v56, %v700_v58 }
 0x7cd   :  { %707 = vrot.lane.b32.xlu1 %v705_v59, %s5672_s21 }
 0x7f1   :  { %v808_v12 = vpop.permute.xlu2 %807 }
 0x7f2   :  { %v810_v17 = vmul.f32 %v808_v12, %v805_v8 }
 0x7f4   :  { %v5956_v20 = vadd.f32 %v812_v14, %v810_v17 }
 0x7f6   :  { %5026 = vmatmul.msk.f32.vlgmr.msra.gmra.mxu1 %vm160_vm13, %v5956_v20 }
 0x83f   :  { %v708_v22 = vpop.permute.xlu1 %707 }
 0x840   :  { %v710_v0 = vadd.f32 %v708_v22, %v5839_v28 }
 0x842   :  { %5169 = vtanh.f32 %v710_v0 }
 0x848   :  { %v5170_v2 = vpop.eup %5169 }
 0x849   :  { %714 = vrot.lane.b32.xlu0 %v5170_v2, %s5671_s2 }
 0x873   :  { %v909_v24 = vpop.f32.mrf.mxu1 }
 0x874   :  { %v910_v4 = vadd.f32 %v5826_v19, %v909_v24 }
 0x876   :  { %v913_v9 = vrot.slane %v910_v4, 2 }
 0x878   :  { %914 = vrot.lane.b32.xlu2 %v913_v9, %s5671_s2  ;;  %957 = vrot.lane.b32.xlu0 %v913_v9, %s5670_s18 }
 0x8bb   :  { %v715_v15 = vpop.permute.xlu0 %714 }
 0x8bc   :  { %v717_v26 = vmul.f32 %v715_v15, %v712_v52 }
 0x8be   :  { %v5966_v29 = vadd.f32 %v720_v16, %v717_v26 }
 0x8c0   :  { %v820_v30 = vrot.slane %v5966_v29, 6 }
 0x8c2   :  { %821 = vrot.lane.b32.xlu1 %v820_v30, %s5671_s2 }
 0x8d2   :  { %v915_v19 = vpop.permute.xlu2 %914 }
 0x8d3   :  { %v917_v31 = vadd.f32 %v915_v19, %v5839_v28  ;;  %v937_v60 = vadd.f32 %v915_v19, %v5821_v18 }
 0x8d5   :  { %v918_v32 = vsub.f32 0.0, %v917_v31  ;;  %v938_v1 = vsub.f32 0.0, %v937_v60 }
 0x8d7   :  { %v919_v33 = vmul.f32 1.442695, %v918_v32  ;;  %v939_v5 = vmul.f32 1.442695, %v938_v1 }
 0x8d9   :  { %5171 = vpow2.f32 %v919_v33 }
 0x8df   :  { %v5172_v35 = vpop.eup %5171 }
 0x8e0   :  { %v921_v36 = vadd.f32 1.0, %v5172_v35 }
 0x8e2   :  { %5173 = vrcp.f32 %v921_v36  ;;  %v933_v41 = vand.u32 2147483648, %v921_v36  ;;  %v931_v43 = vand.u32 2147483647, %v921_v36  ;;  %vm927_vm8 = vweird.f32 %v921_v36 }
 0x8e4   :  { %v934_v34 = vor.u32 1.1754944e-38, %v933_v41  ;;  %vm932_vm10 = vcmp.eq.f32.partialorder %v931_v43, 8.507059e+37 }
 0x8e8   :  { %v5174_v37 = vpop.eup %5173 }
 0x8e9   :  { %v923_v39 = vmul.f32 %v5174_v37, %v921_v36  ;;  %vm928_vm7 = vweird.f32 %v5174_v37  ;;  %v973_v36 = vrot.slane %v5956_v20, 2 }
 0x8ea   :  { %vm929_vm9 = vmor %vm927_vm8, %vm928_vm7  ;;  %v958_v47 = vpop.permute.xlu0 %957 }
 0x8eb   :  { %v924_v40 = vsub.f32 1.0, %v923_v39 }
 0x8ed   :  { %v925_v42 = vmul.f32 %v5174_v37, %v924_v40 }
 0x8ef   :  { %v926_v44 = vadd.f32 %v5174_v37, %v925_v42 }
 0x8f1   :  { %v930_v45 = vsel %vm929_vm9, %v5174_v37, %v926_v44 }
 0x8f2   :  { %v935_v46 = vsel %vm932_vm10, %v934_v34, %v930_v45 }
 0x8f3   :  { %v960_v49 = vmul.f32 %v958_v47, %v935_v46  ;;  %v5992_v46 = vld [vmem:[%s7031_s4 + $0x1] ss:$0 sm:$0xff] }
 0x8f5   :  { %962 = vrot.lane.b32.xlu2 %v960_v49, %s5672_s21 }
 0x934   :  { %v822_v50 = vpop.permute.xlu1 %821 }
 0x935   :  { %5025 = vmatmul.msk.f32.vlgmr.msra.gmra.mxu0 %vm160_vm13, %v822_v50 }
 0x94f   :  { %v963_v53 = vpop.permute.xlu2 %962 }
 0x950   :  { %v965_v54 = vadd.f32 %v963_v53, %v5821_v18 }
 0x952   :  { %5175 = vtanh.f32 %v965_v54 }
 0x958   :  { %v5176_v58 = vpop.eup %5175 }
 0x9b2   :  { %v842_v55 = vpop.f32.mrf.mxu0 }
 0x9b3   :  { %v843_v56 = vadd.f32 %v5834_v23, %v842_v55 }
 0x9b5   :  { %866 = vrot.lane.b32.xlu1 %v843_v56, %s5672_s21  ;;  %v845_v59 = vadd.f32 %v843_v56, %v5842_v38 }
 0x9b7   :  { %v846_v11 = vsub.f32 0.0, %v845_v59 }
 0x9b9   :  { %v847_v3 = vmul.f32 1.442695, %v846_v11 }
 0x9bb   :  { %5177 = vpow2.f32 %v847_v3 }
 0x9bc   :  { %5179 = vpow2.f32 %v939_v5 }
 0x9bd   :  { %969 = vrot.lane.b32.xlu1 %v5176_v58, %s5671_s2 }
 0x9c1   :  { %v5178_v61 = vpop.eup %5177 }
 0x9c2   :  { %v849_v57 = vadd.f32 1.0, %v5178_v61  ;;  %v5180_v62 = vpop.eup %5179 }
 0x9c3   :  { %v941_v23 = vadd.f32 1.0, %v5180_v62 }
 0x9c4   :  { %5181 = vrcp.f32 %v849_v57  ;;  %v861_v2 = vand.u32 2147483648, %v849_v57  ;;  %vm855_vm12 = vweird.f32 %v849_v57  ;;  %v859_v24 = vand.u32 2147483647, %v849_v57 }
 0x9c5   :  { %5183 = vrcp.f32 %v941_v23  ;;  %v953_v25 = vand.u32 2147483648, %v941_v23  ;;  %vm947_vm2 = vweird.f32 %v941_v23  ;;  %v951_v15 = vand.u32 2147483647, %v941_v23 }
 0x9c6   :  { %v862_v52 = vor.u32 1.1754944e-38, %v861_v2  ;;  %vm860_vm1 = vcmp.eq.f32.partialorder %v859_v24, 8.507059e+37  ;;  %v6012_v2 = vld [vmem:[%s7031_s4] ss:$0 sm:$0xff] }
 0x9c7   :  { %v954_v32 = vor.u32 1.1754944e-38, %v953_v25  ;;  %vm952_vm4 = vcmp.eq.f32.partialorder %v951_v15, 8.507059e+37 }
 0x9ca   :  { %v5182_v63 = vpop.eup %5181 }
 0x9cb   :  { %v851_v6 = vmul.f32 %v5182_v63, %v849_v57  ;;  %v5184_v7 = vpop.eup %5183  ;;  %vm856_vm11 = vweird.f32 %v5182_v63 }
 0x9cc   :  { %v943_v12 = vmul.f32 %v5184_v7, %v941_v23  ;;  %vm857_vm15 = vmor %vm855_vm12, %vm856_vm11  ;;  %vm948_vm0 = vweird.f32 %v5184_v7 }
 0x9cd   :  { %v852_v8 = vsub.f32 1.0, %v851_v6  ;;  %vm949_vm3 = vmor %vm947_vm2, %vm948_vm0 }
 0x9ce   :  { %v944_v17 = vsub.f32 1.0, %v943_v12 }
 0x9cf   :  { %v853_v14 = vmul.f32 %v5182_v63, %v852_v8 }
 0x9d0   :  { %v945_v0 = vmul.f32 %v5184_v7, %v944_v17 }
 0x9d1   :  { %v854_v22 = vadd.f32 %v5182_v63, %v853_v14 }
 0x9d2   :  { %v946_v9 = vadd.f32 %v5184_v7, %v945_v0 }
 0x9d3   :  { %v858_v4 = vsel %vm857_vm15, %v5182_v63, %v854_v22 }
 0x9d4   :  { %v863_v26 = vsel %vm860_vm1, %v862_v52, %v858_v4  ;;  %v950_v31 = vsel %vm949_vm3, %v5184_v7, %v946_v9 }
 0x9d5   :  { %v955_v33 = vsel %vm952_vm4, %v954_v32, %v950_v31  ;;  %v876_v50 = vsub.f32 1.0, %v863_v26  ;;  %v883_v54 = vmul.f32 %v863_v26, %v820_v30 }
 0x9d6   :  { %v967_v35 = vsub.f32 1.0, %v955_v33  ;;  %v975_v39 = vmul.f32 %v973_v36, %v955_v33 }
 0xa27   :  { %v867_v16 = vpop.permute.xlu1 %866 }
 0xa28   :  { %v869_v19 = vmul.f32 %v867_v16, %v863_v26 }
 0xa2a   :  { %871 = vrot.lane.b32.xlu0 %v869_v19, %s5672_s21 }
 0xa2f   :  { %v970_v37 = vpop.permute.xlu1 %969 }
 0xa30   :  { %v972_v40 = vmul.f32 %v970_v37, %v967_v35 }
 0xa32   :  { %v5983_v41 = vadd.f32 %v975_v39, %v972_v40 }
 0xa34   :  { %v1052_v42 = vrot.slane %v5983_v41, 6 }
 0xa36   :  { %5028 = vmatmul.msk.f32.vlgmr.msrb.gmra.mxu3 %vm160_vm13, %v1052_v42 }
 0xa9c   :  { %v872_v43 = vpop.permute.xlu0 %871 }
 0xa9d   :  { %v874_v44 = vadd.f32 %v872_v43, %v5842_v38 }
 0xa9f   :  { %5185 = vtanh.f32 %v874_v44 }
 0xaa5   :  { %v5186_v34 = vpop.eup %5185 }
 0xaa6   :  { %878 = vrot.lane.b32.xlu2 %v5186_v34, %s5671_s2 }
 0xab9   :  { %v1072_v45 = vpop.f32.mrf.mxu3 }
 0xaba   :  { %v1073_v47 = vadd.f32 %v5992_v46, %v1072_v45 }
 0xabc   :  { %v1076_v49 = vrot.slane %v1073_v47, 4 }
 0xabe   :  { %1077 = vrot.lane.b32.xlu1 %v1076_v49, %s5671_s2  ;;  %1120 = vrot.lane.b32.xlu2 %v1076_v49, %s5670_s18 }
 0xb00   :  { %v879_v53 = vpop.permute.xlu2 %878 }
 0xb01   :  { %v881_v55 = vmul.f32 %v879_v53, %v876_v50 }
 0xb03   :  { %v5999_v56 = vadd.f32 %v883_v54, %v881_v55 }
 0xb05   :  { %886 = vrot.lane.b32.xlu0 %v5999_v56, %s5671_s2 }
 0xb18   :  { %v1121_v8 = vpop.permute.xlu2 %1120 }
 0xb30   :  { %v1078_v58 = vpop.permute.xlu1 %1077 }
 0xb31   :  { %v1080_v59 = vadd.f32 %v1078_v58, %v5839_v28  ;;  %v1100_v15 = vadd.f32 %v1078_v58, %v5821_v18 }
 0xb33   :  { %v1081_v60 = vsub.f32 0.0, %v1080_v59  ;;  %v1101_v26 = vsub.f32 0.0, %v1100_v15 }
 0xb35   :  { %v1082_v11 = vmul.f32 1.442695, %v1081_v60  ;;  %v1102_v31 = vmul.f32 1.442695, %v1101_v26 }
 0xb37   :  { %5187 = vpow2.f32 %v1082_v11 }
 0xb3d   :  { %v5188_v1 = vpop.eup %5187 }
 0xb3e   :  { %v1084_v3 = vadd.f32 1.0, %v5188_v1 }
 0xb40   :  { %5189 = vrcp.f32 %v1084_v3  ;;  %v1096_v62 = vand.u32 2147483648, %v1084_v3  ;;  %v1094_v23 = vand.u32 2147483647, %v1084_v3  ;;  %vm1090_vm6 = vweird.f32 %v1084_v3 }
 0xb42   :  { %v1097_v6 = vor.u32 1.1754944e-38, %v1096_v62  ;;  %vm1095_vm8 = vcmp.eq.f32.partialorder %v1094_v23, 8.507059e+37  ;;  %v1136_v62 = vrot.slane %v5983_v41, 2 }
 0xb46   :  { %v5190_v5 = vpop.eup %5189 }
 0xb47   :  { %v1086_v61 = vmul.f32 %v5190_v5, %v1084_v3  ;;  %vm1091_vm5 = vweird.f32 %v5190_v5 }
 0xb48   :  { %vm1092_vm7 = vmor %vm1090_vm6, %vm1091_vm5 }
 0xb49   :  { %v1087_v57 = vsub.f32 1.0, %v1086_v61 }
 0xb4b   :  { %v1088_v30 = vmul.f32 %v5190_v5, %v1087_v57 }
 0xb4d   :  { %v1089_v63 = vadd.f32 %v5190_v5, %v1088_v30 }
 0xb4f   :  { %v1093_v7 = vsel %vm1092_vm7, %v5190_v5, %v1089_v63 }
 0xb50   :  { %v1098_v12 = vsel %vm1095_vm8, %v1097_v6, %v1093_v7 }
 0xb51   :  { %v1123_v14 = vmul.f32 %v1121_v8, %v1098_v12 }
 0xb53   :  { %1125 = vrot.lane.b32.xlu1 %v1123_v14, %s5672_s21 }
 0xb77   :  { %v6005_v17 = vpop.permute.xlu0 %886 }
 0xb78   :  { %5027 = vmatmul.msk.f32.vlgmr.msrb.gmra.mxu2 %vm160_vm13, %v6005_v17 }
 0xbc5   :  { %v1126_v22 = vpop.permute.xlu1 %1125 }
 0xbc6   :  { %v1128_v4 = vadd.f32 %v1126_v22, %v5821_v18 }
 0xbc8   :  { %5191 = vtanh.f32 %v1128_v4  ;;  %v1043_v4 = vrot.slane %v5999_v56, 6 }
 0xbce   :  { %v5192_v52 = vpop.eup %5191 }
 0xbfb   :  { %v1001_v0 = vpop.f32.mrf.mxu2 }
 0xbfc   :  { %v1002_v24 = vadd.f32 %v6012_v2, %v1001_v0 }
 0xbfe   :  { %v1005_v9 = vrot.slane %v1002_v24, 6 }
 0xc00   :  { %1027 = vrot.lane.b32.xlu0 %v1005_v9, %s5672_s21  ;;  %v1007_v25 = vadd.f32 %v1005_v9, %v5842_v38 }
 0xc02   :  { %v1008_v16 = vsub.f32 0.0, %v1007_v25 }
 0xc04   :  { %v1009_v19 = vmul.f32 1.442695, %v1008_v16 }
 0xc06   :  { %5193 = vpow2.f32 %v1009_v19 }
 0xc07   :  { %5195 = vpow2.f32 %v1102_v31 }
 0xc08   :  { %1132 = vrot.lane.b32.xlu0 %v5192_v52, %s5671_s2 }
 0xc0c   :  { %v5194_v32 = vpop.eup %5193 }
 0xc0d   :  { %v1011_v33 = vadd.f32 1.0, %v5194_v32  ;;  %v5196_v35 = vpop.eup %5195 }
 0xc0e   :  { %v1104_v36 = vadd.f32 1.0, %v5196_v35 }
 0xc0f   :  { %5197 = vrcp.f32 %v1011_v33  ;;  %v1023_v49 = vand.u32 2147483648, %v1011_v33  ;;  %vm1017_vm10 = vweird.f32 %v1011_v33  ;;  %v1021_v50 = vand.u32 2147483647, %v1011_v33 }
 0xc10   :  { %5199 = vrcp.f32 %v1104_v36  ;;  %v1116_v58 = vand.u32 2147483648, %v1104_v36  ;;  %vm1110_vm0 = vweird.f32 %v1104_v36  ;;  %v1114_v59 = vand.u32 2147483647, %v1104_v36 }
 0xc11   :  { %v1024_v55 = vor.u32 1.1754944e-38, %v1023_v49  ;;  %vm1022_vm15 = vcmp.eq.f32.partialorder %v1021_v50, 8.507059e+37 }
 0xc12   :  { %v1117_v5 = vor.u32 1.1754944e-38, %v1116_v58  ;;  %vm1115_vm2 = vcmp.eq.f32.partialorder %v1114_v59, 8.507059e+37 }
 0xc15   :  { %v5198_v37 = vpop.eup %5197 }
 0xc16   :  { %v1013_v39 = vmul.f32 %v5198_v37, %v1011_v33  ;;  %v5200_v40 = vpop.eup %5199  ;;  %vm1018_vm9 = vweird.f32 %v5198_v37 }
 0xc17   :  { %v1106_v43 = vmul.f32 %v5200_v40, %v1104_v36  ;;  %vm1019_vm11 = vmor %vm1017_vm10, %vm1018_vm9  ;;  %vm1111_vm12 = vweird.f32 %v5200_v40 }
 0xc18   :  { %v1014_v42 = vsub.f32 1.0, %v1013_v39  ;;  %vm1112_vm1 = vmor %vm1110_vm0, %vm1111_vm12 }
 0xc19   :  { %v1107_v34 = vsub.f32 1.0, %v1106_v43 }
 0xc1a   :  { %v1015_v44 = vmul.f32 %v5198_v37, %v1014_v42 }
 0xc1b   :  { %v1108_v47 = vmul.f32 %v5200_v40, %v1107_v34 }
 0xc1c   :  { %v1016_v45 = vadd.f32 %v5198_v37, %v1015_v44 }
 0xc1d   :  { %v1109_v54 = vadd.f32 %v5200_v40, %v1108_v47 }
 0xc1e   :  { %v1020_v53 = vsel %vm1019_vm11, %v5198_v37, %v1016_v45 }
 0xc1f   :  { %v1025_v11 = vsel %vm1022_vm15, %v1024_v55, %v1020_v53  ;;  %v1113_v3 = vsel %vm1112_vm1, %v5200_v40, %v1109_v54 }
 0xc20   :  { %v1118_v61 = vsel %vm1115_vm2, %v1117_v5, %v1113_v3  ;;  %v1037_v9 = vsub.f32 1.0, %v1025_v11  ;;  %v1045_v25 = vmul.f32 %v1043_v4, %v1025_v11 }
 0xc21   :  { %v1130_v57 = vsub.f32 1.0, %v1118_v61  ;;  %v1138_v23 = vmul.f32 %v1136_v62, %v1118_v61 }
 0xc72   :  { %v1028_v60 = vpop.permute.xlu0 %1027 }
 0xc73   :  { %v1030_v1 = vmul.f32 %v1028_v60, %v1025_v11 }
 0xc75   :  { %1032 = vrot.lane.b32.xlu2 %v1030_v1, %s5672_s21 }
 0xc7a   :  { %v1133_v30 = vpop.permute.xlu0 %1132 }
 0xc7b   :  { %v1135_v63 = vmul.f32 %v1133_v30, %v1130_v57 }
 0xc7d   :  { %v6022_v6 = vadd.f32 %v1138_v23, %v1135_v63 }
 0xc7f   :  { %v1218_v7 = vrot.slane %v6022_v6, 4 }
 0xc81   :  { %5030 = vmatmul.msk.f32.vlgmr.msrb.gmra.mxu1 %vm160_vm13, %v1218_v7 }
 0xccf   :  { %v1033_v8 = vpop.permute.xlu2 %1032 }
 0xcd0   :  { %v1035_v12 = vadd.f32 %v1033_v8, %v5842_v38 }
 0xcd2   :  { %5201 = vtanh.f32 %v1035_v12 }
 0xcd8   :  { %v5202_v14 = vpop.eup %5201 }
 0xcd9   :  { %1039 = vrot.lane.b32.xlu1 %v5202_v14, %s5671_s2 }
 0xcfe   :  { %v1238_v22 = vpop.f32.mrf.mxu1 }
 0xcff   :  { %v1239_v0 = vadd.f32 %v5992_v46, %v1238_v22 }
 0xd01   :  { %v1242_v24 = vrot.slane %v1239_v0, 6 }
 0xd03   :  { %1243 = vrot.lane.b32.xlu0 %v1242_v24, %s5671_s2  ;;  %1286 = vrot.lane.b32.xlu1 %v1242_v24, %s5670_s18 }
 0xd4b   :  { %v1040_v52 = vpop.permute.xlu1 %1039 }
 0xd4c   :  { %v1042_v15 = vmul.f32 %v1040_v52, %v1037_v9 }
 0xd4e   :  { %v6032_v16 = vadd.f32 %v1045_v25, %v1042_v15 }
 0xd50   :  { %v1145_v26 = vrot.slane %v6032_v16, 2 }
 0xd52   :  { %1146 = vrot.lane.b32.xlu2 %v1145_v26, %s5671_s2 }
 0xd75   :  { %v1244_v19 = vpop.permute.xlu0 %1243  ;;  %v1287_v49 = vpop.permute.xlu1 %1286 }
 0xd76   :  { %v1246_v31 = vadd.f32 %v1244_v19, %v5839_v28  ;;  %v1266_v3 = vadd.f32 %v1244_v19, %v5821_v18 }
 0xd78   :  { %v1247_v32 = vsub.f32 0.0, %v1246_v31  ;;  %v1267_v61 = vsub.f32 0.0, %v1266_v3 }
 0xd7a   :  { %v1248_v33 = vmul.f32 1.442695, %v1247_v32  ;;  %v1268_v62 = vmul.f32 1.442695, %v1267_v61 }
 0xd7c   :  { %5203 = vpow2.f32 %v1248_v33 }
 0xd82   :  { %v5204_v35 = vpop.eup %5203 }
 0xd83   :  { %v1250_v36 = vadd.f32 1.0, %v5204_v35 }
 0xd85   :  { %5205 = vrcp.f32 %v1250_v36  ;;  %v1262_v40 = vand.u32 2147483648, %v1250_v36  ;;  %v1260_v43 = vand.u32 2147483647, %v1250_v36  ;;  %vm1256_vm4 = vweird.f32 %v1250_v36 }
 0xd87   :  { %v1263_v34 = vor.u32 1.1754944e-38, %v1262_v40  ;;  %vm1261_vm6 = vcmp.eq.f32.partialorder %v1260_v43, 8.507059e+37  ;;  %v1302_v43 = vrot.slane %v6022_v6, 2 }
 0xd8b   :  { %v5206_v56 = vpop.eup %5205 }
 0xd8c   :  { %v1252_v37 = vmul.f32 %v5206_v56, %v1250_v36  ;;  %vm1257_vm3 = vweird.f32 %v5206_v56 }
 0xd8d   :  { %vm1258_vm5 = vmor %vm1256_vm4, %vm1257_vm3 }
 0xd8e   :  { %v1253_v39 = vsub.f32 1.0, %v1252_v37 }
 0xd90   :  { %v1254_v42 = vmul.f32 %v5206_v56, %v1253_v39 }
 0xd92   :  { %v1255_v44 = vadd.f32 %v5206_v56, %v1254_v42 }
 0xd94   :  { %v1259_v45 = vsel %vm1258_vm5, %v5206_v56, %v1255_v44  ;;  %vm726_vm5 = vcmask 261126  }
 0xd95   :  { %v1264_v47 = vsel %vm1261_vm6, %v1263_v34, %v1259_v45 }
 0xd96   :  { %v1289_v50 = vmul.f32 %v1287_v49, %v1264_v47 }
 0xd98   :  { %1291 = vrot.lane.b32.xlu0 %v1289_v50, %s5672_s21 }
 0xdac   :  { %v1147_v53 = vpop.permute.xlu2 %1146 }
 0xdad   :  { %5029 = vmatmul.msk.f32.vlgmr.msrb.gmra.mxu0 %vm160_vm13, %v1147_v53 }
 0xe0a   :  { %v1292_v54 = vpop.permute.xlu0 %1291 }
 0xe0b   :  { %v1294_v59 = vadd.f32 %v1292_v54, %v5821_v18 }
 0xe0d   :  { %5207 = vtanh.f32 %v1294_v59 }
 0xe13   :  { %v5208_v11 = vpop.eup %5207 }
 0xe2a   :  { %v1167_v55 = vpop.f32.mrf.mxu0 }
 0xe2b   :  { %v1168_v58 = vadd.f32 %v6012_v2, %v1167_v55 }
 0xe2d   :  { %v1171_v60 = vrot.slane %v1168_v58, 4 }
 0xe2f   :  { %1193 = vrot.lane.b32.xlu2 %v1171_v60, %s5672_s21  ;;  %v1173_v1 = vadd.f32 %v1171_v60, %v5842_v38 }
 0xe31   :  { %v1174_v5 = vsub.f32 0.0, %v1173_v1  ;;  %v1209_v1 = vrot.slane %v6032_v16, 6 }
 0xe33   :  { %v1175_v57 = vmul.f32 1.442695, %v1174_v5 }
 0xe35   :  { %5209 = vpow2.f32 %v1175_v57 }
 0xe36   :  { %5211 = vpow2.f32 %v1268_v62 }
 0xe37   :  { %1298 = vrot.lane.b32.xlu2 %v5208_v11, %s5671_s2 }
 0xe3b   :  { %v5210_v30 = vpop.eup %5209 }
 0xe3c   :  { %v1177_v23 = vadd.f32 1.0, %v5210_v30  ;;  %v5212_v63 = vpop.eup %5211 }
 0xe3d   :  { %v1270_v7 = vadd.f32 1.0, %v5212_v63 }
 0xe3e   :  { %5213 = vrcp.f32 %v1177_v23  ;;  %v1189_v25 = vand.u32 2147483648, %v1177_v23  ;;  %vm1183_vm8 = vweird.f32 %v1177_v23  ;;  %v1187_v15 = vand.u32 2147483647, %v1177_v23 }
 0xe3f   :  { %5215 = vrcp.f32 %v1270_v7  ;;  %v1282_v32 = vand.u32 2147483648, %v1270_v7  ;;  %vm1276_vm12 = vweird.f32 %v1270_v7  ;;  %v1280_v33 = vand.u32 2147483647, %v1270_v7 }
 0xe40   :  { %v1190_v31 = vor.u32 1.1754944e-38, %v1189_v25  ;;  %vm1188_vm11 = vcmp.eq.f32.partialorder %v1187_v15, 8.507059e+37 }
 0xe41   :  { %v1283_v39 = vor.u32 1.1754944e-38, %v1282_v32  ;;  %vm1281_vm0 = vcmp.eq.f32.partialorder %v1280_v33, 8.507059e+37 }
 0xe44   :  { %v5214_v8 = vpop.eup %5213 }
 0xe45   :  { %v1179_v12 = vmul.f32 %v5214_v8, %v1177_v23  ;;  %v5216_v14 = vpop.eup %5215  ;;  %vm1184_vm7 = vweird.f32 %v5214_v8 }
 0xe46   :  { %v1272_v0 = vmul.f32 %v5216_v14, %v1270_v7  ;;  %vm1185_vm9 = vmor %vm1183_vm8, %vm1184_vm7  ;;  %vm1277_vm10 = vweird.f32 %v5216_v14 }
 0xe47   :  { %v1180_v22 = vsub.f32 1.0, %v1179_v12  ;;  %vm1278_vm15 = vmor %vm1276_vm12, %vm1277_vm10 }
 0xe48   :  { %v1273_v4 = vsub.f32 1.0, %v1272_v0 }
 0xe49   :  { %v1181_v24 = vmul.f32 %v5214_v8, %v1180_v22 }
 0xe4a   :  { %v1274_v52 = vmul.f32 %v5216_v14, %v1273_v4 }
 0xe4b   :  { %v1182_v9 = vadd.f32 %v5214_v8, %v1181_v24 }
 0xe4c   :  { %v1275_v19 = vadd.f32 %v5216_v14, %v1274_v52 }
 0xe4d   :  { %v1186_v26 = vsel %vm1185_vm9, %v5214_v8, %v1182_v9 }
 0xe4e   :  { %v1191_v36 = vsel %vm1188_vm11, %v1190_v31, %v1186_v26  ;;  %v1279_v37 = vsel %vm1278_vm15, %v5216_v14, %v1275_v19  ;;  %vm558_vm15 = vcmask 259076  }
 0xe4f   :  { %v1284_v40 = vsel %vm1281_vm0, %v1283_v39, %v1279_v37  ;;  %v1203_v11 = vsub.f32 1.0, %v1191_v36  ;;  %v1211_v61 = vmul.f32 %v1209_v1, %v1191_v36 }
 0xe50   :  { %v1296_v42 = vsub.f32 1.0, %v1284_v40  ;;  %v1304_v34 = vmul.f32 %v1302_v43, %v1284_v40 }
 0xe89   :  { %v1194_v35 = vpop.permute.xlu2 %1193 }
 0xe8a   :  { %v1196_v56 = vmul.f32 %v1194_v35, %v1191_v36 }
 0xe8c   :  { %1198 = vrot.lane.b32.xlu1 %v1196_v56, %s5672_s21 }
 0xe91   :  { %v1299_v44 = vpop.permute.xlu2 %1298 }
 0xe92   :  { %v1301_v45 = vmul.f32 %v1299_v44, %v1296_v42 }
 0xe94   :  { %v6047_v47 = vadd.f32 %v1304_v34, %v1301_v45 }
 0xe96   :  { %v1384_v49 = vrot.slane %v6047_v47, 2 }
 0xe98   :  { %5032 = vmatmul.msk.f32.vlgmr.msra.gmra.mxu3 %vm160_vm13, %v1384_v49 }
 0xefe   :  { %v1199_v50 = vpop.permute.xlu1 %1198 }
 0xeff   :  { %v1201_v53 = vadd.f32 %v1199_v50, %v5842_v38 }
 0xf01   :  { %5217 = vtanh.f32 %v1201_v53 }
 0xf07   :  { %v5218_v54 = vpop.eup %5217 }
 0xf08   :  { %1205 = vrot.lane.b32.xlu0 %v5218_v54, %s5671_s2 }
 0xf1b   :  { %v1404_v55 = vpop.f32.mrf.mxu3 }
 0xf1c   :  { %v1405_v58 = vadd.f32 %v5992_v46, %v1404_v55 }
 0xf1e   :  { %1408 = vrot.lane.b32.xlu2 %v1405_v58, %s5671_s2  ;;  %1451 = vrot.lane.b32.xlu0 %v1405_v58, %s5670_s18 }
 0xf78   :  { %v1409_v59 = vpop.permute.xlu2 %1408 }
 0xf79   :  { %v1411_v60 = vadd.f32 %v1409_v59, %v5839_v28  ;;  %v1431_v37 = vadd.f32 %v1409_v59, %v5821_v18 }
 0xf7a   :  { %v1206_v3 = vpop.permute.xlu0 %1205 }
 0xf7b   :  { %v1412_v5 = vsub.f32 0.0, %v1411_v60  ;;  %v1208_v57 = vmul.f32 %v1206_v3, %v1203_v11  ;;  %v1432_v40 = vsub.f32 0.0, %v1431_v37  ;;  %v1484_v37 = vld [vmem:[#allocation6 + $0x38] sm:$0xff] }
 0xf7d   :  { %v1413_v62 = vmul.f32 1.442695, %v1412_v5  ;;  %v6060_v30 = vadd.f32 %v1211_v61, %v1208_v57 }
 0xf7f   :  { %5219 = vpow2.f32 %v1413_v62  ;;  %v1311_v46 = vrot.slane %v6060_v30, 4 }
 0xf81   :  { %1312 = vrot.lane.b32.xlu1 %v1311_v46, %s5671_s2 }
 0xf85   :  { %v5220_v23 = vpop.eup %5219 }
 0xf86   :  { %v1415_v63 = vadd.f32 1.0, %v5220_v23 }
 0xf88   :  { %5221 = vrcp.f32 %v1415_v63  ;;  %v1427_v12 = vand.u32 2147483648, %v1415_v63  ;;  %v1425_v22 = vand.u32 2147483647, %v1415_v63  ;;  %vm1421_vm2 = vweird.f32 %v1415_v63 }
 0xf8a   :  { %v1428_v24 = vor.u32 1.1754944e-38, %v1427_v12  ;;  %vm1426_vm4 = vcmp.eq.f32.partialorder %v1425_v22, 8.507059e+37 }
 0xf8e   :  { %v5222_v7 = vpop.eup %5221 }
 0xf8f   :  { %v1417_v28 = vmul.f32 %v5222_v7, %v1415_v63  ;;  %vm1422_vm1 = vweird.f32 %v5222_v7 }
 0xf90   :  { %vm1423_vm3 = vmor %vm1421_vm2, %vm1422_vm1  ;;  %v1452_v52 = vpop.permute.xlu0 %1451  ;;  %vm484_vm1 = vcmask 521476   ;;  %vm319_vm2 = vcmask 523526  }
 0xf91   :  { %v1418_v8 = vsub.f32 1.0, %v1417_v28 }
 0xf93   :  { %v1419_v14 = vmul.f32 %v5222_v7, %v1418_v8 }
 0xf95   :  { %v1420_v0 = vadd.f32 %v5222_v7, %v1419_v14 }
 0xf97   :  { %v1424_v4 = vsel %vm1423_vm3, %v5222_v7, %v1420_v0  ;;  %vm818_vm3 = vcmask 517376  }
 0xf98   :  { %v1429_v9 = vsel %vm1426_vm4, %v1428_v24, %v1424_v4  ;;  %vm390_vm4 = vcmask 257026   ;;  %v6105_v4 = vld [vmem:[#allocation8 + $0x18] sm:$0xff] }
 0xf99   :  { %v1454_v25 = vmul.f32 %v1452_v52, %v1429_v9  ;;  %v6107_v9 = vld [vmem:[#allocation8 + $0x10] sm:$0xff]  ;;  %1579 = vmatpush.msrb.mxu2 %v6105_v4  ;;  %v6111_v52 = vld [vmem:[#allocation8 + $0x38] sm:$0xff] }
 0xf9a   :  { %1646 = vmatpush.msrb.mxu3 %v6111_v52 }
 0xf9b   :  { %1456 = vrot.lane.b32.xlu2 %v1454_v25, %s5672_s21  ;;  %v6116_v25 = vld [vmem:[#allocation8 + $0x8] sm:$0xff]  ;;  %1580 = vmatpush.msrb.mxu2 %v6107_v9 }
 0xf9d   :  { %1581 = vmatpush.msrb.mxu2 %v6116_v25 }
 0xfa3   :  { %723 = vrot.lane.b32.xlu2 %v5966_v29, %s5671_s2 }
 0xff3   :  { %v1313_v15 = vpop.permute.xlu1 %1312 }
 0xff4   :  { %5031 = vmatmul.msk.f32.vlgmr.msra.gmra.mxu2 %vm160_vm13, %v1313_v15 }
 0xff5   :  { %v1457_v26 = vpop.permute.xlu2 %1456 }
 0xff6   :  { %v1459_v33 = vadd.f32 %v1457_v26, %v5821_v18 }
 0xff8   :  { %5223 = vtanh.f32 %v1459_v33  ;;  %v1490_v33 = vld [vmem:[#allocation6 + $0x68] sm:$0xff] }
 0xffd   :  { %v724_v19 = vpop.permute.xlu2 %723 }
 0xffe   :  { %727 = vst.msk [vmem:[#allocation2] sm:$0xc0] %vm726_vm5, %v724_v19  ;;  %v5224_v36 = vpop.eup %5223  ;;  %v1491_v19 = vld [vmem:[#allocation6 + $0x70] sm:$0xff] }
 0xfff   :  { %1514 = vmatpush.msra.mxu0 %v1491_v19 }
0x1077   :  { %v1333_v31 = vpop.f32.mrf.mxu2 }
0x1078   :  { %v1334_v32 = vadd.f32 %v6012_v2, %v1333_v31  ;;  %v1492_v31 = vld [vmem:[#allocation6 + $0x78] sm:$0xff] }
0x1079   :  { %1537 = vmatpush.msra.mxu1 %v1492_v31 }
0x107a   :  { %v1337_v35 = vrot.slane %v1334_v32, 2  ;;  %v6143_v32 = vld [vmem:[#allocation8 + $0x28] sm:$0xff] }
0x107b   :  { %1538 = vmatpush.msra.mxu1 %v1490_v33 }
0x107c   :  { %1359 = vrot.lane.b32.xlu1 %v1337_v35, %s5672_s21  ;;  %v1339_v29 = vadd.f32 %v1337_v35, %v5842_v38  ;;  %v6145_v35 = vld [vmem:[#allocation8 + $0x20] sm:$0xff] }
0x107e   :  { %v1340_v2 = vsub.f32 0.0, %v1339_v29  ;;  %v1488_v29 = vld [vmem:[#allocation6 + $0x58] sm:$0xff] }
0x107f   :  { %1539 = vmatpush.msra.mxu1 %v1488_v29 }
0x1080   :  { %v1341_v56 = vmul.f32 1.442695, %v1340_v2  ;;  %v1485_v2 = vld [vmem:[#allocation6 + $0x40] sm:$0xff] }
0x1082   :  { %5225 = vpow2.f32 %v1341_v56  ;;  %v1483_v56 = vld [vmem:[#allocation6 + $0x30] sm:$0xff] }
0x1084   :  { %1463 = vrot.lane.b32.xlu1 %v5224_v36, %s5671_s2  ;;  %v1487_v36 = vld [vmem:[#allocation6 + $0x50] sm:$0xff] }
0x1088   :  { %v5226_v39 = vpop.eup %5225 }
0x1089   :  { %v1343_v42 = vadd.f32 1.0, %v5226_v39  ;;  %v1481_v39 = vld [vmem:[#allocation6 + $0x20] sm:$0xff] }
0x108b   :  { %5227 = vrcp.f32 %v1343_v42  ;;  %v1355_v53 = vand.u32 2147483648, %v1343_v42  ;;  %vm1349_vm7 = vweird.f32 %v1343_v42  ;;  %v1353_v54 = vand.u32 2147483647, %v1343_v42 }
0x108c   :  { %555 = vrot.lane.b32.xlu1 %v5936_v10, %s5671_s2  ;;  %v1433_v10 = vmul.f32 1.442695, %v1432_v40  ;;  %v1482_v40 = vld [vmem:[#allocation6 + $0x28] sm:$0xff] }
0x108d   :  { %v1356_v58 = vor.u32 1.1754944e-38, %v1355_v53  ;;  %vm1354_vm9 = vcmp.eq.f32.partialorder %v1353_v54, 8.507059e+37 }
0x108e   :  { %5229 = vpow2.f32 %v1433_v10  ;;  %v1480_v10 = vld [vmem:[#allocation6 + $0x18] sm:$0xff] }
0x1094   :  { %1141 = vrot.lane.b32.xlu1 %v6022_v6, %s5670_s18  ;;  %v5228_v6 = vpop.eup %5227 }
0x1095   :  { %v5230_v43 = vpop.eup %5229  ;;  %v1345_v44 = vmul.f32 %v5228_v6, %v1343_v42  ;;  %vm1350_vm6 = vweird.f32 %v5228_v6  ;;  %v1479_v42 = vld [vmem:[#allocation6 + $0x10] sm:$0xff] }
0x1096   :  { %vm1351_vm8 = vmor %vm1349_vm7, %vm1350_vm6  ;;  %vm652_vm6 = vcmask 519426   ;;  %vm7037_vm7 = vcmask 523264  }
0x1097   :  { %v1346_v34 = vsub.f32 1.0, %v1345_v44 }
0x109c   :  { %316 = vrot.lane.b32.xlu1 %v5860_v48, %s5670_s18  ;;  %v1435_v48 = vadd.f32 1.0, %v5230_v43  ;;  %v1478_v43 = vld [vmem:[#allocation6 + $0x8] sm:$0xff] }
0x109e   :  { %5231 = vrcp.f32 %v1435_v48  ;;  %v1447_v57 = vand.u32 2147483648, %v1435_v48  ;;  %vm1441_vm11 = vweird.f32 %v1435_v48  ;;  %v1445_v62 = vand.u32 2147483647, %v1435_v48 }
0x10a0   :  { %v1448_v23 = vor.u32 1.1754944e-38, %v1447_v57  ;;  %vm1446_vm0 = vcmp.eq.f32.partialorder %v1445_v62, 8.507059e+37  ;;  %v6205_v62 = vld [vmem:[%s7033_s6] sm:$0x3] }
0x10a4   :  { %815 = vrot.lane.b32.xlu1 %v5956_v20, %s5670_s18  ;;  %v1347_v20 = vmul.f32 %v5228_v6, %v1346_v34  ;;  %v5232_v50 = vpop.eup %5231 }
0x10a5   :  { %v1437_v55 = vmul.f32 %v5232_v50, %v1435_v48  ;;  %vm1442_vm10 = vweird.f32 %v5232_v50  ;;  %v1375_v48 = vrot.slane %v6060_v30, 6 }
0x10a6   :  { %v1348_v45 = vadd.f32 %v5228_v6, %v1347_v20  ;;  %vm1443_vm12 = vmor %vm1441_vm11, %vm1442_vm10 }
0x10a7   :  { %v1438_v1 = vsub.f32 1.0, %v1437_v55 }
0x10a8   :  { %v1352_v18 = vsel %vm1351_vm8, %v5228_v6, %v1348_v45  ;;  %v1477_v6 = vld [vmem:[#allocation6] sm:$0xff] }
0x10a9   :  { %v6083_v60 = vsel %vm1354_vm9, %v1356_v58, %v1352_v18  ;;  %v1439_v3 = vmul.f32 %v5232_v50, %v1438_v1  ;;  %v6187_v58 = vld [vmem:[%s7035_s8] ss:$0 sm:$0xff] }
0x10aa   :  { %v1369_v44 = vsub.f32 1.0, %v6083_v60  ;;  %v1377_v20 = vmul.f32 %v1375_v48, %v6083_v60 }
0x10ab   :  { %v1440_v61 = vadd.f32 %v5232_v50, %v1439_v3 }
0x10ad   :  { %v1444_v46 = vsel %vm1443_vm12, %v5232_v50, %v1440_v61 }
0x10ae   :  { %v1449_v63 = vsel %vm1446_vm0, %v1448_v23, %v1444_v46  ;;  %v1495_v46 = vperm.slane %v6205_v62, 0 }
0x10af   :  { %v1461_v28 = vsub.f32 1.0, %v1449_v63  ;;  %v1468_v12 = vmul.f32 %v1449_v63, %v1384_v49 }
0x10ee   :  { %v1360_v59 = vpop.permute.xlu1 %1359 }
0x10ef   :  { %v1362_v11 = vmul.f32 %v1360_v59, %v6083_v60 }
0x10f1   :  { %1364 = vrot.lane.b32.xlu0 %v1362_v11, %s5672_s21  ;;  %v6194_v11 = vld [vmem:[%s7035_s8 + $0x1] ss:$0 sm:$0xff] }
0x10f6   :  { %v1464_v5 = vpop.permute.xlu1 %1463 }
0x10f7   :  { %v1466_v8 = vmul.f32 %v1464_v5, %v1461_v28 }
0x10f9   :  { %387 = vrot.lane.b32.xlu0 %v5898_v27, %s5671_s2  ;;  %v1469_v27 = vadd.f32 %v1468_v12, %v1466_v8 }
0x10fe   :  { %v556_v7 = vpop.permute.xlu1 %555 }
0x10ff   :  { %559 = vst.msk [vmem:[#allocation2] sm:$0x30] %vm558_vm15, %v556_v7 }
0x1101   :  { %978 = vrot.lane.b32.xlu0 %v5983_v41, %s5670_s18 }
0x1106   :  { %v1142_v14 = vpop.permute.xlu1 %1141 }
0x1107   :  { %1144 = vst.msk [vmem:[#allocation2] sm:$0x30] %vm484_vm1, %v1142_v14 }
0x1109   :  { %1471 = vrot.lane.b32.xlu0 %v1469_v27, %s5670_s18 }
0x110e   :  { %v317_v22 = vpop.permute.xlu1 %316 }
0x110f   :  { %320 = vst.msk [vmem:[#allocation2 + $0x8] sm:$0xc0] %vm319_vm2, %v317_v22 }
0x1111   :  { %649 = vrot.lane.b32.xlu0 %v5920_v51, %s5670_s18 }
0x1116   :  { %v816_v41 = vpop.permute.xlu1 %815 }
0x1117   :  { %819 = vst.msk [vmem:[#allocation2 + $0x8] sm:$0x3] %vm818_vm3, %v816_v41 }
0x1118   :  { %889 = vst.msk [vmem:[#allocation2 + $0x8] sm:$0x3] %vm7038_vm14, %v6005_v17  ;;  %v6113_v17 = vld [vmem:[#allocation8 + $0x30] sm:$0xff] }
0x1119   :  { %1214 = vrot.lane.b32.xlu0 %v6060_v30, %s5671_s2  ;;  %1647 = vmatpush.msrb.mxu3 %v6113_v17 }
0x111b   :  { %1648 = vmatpush.msrb.mxu3 %v6143_v32 }
0x111d   :  { %1649 = vmatpush.msrb.mxu3 %v6145_v35 }
0x111e   :  { %1650 = vmatmul.f32.vlgmr.msrb.gmra.mxu3 %v5669_v13 }
0x111f   :  { %1807 = vmatpush.msra.mxu3 %v6111_v52 }
0x1121   :  { %1808 = vmatpush.msra.mxu3 %v6113_v17 }
0x1123   :  { %1809 = vmatpush.msra.mxu3 %v6143_v32 }
0x1125   :  { %1810 = vmatpush.msra.mxu3 %v6145_v35 }
0x1127   :  { %1973 = vmatpush.msrb.mxu3 %v6111_v52 }
0x1129   :  { %1974 = vmatpush.msrb.mxu3 %v6113_v17 }
0x112b   :  { %1975 = vmatpush.msrb.mxu3 %v6143_v32 }
0x112d   :  { %1976 = vmatpush.msrb.mxu3 %v6145_v35 }
0x1163   :  { %v1365_v49 = vpop.permute.xlu0 %1364 }
0x1164   :  { %v1367_v0 = vadd.f32 %v1365_v49, %v5842_v38  ;;  %v6120_v38 = vld [vmem:[#allocation8] sm:$0xff] }
0x1165   :  { %1582 = vmatpush.msrb.mxu2 %v6120_v38 }
0x1166   :  { %5233 = vtanh.f32 %v1367_v0  ;;  %1583 = vmatmul.f32.vlgmr.msrb.gmra.mxu2 %v5669_v13 }
0x1167   :  { %1736 = vmatpush.msra.mxu2 %v6105_v4 }
0x1169   :  { %1737 = vmatpush.msra.mxu2 %v6107_v9 }
0x116b   :  { %v388_v24 = vpop.permute.xlu0 %387  ;;  %1738 = vmatpush.msra.mxu2 %v6116_v25 }
0x116c   :  { %v5234_v51 = vpop.eup %5233  ;;  %391 = vst.msk [vmem:[#allocation2] sm:$0xc] %vm390_vm4, %v388_v24 }
0x116d   :  { %1371 = vrot.lane.b32.xlu2 %v5234_v51, %s5671_s2  ;;  %1739 = vmatpush.msra.mxu2 %v6120_v38 }
0x116f   :  { %1902 = vmatpush.msrb.mxu2 %v6105_v4 }
0x1171   :  { %1903 = vmatpush.msrb.mxu2 %v6107_v9 }
0x1173   :  { %v979_v15 = vpop.permute.xlu0 %978  ;;  %1904 = vmatpush.msrb.mxu2 %v6116_v25 }
0x1174   :  { %981 = vst.msk [vmem:[#allocation2] sm:$0xc0] %vm319_vm2, %v979_v15 }
0x1175   :  { %1307 = vrot.lane.b32.xlu2 %v6047_v47, %s5670_s18  ;;  %1905 = vmatpush.msrb.mxu2 %v6120_v38 }
0x117b   :  { %v1472_v26 = vpop.permute.xlu0 %1471 }
0x117c   :  { %1474 = vst.msk [vmem:[#allocation2] sm:$0x3] %vm818_vm3, %v1472_v26 }
0x117d   :  { %481 = vrot.lane.b32.xlu2 %v5889_v21, %s5670_s18  ;;  %v1489_v21 = vld [vmem:[#allocation6 + $0x60] sm:$0xff] }
0x117e   :  { %1515 = vmatpush.msra.mxu0 %v1489_v21 }
0x1180   :  { %1516 = vmatpush.msra.mxu0 %v1487_v36 }
0x1182   :  { %1517 = vmatpush.msra.mxu0 %v1485_v2 }
0x1183   :  { %v650_v47 = vpop.permute.xlu0 %649 }
0x1184   :  { %653 = vst.msk [vmem:[#allocation2 + $0x8] sm:$0xc] %vm652_vm6, %v650_v47  ;;  %1518 = vmatpush.msra.mxu0 %v1483_v56 }
0x1185   :  { %1048 = vrot.lane.b32.xlu2 %v6032_v16, %s5671_s2  ;;  %v1486_v16 = vld [vmem:[#allocation6 + $0x48] sm:$0xff] }
0x1186   :  { %1540 = vmatpush.msra.mxu1 %v1486_v16  ;;  %1519 = vmatpush.msra.mxu0 %v1481_v39 }
0x1188   :  { %1541 = vmatpush.msra.mxu1 %v1484_v37  ;;  %1520 = vmatpush.msra.mxu0 %v1479_v42 }
0x118a   :  { %1542 = vmatpush.msra.mxu1 %v1482_v40  ;;  %1521 = vmatpush.msra.mxu0 %v1477_v6 }
0x118b   :  { %v1215_v55 = vpop.permute.xlu0 %1214 }
0x118c   :  { %1543 = vmatpush.msra.mxu1 %v1480_v10  ;;  %2068 = vmatpush.msrb.mxu0 %v6105_v4 }
0x118e   :  { %1544 = vmatpush.msra.mxu1 %v1478_v43  ;;  %2069 = vmatpush.msrb.mxu0 %v6107_v9 }
0x1190   :  { %2139 = vmatpush.msrb.mxu1 %v6111_v52  ;;  %2070 = vmatpush.msrb.mxu0 %v6116_v25 }
0x1192   :  { %2140 = vmatpush.msrb.mxu1 %v6113_v17  ;;  %2071 = vmatpush.msrb.mxu0 %v6120_v38 }
0x1194   :  { %2141 = vmatpush.msrb.mxu1 %v6143_v32 }
0x1196   :  { %2142 = vmatpush.msrb.mxu1 %v6145_v35 }
0x11a1   :  { %v1651_v1 = vpop.f32.mrf.mxu3 }
0x11a2   :  { %v1652_v3 = vadd.f32 %v6194_v11, %v1651_v1 }
0x11a4   :  { %v1655_v5 = vrot.slane %v1652_v3, 2 }
0x11a6   :  { %1656 = vrot.lane.b32.xlu0 %v1655_v5, %s5671_s2 }
0x11c7   :  { %v1372_v34 = vpop.permute.xlu2 %1371 }
0x11c8   :  { %v1374_v45 = vmul.f32 %v1372_v34, %v1369_v44 }
0x11ca   :  { %v1378_v50 = vadd.f32 %v1377_v20, %v1374_v45 }
0x11cc   :  { %1380 = vrot.lane.b32.xlu1 %v1378_v50, %s5671_s2 }
0x11cf   :  { %v1308_v53 = vpop.permute.xlu2 %1307 }
0x11d0   :  { %1310 = vst.msk [vmem:[#allocation2] sm:$0xc] %vm652_vm6, %v1308_v53 }
0x11d7   :  { %v1475_v54 = vld [vmem:[#allocation2] sm:$0xff]  ;;  %v482_v18 = vpop.permute.xlu2 %481 }
0x11d8   :  { %485 = vst.msk [vmem:[#allocation2 + $0x8] sm:$0x30] %vm484_vm1, %v482_v18  ;;  %5033 = vmatmul.msk.f32.vlgmr.msra.gmra.mxu0 %vm7037_vm7, %v1475_v54  ;;  %5035 = vmatmul.msk.f32.vlgmr.msra.gmra.mxu1 %vm7037_vm7, %v1475_v54 }
0x11d9   :  { %1217 = vst.msk [vmem:[#allocation2 + $0x8] sm:$0x30] %vm558_vm15, %v1215_v55  ;;  %2462 = vmatpush.msra.mxu1 %v6111_v52  ;;  %2391 = vmatpush.msra.mxu0 %v6105_v4 }
0x11db   :  { %2463 = vmatpush.msra.mxu1 %v6113_v17  ;;  %2392 = vmatpush.msra.mxu0 %v6107_v9 }
0x11dd   :  { %2464 = vmatpush.msra.mxu1 %v6143_v32  ;;  %2393 = vmatpush.msra.mxu0 %v6116_v25 }
0x11df   :  { %v1049_v30 = vpop.permute.xlu2 %1048  ;;  %2465 = vmatpush.msra.mxu1 %v6145_v35  ;;  %2394 = vmatpush.msra.mxu0 %v6120_v38 }
0x11e0   :  { %1051 = vst.msk [vmem:[#allocation2 + $0x8] sm:$0xc] %vm390_vm4, %v1049_v30 }
0x11e9   :  { %v1584_v59 = vpop.f32.mrf.mxu2 }
0x11ea   :  { %v1585_v60 = vadd.f32 %v6187_v58, %v1584_v59  ;;  %v1496_v59 = vperm.slane %v6205_v62, 1 }
0x11ec   :  { %1608 = vrot.lane.b32.xlu2 %v1585_v60, %s5672_s21 }
0x11f4   :  { %1699 = vrot.lane.b32.xlu2 %v1655_v5, %s5670_s18 }
0x1218   :  { %v1657_v33 = vpop.permute.xlu0 %1656 }
0x123e   :  { %v1381_v61 = vpop.permute.xlu1 %1380 }
0x123f   :  { %1383 = vst.msk [vmem:[#allocation2 + $0x8] sm:$0xc0] %vm726_vm5, %v1381_v61 }
0x1246   :  { %v1476_v57 = vld [vmem:[#allocation2 + $0x8] sm:$0xff]  ;;  %v1609_v15 = vpop.permute.xlu2 %1608 }
0x1247   :  { %5034 = vmatmul.msk.f32.gmra.mxu0 %vm7037_vm7, %v1476_v57  ;;  %5036 = vmatmul.msk.f32.gmra.mxu1 %vm7037_vm7, %v1476_v57 }
0x124e   :  { %v1700_v48 = vpop.permute.xlu2 %1699 }
0x1255   :  { %v1523_v23 = vpop.f32.mrf.mxu0  ;;  %v6218_v55 = vpop.f32.mrf.mxu1 }
0x1256   :  { %v6208_v63 = vadd.f32 %v1523_v23, %v1495_v46 }
0x1258   :  { %v1587_v7 = vadd.f32 %v1585_v60, %v6208_v63 }
0x125a   :  { %v1588_v28 = vsub.f32 0.0, %v1587_v7 }
0x125c   :  { %v1589_v8 = vmul.f32 1.442695, %v1588_v28 }
0x125e   :  { %5235 = vpow2.f32 %v1589_v8 }
0x1264   :  { %v5236_v12 = vpop.eup %5235 }
0x1265   :  { %v1591_v14 = vadd.f32 1.0, %v5236_v12 }
0x1267   :  { %5237 = vrcp.f32 %v1591_v14  ;;  %v1603_v49 = vand.u32 2147483648, %v1591_v14  ;;  %v1601_v24 = vand.u32 2147483647, %v1591_v14  ;;  %vm1597_vm9 = vweird.f32 %v1591_v14 }
0x1269   :  { %v1604_v26 = vor.u32 1.1754944e-38, %v1603_v49  ;;  %vm1602_vm11 = vcmp.eq.f32.partialorder %v1601_v24, 8.507059e+37 }
0x126d   :  { %v5238_v27 = vpop.eup %5237 }
0x126e   :  { %v1593_v22 = vmul.f32 %v5238_v27, %v1591_v14  ;;  %vm1598_vm8 = vweird.f32 %v5238_v27 }
0x126f   :  { %vm1599_vm10 = vmor %vm1597_vm9, %vm1598_vm8 }
0x1270   :  { %v1594_v41 = vsub.f32 1.0, %v1593_v22 }
0x1272   :  { %v1595_v0 = vmul.f32 %v5238_v27, %v1594_v41 }
0x1274   :  { %v1596_v51 = vadd.f32 %v5238_v27, %v1595_v0 }
0x1276   :  { %v1600_v47 = vsel %vm1599_vm10, %v5238_v27, %v1596_v51 }
0x1277   :  { %v1605_v19 = vsel %vm1602_vm11, %v1604_v26, %v1600_v47 }
0x1278   :  { %v1611_v31 = vmul.f32 %v1609_v15, %v1605_v19  ;;  %v1618_v61 = vsub.f32 1.0, %v1605_v19 }
0x127a   :  { %1613 = vrot.lane.b32.xlu1 %v1611_v31, %s5672_s21 }
0x12c4   :  { %v1526_v21 = vpop.f32.mrf.mxu0  ;;  %v1549_v30 = vpop.f32.mrf.mxu1 }
0x12c5   :  { %v6212_v36 = vadd.f32 %v1526_v21, %v1495_v46  ;;  %v6223_v60 = vadd.f32 %v1549_v30, %v1496_v59  ;;  %v1624_v46 = vmul.f32 0.0, %v1605_v19 }
0x12c7   :  { %v1659_v29 = vadd.f32 %v1657_v33, %v6212_v36  ;;  %v1679_v28 = vadd.f32 %v1657_v33, %v6223_v60 }
0x12c9   :  { %v1660_v2 = vsub.f32 0.0, %v1659_v29  ;;  %v1680_v8 = vsub.f32 0.0, %v1679_v28 }
0x12cb   :  { %v1661_v16 = vmul.f32 1.442695, %v1660_v2  ;;  %v1681_v12 = vmul.f32 1.442695, %v1680_v8 }
0x12cd   :  { %5239 = vpow2.f32 %v1661_v16 }
0x12d3   :  { %v5240_v56 = vpop.eup %5239 }
0x12d4   :  { %v1663_v37 = vadd.f32 1.0, %v5240_v56 }
0x12d6   :  { %5241 = vrcp.f32 %v1663_v37  ;;  %v1675_v10 = vand.u32 2147483648, %v1663_v37  ;;  %v1673_v43 = vand.u32 2147483647, %v1663_v37  ;;  %vm1669_vm0 = vweird.f32 %v1663_v37 }
0x12d8   :  { %v1676_v34 = vor.u32 1.1754944e-38, %v1675_v10  ;;  %vm1674_vm9 = vcmp.eq.f32.partialorder %v1673_v43, 8.507059e+37 }
0x12dc   :  { %v5242_v39 = vpop.eup %5241 }
0x12dd   :  { %v1665_v40 = vmul.f32 %v5242_v39, %v1663_v37  ;;  %vm1670_vm12 = vweird.f32 %v5242_v39 }
0x12de   :  { %vm1671_vm8 = vmor %vm1669_vm0, %vm1670_vm12 }
0x12df   :  { %v1666_v42 = vsub.f32 1.0, %v1665_v40 }
0x12e1   :  { %v1667_v6 = vmul.f32 %v5242_v39, %v1666_v42 }
0x12e3   :  { %v1668_v44 = vadd.f32 %v5242_v39, %v1667_v6 }
0x12e5   :  { %v1672_v20 = vsel %vm1671_vm8, %v5242_v39, %v1668_v44 }
0x12e6   :  { %v1677_v45 = vsel %vm1674_vm9, %v1676_v34, %v1672_v20 }
0x12e7   :  { %v1702_v50 = vmul.f32 %v1700_v48, %v1677_v45 }
0x12e9   :  { %1704 = vrot.lane.b32.xlu0 %v1702_v50, %s5672_s21 }
0x12ec   :  { %v1614_v53 = vpop.permute.xlu1 %1613 }
0x12ed   :  { %v1616_v54 = vadd.f32 %v1614_v53, %v6208_v63 }
0x12ef   :  { %5243 = vtanh.f32 %v1616_v54 }
0x12f5   :  { %v5244_v18 = vpop.eup %5243 }
0x12f6   :  { %1620 = vrot.lane.b32.xlu1 %v5244_v18, %s5671_s2 }
0x135b   :  { %v1705_v1 = vpop.permute.xlu0 %1704 }
0x135c   :  { %v1707_v3 = vadd.f32 %v1705_v1, %v6223_v60 }
0x135e   :  { %5245 = vtanh.f32 %v1707_v3 }
0x135f   :  { %5247 = vpow2.f32 %v1681_v12 }
0x1364   :  { %v5246_v5 = vpop.eup %5245 }
0x1365   :  { %1711 = vrot.lane.b32.xlu2 %v5246_v5, %s5671_s2  ;;  %v5248_v14 = vpop.eup %5247 }
0x1366   :  { %v1683_v27 = vadd.f32 1.0, %v5248_v14 }
0x1368   :  { %v1621_v57 = vpop.permute.xlu1 %1620  ;;  %5249 = vrcp.f32 %v1683_v27  ;;  %v1695_v51 = vand.u32 2147483648, %v1683_v27  ;;  %vm1689_vm11 = vweird.f32 %v1683_v27  ;;  %v1693_v15 = vand.u32 2147483647, %v1683_v27 }
0x1369   :  { %v1623_v23 = vmul.f32 %v1621_v57, %v1618_v61 }
0x136a   :  { %v1696_v47 = vor.u32 1.1754944e-38, %v1695_v51  ;;  %vm1694_vm0 = vcmp.eq.f32.partialorder %v1693_v15, 8.507059e+37 }
0x136b   :  { %v6227_v7 = vadd.f32 %v1624_v46, %v1623_v23 }
0x136d   :  { %1627 = vrot.lane.b32.xlu0 %v6227_v7, %s5671_s2 }
0x136e   :  { %v5250_v22 = vpop.eup %5249 }
0x136f   :  { %v1685_v41 = vmul.f32 %v5250_v22, %v1683_v27  ;;  %vm1690_vm10 = vweird.f32 %v5250_v22 }
0x1370   :  { %vm1691_vm12 = vmor %vm1689_vm11, %vm1690_vm10 }
0x1371   :  { %v1686_v49 = vsub.f32 1.0, %v1685_v41 }
0x1373   :  { %v1687_v0 = vmul.f32 %v5250_v22, %v1686_v49 }
0x1375   :  { %v1688_v24 = vadd.f32 %v5250_v22, %v1687_v0 }
0x1377   :  { %v1692_v26 = vsel %vm1691_vm12, %v5250_v22, %v1688_v24 }
0x1378   :  { %v1697_v19 = vsel %vm1694_vm0, %v1696_v47, %v1692_v26 }
0x1379   :  { %v1709_v31 = vsub.f32 1.0, %v1697_v19  ;;  %v1715_v33 = vmul.f32 0.0, %v1697_v19 }
0x13bf   :  { %v1712_v21 = vpop.permute.xlu2 %1711 }
0x13c0   :  { %v1714_v29 = vmul.f32 %v1712_v21, %v1709_v31 }
0x13c2   :  { %v6232_v2 = vadd.f32 %v1715_v33, %v1714_v29 }
0x13c4   :  { %v1792_v16 = vrot.slane %v6232_v2, 6 }
0x13c6   :  { %5039 = vmatmul.msk.f32.vlgmr.msra.gmra.mxu3 %vm160_vm13, %v1792_v16 }
0x13c7   :  { %2299 = vmatpush.msra.mxu3 %v6111_v52 }
0x13c9   :  { %2300 = vmatpush.msra.mxu3 %v6113_v17 }
0x13cb   :  { %2301 = vmatpush.msra.mxu3 %v6143_v32 }
0x13cd   :  { %2302 = vmatpush.msra.mxu3 %v6145_v35 }
0x13df   :  { %v1628_v56 = vpop.permute.xlu0 %1627 }
0x13e0   :  { %1630 = vst.msk [vmem:[#allocation2] sm:$0x3] %vm7038_vm14, %v1628_v56  ;;  %5038 = vmatmul.msk.f32.vlgmr.msra.gmra.mxu2 %vm160_vm13, %v1628_v56 }
0x13e1   :  { %2232 = vmatpush.msra.mxu2 %v6105_v4 }
0x13e3   :  { %2233 = vmatpush.msra.mxu2 %v6107_v9 }
0x13e5   :  { %2234 = vmatpush.msra.mxu2 %v6116_v25 }
0x13e7   :  { %2235 = vmatpush.msra.mxu2 %v6120_v38 }
0x1449   :  { %v1812_v37 = vpop.f32.mrf.mxu3 }
0x144a   :  { %v1813_v39 = vadd.f32 %v6194_v11, %v1812_v37 }
0x144c   :  { %v1816_v40 = vrot.slane %v1813_v39, 4 }
0x144e   :  { %1860 = vrot.lane.b32.xlu0 %v1816_v40, %s5670_s18  ;;  %1817 = vrot.lane.b32.xlu2 %v1816_v40, %s5671_s2 }
0x1463   :  { %v1741_v42 = vpop.f32.mrf.mxu2 }
0x1464   :  { %v1742_v10 = vadd.f32 %v6187_v58, %v1741_v42 }
0x1466   :  { %v1745_v6 = vrot.slane %v1742_v10, 6 }
0x1468   :  { %1767 = vrot.lane.b32.xlu1 %v1745_v6, %s5672_s21  ;;  %v1747_v43 = vadd.f32 %v1745_v6, %v6208_v63 }
0x146a   :  { %v1748_v48 = vsub.f32 0.0, %v1747_v43 }
0x146c   :  { %v1749_v45 = vmul.f32 1.442695, %v1748_v48 }
0x14a8   :  { %v1818_v44 = vpop.permute.xlu2 %1817 }
0x14a9   :  { %v1820_v34 = vadd.f32 %v1818_v44, %v6212_v36  ;;  %v1840_v40 = vadd.f32 %v1818_v44, %v6223_v60 }
0x14ab   :  { %v1821_v20 = vsub.f32 0.0, %v1820_v34  ;;  %v1841_v42 = vsub.f32 0.0, %v1840_v40 }
0x14ad   :  { %v1822_v50 = vmul.f32 1.442695, %v1821_v20  ;;  %v1842_v10 = vmul.f32 1.442695, %v1841_v42 }
0x14af   :  { %5251 = vpow2.f32 %v1822_v50 }
0x14b0   :  { %5253 = vpow2.f32 %v1749_v45 }
0x14b5   :  { %v5252_v53 = vpop.eup %5251 }
0x14b6   :  { %v1824_v54 = vadd.f32 1.0, %v5252_v53  ;;  %v5254_v18 = vpop.eup %5253 }
0x14b7   :  { %v1751_v30 = vadd.f32 1.0, %v5254_v18 }
0x14b8   :  { %5255 = vrcp.f32 %v1824_v54  ;;  %v1836_v61 = vand.u32 2147483648, %v1824_v54  ;;  %v1834_v46 = vand.u32 2147483647, %v1824_v54  ;;  %vm1830_vm9 = vweird.f32 %v1824_v54 }
0x14b9   :  { %5257 = vrcp.f32 %v1751_v30  ;;  %v1763_v51 = vand.u32 2147483648, %v1751_v30  ;;  %vm1757_vm0 = vweird.f32 %v1751_v30  ;;  %v1761_v15 = vand.u32 2147483647, %v1751_v30 }
0x14ba   :  { %v1837_v8 = vor.u32 1.1754944e-38, %v1836_v61  ;;  %vm1835_vm11 = vcmp.eq.f32.partialorder %v1834_v46, 8.507059e+37 }
0x14bb   :  { %v1764_v47 = vor.u32 1.1754944e-38, %v1763_v51 }
0x14be   :  { %v5256_v1 = vpop.eup %5255 }
0x14bf   :  { %v1826_v3 = vmul.f32 %v5256_v1, %v1824_v54  ;;  %vm1831_vm8 = vweird.f32 %v5256_v1  ;;  %v5258_v23 = vpop.eup %5257 }
0x14c0   :  { %vm1832_vm10 = vmor %vm1830_vm9, %vm1831_vm8  ;;  %v1753_v14 = vmul.f32 %v5258_v23, %v1751_v30  ;;  %v1861_v22 = vpop.permute.xlu0 %1860  ;;  %vm1758_vm12 = vweird.f32 %v5258_v23  ;;  %vm1762_vm8 = vcmp.eq.f32.partialorder %v1761_v15, 8.507059e+37 }
0x14c1   :  { %v1827_v5 = vsub.f32 1.0, %v1826_v3  ;;  %vm1759_vm7 = vmor %vm1757_vm0, %vm1758_vm12  ;;  %v1876_v3 = vrot.slane %v6232_v2, 2 }
0x14c2   :  { %v1754_v49 = vsub.f32 1.0, %v1753_v14 }
0x14c3   :  { %v1828_v57 = vmul.f32 %v5256_v1, %v1827_v5 }
0x14c4   :  { %v1755_v0 = vmul.f32 %v5258_v23, %v1754_v49 }
0x14c5   :  { %v1829_v28 = vadd.f32 %v5256_v1, %v1828_v57 }
0x14c6   :  { %v1756_v24 = vadd.f32 %v5258_v23, %v1755_v0 }
0x14c7   :  { %v1833_v12 = vsel %vm1832_vm10, %v5256_v1, %v1829_v28  ;;  %v1783_v28 = vrot.slane %v6227_v7, 6 }
0x14c8   :  { %v1838_v27 = vsel %vm1835_vm11, %v1837_v8, %v1833_v12  ;;  %v1760_v26 = vsel %vm1759_vm7, %v5258_v23, %v1756_v24 }
0x14c9   :  { %v1863_v41 = vmul.f32 %v1861_v22, %v1838_v27  ;;  %v1765_v31 = vsel %vm1762_vm8, %v1764_v47, %v1760_v26 }
0x14ca   :  { %v1777_v8 = vsub.f32 1.0, %v1765_v31  ;;  %v1785_v14 = vmul.f32 %v1783_v28, %v1765_v31 }
0x14cb   :  { %1865 = vrot.lane.b32.xlu2 %v1863_v41, %s5672_s21 }
0x14da   :  { %v1768_v19 = vpop.permute.xlu1 %1767 }
0x14db   :  { %v1770_v21 = vmul.f32 %v1768_v19, %v1765_v31 }
0x14dd   :  { %1772 = vrot.lane.b32.xlu1 %v1770_v21, %s5672_s21 }
0x1525   :  { %v1866_v33 = vpop.permute.xlu2 %1865 }
0x1526   :  { %v1868_v29 = vadd.f32 %v1866_v33, %v6223_v60 }
0x1528   :  { %5259 = vtanh.f32 %v1868_v29 }
0x152e   :  { %v5260_v16 = vpop.eup %5259 }
0x152f   :  { %1872 = vrot.lane.b32.xlu1 %v5260_v16, %s5671_s2 }
0x154f   :  { %v1773_v56 = vpop.permute.xlu1 %1772 }
0x1550   :  { %v1775_v37 = vadd.f32 %v1773_v56, %v6208_v63 }
0x1552   :  { %5261 = vtanh.f32 %v1775_v37 }
0x1553   :  { %5263 = vpow2.f32 %v1842_v10 }
0x1558   :  { %v5262_v39 = vpop.eup %5261 }
0x1559   :  { %1779 = vrot.lane.b32.xlu0 %v5262_v39, %s5671_s2  ;;  %v5264_v6 = vpop.eup %5263 }
0x155a   :  { %v1844_v43 = vadd.f32 1.0, %v5264_v6 }
0x155c   :  { %5265 = vrcp.f32 %v1844_v43  ;;  %v1856_v53 = vand.u32 2147483648, %v1844_v43  ;;  %vm1850_vm9 = vweird.f32 %v1844_v43  ;;  %v1854_v54 = vand.u32 2147483647, %v1844_v43 }
0x155e   :  { %v1857_v30 = vor.u32 1.1754944e-38, %v1856_v53  ;;  %vm1855_vm11 = vcmp.eq.f32.partialorder %v1854_v54, 8.507059e+37 }
0x1562   :  { %v5266_v48 = vpop.eup %5265 }
0x1563   :  { %v1846_v34 = vmul.f32 %v5266_v48, %v1844_v43  ;;  %vm1851_vm7 = vweird.f32 %v5266_v48 }
0x1564   :  { %vm1852_vm10 = vmor %vm1850_vm9, %vm1851_vm7 }
0x1565   :  { %v1847_v20 = vsub.f32 1.0, %v1846_v34 }
0x1567   :  { %v1848_v45 = vmul.f32 %v5266_v48, %v1847_v20 }
0x1569   :  { %v1849_v50 = vadd.f32 %v5266_v48, %v1848_v45 }
0x156b   :  { %v1853_v18 = vsel %vm1852_vm10, %v5266_v48, %v1849_v50 }
0x156c   :  { %v1858_v44 = vsel %vm1855_vm11, %v1857_v30, %v1853_v18 }
0x156d   :  { %v1870_v1 = vsub.f32 1.0, %v1858_v44  ;;  %v1878_v61 = vmul.f32 %v1876_v3, %v1858_v44 }
0x15a1   :  { %v1873_v5 = vpop.permute.xlu1 %1872 }
0x15a2   :  { %v1875_v57 = vmul.f32 %v1873_v5, %v1870_v1 }
0x15a4   :  { %v6261_v46 = vadd.f32 %v1878_v61, %v1875_v57 }
0x15a6   :  { %v1958_v23 = vrot.slane %v6261_v46, 4 }
0x15a8   :  { %5041 = vmatmul.msk.f32.vlgmr.msrb.gmra.mxu3 %vm160_vm13, %v1958_v23 }
0x15a9   :  { %2628 = vmatpush.msrb.mxu3 %v6111_v52 }
0x15ab   :  { %2629 = vmatpush.msrb.mxu3 %v6113_v17 }
0x15ad   :  { %2630 = vmatpush.msrb.mxu3 %v6143_v32 }
0x15af   :  { %2631 = vmatpush.msrb.mxu3 %v6145_v35 }
0x15cb   :  { %v1780_v12 = vpop.permute.xlu0 %1779 }
0x15cc   :  { %v1782_v27 = vmul.f32 %v1780_v12, %v1777_v8 }
0x15ce   :  { %v6270_v22 = vadd.f32 %v1785_v14, %v1782_v27 }
0x15d0   :  { %v1885_v41 = vrot.slane %v6270_v22, 2 }
0x15d2   :  { %1886 = vrot.lane.b32.xlu2 %v1885_v41, %s5671_s2 }
0x162b   :  { %v1978_v49 = vpop.f32.mrf.mxu3 }
0x162c   :  { %v1979_v0 = vadd.f32 %v6194_v11, %v1978_v49  ;;  %v1887_v24 = vpop.permute.xlu2 %1886 }
0x162d   :  { %5040 = vmatmul.msk.f32.vlgmr.msrb.gmra.mxu2 %vm160_vm13, %v1887_v24 }
0x162e   :  { %v1982_v51 = vrot.slane %v1979_v0, 6  ;;  %2557 = vmatpush.msrb.mxu2 %v6105_v4 }
0x1630   :  { %1983 = vrot.lane.b32.xlu0 %v1982_v51, %s5671_s2  ;;  %2026 = vrot.lane.b32.xlu2 %v1982_v51, %s5670_s18 }
0x1631   :  { %2558 = vmatpush.msrb.mxu2 %v6107_v9 }
0x1633   :  { %2559 = vmatpush.msrb.mxu2 %v6116_v25 }
0x1635   :  { %2560 = vmatpush.msrb.mxu2 %v6120_v38 }
0x168a   :  { %v2027_v48 = vpop.permute.xlu2 %2026 }
0x16a2   :  { %v1984_v7 = vpop.permute.xlu0 %1983 }
0x16a3   :  { %v1986_v15 = vadd.f32 %v1984_v7, %v6212_v36  ;;  %v2006_v0 = vadd.f32 %v1984_v7, %v6223_v60 }
0x16a5   :  { %v1987_v26 = vsub.f32 0.0, %v1986_v15  ;;  %v2007_v24 = vsub.f32 0.0, %v2006_v0 }
0x16a7   :  { %v1988_v47 = vmul.f32 1.442695, %v1987_v26  ;;  %v2008_v51 = vmul.f32 1.442695, %v2007_v24 }
0x16a9   :  { %5267 = vpow2.f32 %v1988_v47 }
0x16af   :  { %v5268_v19 = vpop.eup %5267 }
0x16b0   :  { %v1990_v31 = vadd.f32 1.0, %v5268_v19  ;;  %v1907_v21 = vpop.f32.mrf.mxu2 }
0x16b1   :  { %v1908_v33 = vadd.f32 %v6187_v58, %v1907_v21 }
0x16b2   :  { %5269 = vrcp.f32 %v1990_v31  ;;  %v2002_v39 = vand.u32 2147483648, %v1990_v31  ;;  %v2000_v42 = vand.u32 2147483647, %v1990_v31  ;;  %vm1996_vm0 = vweird.f32 %v1990_v31 }
0x16b3   :  { %v1911_v29 = vrot.slane %v1908_v33, 4 }
0x16b4   :  { %v2003_v6 = vor.u32 1.1754944e-38, %v2002_v39  ;;  %vm2001_vm7 = vcmp.eq.f32.partialorder %v2000_v42, 8.507059e+37 }
0x16b5   :  { %1933 = vrot.lane.b32.xlu1 %v1911_v29, %s5672_s21  ;;  %v1913_v45 = vadd.f32 %v1911_v29, %v6208_v63 }
0x16b7   :  { %v1914_v50 = vsub.f32 0.0, %v1913_v45 }
0x16b8   :  { %v5270_v16 = vpop.eup %5269 }
0x16b9   :  { %v1992_v56 = vmul.f32 %v5270_v16, %v1990_v31  ;;  %vm1997_vm12 = vweird.f32 %v5270_v16  ;;  %v1915_v53 = vmul.f32 1.442695, %v1914_v50 }
0x16ba   :  { %vm1998_vm8 = vmor %vm1996_vm0, %vm1997_vm12 }
0x16bb   :  { %v1993_v37 = vsub.f32 1.0, %v1992_v56  ;;  %5271 = vpow2.f32 %v1915_v53  ;;  %v1949_v53 = vrot.slane %v6270_v22, 6 }
0x16bd   :  { %v1994_v40 = vmul.f32 %v5270_v16, %v1993_v37 }
0x16bf   :  { %v1995_v10 = vadd.f32 %v5270_v16, %v1994_v40 }
0x16c1   :  { %v1999_v43 = vsel %vm1998_vm8, %v5270_v16, %v1995_v10  ;;  %v5272_v54 = vpop.eup %5271 }
0x16c2   :  { %v2004_v34 = vsel %vm2001_vm7, %v2003_v6, %v1999_v43  ;;  %v1917_v18 = vadd.f32 1.0, %v5272_v54  ;;  %v2042_v6 = vrot.slane %v6261_v46, 2 }
0x16c3   :  { %v2029_v20 = vmul.f32 %v2027_v48, %v2004_v34 }
0x16c4   :  { %5273 = vrcp.f32 %v1917_v18  ;;  %v1929_v61 = vand.u32 2147483648, %v1917_v18  ;;  %vm1923_vm10 = vweird.f32 %v1917_v18  ;;  %v1927_v57 = vand.u32 2147483647, %v1917_v18 }
0x16c5   :  { %2031 = vrot.lane.b32.xlu1 %v2029_v20, %s5672_s21 }
0x16c6   :  { %v1930_v28 = vor.u32 1.1754944e-38, %v1929_v61  ;;  %vm1928_vm12 = vcmp.eq.f32.partialorder %v1927_v57, 8.507059e+37 }
0x16ca   :  { %v5274_v30 = vpop.eup %5273 }
0x16cb   :  { %v1919_v44 = vmul.f32 %v5274_v30, %v1917_v18  ;;  %vm1924_vm9 = vweird.f32 %v5274_v30 }
0x16cc   :  { %vm1925_vm11 = vmor %vm1923_vm10, %vm1924_vm9 }
0x16cd   :  { %v1920_v1 = vsub.f32 1.0, %v1919_v44 }
0x16cf   :  { %v1921_v3 = vmul.f32 %v5274_v30, %v1920_v1 }
0x16d1   :  { %v1922_v5 = vadd.f32 %v5274_v30, %v1921_v3 }
0x16d3   :  { %v1926_v23 = vsel %vm1925_vm11, %v5274_v30, %v1922_v5 }
0x16d4   :  { %v1931_v12 = vsel %vm1928_vm12, %v1930_v28, %v1926_v23 }
0x16d5   :  { %v1943_v50 = vsub.f32 1.0, %v1931_v12  ;;  %v1951_v18 = vmul.f32 %v1949_v53, %v1931_v12 }
0x1727   :  { %v1934_v8 = vpop.permute.xlu1 %1933 }
0x1728   :  { %v1936_v14 = vmul.f32 %v1934_v8, %v1931_v12 }
0x172a   :  { %1938 = vrot.lane.b32.xlu0 %v1936_v14, %s5672_s21 }
0x1737   :  { %v2032_v27 = vpop.permute.xlu1 %2031 }
0x1738   :  { %v2034_v41 = vadd.f32 %v2032_v27, %v6223_v60 }
0x173a   :  { %5275 = vtanh.f32 %v2034_v41 }
0x173b   :  { %5277 = vpow2.f32 %v2008_v51 }
0x1740   :  { %v5276_v49 = vpop.eup %5275 }
0x1741   :  { %2038 = vrot.lane.b32.xlu0 %v5276_v49, %s5671_s2  ;;  %v5278_v15 = vpop.eup %5277 }
0x1742   :  { %v2010_v26 = vadd.f32 1.0, %v5278_v15 }
0x1744   :  { %5279 = vrcp.f32 %v2010_v26  ;;  %v2022_v7 = vand.u32 2147483648, %v2010_v26  ;;  %vm2016_vm8 = vweird.f32 %v2010_v26  ;;  %v2020_v37 = vand.u32 2147483647, %v2010_v26 }
0x1746   :  { %v2023_v40 = vor.u32 1.1754944e-38, %v2022_v7  ;;  %vm2021_vm9 = vcmp.eq.f32.partialorder %v2020_v37, 8.507059e+37 }
0x174a   :  { %v5280_v47 = vpop.eup %5279 }
0x174b   :  { %v2012_v31 = vmul.f32 %v5280_v47, %v2010_v26  ;;  %vm2017_vm0 = vweird.f32 %v5280_v47 }
0x174c   :  { %vm2018_vm7 = vmor %vm2016_vm8, %vm2017_vm0 }
0x174d   :  { %v2013_v33 = vsub.f32 1.0, %v2012_v31 }
0x174f   :  { %v2014_v29 = vmul.f32 %v5280_v47, %v2013_v33 }
0x1751   :  { %v2015_v56 = vadd.f32 %v5280_v47, %v2014_v29 }
0x1753   :  { %v2019_v39 = vsel %vm2018_vm7, %v5280_v47, %v2015_v56 }
0x1754   :  { %v2024_v42 = vsel %vm2021_vm9, %v2023_v40, %v2019_v39 }
0x1755   :  { %v2036_v10 = vsub.f32 1.0, %v2024_v42  ;;  %v2044_v48 = vmul.f32 %v2042_v6, %v2024_v42 }
0x179c   :  { %v1939_v19 = vpop.permute.xlu0 %1938 }
0x179d   :  { %v1941_v21 = vadd.f32 %v1939_v19, %v6208_v63 }
0x179f   :  { %5281 = vtanh.f32 %v1941_v21 }
0x17a5   :  { %v5282_v16 = vpop.eup %5281 }
0x17a6   :  { %1945 = vrot.lane.b32.xlu2 %v5282_v16, %s5671_s2 }
0x17b3   :  { %v2039_v43 = vpop.permute.xlu0 %2038 }
0x17b4   :  { %v2041_v34 = vmul.f32 %v2039_v43, %v2036_v10 }
0x17b6   :  { %v6294_v20 = vadd.f32 %v2044_v48, %v2041_v34 }
0x17b8   :  { %v2124_v45 = vrot.slane %v6294_v20, 2 }
0x17ba   :  { %5043 = vmatmul.msk.f32.vlgmr.msrb.gmra.mxu1 %vm160_vm13, %v2124_v45 }
0x17bb   :  { %2794 = vmatpush.msrb.mxu1 %v6111_v52 }
0x17bd   :  { %2795 = vmatpush.msrb.mxu1 %v6113_v17 }
0x17bf   :  { %2796 = vmatpush.msrb.mxu1 %v6143_v32 }
0x17c1   :  { %2797 = vmatpush.msrb.mxu1 %v6145_v35 }
0x1800   :  { %v1946_v54 = vpop.permute.xlu2 %1945 }
0x1801   :  { %v1948_v30 = vmul.f32 %v1946_v54, %v1943_v50 }
0x1803   :  { %v6305_v44 = vadd.f32 %v1951_v18, %v1948_v30 }
0x1805   :  { %v2051_v1 = vrot.slane %v6305_v44, 4 }
0x1807   :  { %2052 = vrot.lane.b32.xlu1 %v2051_v1, %s5671_s2 }
0x1837   :  { %v2144_v3 = vpop.f32.mrf.mxu1 }
0x1838   :  { %v2145_v52 = vadd.f32 %v6194_v11, %v2144_v3 }
0x183a   :  { %2191 = vrot.lane.b32.xlu1 %v2145_v52, %s5670_s18  ;;  %2148 = vrot.lane.b32.xlu2 %v2145_v52, %s5671_s2 }
0x1879   :  { %v2053_v17 = vpop.permute.xlu1 %2052 }
0x187a   :  { %5042 = vmatmul.msk.f32.vlgmr.msrb.gmra.mxu0 %vm160_vm13, %v2053_v17 }
0x187b   :  { %2723 = vmatpush.msrb.mxu0 %v6105_v4 }
0x187d   :  { %2724 = vmatpush.msrb.mxu0 %v6107_v9 }
0x187f   :  { %2725 = vmatpush.msrb.mxu0 %v6116_v25 }
0x1881   :  { %2726 = vmatpush.msrb.mxu0 %v6120_v38 }
0x1894   :  { %v2149_v32 = vpop.permute.xlu2 %2148 }
0x1895   :  { %v2151_v35 = vadd.f32 %v2149_v32, %v6212_v36  ;;  %v2171_v53 = vadd.f32 %v2149_v32, %v6223_v60 }
0x1897   :  { %v2152_v5 = vsub.f32 0.0, %v2151_v35  ;;  %v2172_v54 = vsub.f32 0.0, %v2171_v53 }
0x1899   :  { %v2153_v61 = vmul.f32 1.442695, %v2152_v5  ;;  %v2173_v18 = vmul.f32 1.442695, %v2172_v54 }
0x189b   :  { %5283 = vpow2.f32 %v2153_v61 }
0x18a1   :  { %v5284_v57 = vpop.eup %5283 }
0x18a2   :  { %v2155_v23 = vadd.f32 1.0, %v5284_v57 }
0x18a4   :  { %5285 = vrcp.f32 %v2155_v23  ;;  %v2167_v25 = vand.u32 2147483648, %v2155_v23  ;;  %vm2161_vm11 = vweird.f32 %v2155_v23  ;;  %v2165_v38 = vand.u32 2147483647, %v2155_v23 }
0x18a6   :  { %v2168_v0 = vor.u32 1.1754944e-38, %v2167_v25  ;;  %vm2166_vm0 = vcmp.eq.f32.partialorder %v2165_v38, 8.507059e+37 }
0x18aa   :  { %v5286_v28 = vpop.eup %5285 }
0x18ab   :  { %v2157_v8 = vmul.f32 %v5286_v28, %v2155_v23  ;;  %vm2162_vm10 = vweird.f32 %v5286_v28 }
0x18ac   :  { %vm2163_vm12 = vmor %vm2161_vm11, %vm2162_vm10  ;;  %v2192_v51 = vpop.permute.xlu1 %2191 }
0x18ad   :  { %v2158_v12 = vsub.f32 1.0, %v2157_v8 }
0x18af   :  { %v2159_v14 = vmul.f32 %v5286_v28, %v2158_v12 }
0x18b1   :  { %v2160_v27 = vadd.f32 %v5286_v28, %v2159_v14 }
0x18b3   :  { %v2164_v49 = vsel %vm2163_vm12, %v5286_v28, %v2160_v27 }
0x18b4   :  { %v2169_v24 = vsel %vm2166_vm0, %v2168_v0, %v2164_v49 }
0x18b5   :  { %v2194_v15 = vmul.f32 %v2192_v51, %v2169_v24 }
0x18f7   :  { %v2073_v4 = vpop.f32.mrf.mxu0 }
0x18f8   :  { %v2074_v9 = vadd.f32 %v6187_v58, %v2073_v4 }
0x18fa   :  { %v2077_v41 = vrot.slane %v2074_v9, 2 }
0x18fc   :  { %2099 = vrot.lane.b32.xlu0 %v2077_v41, %s5672_s21  ;;  %v2079_v26 = vadd.f32 %v2077_v41, %v6208_v63  ;;  %v2115_v41 = vrot.slane %v6305_v44, 6 }
0x18fe   :  { %v2080_v47 = vsub.f32 0.0, %v2079_v26 }
0x1900   :  { %v2081_v19 = vmul.f32 1.442695, %v2080_v47 }
0x1902   :  { %5287 = vpow2.f32 %v2081_v19 }
0x1904   :  { %2196 = vrot.lane.b32.xlu0 %v2194_v15, %s5672_s21 }
0x1908   :  { %v5288_v31 = vpop.eup %5287 }
0x1909   :  { %v2083_v21 = vadd.f32 1.0, %v5288_v31 }
0x190b   :  { %5289 = vrcp.f32 %v2083_v21  ;;  %v2095_v37 = vand.u32 2147483648, %v2083_v21  ;;  %vm2089_vm7 = vweird.f32 %v2083_v21  ;;  %v2093_v39 = vand.u32 2147483647, %v2083_v21 }
0x190d   :  { %v2096_v42 = vor.u32 1.1754944e-38, %v2095_v37  ;;  %vm2094_vm10 = vcmp.eq.f32.partialorder %v2093_v39, 8.507059e+37 }
0x1911   :  { %v5290_v33 = vpop.eup %5289 }
0x1912   :  { %v2085_v29 = vmul.f32 %v5290_v33, %v2083_v21  ;;  %vm2090_vm8 = vweird.f32 %v5290_v33 }
0x1913   :  { %vm2091_vm9 = vmor %vm2089_vm7, %vm2090_vm8 }
0x1914   :  { %v2086_v16 = vsub.f32 1.0, %v2085_v29 }
0x1916   :  { %v2087_v56 = vmul.f32 %v5290_v33, %v2086_v16 }
0x1918   :  { %v2088_v7 = vadd.f32 %v5290_v33, %v2087_v56 }
0x191a   :  { %v2092_v40 = vsel %vm2091_vm9, %v5290_v33, %v2088_v7 }
0x191b   :  { %v2097_v10 = vsel %vm2094_vm10, %v2096_v42, %v2092_v40 }
0x191c   :  { %v2109_v38 = vsub.f32 1.0, %v2097_v10  ;;  %v2117_v0 = vmul.f32 %v2115_v41, %v2097_v10 }
0x196e   :  { %v2100_v6 = vpop.permute.xlu0 %2099 }
0x196f   :  { %v2102_v43 = vmul.f32 %v2100_v6, %v2097_v10 }
0x1971   :  { %2104 = vrot.lane.b32.xlu2 %v2102_v43, %s5672_s21 }
0x1976   :  { %v2197_v48 = vpop.permute.xlu0 %2196 }
0x1977   :  { %v2199_v34 = vadd.f32 %v2197_v48, %v6223_v60 }
0x1979   :  { %5291 = vtanh.f32 %v2199_v34 }
0x197a   :  { %5293 = vpow2.f32 %v2173_v18 }
0x197f   :  { %v5292_v50 = vpop.eup %5291 }
0x1980   :  { %2203 = vrot.lane.b32.xlu2 %v5292_v50, %s5671_s2  ;;  %v5294_v30 = vpop.eup %5293 }
0x1981   :  { %v2175_v1 = vadd.f32 1.0, %v5294_v30 }
0x1983   :  { %5295 = vrcp.f32 %v2175_v1  ;;  %v2187_v23 = vand.u32 2147483648, %v2175_v1  ;;  %vm2181_vm12 = vweird.f32 %v2175_v1  ;;  %v2185_v28 = vand.u32 2147483647, %v2175_v1 }
0x1985   :  { %v2188_v8 = vor.u32 1.1754944e-38, %v2187_v23  ;;  %vm2186_vm8 = vcmp.eq.f32.partialorder %v2185_v28, 8.507059e+37 }
0x1989   :  { %v5296_v3 = vpop.eup %5295 }
0x198a   :  { %v2177_v52 = vmul.f32 %v5296_v3, %v2175_v1  ;;  %vm2182_vm11 = vweird.f32 %v5296_v3 }
0x198b   :  { %vm2183_vm0 = vmor %vm2181_vm12, %vm2182_vm11 }
0x198c   :  { %v2178_v17 = vsub.f32 1.0, %v2177_v52 }
0x198e   :  { %v2179_v5 = vmul.f32 %v5296_v3, %v2178_v17 }
0x1990   :  { %v2180_v57 = vadd.f32 %v5296_v3, %v2179_v5 }
0x1992   :  { %v2184_v60 = vsel %vm2183_vm0, %v5296_v3, %v2180_v57 }
0x1993   :  { %v2189_v12 = vsel %vm2186_vm8, %v2188_v8, %v2184_v60 }
0x1994   :  { %v2201_v14 = vsub.f32 1.0, %v2189_v12  ;;  %v2208_v27 = vmul.f32 %v2189_v12, %v2124_v45 }
0x19cb   :  { %v2105_v35 = vpop.permute.xlu2 %2104 }
0x19cc   :  { %v2107_v61 = vadd.f32 %v2105_v35, %v6208_v63 }
0x19ce   :  { %5297 = vtanh.f32 %v2107_v61 }
0x19d4   :  { %v5298_v32 = vpop.eup %5297 }
0x19d5   :  { %2111 = vrot.lane.b32.xlu1 %v5298_v32, %s5671_s2 }
0x19da   :  { %v2204_v4 = vpop.permute.xlu2 %2203 }
0x19db   :  { %v2206_v9 = vmul.f32 %v2204_v4, %v2201_v14  ;;  %v6354_v14 = vadd.f32 %v6218_v55, %v1496_v59 }
0x19dd   :  { %v6330_v25 = vadd.f32 %v2208_v27, %v2206_v9 }
0x19df   :  { %5045 = vmatmul.msk.f32.vlgmr.msra.gmra.mxu3 %vm160_vm13, %v6330_v25 }
0x1a47   :  { %v2112_v49 = vpop.permute.xlu1 %2111 }
0x1a48   :  { %v2114_v24 = vmul.f32 %v2112_v49, %v2109_v38 }
0x1a4a   :  { %v6335_v51 = vadd.f32 %v2117_v0, %v2114_v24 }
0x1a4c   :  { %v2215_v15 = vrot.slane %v6335_v51, 6 }
0x1a4e   :  { %2216 = vrot.lane.b32.xlu0 %v2215_v15, %s5671_s2 }
0x1a62   :  { %v2304_v45 = vpop.f32.mrf.mxu3 }
0x1a63   :  { %v2305_v26 = vadd.f32 %v6194_v11, %v2304_v45 }
0x1a65   :  { %v2308_v47 = vrot.slane %v2305_v26, 2 }
0x1a67   :  { %2352 = vrot.lane.b32.xlu0 %v2308_v47, %s5670_s18  ;;  %2309 = vrot.lane.b32.xlu1 %v2308_v47, %s5671_s2 }
0x1ac0   :  { %v2217_v19 = vpop.permute.xlu0 %2216 }
0x1ac1   :  { %5044 = vmatmul.msk.f32.vlgmr.msra.gmra.mxu2 %vm160_vm13, %v2217_v19 }
0x1ad9   :  { %v2310_v31 = vpop.permute.xlu1 %2309  ;;  %v2353_v53 = vpop.permute.xlu0 %2352 }
0x1ada   :  { %v2312_v21 = vadd.f32 %v2310_v31, %v6208_v63  ;;  %v2332_v38 = vadd.f32 %v2310_v31, %v6354_v14 }
0x1adc   :  { %v2313_v33 = vsub.f32 0.0, %v2312_v21  ;;  %v2333_v41 = vsub.f32 0.0, %v2332_v38 }
0x1ade   :  { %v2314_v29 = vmul.f32 1.442695, %v2313_v33  ;;  %v2334_v49 = vmul.f32 1.442695, %v2333_v41 }
0x1ae0   :  { %5299 = vpow2.f32 %v2314_v29 }
0x1ae6   :  { %v5300_v16 = vpop.eup %5299 }
0x1ae7   :  { %v2316_v56 = vadd.f32 1.0, %v5300_v16 }
0x1ae9   :  { %5301 = vrcp.f32 %v2316_v56  ;;  %v2328_v42 = vand.u32 2147483648, %v2316_v56  ;;  %vm2322_vm9 = vweird.f32 %v2316_v56  ;;  %v2326_v6 = vand.u32 2147483647, %v2316_v56 }
0x1aeb   :  { %v2329_v34 = vor.u32 1.1754944e-38, %v2328_v42  ;;  %vm2327_vm11 = vcmp.eq.f32.partialorder %v2326_v6, 8.507059e+37 }
0x1aef   :  { %v5302_v7 = vpop.eup %5301 }
0x1af0   :  { %v2318_v37 = vmul.f32 %v5302_v7, %v2316_v56  ;;  %vm2323_vm7 = vweird.f32 %v5302_v7 }
0x1af1   :  { %vm2324_vm10 = vmor %vm2322_vm9, %vm2323_vm7 }
0x1af2   :  { %v2319_v11 = vsub.f32 1.0, %v2318_v37  ;;  %v2368_v37 = vrot.slane %v6330_v25, 2 }
0x1af4   :  { %v2320_v39 = vmul.f32 %v5302_v7, %v2319_v11 }
0x1af6   :  { %v2321_v40 = vadd.f32 %v5302_v7, %v2320_v39 }
0x1af8   :  { %v2325_v48 = vsel %vm2324_vm10, %v5302_v7, %v2321_v40 }
0x1af9   :  { %v2330_v50 = vsel %vm2327_vm11, %v2329_v34, %v2325_v48 }
0x1afa   :  { %v2355_v54 = vmul.f32 %v2353_v53, %v2330_v50 }
0x1b44   :  { %v2237_v10 = vpop.f32.mrf.mxu2 }
0x1b45   :  { %v2238_v43 = vadd.f32 %v6187_v58, %v2237_v10 }
0x1b47   :  { %2261 = vrot.lane.b32.xlu2 %v2238_v43, %s5672_s21  ;;  %v2240_v18 = vadd.f32 %v2238_v43, %v6212_v36 }
0x1b49   :  { %v2241_v30 = vsub.f32 0.0, %v2240_v18 }
0x1b4b   :  { %v2242_v1 = vmul.f32 1.442695, %v2241_v30 }
0x1b4d   :  { %5303 = vpow2.f32 %v2242_v1 }
0x1b4f   :  { %2357 = vrot.lane.b32.xlu2 %v2355_v54, %s5672_s21  ;;  %v6375_v54 = vld [vmem:[%s7035_s8 + $0x1] ss:$0 sm:$0xff] }
0x1b53   :  { %v5304_v3 = vpop.eup %5303 }
0x1b54   :  { %v2244_v52 = vadd.f32 1.0, %v5304_v3 }
0x1b56   :  { %5305 = vrcp.f32 %v2244_v52  ;;  %v2256_v57 = vand.u32 2147483648, %v2244_v52  ;;  %vm2250_vm0 = vweird.f32 %v2244_v52  ;;  %v2254_v23 = vand.u32 2147483647, %v2244_v52 }
0x1b58   :  { %v2257_v60 = vor.u32 1.1754944e-38, %v2256_v57  ;;  %vm2255_vm7 = vcmp.eq.f32.partialorder %v2254_v23, 8.507059e+37 }
0x1b5c   :  { %v5306_v58 = vpop.eup %5305 }
0x1b5d   :  { %v2246_v17 = vmul.f32 %v5306_v58, %v2244_v52  ;;  %vm2251_vm12 = vweird.f32 %v5306_v58 }
0x1b5e   :  { %vm2252_vm8 = vmor %vm2250_vm0, %vm2251_vm12 }
0x1b5f   :  { %v2247_v35 = vsub.f32 1.0, %v2246_v17 }
0x1b61   :  { %v2248_v5 = vmul.f32 %v5306_v58, %v2247_v35 }
0x1b63   :  { %v2249_v61 = vadd.f32 %v5306_v58, %v2248_v5 }
0x1b65   :  { %v2253_v28 = vsel %vm2252_vm8, %v5306_v58, %v2249_v61 }
0x1b66   :  { %v2258_v8 = vsel %vm2255_vm7, %v2257_v60, %v2253_v28  ;;  %v6388_v60 = vld [vmem:[%s7035_s8] ss:$0 sm:$0xff] }
0x1b67   :  { %v2271_v6 = vsub.f32 1.0, %v2258_v8  ;;  %v2278_v48 = vmul.f32 %v2258_v8, %v2215_v15 }
0x1ba1   :  { %v2262_v32 = vpop.permute.xlu2 %2261 }
0x1ba2   :  { %v2264_v12 = vmul.f32 %v2262_v32, %v2258_v8 }
0x1ba4   :  { %2266 = vrot.lane.b32.xlu1 %v2264_v12, %s5672_s21 }
0x1ba9   :  { %v2358_v4 = vpop.permute.xlu2 %2357 }
0x1baa   :  { %v2360_v27 = vadd.f32 %v2358_v4, %v6354_v14 }
0x1bac   :  { %5307 = vtanh.f32 %v2360_v27 }
0x1bad   :  { %5309 = vpow2.f32 %v2334_v49 }
0x1bb2   :  { %v5308_v9 = vpop.eup %5307 }
0x1bb3   :  { %2364 = vrot.lane.b32.xlu1 %v5308_v9, %s5671_s2  ;;  %v5310_v0 = vpop.eup %5309 }
0x1bb4   :  { %v2336_v24 = vadd.f32 1.0, %v5310_v0 }
0x1bb6   :  { %5311 = vrcp.f32 %v2336_v24  ;;  %v2348_v21 = vand.u32 2147483648, %v2336_v24  ;;  %vm2342_vm10 = vweird.f32 %v2336_v24  ;;  %v2346_v33 = vand.u32 2147483647, %v2336_v24 }
0x1bb8   :  { %v2349_v16 = vor.u32 1.1754944e-38, %v2348_v21  ;;  %vm2347_vm12 = vcmp.eq.f32.partialorder %v2346_v33, 8.507059e+37 }
0x1bbc   :  { %v5312_v45 = vpop.eup %5311 }
0x1bbd   :  { %v2338_v62 = vmul.f32 %v5312_v45, %v2336_v24  ;;  %vm2343_vm9 = vweird.f32 %v5312_v45 }
0x1bbe   :  { %vm2344_vm11 = vmor %vm2342_vm10, %vm2343_vm9 }
0x1bbf   :  { %v2339_v26 = vsub.f32 1.0, %v2338_v62 }
0x1bc1   :  { %v2340_v59 = vmul.f32 %v5312_v45, %v2339_v26 }
0x1bc3   :  { %v2341_v19 = vadd.f32 %v5312_v45, %v2340_v59 }
0x1bc5   :  { %v2345_v31 = vsel %vm2344_vm11, %v5312_v45, %v2341_v19 }
0x1bc6   :  { %v2350_v56 = vsel %vm2347_vm12, %v2349_v16, %v2345_v31 }
0x1bc7   :  { %v2362_v7 = vsub.f32 1.0, %v2350_v56  ;;  %v2370_v39 = vmul.f32 %v2368_v37, %v2350_v56 }
0x1c16   :  { %v2267_v55 = vpop.permute.xlu1 %2266 }
0x1c17   :  { %v2269_v47 = vadd.f32 %v2267_v55, %v6212_v36 }
0x1c19   :  { %5313 = vtanh.f32 %v2269_v47 }
0x1c1f   :  { %v5314_v29 = vpop.eup %5313 }
0x1c20   :  { %2273 = vrot.lane.b32.xlu0 %v5314_v29, %s5671_s2 }
0x1c25   :  { %v2365_v11 = vpop.permute.xlu1 %2364 }
0x1c26   :  { %v2367_v40 = vmul.f32 %v2365_v11, %v2362_v7 }
0x1c28   :  { %v6362_v42 = vadd.f32 %v2370_v39, %v2367_v40 }
0x1c2a   :  { %v2447_v10 = vrot.slane %v6362_v42, 6 }
0x1c2c   :  { %5047 = vmatmul.msk.f32.vlgmr.msra.gmra.mxu1 %vm160_vm13, %v2447_v10 }
0x1c92   :  { %v2274_v43 = vpop.permute.xlu0 %2273 }
0x1c93   :  { %v2276_v34 = vmul.f32 %v2274_v43, %v2271_v6 }
0x1c95   :  { %v6368_v50 = vadd.f32 %v2278_v48, %v2276_v34 }
0x1c97   :  { %2281 = vrot.lane.b32.xlu2 %v6368_v50, %s5671_s2 }
0x1ca9   :  { %v2467_v53 = vpop.f32.mrf.mxu1 }
0x1caa   :  { %v2468_v18 = vadd.f32 %v6375_v54, %v2467_v53 }
0x1cac   :  { %v2471_v30 = vrot.slane %v2468_v18, 4 }
0x1cae   :  { %2472 = vrot.lane.b32.xlu0 %v2471_v30, %s5671_s2  ;;  %2515 = vrot.lane.b32.xlu2 %v2471_v30, %s5670_s18 }
0x1cf1   :  { %v6380_v15 = vpop.permute.xlu2 %2281 }
0x1cf2   :  { %5046 = vmatmul.msk.f32.vlgmr.msra.gmra.mxu0 %vm160_vm13, %v6380_v15 }
0x1d08   :  { %v2516_v49 = vpop.permute.xlu2 %2515 }
0x1d20   :  { %v2473_v1 = vpop.permute.xlu0 %2472 }
0x1d21   :  { %v2475_v3 = vadd.f32 %v2473_v1, %v6208_v63  ;;  %v2495_v6 = vadd.f32 %v2473_v1, %v6354_v14 }
0x1d23   :  { %v2476_v52 = vsub.f32 0.0, %v2475_v3  ;;  %v2496_v43 = vsub.f32 0.0, %v2495_v6 }
0x1d25   :  { %v2477_v58 = vmul.f32 1.442695, %v2476_v52  ;;  %v2497_v48 = vmul.f32 1.442695, %v2496_v43 }
0x1d27   :  { %5315 = vpow2.f32 %v2477_v58 }
0x1d2d   :  { %v5316_v17 = vpop.eup %5315 }
0x1d2e   :  { %v2479_v35 = vadd.f32 1.0, %v5316_v17 }
0x1d30   :  { %5317 = vrcp.f32 %v2479_v35  ;;  %v2491_v12 = vand.u32 2147483648, %v2479_v35  ;;  %vm2485_vm8 = vweird.f32 %v2479_v35  ;;  %v2489_v27 = vand.u32 2147483647, %v2479_v35 }
0x1d32   :  { %v2492_v38 = vor.u32 1.1754944e-38, %v2491_v12  ;;  %vm2490_vm9 = vcmp.eq.f32.partialorder %v2489_v27, 8.507059e+37 }
0x1d36   :  { %v5318_v5 = vpop.eup %5317 }
0x1d37   :  { %v2481_v61 = vmul.f32 %v5318_v5, %v2479_v35  ;;  %vm2486_vm0 = vweird.f32 %v5318_v5 }
0x1d38   :  { %vm2487_vm7 = vmor %vm2485_vm8, %vm2486_vm0 }
0x1d39   :  { %v2482_v57 = vsub.f32 1.0, %v2481_v61 }
0x1d3b   :  { %v2483_v23 = vmul.f32 %v5318_v5, %v2482_v57 }
0x1d3d   :  { %v2484_v8 = vadd.f32 %v5318_v5, %v2483_v23 }
0x1d3f   :  { %v2488_v9 = vsel %vm2487_vm7, %v5318_v5, %v2484_v8  ;;  %v2531_v8 = vrot.slane %v6362_v42, 2 }
0x1d40   :  { %v2493_v41 = vsel %vm2490_vm9, %v2492_v38, %v2488_v9 }
0x1d41   :  { %v2518_v0 = vmul.f32 %v2516_v49, %v2493_v41  ;;  %v2438_v41 = vrot.slane %v6368_v50, 6 }
0x1d6f   :  { %v2396_v28 = vpop.f32.mrf.mxu0 }
0x1d70   :  { %v2397_v32 = vadd.f32 %v6388_v60, %v2396_v28 }
0x1d72   :  { %v2400_v4 = vrot.slane %v2397_v32, 6 }
0x1d74   :  { %2422 = vrot.lane.b32.xlu1 %v2400_v4, %s5672_s21  ;;  %v2402_v24 = vadd.f32 %v2400_v4, %v6212_v36 }
0x1d76   :  { %v2403_v45 = vsub.f32 0.0, %v2402_v24 }
0x1d78   :  { %v2404_v62 = vmul.f32 1.442695, %v2403_v45 }
0x1d7a   :  { %5319 = vpow2.f32 %v2404_v62 }
0x1d7c   :  { %2520 = vrot.lane.b32.xlu1 %v2518_v0, %s5672_s21 }
0x1d80   :  { %v5320_v26 = vpop.eup %5319 }
0x1d81   :  { %v2406_v55 = vadd.f32 1.0, %v5320_v26 }
0x1d83   :  { %5321 = vrcp.f32 %v2406_v55  ;;  %v2418_v31 = vand.u32 2147483648, %v2406_v55  ;;  %vm2412_vm11 = vweird.f32 %v2406_v55  ;;  %v2416_v29 = vand.u32 2147483647, %v2406_v55 }
0x1d85   :  { %v2419_v56 = vor.u32 1.1754944e-38, %v2418_v31  ;;  %vm2417_vm0 = vcmp.eq.f32.partialorder %v2416_v29, 8.507059e+37 }
0x1d89   :  { %v5322_v59 = vpop.eup %5321 }
0x1d8a   :  { %v2408_v47 = vmul.f32 %v5322_v59, %v2406_v55  ;;  %vm2413_vm10 = vweird.f32 %v5322_v59 }
0x1d8b   :  { %vm2414_vm12 = vmor %vm2412_vm11, %vm2413_vm10 }
0x1d8c   :  { %v2409_v19 = vsub.f32 1.0, %v2408_v47 }
0x1d8e   :  { %v2410_v21 = vmul.f32 %v5322_v59, %v2409_v19 }
0x1d90   :  { %v2411_v33 = vadd.f32 %v5322_v59, %v2410_v21 }
0x1d92   :  { %v2415_v16 = vsel %vm2414_vm12, %v5322_v59, %v2411_v33 }
0x1d93   :  { %v2420_v37 = vsel %vm2417_vm0, %v2419_v56, %v2415_v16 }
0x1d94   :  { %v2432_v49 = vsub.f32 1.0, %v2420_v37  ;;  %v2440_v24 = vmul.f32 %v2438_v41, %v2420_v37 }
0x1de6   :  { %v2423_v7 = vpop.permute.xlu1 %2422 }
0x1de7   :  { %v2425_v11 = vmul.f32 %v2423_v7, %v2420_v37 }
0x1de9   :  { %2427 = vrot.lane.b32.xlu0 %v2425_v11, %s5672_s21 }
0x1dee   :  { %v2521_v39 = vpop.permute.xlu1 %2520 }
0x1def   :  { %v2523_v40 = vadd.f32 %v2521_v39, %v6354_v14 }
0x1df1   :  { %5323 = vtanh.f32 %v2523_v40 }
0x1df2   :  { %5325 = vpow2.f32 %v2497_v48 }
0x1df7   :  { %v5324_v10 = vpop.eup %5323 }
0x1df8   :  { %2527 = vrot.lane.b32.xlu0 %v5324_v10, %s5671_s2  ;;  %v5326_v34 = vpop.eup %5325 }
0x1df9   :  { %v2499_v53 = vadd.f32 1.0, %v5326_v34 }
0x1dfb   :  { %5327 = vrcp.f32 %v2499_v53  ;;  %v2511_v5 = vand.u32 2147483648, %v2499_v53  ;;  %vm2505_vm7 = vweird.f32 %v2499_v53  ;;  %v2509_v61 = vand.u32 2147483647, %v2499_v53 }
0x1dfd   :  { %v2512_v23 = vor.u32 1.1754944e-38, %v2511_v5  ;;  %vm2510_vm10 = vcmp.eq.f32.partialorder %v2509_v61, 8.507059e+37 }
0x1e01   :  { %v5328_v18 = vpop.eup %5327 }
0x1e02   :  { %v2501_v30 = vmul.f32 %v5328_v18, %v2499_v53  ;;  %vm2506_vm8 = vweird.f32 %v5328_v18 }
0x1e03   :  { %vm2507_vm9 = vmor %vm2505_vm7, %vm2506_vm8 }
0x1e04   :  { %v2502_v3 = vsub.f32 1.0, %v2501_v30 }
0x1e06   :  { %v2503_v58 = vmul.f32 %v5328_v18, %v2502_v3 }
0x1e08   :  { %v2504_v35 = vadd.f32 %v5328_v18, %v2503_v58 }
0x1e0a   :  { %v2508_v1 = vsel %vm2507_vm9, %v5328_v18, %v2504_v35 }
0x1e0b   :  { %v2513_v28 = vsel %vm2510_vm10, %v2512_v23, %v2508_v1 }
0x1e0c   :  { %v2525_v32 = vsub.f32 1.0, %v2513_v28  ;;  %v2533_v4 = vmul.f32 %v2531_v8, %v2513_v28 }
0x1e5b   :  { %v2428_v52 = vpop.permute.xlu0 %2427 }
0x1e5c   :  { %v2430_v17 = vadd.f32 %v2428_v52, %v6212_v36 }
0x1e5e   :  { %5329 = vtanh.f32 %v2430_v17 }
0x1e64   :  { %v5330_v57 = vpop.eup %5329 }
0x1e65   :  { %2434 = vrot.lane.b32.xlu2 %v5330_v57, %s5671_s2 }
0x1e6a   :  { %v2528_v12 = vpop.permute.xlu0 %2527 }
0x1e6b   :  { %v2530_v27 = vmul.f32 %v2528_v12, %v2525_v32 }
0x1e6d   :  { %v6401_v9 = vadd.f32 %v2533_v4, %v2530_v27 }
0x1e6f   :  { %v2613_v38 = vrot.slane %v6401_v9, 4 }
0x1e71   :  { %5049 = vmatmul.msk.f32.vlgmr.msrb.gmra.mxu3 %vm160_vm13, %v2613_v38 }
0x1ebf   :  { %v2435_v0 = vpop.permute.xlu2 %2434 }
0x1ec0   :  { %v2437_v45 = vmul.f32 %v2435_v0, %v2432_v49 }
0x1ec2   :  { %v6406_v62 = vadd.f32 %v2440_v24, %v2437_v45 }
0x1ec4   :  { %v2540_v26 = vrot.slane %v6406_v62, 2 }
0x1ec6   :  { %2541 = vrot.lane.b32.xlu1 %v2540_v26, %s5671_s2 }
0x1ef4   :  { %v2633_v55 = vpop.f32.mrf.mxu3 }
0x1ef5   :  { %v2634_v59 = vadd.f32 %v6375_v54, %v2633_v55 }
0x1ef7   :  { %v2637_v47 = vrot.slane %v2634_v59, 6 }
0x1ef9   :  { %2681 = vrot.lane.b32.xlu1 %v2637_v47, %s5670_s18  ;;  %2638 = vrot.lane.b32.xlu2 %v2637_v47, %s5671_s2 }
0x1f38   :  { %v2542_v19 = vpop.permute.xlu1 %2541 }
0x1f39   :  { %5048 = vmatmul.msk.f32.vlgmr.msrb.gmra.mxu2 %vm160_vm13, %v2542_v19 }
0x1f53   :  { %v2639_v50 = vpop.permute.xlu2 %2638 }
0x1f54   :  { %v2641_v21 = vadd.f32 %v2639_v50, %v6208_v63  ;;  %v2661_v45 = vadd.f32 %v2639_v50, %v6354_v14 }
0x1f56   :  { %v2642_v33 = vsub.f32 0.0, %v2641_v21  ;;  %v2662_v26 = vsub.f32 0.0, %v2661_v45 }
0x1f58   :  { %v2643_v31 = vmul.f32 1.442695, %v2642_v33  ;;  %v2663_v55 = vmul.f32 1.442695, %v2662_v26 }
0x1f5a   :  { %5331 = vpow2.f32 %v2643_v31 }
0x1f60   :  { %v5332_v29 = vpop.eup %5331 }
0x1f61   :  { %v2645_v16 = vadd.f32 1.0, %v5332_v29 }
0x1f63   :  { %5333 = vrcp.f32 %v2645_v16  ;;  %v2657_v6 = vand.u32 2147483648, %v2645_v16  ;;  %vm2651_vm12 = vweird.f32 %v2645_v16  ;;  %v2655_v43 = vand.u32 2147483647, %v2645_v16 }
0x1f65   :  { %v2658_v53 = vor.u32 1.1754944e-38, %v2657_v6  ;;  %vm2656_vm8 = vcmp.eq.f32.partialorder %v2655_v43, 8.507059e+37  ;;  %v2697_v6 = vrot.slane %v6401_v9, 2 }
0x1f69   :  { %v5334_v56 = vpop.eup %5333 }
0x1f6a   :  { %v2647_v7 = vmul.f32 %v5334_v56, %v2645_v16  ;;  %vm2652_vm11 = vweird.f32 %v5334_v56 }
0x1f6b   :  { %vm2653_vm0 = vmor %vm2651_vm12, %vm2652_vm11  ;;  %v2682_v30 = vpop.permute.xlu1 %2681 }
0x1f6c   :  { %v2648_v37 = vsub.f32 1.0, %v2647_v7 }
0x1f6e   :  { %v2649_v11 = vmul.f32 %v5334_v56, %v2648_v37 }
0x1f70   :  { %v2650_v40 = vadd.f32 %v5334_v56, %v2649_v11 }
0x1f72   :  { %v2654_v34 = vsel %vm2653_vm0, %v5334_v56, %v2650_v40 }
0x1f73   :  { %v2659_v18 = vsel %vm2656_vm8, %v2658_v53, %v2654_v34 }
0x1f74   :  { %v2684_v3 = vmul.f32 %v2682_v30, %v2659_v18 }
0x1fbc   :  { %v2562_v39 = vpop.f32.mrf.mxu2 }
0x1fbd   :  { %v2563_v10 = vadd.f32 %v6388_v60, %v2562_v39 }
0x1fbf   :  { %v2566_v48 = vrot.slane %v2563_v10, 4 }
0x1fc1   :  { %2588 = vrot.lane.b32.xlu0 %v2566_v48, %s5672_s21  ;;  %v2568_v52 = vadd.f32 %v2566_v48, %v6212_v36 }
0x1fc3   :  { %v2569_v58 = vsub.f32 0.0, %v2568_v52 }
0x1fc5   :  { %v2570_v17 = vmul.f32 1.442695, %v2569_v58 }
0x1fc7   :  { %5335 = vpow2.f32 %v2570_v17 }
0x1fc9   :  { %2686 = vrot.lane.b32.xlu0 %v2684_v3, %s5672_s21  ;;  %v2604_v3 = vrot.slane %v6406_v62, 6 }
0x1fcd   :  { %v5336_v35 = vpop.eup %5335 }
0x1fce   :  { %v2572_v5 = vadd.f32 1.0, %v5336_v35 }
0x1fd0   :  { %5337 = vrcp.f32 %v2572_v5  ;;  %v2584_v32 = vand.u32 2147483648, %v2572_v5  ;;  %vm2578_vm9 = vweird.f32 %v2572_v5  ;;  %v2582_v8 = vand.u32 2147483647, %v2572_v5 }
0x1fd2   :  { %v2585_v4 = vor.u32 1.1754944e-38, %v2584_v32  ;;  %vm2583_vm11 = vcmp.eq.f32.partialorder %v2582_v8, 8.507059e+37 }
0x1fd6   :  { %v5338_v61 = vpop.eup %5337 }
0x1fd7   :  { %v2574_v1 = vmul.f32 %v5338_v61, %v2572_v5  ;;  %vm2579_vm7 = vweird.f32 %v5338_v61 }
0x1fd8   :  { %vm2580_vm10 = vmor %vm2578_vm9, %vm2579_vm7 }
0x1fd9   :  { %v2575_v57 = vsub.f32 1.0, %v2574_v1 }
0x1fdb   :  { %v2576_v23 = vmul.f32 %v5338_v61, %v2575_v57 }
0x1fdd   :  { %v2577_v28 = vadd.f32 %v5338_v61, %v2576_v23 }
0x1fdf   :  { %v2581_v12 = vsel %vm2580_vm10, %v5338_v61, %v2577_v28 }
0x1fe0   :  { %v2586_v27 = vsel %vm2583_vm11, %v2585_v4, %v2581_v12 }
0x1fe1   :  { %v2598_v30 = vsub.f32 1.0, %v2586_v27  ;;  %v2606_v58 = vmul.f32 %v2604_v3, %v2586_v27 }
0x2033   :  { %v2589_v38 = vpop.permute.xlu0 %2588 }
0x2034   :  { %v2591_v41 = vmul.f32 %v2589_v38, %v2586_v27 }
0x2036   :  { %2593 = vrot.lane.b32.xlu2 %v2591_v41, %s5672_s21 }
0x203b   :  { %v2687_v49 = vpop.permute.xlu0 %2686 }
0x203c   :  { %v2689_v0 = vadd.f32 %v2687_v49, %v6354_v14 }
0x203e   :  { %5339 = vtanh.f32 %v2689_v0 }
0x203f   :  { %5341 = vpow2.f32 %v2663_v55 }
0x2044   :  { %v5340_v24 = vpop.eup %5339 }
0x2045   :  { %2693 = vrot.lane.b32.xlu2 %v5340_v24, %s5671_s2  ;;  %v5342_v59 = vpop.eup %5341 }
0x2046   :  { %v2665_v47 = vadd.f32 1.0, %v5342_v59 }
0x2048   :  { %5343 = vrcp.f32 %v2665_v47  ;;  %v2677_v7 = vand.u32 2147483648, %v2665_v47  ;;  %vm2671_vm0 = vweird.f32 %v2665_v47  ;;  %v2675_v37 = vand.u32 2147483647, %v2665_v47 }
0x204a   :  { %v2678_v39 = vor.u32 1.1754944e-38, %v2677_v7  ;;  %vm2676_vm7 = vcmp.eq.f32.partialorder %v2675_v37, 8.507059e+37 }
0x204e   :  { %v5344_v19 = vpop.eup %5343 }
0x204f   :  { %v2667_v21 = vmul.f32 %v5344_v19, %v2665_v47  ;;  %vm2672_vm12 = vweird.f32 %v5344_v19 }
0x2050   :  { %vm2673_vm8 = vmor %vm2671_vm0, %vm2672_vm12 }
0x2051   :  { %v2668_v33 = vsub.f32 1.0, %v2667_v21 }
0x2053   :  { %v2669_v29 = vmul.f32 %v5344_v19, %v2668_v33 }
0x2055   :  { %v2670_v56 = vadd.f32 %v5344_v19, %v2669_v29 }
0x2057   :  { %v2674_v50 = vsel %vm2673_vm8, %v5344_v19, %v2670_v56 }
0x2058   :  { %v2679_v40 = vsel %vm2676_vm7, %v2678_v39, %v2674_v50 }
0x2059   :  { %v2691_v10 = vsub.f32 1.0, %v2679_v40  ;;  %v2699_v48 = vmul.f32 %v2697_v6, %v2679_v40 }
0x2090   :  { %v2594_v31 = vpop.permute.xlu2 %2593 }
0x2091   :  { %v2596_v16 = vadd.f32 %v2594_v31, %v6212_v36 }
0x2093   :  { %5345 = vtanh.f32 %v2596_v16 }
0x2099   :  { %v5346_v11 = vpop.eup %5345 }
0x209a   :  { %2600 = vrot.lane.b32.xlu1 %v5346_v11, %s5671_s2 }
0x209f   :  { %v2694_v43 = vpop.permute.xlu2 %2693 }
0x20a0   :  { %v2696_v34 = vmul.f32 %v2694_v43, %v2691_v10 }
0x20a2   :  { %v6426_v53 = vadd.f32 %v2699_v48, %v2696_v34 }
0x20a4   :  { %v2779_v18 = vrot.slane %v6426_v53, 2 }
0x20a6   :  { %5051 = vmatmul.msk.f32.vlgmr.msrb.gmra.mxu1 %vm160_vm13, %v2779_v18 }
0x210c   :  { %v2601_v52 = vpop.permute.xlu1 %2600 }
0x210d   :  { %v2603_v17 = vmul.f32 %v2601_v52, %v2598_v30 }
0x210f   :  { %v6433_v35 = vadd.f32 %v2606_v58, %v2603_v17 }
0x2111   :  { %v2706_v5 = vrot.slane %v6433_v35, 4 }
0x2113   :  { %2707 = vrot.lane.b32.xlu0 %v2706_v5, %s5671_s2 }
0x2123   :  { %v2799_v61 = vpop.f32.mrf.mxu1 }
0x2124   :  { %v2800_v1 = vadd.f32 %v6375_v54, %v2799_v61 }
0x2126   :  { %2846 = vrot.lane.b32.xlu2 %v2800_v1, %s5670_s18  ;;  %2803 = vrot.lane.b32.xlu1 %v2800_v1, %s5671_s2 }
0x2185   :  { %v2708_v57 = vpop.permute.xlu0 %2707 }
0x2186   :  { %5050 = vmatmul.msk.f32.vlgmr.msrb.gmra.mxu0 %vm160_vm13, %v2708_v57 }
0x2198   :  { %v2804_v23 = vpop.permute.xlu1 %2803 }
0x2199   :  { %v2806_v28 = vadd.f32 %v2804_v23, %v6208_v63  ;;  %v2847_v63 = vpop.permute.xlu2 %2846  ;;  %v2826_v40 = vadd.f32 %v2804_v23, %v6354_v14 }
0x219b   :  { %v2807_v32 = vsub.f32 0.0, %v2806_v28 }
0x219d   :  { %v2808_v8 = vmul.f32 1.442695, %v2807_v32 }
0x219f   :  { %5347 = vpow2.f32 %v2808_v8 }
0x21a5   :  { %v5348_v12 = vpop.eup %5347 }
0x21a6   :  { %v2810_v4 = vadd.f32 1.0, %v5348_v12 }
0x21a8   :  { %5349 = vrcp.f32 %v2810_v4  ;;  %v2822_v54 = vand.u32 2147483648, %v2810_v4  ;;  %v2820_v0 = vand.u32 2147483647, %v2810_v4  ;;  %vm2816_vm10 = vweird.f32 %v2810_v4 }
0x21aa   :  { %v2823_v45 = vor.u32 1.1754944e-38, %v2822_v54  ;;  %vm2821_vm12 = vcmp.eq.f32.partialorder %v2820_v0, 8.507059e+37 }
0x21ae   :  { %v5350_v27 = vpop.eup %5349 }
0x21af   :  { %v2812_v38 = vmul.f32 %v5350_v27, %v2810_v4  ;;  %vm2817_vm9 = vweird.f32 %v5350_v27 }
0x21b0   :  { %vm2818_vm11 = vmor %vm2816_vm10, %vm2817_vm9 }
0x21b1   :  { %v2813_v41 = vsub.f32 1.0, %v2812_v38 }
0x21b3   :  { %v2814_v49 = vmul.f32 %v5350_v27, %v2813_v41 }
0x21b5   :  { %v2815_v24 = vadd.f32 %v5350_v27, %v2814_v49 }
0x21b7   :  { %v2819_v26 = vsel %vm2818_vm11, %v5350_v27, %v2815_v24 }
0x21b8   :  { %v2824_v55 = vsel %vm2821_vm12, %v2823_v45, %v2819_v26 }
0x21b9   :  { %v2849_v59 = vmul.f32 %v2847_v63, %v2824_v55  ;;  %v6486_v63 = vld [vmem:[#allocation8 + $0x78] sm:$0xff]  ;;  %v6495_v55 = vld [vmem:[#allocation8 + $0x50] sm:$0xff] }
0x21ba   :  { %3044 = vmatpush.msra.mxu1 %v6486_v63 }
0x21bb   :  { %2851 = vrot.lane.b32.xlu1 %v2849_v59, %s5672_s21  ;;  %v6497_v59 = vld [vmem:[#allocation8 + $0x68] sm:$0xff] }
0x2203   :  { %v2728_v47 = vpop.f32.mrf.mxu0 }
0x2204   :  { %v2729_v19 = vadd.f32 %v6388_v60, %v2728_v47  ;;  %v6503_v47 = vld [vmem:[#allocation8 + $0x60] sm:$0xff] }
0x2206   :  { %v2732_v21 = vrot.slane %v2729_v19, 2  ;;  %v2888_v19 = vld [vmem:[#allocation6 + $0xf8] sm:$0xff] }
0x2207   :  { %2933 = vmatpush.msra.mxu3 %v2888_v19 }
0x2208   :  { %2754 = vrot.lane.b32.xlu0 %v2732_v21, %s5672_s21  ;;  %v2734_v16 = vadd.f32 %v2732_v21, %v6212_v36  ;;  %v2885_v21 = vld [vmem:[#allocation6 + $0xe0] sm:$0xff] }
0x220a   :  { %v2735_v56 = vsub.f32 0.0, %v2734_v16  ;;  %v2881_v16 = vld [vmem:[#allocation6 + $0xc0] sm:$0xff] }
0x220c   :  { %v2736_v60 = vmul.f32 1.442695, %v2735_v56  ;;  %v2882_v56 = vld [vmem:[#allocation6 + $0xc8] sm:$0xff] }
0x222d   :  { %v2852_v33 = vpop.permute.xlu1 %2851 }
0x222e   :  { %v2854_v31 = vadd.f32 %v2852_v33, %v6354_v14  ;;  %v2886_v33 = vld [vmem:[#allocation6 + $0xe8] sm:$0xff] }
0x222f   :  { %2934 = vmatpush.msra.mxu3 %v2886_v33 }
0x2230   :  { %5351 = vtanh.f32 %v2854_v31  ;;  %v2883_v31 = vld [vmem:[#allocation6 + $0xd0] sm:$0xff] }
0x2231   :  { %5353 = vpow2.f32 %v2736_v60  ;;  %v2879_v60 = vld [vmem:[#allocation6 + $0xb0] sm:$0xff] }
0x2236   :  { %v5352_v29 = vpop.eup %5351 }
0x2237   :  { %2858 = vrot.lane.b32.xlu0 %v5352_v29, %s5671_s2  ;;  %v5354_v7 = vpop.eup %5353  ;;  %v2884_v29 = vld [vmem:[#allocation6 + $0xd8] sm:$0xff] }
0x2238   :  { %v2738_v37 = vadd.f32 1.0, %v5354_v7  ;;  %2935 = vmatpush.msra.mxu3 %v2884_v29  ;;  %v2880_v7 = vld [vmem:[#allocation6 + $0xb8] sm:$0xff] }
0x223a   :  { %5355 = vrcp.f32 %v2738_v37  ;;  %v2750_v6 = vand.u32 2147483648, %v2738_v37  ;;  %vm2744_vm8 = vweird.f32 %v2738_v37  ;;  %v2748_v43 = vand.u32 2147483647, %v2738_v37  ;;  %2936 = vmatpush.msra.mxu3 %v2882_v56 }
0x223c   :  { %v2751_v34 = vor.u32 1.1754944e-38, %v2750_v6  ;;  %vm2749_vm9 = vcmp.eq.f32.partialorder %v2748_v43, 8.507059e+37  ;;  %2937 = vmatpush.msra.mxu3 %v2880_v7 }
0x223f   :  { %1954 = vrot.lane.b32.xlu0 %v6305_v44, %s5671_s2 }
0x2240   :  { %v5356_v50 = vpop.eup %5355 }
0x2241   :  { %v2740_v11 = vmul.f32 %v5356_v50, %v2738_v37  ;;  %vm2745_vm0 = vweird.f32 %v5356_v50  ;;  %v2877_v37 = vld [vmem:[#allocation6 + $0xa0] sm:$0xff] }
0x2242   :  { %vm2746_vm7 = vmor %vm2744_vm8, %vm2745_vm0  ;;  %vm7039_vm8 = vcmask 523264  }
0x2243   :  { %v2741_v44 = vsub.f32 1.0, %v2740_v11  ;;  %v2875_v11 = vld [vmem:[#allocation6 + $0x90] sm:$0xff] }
0x2245   :  { %v2742_v39 = vmul.f32 %v5356_v50, %v2741_v44  ;;  %v2876_v44 = vld [vmem:[#allocation6 + $0x98] sm:$0xff] }
0x2247   :  { %2536 = vrot.lane.b32.xlu0 %v6401_v9, %s5670_s18  ;;  %v2743_v10 = vadd.f32 %v5356_v50, %v2742_v39  ;;  %v2827_v9 = vsub.f32 0.0, %v2826_v40  ;;  %v2873_v39 = vld [vmem:[#allocation6 + $0x80] sm:$0xff]  ;;  %v2874_v40 = vld [vmem:[#allocation6 + $0x88] sm:$0xff] }
0x2249   :  { %v2828_v48 = vmul.f32 1.442695, %v2827_v9  ;;  %v2770_v9 = vrot.slane %v6433_v35, 6 }
0x224b   :  { %5357 = vpow2.f32 %v2828_v48 }
0x224f   :  { %1718 = vrot.lane.b32.xlu0 %v6232_v2, %s5670_s18  ;;  %v2747_v2 = vsel %vm2746_vm7, %v5356_v50, %v2743_v10  ;;  %v2878_v50 = vld [vmem:[#allocation6 + $0xa8] sm:$0xff]  ;;  %vm7040_vm7 = vmmov %vm7039_vm8 }
0x2250   :  { %v6457_v30 = vsel %vm2749_vm9, %v2751_v34, %v2747_v2  ;;  %2938 = vmatpush.msra.mxu3 %v2878_v50  ;;  %vm7041_vm9 = vmmov %vm7040_vm7 }
0x2251   :  { %v5358_v14 = vpop.eup %5357  ;;  %v2764_v10 = vsub.f32 1.0, %v6457_v30  ;;  %v2772_v43 = vmul.f32 %v2770_v9, %v6457_v30 }
0x2252   :  { %v2830_v52 = vadd.f32 1.0, %v5358_v14  ;;  %2939 = vmatpush.msra.mxu3 %v2876_v44 }
0x2254   :  { %5359 = vrcp.f32 %v2830_v52  ;;  %v2842_v57 = vand.u32 2147483648, %v2830_v52  ;;  %vm2836_vm11 = vweird.f32 %v2830_v52  ;;  %v2840_v23 = vand.u32 2147483647, %v2830_v52  ;;  %2940 = vmatpush.msra.mxu3 %v2874_v40 }
0x2256   :  { %v2843_v32 = vor.u32 1.1754944e-38, %v2842_v57  ;;  %vm2841_vm0 = vcmp.eq.f32.partialorder %v2840_v23, 8.507059e+37  ;;  %3537 = vmatpush.msrb.mxu3 %v6486_v63 }
0x2257   :  { %2211 = vrot.lane.b32.xlu0 %v6330_v25, %s5670_s18 }
0x225a   :  { %v5360_v58 = vpop.eup %5359 }
0x225b   :  { %v2832_v17 = vmul.f32 %v5360_v58, %v2830_v52  ;;  %vm2837_vm10 = vweird.f32 %v5360_v58 }
0x225c   :  { %vm2838_vm12 = vmor %vm2836_vm11, %vm2837_vm10 }
0x225d   :  { %v2833_v5 = vsub.f32 1.0, %v2832_v17  ;;  %vm7042_vm10 = vmmov %vm7040_vm7 }
0x225f   :  { %v2834_v61 = vmul.f32 %v5360_v58, %v2833_v5 }
0x2261   :  { %v2835_v1 = vadd.f32 %v5360_v58, %v2834_v61  ;;  %v6574_v61 = vld [vmem:[%s7035_s8 + $0x2] ss:$0 sm:$0xff] }
0x2263   :  { %v2839_v28 = vsel %vm2838_vm12, %v5360_v58, %v2835_v1 }
0x227a   :  { %v2755_v25 = vpop.permute.xlu0 %2754 }
0x227b   :  { %v2757_v3 = vmul.f32 %v2755_v25, %v6457_v30  ;;  %v6564_v30 = vld [vmem:[%s7035_s8 + $0x3] ss:$0 sm:$0xff] }
0x227d   :  { %2759 = vrot.lane.b32.xlu2 %v2757_v3, %s5672_s21 }
0x2285   :  { %1788 = vrot.lane.b32.xlu2 %v6270_v22, %s5671_s2  ;;  %v2844_v22 = vsel %vm2841_vm0, %v2843_v32, %v2839_v28 }
0x2286   :  { %v2856_v8 = vsub.f32 1.0, %v2844_v22 }
0x228d   :  { %2373 = vrot.lane.b32.xlu2 %v6362_v42, %s5670_s18  ;;  %v2863_v42 = vmul.f32 %v2844_v22, %v2779_v18  ;;  %v6585_v22 = vld [vmem:[%s7033_s6 + $0x2] sm:$0x3] }
0x228e   :  { %v2893_v40 = vperm.slane %v6585_v22, 1 }
0x2295   :  { %2047 = vrot.lane.b32.xlu2 %v6294_v20, %s5670_s18 }
0x22a9   :  { %v2859_v12 = vpop.permute.xlu0 %2858 }
0x22aa   :  { %v2861_v4 = vmul.f32 %v2859_v12, %v2856_v8  ;;  %v2892_v8 = vperm.slane %v6585_v22, 0 }
0x22ac   :  { %v2864_v27 = vadd.f32 %v2863_v42, %v2861_v4 }
0x22ae   :  { %2866 = vrot.lane.b32.xlu2 %v2864_v27, %s5670_s18 }
0x22b1   :  { %v1955_v20 = vpop.permute.xlu0 %1954 }
0x22b2   :  { %1957 = vst.msk [vmem:[#allocation2] sm:$0x30] %vm558_vm15, %v1955_v20 }
0x22b6   :  { %2609 = vrot.lane.b32.xlu2 %v6433_v35, %s5671_s2 }
0x22b9   :  { %v2537_v38 = vpop.permute.xlu0 %2536 }
0x22ba   :  { %2539 = vst.msk [vmem:[#allocation2] sm:$0x30] %vm484_vm1, %v2537_v38 }
0x22c1   :  { %v1719_v41 = vpop.permute.xlu0 %1718 }
0x22c2   :  { %1721 = vst.msk [vmem:[#allocation2 + $0x8] sm:$0xc0] %vm319_vm2, %v1719_v41 }
0x22c9   :  { %v2212_v54 = vpop.permute.xlu0 %2211 }
0x22ca   :  { %2214 = vst.msk [vmem:[#allocation2 + $0x8] sm:$0x3] %vm818_vm3, %v2212_v54 }
0x22cb   :  { %2284 = vst.msk [vmem:[#allocation2 + $0x8] sm:$0x3] %vm7038_vm14, %v6380_v15  ;;  %v6488_v15 = vld [vmem:[#allocation8 + $0x70] sm:$0xff] }
0x22cc   :  { %3045 = vmatpush.msra.mxu1 %v6488_v15  ;;  %3538 = vmatpush.msrb.mxu3 %v6488_v15 }
0x22ce   :  { %3046 = vmatpush.msra.mxu1 %v6497_v59  ;;  %3539 = vmatpush.msrb.mxu3 %v6497_v59 }
0x22d0   :  { %3047 = vmatpush.msra.mxu1 %v6503_v47  ;;  %3540 = vmatpush.msrb.mxu3 %v6503_v47 }
0x22d1   :  { %3048 = vmatmul.f32.vlgmr.msra.gmra.mxu1 %v5669_v13 }
0x22d2   :  { %3205 = vmatpush.msrb.mxu1 %v6486_v63 }
0x22d4   :  { %3206 = vmatpush.msrb.mxu1 %v6488_v15 }
0x22d6   :  { %3207 = vmatpush.msrb.mxu1 %v6497_v59 }
0x22d7   :  { %v2760_v18 = vpop.permute.xlu2 %2759 }
0x22d8   :  { %v2762_v49 = vadd.f32 %v2760_v18, %v6212_v36  ;;  %v6493_v36 = vld [vmem:[#allocation8 + $0x58] sm:$0xff]  ;;  %3208 = vmatpush.msrb.mxu1 %v6503_v47 }
0x22d9   :  { %2977 = vmatpush.msra.mxu0 %v6493_v36 }
0x22da   :  { %5361 = vtanh.f32 %v2762_v49  ;;  %3371 = vmatpush.msra.mxu1 %v6486_v63 }
0x22db   :  { %2978 = vmatpush.msra.mxu0 %v6495_v55 }
0x22dc   :  { %3372 = vmatpush.msra.mxu1 %v6488_v15 }
0x22de   :  { %3373 = vmatpush.msra.mxu1 %v6497_v59 }
0x22df   :  { %v1789_v0 = vpop.permute.xlu2 %1788 }
0x22e0   :  { %v5362_v24 = vpop.eup %5361  ;;  %1791 = vst.msk [vmem:[#allocation2] sm:$0xc] %vm390_vm4, %v1789_v0  ;;  %3374 = vmatpush.msra.mxu1 %v6503_v47 }
0x22e1   :  { %2766 = vrot.lane.b32.xlu1 %v5362_v24, %s5671_s2 }
0x22e7   :  { %v6481_v45 = vpop.permute.xlu2 %2373 }
0x22e9   :  { %2120 = vrot.lane.b32.xlu1 %v6335_v51, %s5671_s2  ;;  %v6501_v51 = vld [vmem:[#allocation8 + $0x48] sm:$0xff] }
0x22ea   :  { %2979 = vmatpush.msra.mxu0 %v6501_v51 }
0x22ef   :  { %v2048_v26 = vpop.permute.xlu2 %2047 }
0x22f0   :  { %2050 = vst.msk [vmem:[#allocation2 + $0x8] sm:$0xc] %vm652_vm6, %v2048_v26 }
0x22f1   :  { %2702 = vrot.lane.b32.xlu1 %v6426_v53, %s5670_s18  ;;  %v6507_v53 = vld [vmem:[#allocation8 + $0x40] sm:$0xff] }
0x22f2   :  { %2980 = vmatpush.msra.mxu0 %v6507_v53 }
0x22f3   :  { %2981 = vmatmul.f32.vlgmr.msra.gmra.mxu0 %v5669_v13 }
0x22f4   :  { %3134 = vmatpush.msrb.mxu0 %v6493_v36 }
0x22f6   :  { %3135 = vmatpush.msrb.mxu0 %v6495_v55 }
0x22f8   :  { %3136 = vmatpush.msrb.mxu0 %v6501_v51 }
0x22f9   :  { %1881 = vrot.lane.b32.xlu1 %v6261_v46, %s5670_s18 }
0x22fa   :  { %3137 = vmatpush.msrb.mxu0 %v6507_v53 }
0x22fc   :  { %3300 = vmatpush.msra.mxu0 %v6493_v36 }
0x22fe   :  { %3301 = vmatpush.msra.mxu0 %v6495_v55 }
0x2300   :  { %3302 = vmatpush.msra.mxu0 %v6501_v51 }
0x2301   :  { %2443 = vrot.lane.b32.xlu1 %v6406_v62, %s5671_s2  ;;  %v2887_v62 = vld [vmem:[#allocation6 + $0xf0] sm:$0xff] }
0x2302   :  { %3303 = vmatpush.msra.mxu0 %v6507_v53  ;;  %2910 = vmatpush.msra.mxu2 %v2887_v62 }
0x2304   :  { %2911 = vmatpush.msra.mxu2 %v2885_v21 }
0x2306   :  { %2912 = vmatpush.msra.mxu2 %v2883_v31 }
0x2308   :  { %v2867_v46 = vpop.permute.xlu2 %2866  ;;  %2913 = vmatpush.msra.mxu2 %v2881_v16 }
0x2309   :  { %2869 = vst.msk [vmem:[#allocation2] sm:$0x3] %vm818_vm3, %v2867_v46 }
0x230a   :  { %2914 = vmatpush.msra.mxu2 %v2879_v60 }
0x230c   :  { %2915 = vmatpush.msra.mxu2 %v2877_v37 }
0x230e   :  { %2916 = vmatpush.msra.mxu2 %v2875_v11 }
0x2310   :  { %2917 = vmatpush.msra.mxu2 %v2873_v39  ;;  %v2610_v14 = vpop.permute.xlu2 %2609 }
0x2312   :  { %3466 = vmatpush.msrb.mxu2 %v6493_v36 }
0x2314   :  { %3467 = vmatpush.msrb.mxu2 %v6495_v55 }
0x2316   :  { %3468 = vmatpush.msrb.mxu2 %v6501_v51 }
0x2318   :  { %3469 = vmatpush.msrb.mxu2 %v6507_v53 }
0x234e   :  { %v3049_v58 = vpop.f32.mrf.mxu1 }
0x234f   :  { %v3050_v17 = vadd.f32 %v6564_v30, %v3049_v58 }
0x2351   :  { %v3053_v5 = vrot.slane %v3050_v17, 2 }
0x2353   :  { %v2767_v6 = vpop.permute.xlu1 %2766  ;;  %3097 = vrot.lane.b32.xlu2 %v3053_v5, %s5670_s18  ;;  %3054 = vrot.lane.b32.xlu1 %v3053_v5, %s5671_s2 }
0x2354   :  { %v2769_v2 = vmul.f32 %v2767_v6, %v2764_v10 }
0x2356   :  { %v2773_v48 = vadd.f32 %v2772_v43, %v2769_v2 }
0x2358   :  { %2775 = vrot.lane.b32.xlu0 %v2773_v48, %s5671_s2 }
0x235b   :  { %v2121_v34 = vpop.permute.xlu1 %2120 }
0x235c   :  { %2123 = vst.msk [vmem:[#allocation2] sm:$0xc0] %vm726_vm5, %v2121_v34 }
0x235d   :  { %2376 = vst.msk [vmem:[#allocation2] sm:$0xc0] %vm319_vm2, %v6481_v45 }
0x2363   :  { %v2703_v25 = vpop.permute.xlu1 %2702 }
0x2364   :  { %2705 = vst.msk [vmem:[#allocation2] sm:$0xc] %vm652_vm6, %v2703_v25 }
0x236b   :  { %v1882_v35 = vpop.permute.xlu1 %1881  ;;  %v2870_v3 = vld [vmem:[#allocation2] sm:$0xff] }
0x236c   :  { %1884 = vst.msk [vmem:[#allocation2 + $0x8] sm:$0x30] %vm484_vm1, %v1882_v35  ;;  %5053 = vmatmul.msk.f32.vlgmr.msra.gmra.mxu2 %vm7039_vm8, %v2870_v3  ;;  %5055 = vmatmul.msk.f32.vlgmr.msra.gmra.mxu3 %vm7040_vm7, %v2870_v3 }
0x236d   :  { %2612 = vst.msk [vmem:[#allocation2 + $0x8] sm:$0x30] %vm558_vm15, %v2610_v14  ;;  %3860 = vmatpush.msra.mxu3 %v6486_v63  ;;  %3789 = vmatpush.msra.mxu2 %v6493_v36 }
0x236f   :  { %3861 = vmatpush.msra.mxu3 %v6488_v15  ;;  %3790 = vmatpush.msra.mxu2 %v6495_v55 }
0x2370   :  { %v2982_v1 = vpop.f32.mrf.mxu0 }
0x2371   :  { %3862 = vmatpush.msra.mxu3 %v6497_v59  ;;  %3791 = vmatpush.msra.mxu2 %v6501_v51  ;;  %v2983_v57 = vadd.f32 %v6574_v61, %v2982_v1 }
0x2373   :  { %v2444_v52 = vpop.permute.xlu1 %2443  ;;  %3863 = vmatpush.msra.mxu3 %v6503_v47  ;;  %3792 = vmatpush.msra.mxu2 %v6507_v53 }
0x2374   :  { %2446 = vst.msk [vmem:[#allocation2 + $0x8] sm:$0xc] %vm390_vm4, %v2444_v52  ;;  %3006 = vrot.lane.b32.xlu2 %v2983_v57, %s5672_s21 }
0x23ad   :  { %v3098_v21 = vpop.permute.xlu2 %3097 }
0x23c5   :  { %v3055_v42 = vpop.permute.xlu1 %3054 }
0x23ca   :  { %v2776_v23 = vpop.permute.xlu0 %2775 }
0x23cb   :  { %2778 = vst.msk [vmem:[#allocation2 + $0x8] sm:$0xc0] %vm726_vm5, %v2776_v23 }
0x23ce   :  { %v3007_v58 = vpop.permute.xlu2 %3006 }
0x23d2   :  { %v2871_v28 = vld [vmem:[#allocation2 + $0x8] sm:$0xff] }
0x23d3   :  { %5054 = vmatmul.msk.f32.gmra.mxu2 %vm7041_vm9, %v2871_v28  ;;  %5056 = vmatmul.msk.f32.gmra.mxu3 %vm7042_vm10, %v2871_v28 }
0x23ef   :  { %v2919_v32 = vpop.f32.mrf.mxu2  ;;  %v6595_v50 = vpop.f32.mrf.mxu3 }
0x23f0   :  { %v6592_v29 = vadd.f32 %v2919_v32, %v2892_v8 }
0x23f2   :  { %v2985_v16 = vadd.f32 %v2983_v57, %v6592_v29 }
0x23f4   :  { %v2986_v56 = vsub.f32 0.0, %v2985_v16 }
0x23f6   :  { %v2987_v60 = vmul.f32 1.442695, %v2986_v56 }
0x2456   :  { %v2922_v12 = vpop.f32.mrf.mxu2  ;;  %v2945_v39 = vpop.f32.mrf.mxu3 }
0x2457   :  { %v6588_v4 = vadd.f32 %v2922_v12, %v2892_v8  ;;  %v6600_v9 = vadd.f32 %v2945_v39, %v2893_v40 }
0x2459   :  { %v3057_v27 = vadd.f32 %v3055_v42, %v6588_v4  ;;  %v3077_v5 = vadd.f32 %v3055_v42, %v6600_v9 }
0x245b   :  { %v3058_v20 = vsub.f32 0.0, %v3057_v27  ;;  %v3078_v1 = vsub.f32 0.0, %v3077_v5 }
0x245d   :  { %v3059_v38 = vmul.f32 1.442695, %v3058_v20  ;;  %v3079_v57 = vmul.f32 1.442695, %v3078_v1 }
0x245f   :  { %5363 = vpow2.f32 %v3059_v38 }
0x2465   :  { %v5364_v41 = vpop.eup %5363 }
0x2466   :  { %v3061_v54 = vadd.f32 1.0, %v5364_v41 }
0x2468   :  { %5365 = vrcp.f32 %v3061_v54  ;;  %v3073_v24 = vand.u32 2147483648, %v3061_v54  ;;  %v3071_v26 = vand.u32 2147483647, %v3061_v54  ;;  %vm3067_vm12 = vweird.f32 %v3061_v54 }
0x2469   :  { %5367 = vpow2.f32 %v2987_v60 }
0x246a   :  { %v3074_v62 = vor.u32 1.1754944e-38, %v3073_v24  ;;  %vm3072_vm8 = vcmp.eq.f32.partialorder %v3071_v26, 8.507059e+37 }
0x246e   :  { %v5366_v18 = vpop.eup %5365 }
0x246f   :  { %v3063_v49 = vmul.f32 %v5366_v18, %v3061_v54  ;;  %vm3068_vm11 = vweird.f32 %v5366_v18  ;;  %v5368_v7 = vpop.eup %5367 }
0x2470   :  { %vm3069_vm0 = vmor %vm3067_vm12, %vm3068_vm11  ;;  %v2989_v37 = vadd.f32 1.0, %v5368_v7 }
0x2471   :  { %v3064_v0 = vsub.f32 1.0, %v3063_v49 }
0x2472   :  { %5369 = vrcp.f32 %v2989_v37  ;;  %v3001_v34 = vand.u32 2147483648, %v2989_v37  ;;  %vm2995_vm9 = vweird.f32 %v2989_v37  ;;  %v2999_v25 = vand.u32 2147483647, %v2989_v37 }
0x2473   :  { %v3065_v45 = vmul.f32 %v5366_v18, %v3064_v0 }
0x2474   :  { %v3002_v14 = vor.u32 1.1754944e-38, %v3001_v34  ;;  %vm3000_vm11 = vcmp.eq.f32.partialorder %v2999_v25, 8.507059e+37 }
0x2475   :  { %v3066_v46 = vadd.f32 %v5366_v18, %v3065_v45 }
0x2477   :  { %v3070_v19 = vsel %vm3069_vm0, %v5366_v18, %v3066_v46 }
0x2478   :  { %v3075_v33 = vsel %vm3072_vm8, %v3074_v62, %v3070_v19  ;;  %v5370_v11 = vpop.eup %5369 }
0x2479   :  { %v3100_v31 = vmul.f32 %v3098_v21, %v3075_v33  ;;  %v2991_v44 = vmul.f32 %v5370_v11, %v2989_v37  ;;  %vm2996_vm7 = vweird.f32 %v5370_v11 }
0x247a   :  { %vm2997_vm10 = vmor %vm2995_vm9, %vm2996_vm7 }
0x247b   :  { %3102 = vrot.lane.b32.xlu0 %v3100_v31, %s5672_s21  ;;  %v2992_v10 = vsub.f32 1.0, %v2991_v44 }
0x247d   :  { %v2993_v2 = vmul.f32 %v5370_v11, %v2992_v10 }
0x247f   :  { %v2994_v48 = vadd.f32 %v5370_v11, %v2993_v2 }
0x2481   :  { %v2998_v3 = vsel %vm2997_vm10, %v5370_v11, %v2994_v48 }
0x2482   :  { %v3003_v52 = vsel %vm3000_vm11, %v3002_v14, %v2998_v3 }
0x2483   :  { %v3009_v17 = vmul.f32 %v3007_v58, %v3003_v52  ;;  %v3016_v11 = vsub.f32 1.0, %v3003_v52  ;;  %v3022_v39 = vmul.f32 0.0, %v3003_v52 }
0x24ed   :  { %v3103_v6 = vpop.permute.xlu0 %3102 }
0x24ee   :  { %v3105_v43 = vadd.f32 %v3103_v6, %v6600_v9 }
0x24f0   :  { %5371 = vtanh.f32 %v3105_v43 }
0x24f1   :  { %5373 = vpow2.f32 %v3079_v57 }
0x24f6   :  { %v5372_v35 = vpop.eup %5371 }
0x24f7   :  { %3109 = vrot.lane.b32.xlu1 %v5372_v35, %s5671_s2  ;;  %v5374_v23 = vpop.eup %5373 }
0x24f8   :  { %v3081_v28 = vadd.f32 1.0, %v5374_v23 }
0x24fa   :  { %5375 = vrcp.f32 %v3081_v28  ;;  %v3093_v38 = vand.u32 2147483648, %v3081_v28  ;;  %vm3087_vm0 = vweird.f32 %v3081_v28  ;;  %v3091_v41 = vand.u32 2147483647, %v3081_v28 }
0x24fc   :  { %v3094_v18 = vor.u32 1.1754944e-38, %v3093_v38  ;;  %vm3092_vm7 = vcmp.eq.f32.partialorder %v3091_v41, 8.507059e+37 }
0x24ff   :  { %3011 = vrot.lane.b32.xlu1 %v3009_v17, %s5672_s21 }
0x2500   :  { %v5376_v32 = vpop.eup %5375 }
0x2501   :  { %v3083_v8 = vmul.f32 %v5376_v32, %v3081_v28  ;;  %vm3088_vm12 = vweird.f32 %v5376_v32 }
0x2502   :  { %vm3089_vm8 = vmor %vm3087_vm0, %vm3088_vm12 }
0x2503   :  { %v3084_v12 = vsub.f32 1.0, %v3083_v8 }
0x2505   :  { %v3085_v27 = vmul.f32 %v5376_v32, %v3084_v12 }
0x2507   :  { %v3086_v20 = vadd.f32 %v5376_v32, %v3085_v27 }
0x2509   :  { %v3090_v54 = vsel %vm3089_vm8, %v5376_v32, %v3086_v20 }
0x250a   :  { %v3095_v42 = vsel %vm3092_vm7, %v3094_v18, %v3090_v54 }
0x250b   :  { %v3107_v49 = vsub.f32 1.0, %v3095_v42  ;;  %v3113_v24 = vmul.f32 0.0, %v3095_v42 }
0x2569   :  { %v3110_v0 = vpop.permute.xlu1 %3109 }
0x256a   :  { %v3112_v45 = vmul.f32 %v3110_v0, %v3107_v49 }
0x256c   :  { %v6606_v26 = vadd.f32 %v3113_v24, %v3112_v45 }
0x256e   :  { %v3190_v46 = vrot.slane %v6606_v26, 6 }
0x2570   :  { %5060 = vmatmul.msk.f32.vlgmr.msrb.gmra.mxu1 %vm160_vm13, %v3190_v46 }
0x2571   :  { %3697 = vmatpush.msrb.mxu1 %v6486_v63  ;;  %v3012_v62 = vpop.permute.xlu1 %3011 }
0x2572   :  { %v3014_v33 = vadd.f32 %v3012_v62, %v6592_v29 }
0x2573   :  { %3698 = vmatpush.msrb.mxu1 %v6488_v15 }
0x2574   :  { %5377 = vtanh.f32 %v3014_v33 }
0x2575   :  { %3699 = vmatpush.msrb.mxu1 %v6497_v59 }
0x2577   :  { %3700 = vmatpush.msrb.mxu1 %v6503_v47 }
0x257a   :  { %v5378_v16 = vpop.eup %5377 }
0x25ed   :  { %v3210_v19 = vpop.f32.mrf.mxu1 }
0x25ee   :  { %v3211_v21 = vadd.f32 %v6564_v30, %v3210_v19 }
0x25f0   :  { %v3214_v31 = vrot.slane %v3211_v21, 4 }
0x25f2   :  { %3258 = vrot.lane.b32.xlu2 %v3214_v31, %s5670_s18  ;;  %3215 = vrot.lane.b32.xlu0 %v3214_v31, %s5671_s2 }
0x25fa   :  { %3018 = vrot.lane.b32.xlu0 %v5378_v16, %s5671_s2 }
0x264c   :  { %v3259_v5 = vpop.permute.xlu2 %3258 }
0x2664   :  { %v3216_v56 = vpop.permute.xlu0 %3215 }
0x2665   :  { %v3218_v60 = vadd.f32 %v3216_v56, %v6588_v4  ;;  %v3238_v12 = vadd.f32 %v3216_v56, %v6600_v9  ;;  %v3274_v56 = vrot.slane %v6606_v26, 2 }
0x2667   :  { %v3219_v7 = vsub.f32 0.0, %v3218_v60  ;;  %v3239_v27 = vsub.f32 0.0, %v3238_v12 }
0x2669   :  { %v3220_v37 = vmul.f32 1.442695, %v3219_v7  ;;  %v3240_v20 = vmul.f32 1.442695, %v3239_v27 }
0x266b   :  { %5379 = vpow2.f32 %v3220_v37 }
0x266c   :  { %v3019_v44 = vpop.permute.xlu0 %3018 }
0x266d   :  { %v3021_v10 = vmul.f32 %v3019_v44, %v3016_v11 }
0x266f   :  { %v6620_v6 = vadd.f32 %v3022_v39, %v3021_v10 }
0x2671   :  { %v5380_v43 = vpop.eup %5379  ;;  %3025 = vrot.lane.b32.xlu2 %v6620_v6, %s5671_s2 }
0x2672   :  { %v3222_v2 = vadd.f32 1.0, %v5380_v43 }
0x2674   :  { %5381 = vrcp.f32 %v3222_v2  ;;  %v3234_v35 = vand.u32 2147483648, %v3222_v2  ;;  %v3232_v14 = vand.u32 2147483647, %v3222_v2  ;;  %vm3228_vm10 = vweird.f32 %v3222_v2 }
0x2676   :  { %v3235_v52 = vor.u32 1.1754944e-38, %v3234_v35  ;;  %vm3233_vm12 = vcmp.eq.f32.partialorder %v3232_v14, 8.507059e+37 }
0x267a   :  { %v5382_v48 = vpop.eup %5381 }
0x267b   :  { %v3224_v34 = vmul.f32 %v5382_v48, %v3222_v2  ;;  %vm3229_vm9 = vweird.f32 %v5382_v48 }
0x267c   :  { %vm3230_vm11 = vmor %vm3228_vm10, %vm3229_vm9 }
0x267d   :  { %v3225_v25 = vsub.f32 1.0, %v3224_v34 }
0x267f   :  { %v3226_v3 = vmul.f32 %v5382_v48, %v3225_v25 }
0x2681   :  { %v3227_v58 = vadd.f32 %v5382_v48, %v3226_v3 }
0x2683   :  { %v3231_v17 = vsel %vm3230_vm11, %v5382_v48, %v3227_v58 }
0x2684   :  { %v3236_v1 = vsel %vm3233_vm12, %v3235_v52, %v3231_v17 }
0x2685   :  { %v3261_v57 = vmul.f32 %v3259_v5, %v3236_v1 }
0x2687   :  { %3263 = vrot.lane.b32.xlu1 %v3261_v57, %s5672_s21 }
0x26cb   :  { %v3026_v23 = vpop.permute.xlu2 %3025 }
0x26cc   :  { %3028 = vst.msk [vmem:[#allocation2] sm:$0x3] %vm7038_vm14, %v3026_v23  ;;  %5059 = vmatmul.msk.f32.vlgmr.msrb.gmra.mxu0 %vm160_vm13, %v3026_v23 }
0x26cd   :  { %3630 = vmatpush.msrb.mxu0 %v6493_v36 }
0x26cf   :  { %3631 = vmatpush.msrb.mxu0 %v6495_v55 }
0x26d1   :  { %3632 = vmatpush.msrb.mxu0 %v6501_v51 }
0x26d3   :  { %3633 = vmatpush.msrb.mxu0 %v6507_v53 }
0x26f9   :  { %v3264_v28 = vpop.permute.xlu1 %3263 }
0x26fa   :  { %v3266_v32 = vadd.f32 %v3264_v28, %v6600_v9 }
0x26fc   :  { %5383 = vtanh.f32 %v3266_v32 }
0x26fd   :  { %5385 = vpow2.f32 %v3240_v20 }
0x2702   :  { %v5384_v8 = vpop.eup %5383 }
0x2703   :  { %3270 = vrot.lane.b32.xlu0 %v5384_v8, %s5671_s2  ;;  %v5386_v18 = vpop.eup %5385 }
0x2704   :  { %v3242_v42 = vadd.f32 1.0, %v5386_v18 }
0x2706   :  { %5387 = vrcp.f32 %v3242_v42  ;;  %v3254_v62 = vand.u32 2147483648, %v3242_v42  ;;  %vm3248_vm8 = vweird.f32 %v3242_v42  ;;  %v3252_v19 = vand.u32 2147483647, %v3242_v42 }
0x2708   :  { %v3255_v33 = vor.u32 1.1754944e-38, %v3254_v62  ;;  %vm3253_vm9 = vcmp.eq.f32.partialorder %v3252_v19, 8.507059e+37 }
0x270c   :  { %v5388_v49 = vpop.eup %5387 }
0x270d   :  { %v3244_v0 = vmul.f32 %v5388_v49, %v3242_v42  ;;  %vm3249_vm0 = vweird.f32 %v5388_v49 }
0x270e   :  { %vm3250_vm7 = vmor %vm3248_vm8, %vm3249_vm0 }
0x270f   :  { %v3245_v24 = vsub.f32 1.0, %v3244_v0 }
0x2711   :  { %v3246_v45 = vmul.f32 %v5388_v49, %v3245_v24 }
0x2713   :  { %v3247_v46 = vadd.f32 %v5388_v49, %v3246_v45 }
0x2715   :  { %v3251_v21 = vsel %vm3250_vm7, %v5388_v49, %v3247_v46 }
0x2716   :  { %v3256_v31 = vsel %vm3253_vm9, %v3255_v33, %v3251_v21 }
0x2717   :  { %v3268_v16 = vsub.f32 1.0, %v3256_v31  ;;  %v3276_v7 = vmul.f32 %v3274_v56, %v3256_v31 }
0x2749   :  { %v3139_v38 = vpop.f32.mrf.mxu0 }
0x274a   :  { %v3140_v41 = vadd.f32 %v6574_v61, %v3139_v38 }
0x274c   :  { %v3143_v54 = vrot.slane %v3140_v41, 6 }
0x274e   :  { %3165 = vrot.lane.b32.xlu1 %v3143_v54, %s5672_s21  ;;  %v3145_v39 = vadd.f32 %v3143_v54, %v6592_v29 }
0x2750   :  { %v3146_v10 = vsub.f32 0.0, %v3145_v39 }
0x2752   :  { %v3147_v43 = vmul.f32 1.442695, %v3146_v10 }
0x2754   :  { %5389 = vpow2.f32 %v3147_v43 }
0x275a   :  { %v5390_v2 = vpop.eup %5389 }
0x275b   :  { %v3149_v48 = vadd.f32 1.0, %v5390_v2 }
0x275d   :  { %5391 = vrcp.f32 %v3149_v48  ;;  %v3161_v58 = vand.u32 2147483648, %v3149_v48  ;;  %vm3155_vm11 = vweird.f32 %v3149_v48  ;;  %v3159_v52 = vand.u32 2147483647, %v3149_v48 }
0x275f   :  { %v3162_v5 = vor.u32 1.1754944e-38, %v3161_v58  ;;  %vm3160_vm0 = vcmp.eq.f32.partialorder %v3159_v52, 8.507059e+37 }
0x2763   :  { %v5392_v34 = vpop.eup %5391 }
0x2764   :  { %v3151_v25 = vmul.f32 %v5392_v34, %v3149_v48  ;;  %vm3156_vm10 = vweird.f32 %v5392_v34 }
0x2765   :  { %vm3157_vm12 = vmor %vm3155_vm11, %vm3156_vm10 }
0x2766   :  { %v3152_v35 = vsub.f32 1.0, %v3151_v25 }
0x2768   :  { %v3153_v3 = vmul.f32 %v5392_v34, %v3152_v35 }
0x276a   :  { %v3154_v14 = vadd.f32 %v5392_v34, %v3153_v3 }
0x276c   :  { %v3158_v17 = vsel %vm3157_vm12, %v5392_v34, %v3154_v14 }
0x276d   :  { %v3163_v57 = vsel %vm3160_vm0, %v3162_v5, %v3158_v17 }
0x2775   :  { %v3271_v60 = vpop.permute.xlu0 %3270 }
0x2776   :  { %v3273_v37 = vmul.f32 %v3271_v60, %v3268_v16 }
0x2778   :  { %v6637_v11 = vadd.f32 %v3276_v7, %v3273_v37  ;;  %v3181_v7 = vrot.slane %v6620_v6, 6  ;;  %v3175_v37 = vsub.f32 1.0, %v3163_v57 }
0x277a   :  { %v3356_v44 = vrot.slane %v6637_v11, 4  ;;  %v3183_v39 = vmul.f32 %v3181_v7, %v3163_v57 }
0x277c   :  { %5062 = vmatmul.msk.f32.vlgmr.msra.gmra.mxu1 %vm160_vm13, %v3356_v44 }
0x277d   :  { %4026 = vmatpush.msra.mxu1 %v6486_v63 }
0x277f   :  { %4027 = vmatpush.msra.mxu1 %v6488_v15 }
0x2781   :  { %4028 = vmatpush.msra.mxu1 %v6497_v59 }
0x2783   :  { %4029 = vmatpush.msra.mxu1 %v6503_v47 }
0x27c0   :  { %v3166_v1 = vpop.permute.xlu1 %3165 }
0x27c1   :  { %v3168_v23 = vmul.f32 %v3166_v1, %v3163_v57 }
0x27c3   :  { %3170 = vrot.lane.b32.xlu0 %v3168_v23, %s5672_s21 }
0x27f9   :  { %v3376_v28 = vpop.f32.mrf.mxu1 }
0x27fa   :  { %v3377_v32 = vadd.f32 %v6564_v30, %v3376_v28 }
0x27fc   :  { %v3380_v8 = vrot.slane %v3377_v32, 6 }
0x27fe   :  { %3381 = vrot.lane.b32.xlu2 %v3380_v8, %s5671_s2  ;;  %3424 = vrot.lane.b32.xlu1 %v3380_v8, %s5670_s18 }
0x2835   :  { %v3171_v12 = vpop.permute.xlu0 %3170 }
0x2836   :  { %v3173_v27 = vadd.f32 %v3171_v12, %v6592_v29 }
0x2838   :  { %5393 = vtanh.f32 %v3173_v27 }
0x283e   :  { %v5394_v20 = vpop.eup %5393 }
0x283f   :  { %3177 = vrot.lane.b32.xlu0 %v5394_v20, %s5671_s2 }
0x2858   :  { %v3382_v38 = vpop.permute.xlu2 %3381 }
0x2859   :  { %v3384_v41 = vadd.f32 %v3382_v38, %v6588_v4  ;;  %v3404_v35 = vadd.f32 %v3382_v38, %v6600_v9  ;;  %v3440_v38 = vrot.slane %v6637_v11, 2 }
0x285b   :  { %v3385_v54 = vsub.f32 0.0, %v3384_v41  ;;  %v3405_v6 = vsub.f32 0.0, %v3404_v35 }
0x285d   :  { %v3386_v18 = vmul.f32 1.442695, %v3385_v54  ;;  %v3406_v3 = vmul.f32 1.442695, %v3405_v6 }
0x285f   :  { %5395 = vpow2.f32 %v3386_v18 }
0x2865   :  { %v5396_v42 = vpop.eup %5395 }
0x2866   :  { %v3388_v49 = vadd.f32 1.0, %v5396_v42 }
0x2868   :  { %5397 = vrcp.f32 %v3388_v49  ;;  %v3400_v46 = vand.u32 2147483648, %v3388_v49  ;;  %v3398_v19 = vand.u32 2147483647, %v3388_v49  ;;  %vm3394_vm7 = vweird.f32 %v3388_v49 }
0x286a   :  { %v3401_v33 = vor.u32 1.1754944e-38, %v3400_v46  ;;  %vm3399_vm10 = vcmp.eq.f32.partialorder %v3398_v19, 8.507059e+37 }
0x286e   :  { %v5398_v0 = vpop.eup %5397 }
0x286f   :  { %v3390_v24 = vmul.f32 %v5398_v0, %v3388_v49  ;;  %vm3395_vm8 = vweird.f32 %v5398_v0 }
0x2870   :  { %vm3396_vm9 = vmor %vm3394_vm7, %vm3395_vm8  ;;  %v3425_v16 = vpop.permute.xlu1 %3424 }
0x2871   :  { %v3391_v45 = vsub.f32 1.0, %v3390_v24 }
0x2873   :  { %v3392_v62 = vmul.f32 %v5398_v0, %v3391_v45 }
0x2875   :  { %v3393_v21 = vadd.f32 %v5398_v0, %v3392_v62 }
0x2877   :  { %v3397_v31 = vsel %vm3396_vm9, %v5398_v0, %v3393_v21 }
0x2878   :  { %v3402_v56 = vsel %vm3399_vm10, %v3401_v33, %v3397_v31 }
0x2879   :  { %v3427_v60 = vmul.f32 %v3425_v16, %v3402_v56 }
0x287b   :  { %3429 = vrot.lane.b32.xlu2 %v3427_v60, %s5672_s21 }
0x28b1   :  { %v3178_v44 = vpop.permute.xlu0 %3177 }
0x28b2   :  { %v3180_v10 = vmul.f32 %v3178_v44, %v3175_v37 }
0x28b4   :  { %v6655_v43 = vadd.f32 %v3183_v39, %v3180_v10 }
0x28b6   :  { %v3283_v2 = vrot.slane %v6655_v43, 2 }
0x28b8   :  { %3284 = vrot.lane.b32.xlu1 %v3283_v2, %s5671_s2 }
0x28d5   :  { %v3430_v48 = vpop.permute.xlu2 %3429 }
0x28d6   :  { %v3432_v34 = vadd.f32 %v3430_v48, %v6600_v9 }
0x28d8   :  { %5399 = vtanh.f32 %v3432_v34 }
0x28d9   :  { %5401 = vpow2.f32 %v3406_v3 }
0x28de   :  { %v5400_v25 = vpop.eup %5399 }
0x28df   :  { %3436 = vrot.lane.b32.xlu2 %v5400_v25, %s5671_s2  ;;  %v5402_v14 = vpop.eup %5401 }
0x28e0   :  { %v3408_v58 = vadd.f32 1.0, %v5402_v14 }
0x28e2   :  { %5403 = vrcp.f32 %v3408_v58  ;;  %v3420_v28 = vand.u32 2147483648, %v3408_v58  ;;  %vm3414_vm12 = vweird.f32 %v3408_v58  ;;  %v3418_v32 = vand.u32 2147483647, %v3408_v58 }
0x28e4   :  { %v3421_v12 = vor.u32 1.1754944e-38, %v3420_v28  ;;  %vm3419_vm8 = vcmp.eq.f32.partialorder %v3418_v32, 8.507059e+37 }
0x28e8   :  { %v5404_v52 = vpop.eup %5403 }
0x28e9   :  { %v3410_v17 = vmul.f32 %v5404_v52, %v3408_v58  ;;  %vm3415_vm11 = vweird.f32 %v5404_v52 }
0x28ea   :  { %vm3416_vm0 = vmor %vm3414_vm12, %vm3415_vm11 }
0x28eb   :  { %v3411_v5 = vsub.f32 1.0, %v3410_v17 }
0x28ed   :  { %v3412_v57 = vmul.f32 %v5404_v52, %v3411_v5 }
0x28ef   :  { %v3413_v23 = vadd.f32 %v5404_v52, %v3412_v57 }
0x28f1   :  { %v3417_v8 = vsel %vm3416_vm0, %v5404_v52, %v3413_v23 }
0x28f2   :  { %v3422_v27 = vsel %vm3419_vm8, %v3421_v12, %v3417_v8 }
0x28f3   :  { %v3434_v20 = vsub.f32 1.0, %v3422_v27  ;;  %v3442_v41 = vmul.f32 %v3440_v38, %v3422_v27 }
0x292a   :  { %v3285_v1 = vpop.permute.xlu1 %3284 }
0x292b   :  { %5061 = vmatmul.msk.f32.vlgmr.msra.gmra.mxu0 %vm160_vm13, %v3285_v1 }
0x292c   :  { %3955 = vmatpush.msra.mxu0 %v6493_v36 }
0x292e   :  { %3956 = vmatpush.msra.mxu0 %v6495_v55 }
0x2930   :  { %3957 = vmatpush.msra.mxu0 %v6501_v51 }
0x2932   :  { %3958 = vmatpush.msra.mxu0 %v6507_v53 }
0x2939   :  { %v3437_v36 = vpop.permute.xlu2 %3436 }
0x293a   :  { %v3439_v54 = vmul.f32 %v3437_v36, %v3434_v20  ;;  %v3347_v36 = vrot.slane %v6655_v43, 6 }
0x293c   :  { %v6668_v18 = vadd.f32 %v3442_v41, %v3439_v54 }
0x293e   :  { %v3522_v55 = vrot.slane %v6668_v18, 2 }
0x2940   :  { %5064 = vmatmul.msk.f32.vlgmr.msrb.gmra.mxu3 %vm160_vm13, %v3522_v55 }
0x2941   :  { %4192 = vmatpush.msrb.mxu3 %v6486_v63 }
0x2943   :  { %4193 = vmatpush.msrb.mxu3 %v6488_v15 }
0x2945   :  { %4194 = vmatpush.msrb.mxu3 %v6497_v59 }
0x2947   :  { %4195 = vmatpush.msrb.mxu3 %v6503_v47 }
0x29a8   :  { %v3305_v51 = vpop.f32.mrf.mxu0 }
0x29a9   :  { %v3306_v53 = vadd.f32 %v6574_v61, %v3305_v51 }
0x29ab   :  { %v3309_v42 = vrot.slane %v3306_v53, 4 }
0x29ad   :  { %3331 = vrot.lane.b32.xlu0 %v3309_v42, %s5672_s21  ;;  %v3311_v63 = vadd.f32 %v3309_v42, %v6592_v29 }
0x29af   :  { %v3312_v15 = vsub.f32 0.0, %v3311_v63 }
0x29b1   :  { %v3313_v24 = vmul.f32 1.442695, %v3312_v15 }
0x29b3   :  { %5405 = vpow2.f32 %v3313_v24 }
0x29b9   :  { %v5406_v59 = vpop.eup %5405 }
0x29ba   :  { %v3315_v47 = vadd.f32 1.0, %v5406_v59 }
0x29bc   :  { %5407 = vrcp.f32 %v3315_v47  ;;  %v3327_v33 = vand.u32 2147483648, %v3315_v47  ;;  %vm3321_vm9 = vweird.f32 %v3315_v47  ;;  %v3325_v31 = vand.u32 2147483647, %v3315_v47 }
0x29be   :  { %v3328_v56 = vor.u32 1.1754944e-38, %v3327_v33  ;;  %vm3326_vm11 = vcmp.eq.f32.partialorder %v3325_v31, 8.507059e+37 }
0x29c2   :  { %v5408_v45 = vpop.eup %5407 }
0x29c3   :  { %v3542_v49 = vpop.f32.mrf.mxu3  ;;  %v3317_v46 = vmul.f32 %v5408_v45, %v3315_v47  ;;  %vm3322_vm7 = vweird.f32 %v5408_v45 }
0x29c4   :  { %v3543_v0 = vadd.f32 %v6564_v30, %v3542_v49  ;;  %vm3323_vm10 = vmor %vm3321_vm9, %vm3322_vm7 }
0x29c5   :  { %v3318_v62 = vsub.f32 1.0, %v3317_v46 }
0x29c6   :  { %3589 = vrot.lane.b32.xlu0 %v3543_v0, %s5670_s18  ;;  %3546 = vrot.lane.b32.xlu1 %v3543_v0, %s5671_s2 }
0x29c7   :  { %v3319_v19 = vmul.f32 %v5408_v45, %v3318_v62 }
0x29c9   :  { %v3320_v21 = vadd.f32 %v5408_v45, %v3319_v19 }
0x29cb   :  { %v3324_v16 = vsel %vm3323_vm10, %v5408_v45, %v3320_v21 }
0x29cc   :  { %v3329_v7 = vsel %vm3326_vm11, %v3328_v56, %v3324_v16 }
0x29cd   :  { %v3341_v38 = vsub.f32 1.0, %v3329_v7  ;;  %v3349_v54 = vmul.f32 %v3347_v36, %v3329_v7 }
0x2a1f   :  { %v3332_v60 = vpop.permute.xlu0 %3331 }
0x2a20   :  { %v3334_v37 = vmul.f32 %v3332_v60, %v3329_v7 }
0x2a22   :  { %3336 = vrot.lane.b32.xlu2 %v3334_v37, %s5672_s21 }
0x2a38   :  { %v3547_v44 = vpop.permute.xlu1 %3546  ;;  %v3590_v1 = vpop.permute.xlu0 %3589 }
0x2a39   :  { %v3549_v39 = vadd.f32 %v3547_v44, %v6588_v4  ;;  %v3569_v49 = vadd.f32 %v3547_v44, %v6600_v9 }
0x2a3b   :  { %v3550_v10 = vsub.f32 0.0, %v3549_v39  ;;  %v3570_v0 = vsub.f32 0.0, %v3569_v49  ;;  %v5553_v39 = vld [vmem:[#allocation8 + $0x58] sm:$0xff] }
0x2a3d   :  { %v3551_v2 = vmul.f32 1.442695, %v3550_v10  ;;  %v3571_v63 = vmul.f32 1.442695, %v3570_v0  ;;  %v5554_v10 = vld [vmem:[#allocation8 + $0x50] sm:$0xff] }
0x2a3f   :  { %5409 = vpow2.f32 %v3551_v2  ;;  %v5555_v2 = vld [vmem:[#allocation8 + $0x48] sm:$0xff] }
0x2a45   :  { %v5410_v48 = vpop.eup %5409 }
0x2a46   :  { %v3553_v34 = vadd.f32 1.0, %v5410_v48  ;;  %v5556_v48 = vld [vmem:[#allocation8 + $0x40] sm:$0xff] }
0x2a48   :  { %5411 = vrcp.f32 %v3553_v34  ;;  %v3565_v3 = vand.u32 2147483648, %v3553_v34  ;;  %v3563_v58 = vand.u32 2147483647, %v3553_v34  ;;  %vm3559_vm0 = vweird.f32 %v3553_v34 }
0x2a4a   :  { %v3566_v17 = vor.u32 1.1754944e-38, %v3565_v3  ;;  %vm3564_vm7 = vcmp.eq.f32.partialorder %v3563_v58, 8.507059e+37 }
0x2a4e   :  { %v5412_v25 = vpop.eup %5411 }
0x2a4f   :  { %v3555_v35 = vmul.f32 %v5412_v25, %v3553_v34  ;;  %vm3560_vm12 = vweird.f32 %v5412_v25 }
0x2a50   :  { %vm3561_vm8 = vmor %vm3559_vm0, %vm3560_vm12 }
0x2a51   :  { %v3556_v6 = vsub.f32 1.0, %v3555_v35 }
0x2a53   :  { %v3557_v14 = vmul.f32 %v5412_v25, %v3556_v6 }
0x2a55   :  { %v3558_v52 = vadd.f32 %v5412_v25, %v3557_v14 }
0x2a57   :  { %v3562_v5 = vsel %vm3561_vm8, %v5412_v25, %v3558_v52 }
0x2a58   :  { %v3567_v57 = vsel %vm3564_vm7, %v3566_v17, %v3562_v5 }
0x2a59   :  { %v3592_v23 = vmul.f32 %v3590_v1, %v3567_v57 }
0x2a5b   :  { %3594 = vrot.lane.b32.xlu1 %v3592_v23, %s5672_s21 }
0x2a7c   :  { %v3337_v28 = vpop.permute.xlu2 %3336 }
0x2a7d   :  { %v3339_v32 = vadd.f32 %v3337_v28, %v6592_v29 }
0x2a7f   :  { %5413 = vtanh.f32 %v3339_v32 }
0x2a85   :  { %v5414_v8 = vpop.eup %5413 }
0x2a86   :  { %3343 = vrot.lane.b32.xlu2 %v5414_v8, %s5671_s2 }
0x2acd   :  { %v3595_v12 = vpop.permute.xlu1 %3594 }
0x2ace   :  { %v3597_v27 = vadd.f32 %v3595_v12, %v6600_v9 }
0x2ad0   :  { %5415 = vtanh.f32 %v3597_v27 }
0x2ad1   :  { %5417 = vpow2.f32 %v3571_v63 }
0x2ad6   :  { %v5416_v20 = vpop.eup %5415 }
0x2ad7   :  { %3601 = vrot.lane.b32.xlu0 %v5416_v20, %s5671_s2  ;;  %v5418_v15 = vpop.eup %5417 }
0x2ad8   :  { %v3573_v24 = vadd.f32 1.0, %v5418_v15 }
0x2ada   :  { %5419 = vrcp.f32 %v3573_v24  ;;  %v3585_v19 = vand.u32 2147483648, %v3573_v24  ;;  %vm3579_vm10 = vweird.f32 %v3573_v24  ;;  %v3583_v21 = vand.u32 2147483647, %v3573_v24 }
0x2adc   :  { %v3586_v31 = vor.u32 1.1754944e-38, %v3585_v19  ;;  %vm3584_vm12 = vcmp.eq.f32.partialorder %v3583_v21, 8.507059e+37 }
0x2ae0   :  { %v3344_v41 = vpop.permute.xlu2 %3343  ;;  %v5420_v59 = vpop.eup %5419 }
0x2ae1   :  { %v3346_v51 = vmul.f32 %v3344_v41, %v3341_v38  ;;  %v3575_v47 = vmul.f32 %v5420_v59, %v3573_v24  ;;  %vm3580_vm9 = vweird.f32 %v5420_v59 }
0x2ae2   :  { %vm3581_vm11 = vmor %vm3579_vm10, %vm3580_vm9 }
0x2ae3   :  { %v6692_v53 = vadd.f32 %v3349_v54, %v3346_v51  ;;  %v3576_v45 = vsub.f32 1.0, %v3575_v47 }
0x2ae5   :  { %v3449_v42 = vrot.slane %v6692_v53, 4  ;;  %v3577_v46 = vmul.f32 %v5420_v59, %v3576_v45 }
0x2ae7   :  { %3450 = vrot.lane.b32.xlu1 %v3449_v42, %s5671_s2  ;;  %v3578_v62 = vadd.f32 %v5420_v59, %v3577_v46 }
0x2ae9   :  { %v3582_v33 = vsel %vm3581_vm11, %v5420_v59, %v3578_v62 }
0x2aea   :  { %v3587_v9 = vsel %vm3584_vm12, %v3586_v31, %v3582_v33 }
0x2aeb   :  { %v3599_v16 = vsub.f32 1.0, %v3587_v9  ;;  %v3606_v60 = vmul.f32 %v3587_v9, %v3522_v55 }
0x2b49   :  { %v3602_v56 = vpop.permute.xlu0 %3601 }
0x2b4a   :  { %v3604_v7 = vmul.f32 %v3602_v56, %v3599_v16  ;;  %v6718_v56 = vadd.f32 %v6595_v50, %v2893_v40 }
0x2b4c   :  { %v6699_v37 = vadd.f32 %v3606_v60, %v3604_v7 }
0x2b4e   :  { %5066 = vmatmul.msk.f32.vlgmr.msrb.gmra.mxu1 %vm160_vm13, %v6699_v37 }
0x2b59   :  { %v3451_v44 = vpop.permute.xlu1 %3450 }
0x2b5a   :  { %5063 = vmatmul.msk.f32.vlgmr.msrb.gmra.mxu2 %vm160_vm13, %v3451_v44 }
0x2b5b   :  { %4121 = vmatpush.msrb.mxu2 %v5553_v39 }
0x2b5d   :  { %4122 = vmatpush.msrb.mxu2 %v5554_v10 }
0x2b5f   :  { %4123 = vmatpush.msrb.mxu2 %v5555_v2 }
0x2b61   :  { %4124 = vmatpush.msrb.mxu2 %v5556_v48 }
0x2bcb   :  { %v3702_v34 = vpop.f32.mrf.mxu1 }
0x2bcc   :  { %v3703_v55 = vadd.f32 %v6564_v30, %v3702_v34 }
0x2bce   :  { %v3706_v25 = vrot.slane %v3703_v55, 2 }
0x2bd0   :  { %3707 = vrot.lane.b32.xlu2 %v3706_v25, %s5671_s2  ;;  %3750 = vrot.lane.b32.xlu1 %v3706_v25, %s5670_s18 }
0x2bdd   :  { %v3471_v35 = vpop.f32.mrf.mxu2 }
0x2bde   :  { %v3472_v6 = vadd.f32 %v6574_v61, %v3471_v35 }
0x2be0   :  { %v3475_v3 = vrot.slane %v3472_v6, 2 }
0x2be2   :  { %3497 = vrot.lane.b32.xlu0 %v3475_v3, %s5672_s21  ;;  %v3477_v14 = vadd.f32 %v3475_v3, %v6592_v29 }
0x2be4   :  { %v3478_v58 = vsub.f32 0.0, %v3477_v14 }
0x2be6   :  { %v3479_v52 = vmul.f32 1.442695, %v3478_v58 }
0x2be8   :  { %5421 = vpow2.f32 %v3479_v52 }
0x2bee   :  { %v5422_v57 = vpop.eup %5421 }
0x2bef   :  { %v3481_v23 = vadd.f32 1.0, %v5422_v57 }
0x2bf1   :  { %v3493_v47 = vand.u32 2147483648, %v3481_v23  ;;  %vm3487_vm11 = vweird.f32 %v3481_v23  ;;  %v3491_v45 = vand.u32 2147483647, %v3481_v23 }
0x2bf3   :  { %v3494_v62 = vor.u32 1.1754944e-38, %v3493_v47  ;;  %vm3492_vm14 = vcmp.eq.f32.partialorder %v3491_v45, 8.507059e+37 }
0x2c2a   :  { %v3708_v17 = vpop.permute.xlu2 %3707 }
0x2c2b   :  { %v3710_v5 = vadd.f32 %v3708_v17, %v6592_v29  ;;  %v3730_v39 = vadd.f32 %v3708_v17, %v6718_v56  ;;  %v3766_v17 = vrot.slane %v6699_v37, 2 }
0x2c2d   :  { %v3711_v30 = vsub.f32 0.0, %v3710_v5  ;;  %v3731_v10 = vsub.f32 0.0, %v3730_v39 }
0x2c2f   :  { %v3712_v1 = vmul.f32 1.442695, %v3711_v30  ;;  %v3732_v2 = vmul.f32 1.442695, %v3731_v10 }
0x2c31   :  { %5423 = vpow2.f32 %v3712_v1 }
0x2c32   :  { %5425 = vrcp.f32 %v3481_v23 }
0x2c37   :  { %v5424_v28 = vpop.eup %5423 }
0x2c38   :  { %v3714_v32 = vadd.f32 1.0, %v5424_v28  ;;  %v5426_v61 = vpop.eup %5425 }
0x2c39   :  { %v3483_v27 = vmul.f32 %v5426_v61, %v3481_v23  ;;  %vm3488_vm10 = vweird.f32 %v5426_v61 }
0x2c3a   :  { %5427 = vrcp.f32 %v3714_v32  ;;  %v3726_v38 = vand.u32 2147483648, %v3714_v32  ;;  %v3724_v41 = vand.u32 2147483647, %v3714_v32  ;;  %vm3720_vm8 = vweird.f32 %v3714_v32  ;;  %vm3489_vm12 = vmor %vm3487_vm11, %vm3488_vm10 }
0x2c3b   :  { %v3484_v54 = vsub.f32 1.0, %v3483_v27 }
0x2c3c   :  { %v3727_v42 = vor.u32 1.1754944e-38, %v3726_v38  ;;  %vm3725_vm9 = vcmp.eq.f32.partialorder %v3724_v41, 8.507059e+37  ;;  %v6739_v41 = vld [vmem:[%s7035_s8 + $0x3] ss:$0 sm:$0xff] }
0x2c3d   :  { %v3485_v0 = vmul.f32 %v5426_v61, %v3484_v54 }
0x2c3f   :  { %v3486_v59 = vadd.f32 %v5426_v61, %v3485_v0 }
0x2c40   :  { %v5428_v8 = vpop.eup %5427 }
0x2c41   :  { %v3716_v12 = vmul.f32 %v5428_v8, %v3714_v32  ;;  %vm3721_vm0 = vweird.f32 %v5428_v8  ;;  %v3490_v46 = vsel %vm3489_vm12, %v5426_v61, %v3486_v59  ;;  %v3513_v32 = vrot.slane %v6692_v53, 6 }
0x2c42   :  { %vm3722_vm7 = vmor %vm3720_vm8, %vm3721_vm0  ;;  %v3751_v63 = vpop.permute.xlu1 %3750  ;;  %v3495_v21 = vsel %vm3492_vm14, %v3494_v62, %v3490_v46 }
0x2c43   :  { %v3717_v20 = vsub.f32 1.0, %v3716_v12  ;;  %v3507_v28 = vsub.f32 1.0, %v3495_v21 }
0x2c45   :  { %v3718_v36 = vmul.f32 %v5428_v8, %v3717_v20 }
0x2c47   :  { %v3719_v51 = vadd.f32 %v5428_v8, %v3718_v36 }
0x2c49   :  { %v3723_v49 = vsel %vm3722_vm7, %v5428_v8, %v3719_v51  ;;  %v3515_v8 = vmul.f32 %v3513_v32, %v3495_v21 }
0x2c4a   :  { %v3728_v15 = vsel %vm3725_vm9, %v3727_v42, %v3723_v49  ;;  %v6747_v49 = vld [vmem:[%s7035_s8 + $0x2] ss:$0 sm:$0xff] }
0x2c4b   :  { %v3753_v24 = vmul.f32 %v3751_v63, %v3728_v15 }
0x2c4d   :  { %3755 = vrot.lane.b32.xlu0 %v3753_v24, %s5672_s21 }
0x2c54   :  { %v3498_v19 = vpop.permute.xlu0 %3497 }
0x2c55   :  { %v3500_v33 = vmul.f32 %v3498_v19, %v3495_v21 }
0x2c57   :  { %3502 = vrot.lane.b32.xlu2 %v3500_v33, %s5672_s21 }
0x2cb1   :  { %v3503_v31 = vpop.permute.xlu2 %3502 }
0x2cb2   :  { %v3505_v9 = vadd.f32 %v3503_v31, %v6592_v29 }
0x2cb4   :  { %5429 = vtanh.f32 %v3505_v9 }
0x2cba   :  { %v5430_v16 = vpop.eup %5429 }
0x2cbb   :  { %3509 = vrot.lane.b32.xlu1 %v5430_v16, %s5671_s2 }
0x2cbf   :  { %v3756_v60 = vpop.permute.xlu0 %3755 }
0x2cc0   :  { %v3758_v7 = vadd.f32 %v3756_v60, %v6718_v56 }
0x2cc2   :  { %5431 = vtanh.f32 %v3758_v7 }
0x2cc3   :  { %5433 = vpow2.f32 %v3732_v2 }
0x2cc8   :  { %v5432_v44 = vpop.eup %5431 }
0x2cc9   :  { %3762 = vrot.lane.b32.xlu2 %v5432_v44, %s5671_s2  ;;  %v5434_v48 = vpop.eup %5433 }
0x2cca   :  { %v3734_v34 = vadd.f32 1.0, %v5434_v48 }
0x2ccc   :  { %5435 = vrcp.f32 %v3734_v34  ;;  %v3746_v35 = vand.u32 2147483648, %v3734_v34  ;;  %vm3740_vm0 = vweird.f32 %v3734_v34  ;;  %v3744_v6 = vand.u32 2147483647, %v3734_v34 }
0x2cce   :  { %v3747_v14 = vor.u32 1.1754944e-38, %v3746_v35  ;;  %vm3745_vm7 = vcmp.eq.f32.partialorder %v3744_v6, 8.507059e+37 }
0x2cd2   :  { %v5436_v55 = vpop.eup %5435 }
0x2cd3   :  { %v3736_v22 = vmul.f32 %v5436_v55, %v3734_v34  ;;  %vm3741_vm14 = vweird.f32 %v5436_v55 }
0x2cd4   :  { %vm3742_vm8 = vmor %vm3740_vm0, %vm3741_vm14 }
0x2cd5   :  { %v3737_v25 = vsub.f32 1.0, %v3736_v22 }
0x2cd7   :  { %v3738_v50 = vmul.f32 %v5436_v55, %v3737_v25 }
0x2cd9   :  { %v3739_v40 = vadd.f32 %v5436_v55, %v3738_v50 }
0x2cdb   :  { %v3743_v3 = vsel %vm3742_vm8, %v5436_v55, %v3739_v40 }
0x2cdc   :  { %v3748_v58 = vsel %vm3745_vm7, %v3747_v14, %v3743_v3 }
0x2cdd   :  { %v3760_v52 = vsub.f32 1.0, %v3748_v58  ;;  %v3768_v30 = vmul.f32 %v3766_v17, %v3748_v58 }
0x2d23   :  { %v3763_v5 = vpop.permute.xlu2 %3762 }
0x2d24   :  { %v3765_v1 = vmul.f32 %v3763_v5, %v3760_v52 }
0x2d26   :  { %v6724_v57 = vadd.f32 %v3768_v30, %v3765_v1 }
0x2d28   :  { %v3845_v23 = vrot.slane %v6724_v57, 6 }
0x2d2a   :  { %5068 = vmatmul.msk.f32.vlgmr.msra.gmra.mxu3 %vm160_vm13, %v3845_v23 }
0x2d2d   :  { %v3510_v61 = vpop.permute.xlu1 %3509 }
0x2d2e   :  { %v3512_v12 = vmul.f32 %v3510_v61, %v3507_v28 }
0x2d30   :  { %v6729_v27 = vadd.f32 %v3515_v8, %v3512_v12 }
0x2d32   :  { %v3613_v20 = vrot.slane %v6729_v27, 6 }
0x2d34   :  { %3614 = vrot.lane.b32.xlu0 %v3613_v20, %s5671_s2 }
0x2da6   :  { %v3615_v38 = vpop.permute.xlu0 %3614 }
0x2da7   :  { %5065 = vmatmul.msk.f32.vlgmr.msrb.gmra.mxu0 %vm160_vm13, %v3615_v38 }
0x2dad   :  { %v3865_v36 = vpop.f32.mrf.mxu3 }
0x2dae   :  { %v3866_v54 = vadd.f32 %v6739_v41, %v3865_v36 }
0x2db0   :  { %v3869_v51 = vrot.slane %v3866_v54, 4 }
0x2db2   :  { %3913 = vrot.lane.b32.xlu0 %v3869_v51, %s5670_s18  ;;  %3870 = vrot.lane.b32.xlu1 %v3869_v51, %s5671_s2 }
0x2e24   :  { %v3635_v42 = vpop.f32.mrf.mxu0  ;;  %v3871_v63 = vpop.permute.xlu1 %3870 }
0x2e25   :  { %v3636_v0 = vadd.f32 %v6747_v49, %v3635_v42  ;;  %v3873_v15 = vadd.f32 %v3871_v63, %v6592_v29  ;;  %v3914_v7 = vpop.permute.xlu0 %3913  ;;  %v3893_v28 = vadd.f32 %v3871_v63, %v6718_v56 }
0x2e27   :  { %3659 = vrot.lane.b32.xlu2 %v3636_v0, %s5672_s21  ;;  %v3874_v24 = vsub.f32 0.0, %v3873_v15  ;;  %v3638_v10 = vadd.f32 %v3636_v0, %v6588_v4  ;;  %v3894_v32 = vsub.f32 0.0, %v3893_v28 }
0x2e29   :  { %v3875_v59 = vmul.f32 1.442695, %v3874_v24  ;;  %v3639_v2 = vsub.f32 0.0, %v3638_v10  ;;  %v3895_v61 = vmul.f32 1.442695, %v3894_v32 }
0x2e2b   :  { %5437 = vpow2.f32 %v3875_v59  ;;  %v3640_v48 = vmul.f32 1.442695, %v3639_v2 }
0x2e31   :  { %v5438_v47 = vpop.eup %5437 }
0x2e32   :  { %v3877_v45 = vadd.f32 1.0, %v5438_v47 }
0x2e34   :  { %5439 = vrcp.f32 %v3877_v45  ;;  %v3889_v21 = vand.u32 2147483648, %v3877_v45  ;;  %v3887_v31 = vand.u32 2147483647, %v3877_v45  ;;  %vm3883_vm10 = vweird.f32 %v3877_v45 }
0x2e35   :  { %5441 = vpow2.f32 %v3640_v48 }
0x2e36   :  { %v3890_v16 = vor.u32 1.1754944e-38, %v3889_v21  ;;  %vm3888_vm12 = vcmp.eq.f32.partialorder %v3887_v31, 8.507059e+37 }
0x2e3a   :  { %v5440_v46 = vpop.eup %5439 }
0x2e3b   :  { %v3879_v62 = vmul.f32 %v5440_v46, %v3877_v45  ;;  %vm3884_vm9 = vweird.f32 %v5440_v46  ;;  %v5442_v34 = vpop.eup %5441 }
0x2e3c   :  { %vm3885_vm11 = vmor %vm3883_vm10, %vm3884_vm9  ;;  %v3642_v55 = vadd.f32 1.0, %v5442_v34 }
0x2e3d   :  { %v3880_v19 = vsub.f32 1.0, %v3879_v62 }
0x2e3e   :  { %5443 = vrcp.f32 %v3642_v55  ;;  %v3654_v6 = vand.u32 2147483648, %v3642_v55  ;;  %vm3648_vm0 = vweird.f32 %v3642_v55  ;;  %v3652_v3 = vand.u32 2147483647, %v3642_v55 }
0x2e3f   :  { %v3881_v33 = vmul.f32 %v5440_v46, %v3880_v19  ;;  %v3929_v19 = vrot.slane %v6724_v57, 2 }
0x2e40   :  { %v3655_v58 = vor.u32 1.1754944e-38, %v3654_v6  ;;  %vm3653_vm7 = vcmp.eq.f32.partialorder %v3652_v3, 8.507059e+37 }
0x2e41   :  { %v3882_v9 = vadd.f32 %v5440_v46, %v3881_v33 }
0x2e43   :  { %v3886_v60 = vsel %vm3885_vm11, %v5440_v46, %v3882_v9 }
0x2e44   :  { %v3891_v44 = vsel %vm3888_vm12, %v3890_v16, %v3886_v60  ;;  %v5444_v22 = vpop.eup %5443 }
0x2e45   :  { %v3916_v39 = vmul.f32 %v3914_v7, %v3891_v44  ;;  %v3644_v25 = vmul.f32 %v5444_v22, %v3642_v55  ;;  %vm3649_vm14 = vweird.f32 %v5444_v22 }
0x2e46   :  { %vm3650_vm8 = vmor %vm3648_vm0, %vm3649_vm14 }
0x2e47   :  { %3918 = vrot.lane.b32.xlu2 %v3916_v39, %s5672_s21  ;;  %v3645_v50 = vsub.f32 1.0, %v3644_v25 }
0x2e49   :  { %v3646_v40 = vmul.f32 %v5444_v22, %v3645_v50 }
0x2e4b   :  { %v3647_v35 = vadd.f32 %v5444_v22, %v3646_v40 }
0x2e4d   :  { %v3651_v14 = vsel %vm3650_vm8, %v5444_v22, %v3647_v35 }
0x2e4e   :  { %v3656_v52 = vsel %vm3653_vm7, %v3655_v58, %v3651_v14 }
0x2e4f   :  { %v3669_v60 = vsub.f32 1.0, %v3656_v52  ;;  %v3676_v44 = vmul.f32 %v3656_v52, %v3613_v20 }
0x2e81   :  { %v3660_v17 = vpop.permute.xlu2 %3659 }
0x2e82   :  { %v3662_v5 = vmul.f32 %v3660_v17, %v3656_v52 }
0x2e84   :  { %3664 = vrot.lane.b32.xlu1 %v3662_v5, %s5672_s21 }
0x2ea1   :  { %v3919_v30 = vpop.permute.xlu2 %3918 }
0x2ea2   :  { %v3921_v1 = vadd.f32 %v3919_v30, %v6718_v56 }
0x2ea4   :  { %5445 = vtanh.f32 %v3921_v1 }
0x2ea5   :  { %5447 = vpow2.f32 %v3895_v61 }
0x2eaa   :  { %v5446_v23 = vpop.eup %5445 }
0x2eab   :  { %3925 = vrot.lane.b32.xlu1 %v5446_v23, %s5671_s2  ;;  %v5448_v12 = vpop.eup %5447 }
0x2eac   :  { %v3897_v36 = vadd.f32 1.0, %v5448_v12 }
0x2eae   :  { %v3909_v63 = vand.u32 2147483648, %v3897_v36  ;;  %vm3903_vm10 = vweird.f32 %v3897_v36  ;;  %v3907_v59 = vand.u32 2147483647, %v3897_v36 }
0x2eb0   :  { %v3910_v45 = vor.u32 1.1754944e-38, %v3909_v63  ;;  %vm3908_vm12 = vcmp.eq.f32.partialorder %v3907_v59, 8.507059e+37 }
0x2ef6   :  { %v3665_v8 = vpop.permute.xlu1 %3664 }
0x2ef7   :  { %v3667_v38 = vadd.f32 %v3665_v8, %v6588_v4 }
0x2ef9   :  { %5449 = vtanh.f32 %v3667_v38 }
0x2efa   :  { %5451 = vrcp.f32 %v3897_v36 }
0x2eff   :  { %v5450_v54 = vpop.eup %5449 }
0x2f00   :  { %3671 = vrot.lane.b32.xlu0 %v5450_v54, %s5671_s2  ;;  %v5452_v51 = vpop.eup %5451 }
0x2f01   :  { %v3899_v42 = vmul.f32 %v5452_v51, %v3897_v36  ;;  %vm3904_vm9 = vweird.f32 %v5452_v51 }
0x2f02   :  { %vm3905_vm11 = vmor %vm3903_vm10, %vm3904_vm9 }
0x2f03   :  { %v3900_v0 = vsub.f32 1.0, %v3899_v42 }
0x2f05   :  { %v3901_v15 = vmul.f32 %v5452_v51, %v3900_v0 }
0x2f07   :  { %v3902_v24 = vadd.f32 %v5452_v51, %v3901_v15 }
0x2f09   :  { %v3906_v47 = vsel %vm3905_vm11, %v5452_v51, %v3902_v24 }
0x2f0a   :  { %v3911_v46 = vsel %vm3908_vm12, %v3910_v45, %v3906_v47 }
0x2f0b   :  { %v3923_v62 = vsub.f32 1.0, %v3911_v46  ;;  %v3931_v33 = vmul.f32 %v3929_v19, %v3911_v46 }
0x2f1d   :  { %v3926_v21 = vpop.permute.xlu1 %3925 }
0x2f1e   :  { %v3928_v31 = vmul.f32 %v3926_v21, %v3923_v62 }
0x2f20   :  { %v6761_v9 = vadd.f32 %v3931_v33, %v3928_v31 }
0x2f22   :  { %v4011_v16 = vrot.slane %v6761_v9, 4 }
0x2f24   :  { %5070 = vmatmul.msk.f32.vlgmr.msra.gmra.mxu1 %vm160_vm13, %v4011_v16 }
0x2f72   :  { %v3672_v7 = vpop.permute.xlu0 %3671 }
0x2f73   :  { %v3674_v39 = vmul.f32 %v3672_v7, %v3669_v60 }
0x2f75   :  { %v6767_v10 = vadd.f32 %v3676_v44, %v3674_v39 }
0x2f77   :  { %3679 = vrot.lane.b32.xlu2 %v6767_v10, %s5671_s2 }
0x2fa1   :  { %v4031_v2 = vpop.f32.mrf.mxu1 }
0x2fa2   :  { %v4032_v48 = vadd.f32 %v6739_v41, %v4031_v2 }
0x2fa4   :  { %v4035_v34 = vrot.slane %v4032_v48, 6 }
0x2fa6   :  { %4079 = vrot.lane.b32.xlu2 %v4035_v34, %s5670_s18  ;;  %4036 = vrot.lane.b32.xlu0 %v4035_v34, %s5671_s2 }
0x2fd1   :  { %v6774_v55 = vpop.permute.xlu2 %3679 }
0x2fd2   :  { %5067 = vmatmul.msk.f32.vlgmr.msra.gmra.mxu2 %vm160_vm13, %v6774_v55 }
0x3000   :  { %v4080_v8 = vpop.permute.xlu2 %4079 }
0x3018   :  { %v4037_v20 = vpop.permute.xlu0 %4036 }
0x3019   :  { %v4039_v22 = vadd.f32 %v4037_v20, %v6592_v29  ;;  %v4059_v7 = vadd.f32 %v4037_v20, %v6718_v56 }
0x301b   :  { %v4040_v25 = vsub.f32 0.0, %v4039_v22  ;;  %v4060_v44 = vsub.f32 0.0, %v4059_v7 }
0x301d   :  { %v4041_v50 = vmul.f32 1.442695, %v4040_v25  ;;  %v4061_v39 = vmul.f32 1.442695, %v4060_v44 }
0x301f   :  { %5453 = vpow2.f32 %v4041_v50 }
0x3025   :  { %v5454_v40 = vpop.eup %5453 }
0x3026   :  { %v4043_v35 = vadd.f32 1.0, %v5454_v40 }
0x3028   :  { %5455 = vrcp.f32 %v4043_v35  ;;  %v4055_v30 = vand.u32 2147483648, %v4043_v35  ;;  %vm4049_vm0 = vweird.f32 %v4043_v35  ;;  %v4053_v23 = vand.u32 2147483647, %v4043_v35 }
0x302a   :  { %v4056_v32 = vor.u32 1.1754944e-38, %v4055_v30  ;;  %vm4054_vm7 = vcmp.eq.f32.partialorder %v4053_v23, 8.507059e+37  ;;  %v4095_v30 = vrot.slane %v6761_v9, 2 }
0x302e   :  { %v5456_v6 = vpop.eup %5455 }
0x302f   :  { %v4045_v3 = vmul.f32 %v5456_v6, %v4043_v35  ;;  %vm4050_vm14 = vweird.f32 %v5456_v6 }
0x3030   :  { %vm4051_vm8 = vmor %vm4049_vm0, %vm4050_vm14 }
0x3031   :  { %v4046_v14 = vsub.f32 1.0, %v4045_v3 }
0x3033   :  { %v4047_v58 = vmul.f32 %v5456_v6, %v4046_v14 }
0x3035   :  { %v4048_v5 = vadd.f32 %v5456_v6, %v4047_v58 }
0x3037   :  { %v4052_v28 = vsel %vm4051_vm8, %v5456_v6, %v4048_v5 }
0x3038   :  { %v4057_v61 = vsel %vm4054_vm7, %v4056_v32, %v4052_v28 }
0x3039   :  { %v4082_v12 = vmul.f32 %v4080_v8, %v4057_v61  ;;  %v3836_v8 = vrot.slane %v6767_v10, 6 }
0x3055   :  { %v3794_v52 = vpop.f32.mrf.mxu2 }
0x3056   :  { %v3795_v17 = vadd.f32 %v6747_v49, %v3794_v52 }
0x3058   :  { %v3798_v1 = vrot.slane %v3795_v17, 6 }
0x305a   :  { %3820 = vrot.lane.b32.xlu1 %v3798_v1, %s5672_s21  ;;  %v3800_v38 = vadd.f32 %v3798_v1, %v6588_v4 }
0x305c   :  { %v3801_v36 = vsub.f32 0.0, %v3800_v38 }
0x305e   :  { %v3802_v54 = vmul.f32 1.442695, %v3801_v36 }
0x3060   :  { %5457 = vpow2.f32 %v3802_v54 }
0x3062   :  { %4084 = vrot.lane.b32.xlu1 %v4082_v12, %s5672_s21 }
0x3066   :  { %v5458_v51 = vpop.eup %5457 }
0x3067   :  { %v3804_v42 = vadd.f32 1.0, %v5458_v51 }
0x3069   :  { %5459 = vrcp.f32 %v3804_v42  ;;  %v3816_v47 = vand.u32 2147483648, %v3804_v42  ;;  %vm3810_vm10 = vweird.f32 %v3804_v42  ;;  %v3814_v45 = vand.u32 2147483647, %v3804_v42 }
0x306b   :  { %v3817_v62 = vor.u32 1.1754944e-38, %v3816_v47  ;;  %vm3815_vm12 = vcmp.eq.f32.partialorder %v3814_v45, 8.507059e+37 }
0x306f   :  { %v5460_v0 = vpop.eup %5459 }
0x3070   :  { %v3806_v15 = vmul.f32 %v5460_v0, %v3804_v42  ;;  %vm3811_vm9 = vweird.f32 %v5460_v0 }
0x3071   :  { %vm3812_vm11 = vmor %vm3810_vm10, %vm3811_vm9 }
0x3072   :  { %v3807_v24 = vsub.f32 1.0, %v3806_v15 }
0x3074   :  { %v3808_v63 = vmul.f32 %v5460_v0, %v3807_v24 }
0x3076   :  { %v3809_v59 = vadd.f32 %v5460_v0, %v3808_v63 }
0x3078   :  { %v3813_v46 = vsel %vm3812_vm11, %v5460_v0, %v3809_v59 }
0x3079   :  { %v3818_v21 = vsel %vm3815_vm12, %v3817_v62, %v3813_v46 }
0x307a   :  { %v3830_v12 = vsub.f32 1.0, %v3818_v21  ;;  %v3838_v36 = vmul.f32 %v3836_v8, %v3818_v21 }
0x30cc   :  { %v3821_v19 = vpop.permute.xlu1 %3820 }
0x30cd   :  { %v3823_v33 = vmul.f32 %v3821_v19, %v3818_v21 }
0x30cf   :  { %3825 = vrot.lane.b32.xlu0 %v3823_v33, %s5672_s21 }
0x30d4   :  { %v4085_v31 = vpop.permute.xlu1 %4084 }
0x30d5   :  { %v4087_v16 = vadd.f32 %v4085_v31, %v6718_v56 }
0x30d7   :  { %5461 = vtanh.f32 %v4087_v16 }
0x30d8   :  { %5463 = vpow2.f32 %v4061_v39 }
0x30dd   :  { %v5462_v60 = vpop.eup %5461 }
0x30de   :  { %4091 = vrot.lane.b32.xlu0 %v5462_v60, %s5671_s2  ;;  %v5464_v2 = vpop.eup %5463 }
0x30df   :  { %v4063_v48 = vadd.f32 1.0, %v5464_v2 }
0x30e1   :  { %5465 = vrcp.f32 %v4063_v48  ;;  %v4075_v3 = vand.u32 2147483648, %v4063_v48  ;;  %vm4069_vm0 = vweird.f32 %v4063_v48  ;;  %v4073_v14 = vand.u32 2147483647, %v4063_v48 }
0x30e3   :  { %v4076_v52 = vor.u32 1.1754944e-38, %v4075_v3  ;;  %vm4074_vm7 = vcmp.eq.f32.partialorder %v4073_v14, 8.507059e+37 }
0x30e7   :  { %v5466_v34 = vpop.eup %5465 }
0x30e8   :  { %v4065_v22 = vmul.f32 %v5466_v34, %v4063_v48  ;;  %vm4070_vm14 = vweird.f32 %v5466_v34 }
0x30e9   :  { %vm4071_vm8 = vmor %vm4069_vm0, %vm4070_vm14 }
0x30ea   :  { %v4066_v25 = vsub.f32 1.0, %v4065_v22 }
0x30ec   :  { %v4067_v40 = vmul.f32 %v5466_v34, %v4066_v25 }
0x30ee   :  { %v4068_v6 = vadd.f32 %v5466_v34, %v4067_v40 }
0x30f0   :  { %v4072_v20 = vsel %vm4071_vm8, %v5466_v34, %v4068_v6 }
0x30f1   :  { %v4077_v17 = vsel %vm4074_vm7, %v4076_v52, %v4072_v20 }
0x30f2   :  { %v4089_v5 = vsub.f32 1.0, %v4077_v17  ;;  %v4097_v23 = vmul.f32 %v4095_v30, %v4077_v17 }
0x3141   :  { %v3826_v50 = vpop.permute.xlu0 %3825 }
0x3142   :  { %v3828_v35 = vadd.f32 %v3826_v50, %v6588_v4 }
0x3144   :  { %5467 = vtanh.f32 %v3828_v35 }
0x314a   :  { %v5468_v58 = vpop.eup %5467 }
0x314b   :  { %3832 = vrot.lane.b32.xlu2 %v5468_v58, %s5671_s2 }
0x3150   :  { %v4092_v1 = vpop.permute.xlu0 %4091 }
0x3151   :  { %v4094_v28 = vmul.f32 %v4092_v1, %v4089_v5 }
0x3153   :  { %v6790_v32 = vadd.f32 %v4097_v23, %v4094_v28 }
0x3155   :  { %v4177_v61 = vrot.slane %v6790_v32, 2 }
0x3157   :  { %5072 = vmatmul.msk.f32.vlgmr.msrb.gmra.mxu3 %vm160_vm13, %v4177_v61 }
0x31a5   :  { %v3833_v38 = vpop.permute.xlu2 %3832 }
0x31a6   :  { %v3835_v54 = vmul.f32 %v3833_v38, %v3830_v12 }
0x31a8   :  { %v6797_v51 = vadd.f32 %v3838_v36, %v3835_v54 }
0x31aa   :  { %v3938_v42 = vrot.slane %v6797_v51, 2 }
0x31ac   :  { %3939 = vrot.lane.b32.xlu1 %v3938_v42, %s5671_s2 }
0x31da   :  { %v4197_v0 = vpop.f32.mrf.mxu3 }
0x31db   :  { %v4198_v15 = vadd.f32 %v6739_v41, %v4197_v0 }
0x31dd   :  { %4201 = vrot.lane.b32.xlu2 %v4198_v15, %s5671_s2  ;;  %4244 = vrot.lane.b32.xlu1 %v4198_v15, %s5670_s18 }
0x321e   :  { %v3940_v24 = vpop.permute.xlu1 %3939 }
0x321f   :  { %5069 = vmatmul.msk.f32.vlgmr.msra.gmra.mxu0 %vm160_vm13, %v3940_v24 }
0x3237   :  { %v4202_v10 = vpop.permute.xlu2 %4201 }
0x3238   :  { %v4204_v63 = vadd.f32 %v4202_v10, %v6592_v29  ;;  %v4224_v38 = vadd.f32 %v4202_v10, %v6718_v56 }
0x323a   :  { %v4205_v59 = vsub.f32 0.0, %v4204_v63  ;;  %v4225_v36 = vsub.f32 0.0, %v4224_v38 }
0x323c   :  { %v4206_v47 = vmul.f32 1.442695, %v4205_v59  ;;  %v4226_v54 = vmul.f32 1.442695, %v4225_v36 }
0x323e   :  { %5469 = vpow2.f32 %v4206_v47 }
0x3244   :  { %v5470_v45 = vpop.eup %5469 }
0x3245   :  { %v4208_v46 = vadd.f32 1.0, %v5470_v45 }
0x3247   :  { %5471 = vrcp.f32 %v4208_v46  ;;  %v4220_v60 = vand.u32 2147483648, %v4208_v46  ;;  %vm4214_vm10 = vweird.f32 %v4208_v46  ;;  %v4218_v7 = vand.u32 2147483647, %v4208_v46 }
0x3249   :  { %v4221_v39 = vor.u32 1.1754944e-38, %v4220_v60  ;;  %vm4219_vm12 = vcmp.eq.f32.partialorder %v4218_v7, 8.507059e+37 }
0x324d   :  { %v5472_v62 = vpop.eup %5471 }
0x324e   :  { %v4210_v19 = vmul.f32 %v5472_v62, %v4208_v46  ;;  %vm4215_vm9 = vweird.f32 %v5472_v62 }
0x324f   :  { %vm4216_vm11 = vmor %vm4214_vm10, %vm4215_vm9  ;;  %v4245_v48 = vpop.permute.xlu1 %4244 }
0x3250   :  { %v4211_v21 = vsub.f32 1.0, %v4210_v19 }
0x3252   :  { %v4212_v41 = vmul.f32 %v5472_v62, %v4211_v21 }
0x3254   :  { %v4213_v31 = vadd.f32 %v5472_v62, %v4212_v41 }
0x3256   :  { %v4217_v29 = vsel %vm4216_vm11, %v5472_v62, %v4213_v31 }
0x3257   :  { %v4222_v2 = vsel %vm4219_vm12, %v4221_v39, %v4217_v29 }
0x3258   :  { %v4247_v34 = vmul.f32 %v4245_v48, %v4222_v2 }
0x329c   :  { %v3960_v33 = vpop.f32.mrf.mxu0 }
0x329d   :  { %v3961_v16 = vadd.f32 %v6747_v49, %v3960_v33 }
0x329f   :  { %v3964_v44 = vrot.slane %v3961_v16, 4 }
0x32a1   :  { %3986 = vrot.lane.b32.xlu0 %v3964_v44, %s5672_s21  ;;  %v3966_v22 = vadd.f32 %v3964_v44, %v6588_v4  ;;  %v4002_v44 = vrot.slane %v6797_v51, 6 }
0x32a3   :  { %v3967_v25 = vsub.f32 0.0, %v3966_v22 }
0x32a5   :  { %v3968_v50 = vmul.f32 1.442695, %v3967_v25  ;;  %v6842_v25 = vld [vmem:[#allocation8 + $0x98] sm:$0xff] }
0x32a6   :  { %4374 = vmatpush.msra.mxu2 %v6842_v25  ;;  %4438 = vmatpush.msra.mxu3 %v6842_v25 }
0x32a7   :  { %5473 = vpow2.f32 %v3968_v50  ;;  %v6844_v50 = vld [vmem:[#allocation8 + $0x90] sm:$0xff] }
0x32a8   :  { %4375 = vmatpush.msra.mxu2 %v6844_v50  ;;  %4439 = vmatpush.msra.mxu3 %v6844_v50 }
0x32a9   :  { %4249 = vrot.lane.b32.xlu0 %v4247_v34, %s5672_s21 }
0x32ad   :  { %v5474_v49 = vpop.eup %5473 }
0x32ae   :  { %v3970_v40 = vadd.f32 1.0, %v5474_v49  ;;  %v6848_v49 = vld [vmem:[#allocation8 + $0x88] sm:$0xff] }
0x32af   :  { %4376 = vmatpush.msra.mxu2 %v6848_v49  ;;  %4440 = vmatpush.msra.mxu3 %v6848_v49 }
0x32b0   :  { %5475 = vrcp.f32 %v3970_v40  ;;  %v3982_v58 = vand.u32 2147483648, %v3970_v40  ;;  %vm3976_vm0 = vweird.f32 %v3970_v40  ;;  %v3980_v52 = vand.u32 2147483647, %v3970_v40 }
0x32b2   :  { %v3983_v5 = vor.u32 1.1754944e-38, %v3982_v58  ;;  %vm3981_vm7 = vcmp.eq.f32.partialorder %v3980_v52, 8.507059e+37  ;;  %v4280_v58 = vld [vmem:[#allocation6 + $0x148] sm:$0xff]  ;;  %v4277_v52 = vld [vmem:[#allocation6 + $0x130] sm:$0xff] }
0x32b6   :  { %v5476_v35 = vpop.eup %5475 }
0x32b7   :  { %v3972_v6 = vmul.f32 %v5476_v35, %v3970_v40  ;;  %vm3977_vm14 = vweird.f32 %v5476_v35  ;;  %v4286_v40 = vld [vmem:[#allocation6 + $0x178] sm:$0xff] }
0x32b8   :  { %vm3978_vm8 = vmor %vm3976_vm0, %vm3977_vm14  ;;  %4331 = vmatpush.msrb.mxu1 %v4286_v40  ;;  %vm7043_vm14 = vcmask 523264  }
0x32b9   :  { %v3973_v3 = vsub.f32 1.0, %v3972_v6  ;;  %v4284_v6 = vld [vmem:[#allocation6 + $0x168] sm:$0xff]  ;;  %vm7044_vm0 = vmmov %vm7043_vm14 }
0x32ba   :  { %4332 = vmatpush.msrb.mxu1 %v4284_v6 }
0x32bb   :  { %v3974_v14 = vmul.f32 %v5476_v35, %v3973_v3  ;;  %v4281_v3 = vld [vmem:[#allocation6 + $0x150] sm:$0xff] }
0x32bd   :  { %v3975_v20 = vadd.f32 %v5476_v35, %v3974_v14  ;;  %v4282_v14 = vld [vmem:[#allocation6 + $0x158] sm:$0xff] }
0x32be   :  { %4333 = vmatpush.msrb.mxu1 %v4282_v14 }
0x32bf   :  { %v3979_v17 = vsel %vm3978_vm8, %v5476_v35, %v3975_v20  ;;  %v4283_v35 = vld [vmem:[#allocation6 + $0x160] sm:$0xff] }
0x32c0   :  { %v3984_v1 = vsel %vm3981_vm7, %v3983_v5, %v3979_v17  ;;  %v4279_v20 = vld [vmem:[#allocation6 + $0x140] sm:$0xff]  ;;  %4334 = vmatpush.msrb.mxu1 %v4280_v58  ;;  %v4278_v17 = vld [vmem:[#allocation6 + $0x138] sm:$0xff] }
0x32c1   :  { %v4004_v39 = vmul.f32 %v4002_v44, %v3984_v1  ;;  %v4275_v5 = vld [vmem:[#allocation6 + $0x120] sm:$0xff] }
0x32c2   :  { %4335 = vmatpush.msrb.mxu1 %v4278_v17 }
0x3313   :  { %v3987_v30 = vpop.permute.xlu0 %3986 }
0x3314   :  { %v3989_v23 = vmul.f32 %v3987_v30, %v3984_v1  ;;  %v4276_v30 = vld [vmem:[#allocation6 + $0x128] sm:$0xff] }
0x3315   :  { %4336 = vmatpush.msrb.mxu1 %v4276_v30 }
0x3316   :  { %3991 = vrot.lane.b32.xlu2 %v3989_v23, %s5672_s21  ;;  %v4274_v23 = vld [vmem:[#allocation6 + $0x118] sm:$0xff] }
0x3317   :  { %4337 = vmatpush.msrb.mxu1 %v4274_v23 }
0x331b   :  { %v4250_v28 = vpop.permute.xlu0 %4249 }
0x331c   :  { %v4252_v8 = vadd.f32 %v4250_v28, %v6718_v56  ;;  %v4271_v28 = vld [vmem:[#allocation6 + $0x100] sm:$0xff] }
0x331e   :  { %5477 = vtanh.f32 %v4252_v8  ;;  %v4272_v8 = vld [vmem:[#allocation6 + $0x108] sm:$0xff] }
0x331f   :  { %5479 = vpow2.f32 %v4226_v54  ;;  %4338 = vmatpush.msrb.mxu1 %v4272_v8 }
0x3321   :  { %4848 = vmatpush.msra.mxu1 %v6842_v25 }
0x3323   :  { %4849 = vmatpush.msra.mxu1 %v6844_v50 }
0x3324   :  { %v5478_v12 = vpop.eup %5477 }
0x3325   :  { %4256 = vrot.lane.b32.xlu2 %v5478_v12, %s5671_s2  ;;  %v5480_v42 = vpop.eup %5479  ;;  %4850 = vmatpush.msra.mxu1 %v6848_v49 }
0x3326   :  { %v4228_v0 = vadd.f32 1.0, %v5480_v42 }
0x3328   :  { %5481 = vrcp.f32 %v4228_v0  ;;  %v4240_v56 = vand.u32 2147483648, %v4228_v0  ;;  %vm4234_vm10 = vweird.f32 %v4228_v0  ;;  %v4238_v10 = vand.u32 2147483647, %v4228_v0 }
0x332a   :  { %v4241_v19 = vor.u32 1.1754944e-38, %v4240_v56  ;;  %vm4239_vm12 = vcmp.eq.f32.partialorder %v4238_v10, 8.507059e+37 }
0x332d   :  { %3352 = vrot.lane.b32.xlu2 %v6692_v53, %s5671_s2 }
0x332e   :  { %v5482_v24 = vpop.eup %5481 }
0x332f   :  { %v4230_v59 = vmul.f32 %v5482_v24, %v4228_v0  ;;  %vm4235_vm9 = vweird.f32 %v5482_v24  ;;  %v6891_v0 = vld [vmem:[%s7035_s8 + $0x4] ss:$0 sm:$0xff] }
0x3330   :  { %vm4236_vm11 = vmor %vm4234_vm10, %vm4235_vm9 }
0x3331   :  { %v4231_v47 = vsub.f32 1.0, %v4230_v59  ;;  %v6898_v59 = vld [vmem:[%s7033_s6 + $0x4] sm:$0x3] }
0x3333   :  { %v4232_v53 = vmul.f32 %v5482_v24, %v4231_v47  ;;  %v4290_v47 = vperm.slane %v6898_v59, 0 }
0x3335   :  { %3934 = vrot.lane.b32.xlu2 %v6761_v9, %s5670_s18  ;;  %v4233_v46 = vadd.f32 %v5482_v24, %v4232_v53 }
0x3337   :  { %v4237_v62 = vsel %vm4236_vm11, %v5482_v24, %v4233_v46 }
0x3338   :  { %v4242_v21 = vsel %vm4239_vm12, %v4241_v19, %v4237_v62 }
0x3339   :  { %v4254_v33 = vsub.f32 1.0, %v4242_v21  ;;  %v4261_v16 = vmul.f32 %v4242_v21, %v4177_v61 }
0x3370   :  { %v3992_v15 = vpop.permute.xlu2 %3991 }
0x3371   :  { %v3994_v63 = vadd.f32 %v3992_v15, %v6588_v4 }
0x3373   :  { %5483 = vtanh.f32 %v3994_v63 }
0x3379   :  { %v5484_v45 = vpop.eup %5483 }
0x337a   :  { %3998 = vrot.lane.b32.xlu1 %v5484_v45, %s5671_s2 }
0x337f   :  { %v4257_v9 = vpop.permute.xlu2 %4256 }
0x3380   :  { %v4259_v31 = vmul.f32 %v4257_v9, %v4254_v33 }
0x3382   :  { %3186 = vrot.lane.b32.xlu1 %v6655_v43, %s5671_s2  ;;  %v4262_v7 = vadd.f32 %v4261_v16, %v4259_v31  ;;  %v3996_v43 = vsub.f32 1.0, %v3984_v1  ;;  %v4273_v1 = vld [vmem:[#allocation6 + $0x110] sm:$0xff] }
0x3387   :  { %v3353_v41 = vpop.permute.xlu2 %3352 }
0x3388   :  { %3355 = vst.msk [vmem:[#allocation2] sm:$0x30] %vm558_vm15, %v3353_v41 }
0x338a   :  { %3771 = vrot.lane.b32.xlu1 %v6724_v57, %s5670_s18 }
0x338f   :  { %v3935_v60 = vpop.permute.xlu2 %3934 }
0x3390   :  { %3937 = vst.msk [vmem:[#allocation2] sm:$0x30] %vm484_vm1, %v3935_v60 }
0x3392   :  { %4264 = vrot.lane.b32.xlu1 %v4262_v7, %s5670_s18 }
0x33ec   :  { %v3999_v29 = vpop.permute.xlu1 %3998 }
0x33ed   :  { %v4001_v2 = vmul.f32 %v3999_v29, %v3996_v43 }
0x33ef   :  { %v6830_v48 = vadd.f32 %v4004_v39, %v4001_v2 }
0x33f1   :  { %v4104_v57 = vrot.slane %v6830_v48, 4 }
0x33f3   :  { %4105 = vrot.lane.b32.xlu0 %v4104_v57, %s5671_s2 }
0x33f4   :  { %v3187_v34 = vpop.permute.xlu1 %3186 }
0x33f5   :  { %3189 = vst.msk [vmem:[#allocation2] sm:$0xc] %vm390_vm4, %v3187_v34 }
0x33fb   :  { %3518 = vrot.lane.b32.xlu0 %v6729_v27, %s5671_s2  ;;  %v6852_v27 = vld [vmem:[#allocation8 + $0x80] sm:$0xff] }
0x33fc   :  { %v6837_v61 = vpop.permute.xlu1 %3771  ;;  %4377 = vmatpush.msra.mxu2 %v6852_v27  ;;  %4441 = vmatpush.msra.mxu3 %v6852_v27 }
0x33fd   :  { %4851 = vmatpush.msra.mxu1 %v6852_v27 }
0x33fe   :  { %4576 = vmatpush.msrb.mxu3 %v6842_v25 }
0x3400   :  { %4577 = vmatpush.msrb.mxu3 %v6844_v50 }
0x3402   :  { %4578 = vmatpush.msrb.mxu3 %v6848_v49 }
0x3403   :  { %4100 = vrot.lane.b32.xlu0 %v6790_v32, %s5670_s18  ;;  %v4285_v32 = vld [vmem:[#allocation6 + $0x170] sm:$0xff] }
0x3404   :  { %v4265_v22 = vpop.permute.xlu1 %4264  ;;  %4308 = vmatpush.msrb.mxu0 %v4285_v32  ;;  %4579 = vmatpush.msrb.mxu3 %v6852_v27 }
0x3405   :  { %4267 = vst.msk [vmem:[#allocation2] sm:$0x3] %vm818_vm3, %v4265_v22 }
0x3406   :  { %4309 = vmatpush.msrb.mxu0 %v4283_v35 }
0x3408   :  { %4310 = vmatpush.msrb.mxu0 %v4281_v3 }
0x340a   :  { %4311 = vmatpush.msrb.mxu0 %v4279_v20 }
0x340c   :  { %4312 = vmatpush.msrb.mxu0 %v4277_v52 }
0x340e   :  { %4313 = vmatpush.msrb.mxu0 %v4275_v5 }
0x3410   :  { %4314 = vmatpush.msrb.mxu0 %v4273_v1 }
0x3412   :  { %4315 = vmatpush.msrb.mxu0 %v4271_v28 }
0x3414   :  { %4779 = vmatpush.msra.mxu0 %v6842_v25 }
0x3416   :  { %4780 = vmatpush.msra.mxu0 %v6844_v50 }
0x3418   :  { %4781 = vmatpush.msra.mxu0 %v6848_v49 }
0x341a   :  { %4782 = vmatpush.msra.mxu0 %v6852_v27 }
0x3465   :  { %v4106_v12 = vpop.permute.xlu0 %4105 }
0x3466   :  { %5071 = vmatmul.msk.f32.vlgmr.msrb.gmra.mxu2 %vm160_vm13, %v4106_v12 }
0x3467   :  { %4507 = vmatpush.msrb.mxu2 %v6842_v25 }
0x3469   :  { %4508 = vmatpush.msrb.mxu2 %v6844_v50 }
0x346b   :  { %4509 = vmatpush.msrb.mxu2 %v6848_v49 }
0x346d   :  { %v3519_v38 = vpop.permute.xlu0 %3518  ;;  %4510 = vmatpush.msrb.mxu2 %v6852_v27 }
0x346e   :  { %3521 = vst.msk [vmem:[#allocation2] sm:$0xc0] %vm726_vm5, %v3519_v38  ;;  %4378 = vmatmul.f32.vlgmr.msra.gmra.mxu2 %v5669_v13 }
0x346f   :  { %3774 = vst.msk [vmem:[#allocation2] sm:$0xc0] %vm319_vm2, %v6837_v61  ;;  %4645 = vmatpush.msra.mxu2 %v6842_v25 }
0x3471   :  { %4646 = vmatpush.msra.mxu2 %v6844_v50 }
0x3473   :  { %4647 = vmatpush.msra.mxu2 %v6848_v49 }
0x3475   :  { %v4101_v36 = vpop.permute.xlu0 %4100  ;;  %4648 = vmatpush.msra.mxu2 %v6852_v27 }
0x3476   :  { %4103 = vst.msk [vmem:[#allocation2] sm:$0xc] %vm652_vm6, %v4101_v36 }
0x347d   :  { %v4268_v54 = vld [vmem:[#allocation2] sm:$0xff] }
0x347e   :  { %5074 = vmatmul.msk.f32.vlgmr.msrb.gmra.mxu0 %vm7043_vm14, %v4268_v54  ;;  %5076 = vmatmul.msk.f32.vlgmr.msrb.gmra.mxu1 %vm7044_vm0, %v4268_v54 }
0x34e9   :  { %v6886_v42 = vpop.f32.mrf.mxu2 }
0x34f1   :  { %v4379_v15 = vpop.f32.mrf.mxu2 }
0x34f2   :  { %v4380_v24 = vadd.f32 %v6891_v0, %v4379_v15 }
0x34f4   :  { %4403 = vrot.lane.b32.xlu2 %v4380_v24, %s5672_s21 }
0x34fb   :  { %v4340_v63 = vpop.f32.mrf.mxu1  ;;  %v4317_v45 = vpop.f32.mrf.mxu0 }
0x34fc   :  { %v6903_v53 = vadd.f32 %v4317_v45, %v4290_v47 }
0x34fe   :  { %v4382_v9 = vadd.f32 %v4380_v24, %v6903_v53 }
0x3500   :  { %v4383_v46 = vsub.f32 0.0, %v4382_v9 }
0x3502   :  { %v4384_v56 = vmul.f32 1.442695, %v4383_v46 }
0x3504   :  { %5485 = vpow2.f32 %v4384_v56 }
0x350a   :  { %v5486_v10 = vpop.eup %5485 }
0x350b   :  { %v4386_v62 = vadd.f32 1.0, %v5486_v10 }
0x350d   :  { %5487 = vrcp.f32 %v4386_v62  ;;  %v4398_v16 = vand.u32 2147483648, %v4386_v62  ;;  %vm4392_vm7 = vweird.f32 %v4386_v62  ;;  %v4396_v60 = vand.u32 2147483647, %v4386_v62 }
0x350f   :  { %v4399_v43 = vor.u32 1.1754944e-38, %v4398_v16  ;;  %vm4397_vm10 = vcmp.eq.f32.partialorder %v4396_v60, 8.507059e+37 }
0x3513   :  { %v5488_v19 = vpop.eup %5487 }
0x3514   :  { %v4388_v21 = vmul.f32 %v5488_v19, %v4386_v62  ;;  %vm4393_vm8 = vweird.f32 %v5488_v19 }
0x3515   :  { %vm4394_vm9 = vmor %vm4392_vm7, %vm4393_vm8 }
0x3516   :  { %v4389_v41 = vsub.f32 1.0, %v4388_v21 }
0x3518   :  { %v4390_v33 = vmul.f32 %v5488_v19, %v4389_v41 }
0x351a   :  { %v4391_v31 = vadd.f32 %v5488_v19, %v4390_v33 }
0x351c   :  { %v4395_v7 = vsel %vm4394_vm9, %v5488_v19, %v4391_v31 }
0x351d   :  { %v4400_v44 = vsel %vm4397_vm10, %v4399_v43, %v4395_v7 }
0x351e   :  { %v4413_v61 = vsub.f32 1.0, %v4400_v44  ;;  %v4419_v32 = vmul.f32 0.0, %v4400_v44 }
0x354e   :  { %v4404_v29 = vpop.permute.xlu2 %4403 }
0x354f   :  { %v4406_v39 = vmul.f32 %v4404_v29, %v4400_v44 }
0x3551   :  { %4408 = vrot.lane.b32.xlu0 %v4406_v39, %s5672_s21 }
0x35c3   :  { %v4409_v2 = vpop.permute.xlu0 %4408 }
0x35c4   :  { %v4411_v57 = vadd.f32 %v4409_v2, %v6903_v53 }
0x35c6   :  { %5489 = vtanh.f32 %v4411_v57 }
0x35cc   :  { %v5490_v34 = vpop.eup %5489 }
0x35cd   :  { %4415 = vrot.lane.b32.xlu1 %v5490_v34, %s5671_s2 }
0x363f   :  { %v4416_v22 = vpop.permute.xlu1 %4415 }
0x3640   :  { %v4418_v40 = vmul.f32 %v4416_v22, %v4413_v61 }
0x3642   :  { %v4420_v35 = vadd.f32 %v4419_v32, %v4418_v40 }
0x3644   :  { %4422 = vrot.lane.b32.xlu2 %v4420_v35, %s5671_s2  ;;  %v4485_v45 = vrot.slane %v4420_v35, 6 }
0x369e   :  { %v4423_v6 = vpop.permute.xlu2 %4422 }
0x369f   :  { %5080 = vmatmul.msk.f32.vlgmr.msra.gmra.mxu3 %vm160_vm13, %v4423_v6 }
0x36a0   :  { %4710 = vmatpush.msra.mxu3 %v6842_v25 }
0x36a2   :  { %4711 = vmatpush.msra.mxu3 %v6844_v50 }
0x36a4   :  { %4712 = vmatpush.msra.mxu3 %v6848_v49 }
0x36a6   :  { %4713 = vmatpush.msra.mxu3 %v6852_v27 }
0x3722   :  { %v4443_v3 = vpop.f32.mrf.mxu3 }
0x3723   :  { %v4444_v14 = vadd.f32 %v6891_v0, %v4443_v3 }
0x3725   :  { %v4447_v20 = vrot.slane %v4444_v14, 6 }
0x3727   :  { %4469 = vrot.lane.b32.xlu0 %v4447_v20, %s5672_s21  ;;  %v4449_v58 = vadd.f32 %v4447_v20, %v6903_v53 }
0x3729   :  { %v4450_v52 = vsub.f32 0.0, %v4449_v58 }
0x372b   :  { %v4451_v17 = vmul.f32 1.442695, %v4450_v52  ;;  %v5559_v52 = vld [vmem:[%s7035_s8 + $0x2] ss:$0 sm:$0xff] }
0x372d   :  { %5491 = vpow2.f32 %v4451_v17  ;;  %v4127_v17 = vadd.f32 %v5559_v52, %v6886_v42 }
0x3733   :  { %v5492_v5 = vpop.eup %5491 }
0x3734   :  { %v4453_v30 = vadd.f32 1.0, %v5492_v5  ;;  %v4130_v5 = vrot.slane %v4127_v17, 2 }
0x3736   :  { %5493 = vrcp.f32 %v4453_v30  ;;  %v4465_v27 = vand.u32 2147483648, %v4453_v30  ;;  %vm4459_vm12 = vweird.f32 %v4453_v30  ;;  %v4463_v28 = vand.u32 2147483647, %v4453_v30 }
0x3738   :  { %v4466_v12 = vor.u32 1.1754944e-38, %v4465_v27  ;;  %vm4464_vm0 = vcmp.eq.f32.partialorder %v4463_v28, 8.507059e+37 }
0x373c   :  { %v5494_v25 = vpop.eup %5493 }
0x373d   :  { %v4455_v50 = vmul.f32 %v5494_v25, %v4453_v30  ;;  %vm4460_vm11 = vweird.f32 %v5494_v25 }
0x373e   :  { %vm4461_vm14 = vmor %vm4459_vm12, %vm4460_vm11 }
0x373f   :  { %v4456_v1 = vsub.f32 1.0, %v4455_v50 }
0x3741   :  { %v4457_v49 = vmul.f32 %v5494_v25, %v4456_v1 }
0x3743   :  { %v4458_v23 = vadd.f32 %v5494_v25, %v4457_v49 }
0x3745   :  { %v4462_v8 = vsel %vm4461_vm14, %v5494_v25, %v4458_v23 }
0x3746   :  { %v4467_v36 = vsel %vm4464_vm0, %v4466_v12, %v4462_v8  ;;  %v4132_v8 = vadd.f32 %v4130_v5, %v6588_v4 }
0x3747   :  { %v4479_v9 = vsub.f32 1.0, %v4467_v36  ;;  %v4487_v10 = vmul.f32 %v4485_v45, %v4467_v36 }
0x3748   :  { %v4133_v12 = vsub.f32 0.0, %v4132_v8 }
0x3799   :  { %v4470_v38 = vpop.permute.xlu0 %4469 }
0x379a   :  { %v4472_v54 = vmul.f32 %v4470_v38, %v4467_v36  ;;  %v4134_v38 = vmul.f32 1.442695, %v4133_v12 }
0x379c   :  { %4474 = vrot.lane.b32.xlu1 %v4472_v54, %s5672_s21 }
0x380e   :  { %v4475_v15 = vpop.permute.xlu1 %4474 }
0x380f   :  { %v4477_v24 = vadd.f32 %v4475_v15, %v6903_v53 }
0x3811   :  { %5495 = vtanh.f32 %v4477_v24 }
0x3817   :  { %v5496_v63 = vpop.eup %5495 }
0x3818   :  { %4481 = vrot.lane.b32.xlu2 %v5496_v63, %s5671_s2 }
0x3872   :  { %v4482_v46 = vpop.permute.xlu2 %4481 }
0x3873   :  { %v4484_v56 = vmul.f32 %v4482_v46, %v4479_v9 }
0x3875   :  { %v4488_v62 = vadd.f32 %v4487_v10, %v4484_v56 }
0x3877   :  { %v4490_v19 = vrot.slane %v4488_v62, 2  ;;  %v4554_v30 = vrot.slane %v4488_v62, 6 }
0x3879   :  { %4491 = vrot.lane.b32.xlu0 %v4490_v19, %s5671_s2 }
0x38eb   :  { %v4492_v21 = vpop.permute.xlu0 %4491 }
0x38ec   :  { %5081 = vmatmul.msk.f32.vlgmr.msrb.gmra.mxu2 %vm160_vm13, %v4492_v21 }
0x396f   :  { %v4512_v41 = vpop.f32.mrf.mxu2 }
0x3970   :  { %v4513_v33 = vadd.f32 %v6891_v0, %v4512_v41 }
0x3972   :  { %v4516_v31 = vrot.slane %v4513_v33, 4 }
0x3974   :  { %4538 = vrot.lane.b32.xlu1 %v4516_v31, %s5672_s21  ;;  %v4518_v16 = vadd.f32 %v4516_v31, %v6903_v53 }
0x3976   :  { %v4519_v60 = vsub.f32 0.0, %v4518_v16 }
0x3978   :  { %v4520_v7 = vmul.f32 1.442695, %v4519_v60 }
0x397a   :  { %5497 = vpow2.f32 %v4520_v7 }
0x3980   :  { %v5498_v43 = vpop.eup %5497 }
0x3981   :  { %v4522_v44 = vadd.f32 1.0, %v5498_v43 }
0x3983   :  { %5499 = vrcp.f32 %v4522_v44  ;;  %v4534_v61 = vand.u32 2147483648, %v4522_v44  ;;  %vm4528_vm7 = vweird.f32 %v4522_v44  ;;  %v4532_v22 = vand.u32 2147483647, %v4522_v44 }
0x3985   :  { %v4535_v40 = vor.u32 1.1754944e-38, %v4534_v61  ;;  %vm4533_vm10 = vcmp.eq.f32.partialorder %v4532_v22, 8.507059e+37 }
0x3989   :  { %v5500_v29 = vpop.eup %5499 }
0x398a   :  { %v4524_v39 = vmul.f32 %v5500_v29, %v4522_v44  ;;  %vm4529_vm8 = vweird.f32 %v5500_v29 }
0x398b   :  { %vm4530_vm9 = vmor %vm4528_vm7, %vm4529_vm8 }
0x398c   :  { %v4525_v2 = vsub.f32 1.0, %v4524_v39 }
0x398e   :  { %v4526_v57 = vmul.f32 %v5500_v29, %v4525_v2 }
0x3990   :  { %v4527_v34 = vadd.f32 %v5500_v29, %v4526_v57 }
0x3992   :  { %v4531_v32 = vsel %vm4530_vm9, %v5500_v29, %v4527_v34 }
0x3993   :  { %v4536_v6 = vsel %vm4533_vm10, %v4535_v40, %v4531_v32 }
0x3994   :  { %v4548_v25 = vsub.f32 1.0, %v4536_v6  ;;  %v4556_v1 = vmul.f32 %v4554_v30, %v4536_v6 }
0x39e6   :  { %v4539_v35 = vpop.permute.xlu1 %4538 }
0x39e7   :  { %v4541_v3 = vmul.f32 %v4539_v35, %v4536_v6 }
0x39e9   :  { %4543 = vrot.lane.b32.xlu2 %v4541_v3, %s5672_s21 }
0x3a43   :  { %v4544_v14 = vpop.permute.xlu2 %4543 }
0x3a44   :  { %v4546_v20 = vadd.f32 %v4544_v14, %v6903_v53 }
0x3a46   :  { %5501 = vtanh.f32 %v4546_v20 }
0x3a47   :  { %5503 = vpow2.f32 %v4134_v38 }
0x3a4c   :  { %v5502_v58 = vpop.eup %5501 }
0x3a4d   :  { %4550 = vrot.lane.b32.xlu0 %v5502_v58, %s5671_s2  ;;  %v5504_v42 = vpop.eup %5503 }
0x3a4e   :  { %v4136_v36 = vadd.f32 1.0, %v5504_v42 }
0x3a50   :  { %5505 = vrcp.f32 %v4136_v36  ;;  %v4148_v10 = vand.u32 2147483648, %v4136_v36  ;;  %vm4142_vm12 = vweird.f32 %v4136_v36  ;;  %v4146_v62 = vand.u32 2147483647, %v4136_v36 }
0x3a52   :  { %v4149_v33 = vor.u32 1.1754944e-38, %v4148_v10  ;;  %vm4147_vm0 = vcmp.eq.f32.partialorder %v4146_v62, 8.507059e+37 }
0x3a55   :  { %4152 = vrot.lane.b32.xlu0 %v4130_v5, %s5672_s21 }
0x3a56   :  { %v5506_v54 = vpop.eup %5505 }
0x3a57   :  { %v4138_v15 = vmul.f32 %v5506_v54, %v4136_v36  ;;  %vm4143_vm11 = vweird.f32 %v5506_v54 }
0x3a58   :  { %vm4144_vm14 = vmor %vm4142_vm12, %vm4143_vm11 }
0x3a59   :  { %v4139_v24 = vsub.f32 1.0, %v4138_v15 }
0x3a5b   :  { %v4140_v63 = vmul.f32 %v5506_v54, %v4139_v24 }
0x3a5d   :  { %v4141_v46 = vadd.f32 %v5506_v54, %v4140_v63 }
0x3a5f   :  { %v4145_v21 = vsel %vm4144_vm14, %v5506_v54, %v4141_v46 }
0x3a60   :  { %v4150_v60 = vsel %vm4147_vm0, %v4149_v33, %v4145_v21 }
0x3abf   :  { %v4551_v50 = vpop.permute.xlu0 %4550 }
0x3ac0   :  { %v4553_v49 = vmul.f32 %v4551_v50, %v4548_v25 }
0x3ac2   :  { %v4557_v23 = vadd.f32 %v4556_v1, %v4553_v49  ;;  %v4162_v1 = vsub.f32 1.0, %v4150_v60 }
0x3ac4   :  { %v4559_v27 = vrot.slane %v4557_v23, 4  ;;  %v4623_v40 = vrot.slane %v4557_v23, 6 }
0x3ac6   :  { %4560 = vrot.lane.b32.xlu1 %v4559_v27, %s5671_s2 }
0x3ac7   :  { %v4153_v31 = vpop.permute.xlu0 %4152 }
0x3ac8   :  { %v4155_v7 = vmul.f32 %v4153_v31, %v4150_v60 }
0x3b38   :  { %v4561_v28 = vpop.permute.xlu1 %4560 }
0x3b39   :  { %5082 = vmatmul.msk.f32.vlgmr.msrb.gmra.mxu3 %vm160_vm13, %v4561_v28 }
0x3bbc   :  { %v4581_v45 = vpop.f32.mrf.mxu3 }
0x3bbd   :  { %v4582_v9 = vadd.f32 %v6891_v0, %v4581_v45 }
0x3bbf   :  { %v4585_v56 = vrot.slane %v4582_v9, 2 }
0x3bc1   :  { %v4587_v19 = vadd.f32 %v4585_v56, %v6903_v53  ;;  %4607 = vrot.lane.b32.xlu2 %v4585_v56, %s5672_s21 }
0x3bc3   :  { %v4588_v41 = vsub.f32 0.0, %v4587_v19 }
0x3bc5   :  { %v4589_v16 = vmul.f32 1.442695, %v4588_v41 }
0x3bc7   :  { %5507 = vpow2.f32 %v4589_v16 }
0x3bc9   :  { %4157 = vrot.lane.b32.xlu2 %v4155_v7, %s5672_s21 }
0x3bcd   :  { %v5508_v43 = vpop.eup %5507 }
0x3bce   :  { %v4591_v44 = vadd.f32 1.0, %v5508_v43 }
0x3bd0   :  { %5509 = vrcp.f32 %v4591_v44  ;;  %v4603_v57 = vand.u32 2147483648, %v4591_v44  ;;  %v4601_v61 = vand.u32 2147483647, %v4591_v44  ;;  %vm4597_vm7 = vweird.f32 %v4591_v44 }
0x3bd1   :  { %3445 = vrot.lane.b32.xlu2 %v6668_v18, %s5670_s18 }
0x3bd2   :  { %v4604_v32 = vor.u32 1.1754944e-38, %v4603_v57  ;;  %vm4602_vm10 = vcmp.eq.f32.partialorder %v4601_v61, 8.507059e+37 }
0x3bd6   :  { %v5510_v29 = vpop.eup %5509 }
0x3bd7   :  { %v4593_v39 = vmul.f32 %v5510_v29, %v4591_v44  ;;  %vm4598_vm8 = vweird.f32 %v5510_v29 }
0x3bd8   :  { %vm4599_vm9 = vmor %vm4597_vm7, %vm4598_vm8 }
0x3bd9   :  { %v4594_v2 = vsub.f32 1.0, %v4593_v39 }
0x3bdb   :  { %v4595_v34 = vmul.f32 %v5510_v29, %v4594_v2 }
0x3bdd   :  { %v4596_v22 = vadd.f32 %v5510_v29, %v4595_v34 }
0x3bdf   :  { %v4600_v35 = vsel %vm4599_vm9, %v5510_v29, %v4596_v22 }
0x3be0   :  { %v4605_v6 = vsel %vm4602_vm10, %v4604_v32, %v4600_v35 }
0x3be1   :  { %v4625_v3 = vmul.f32 %v4623_v40, %v4605_v6  ;;  %v4617_v27 = vsub.f32 1.0, %v4605_v6 }
0x3c1b   :  { %v4608_v14 = vpop.permute.xlu2 %4607 }
0x3c1c   :  { %v4610_v20 = vmul.f32 %v4608_v14, %v4605_v6 }
0x3c1e   :  { %4612 = vrot.lane.b32.xlu1 %v4610_v20, %s5672_s21 }
0x3c23   :  { %v4158_v18 = vpop.permute.xlu2 %4157 }
0x3c24   :  { %v4160_v58 = vadd.f32 %v4158_v18, %v6588_v4 }
0x3c26   :  { %5511 = vtanh.f32 %v4160_v58 }
0x3c2b   :  { %v3446_v52 = vpop.permute.xlu2 %3445 }
0x3c2c   :  { %v5512_v17 = vpop.eup %5511  ;;  %3448 = vst.msk [vmem:[#allocation2 + $0x8] sm:$0xc] %vm652_vm6, %v3446_v52 }
0x3c2d   :  { %4164 = vrot.lane.b32.xlu1 %v5512_v17, %s5671_s2 }
0x3c35   :  { %3279 = vrot.lane.b32.xlu1 %v6637_v11, %s5670_s18  ;;  %v4168_v11 = vrot.slane %v6830_v48, 6 }
0x3c37   :  { %v4170_v49 = vmul.f32 %v4168_v11, %v4150_v60 }
0x3c3d   :  { %3841 = vrot.lane.b32.xlu1 %v6797_v51, %s5671_s2 }
0x3c90   :  { %v4613_v5 = vpop.permute.xlu1 %4612 }
0x3c91   :  { %v4615_v30 = vadd.f32 %v4613_v5, %v6903_v53 }
0x3c93   :  { %5513 = vtanh.f32 %v4615_v30 }
0x3c99   :  { %v5514_v25 = vpop.eup %5513 }
0x3c9a   :  { %4619 = vrot.lane.b32.xlu0 %v5514_v25, %s5671_s2 }
0x3c9f   :  { %v4165_v4 = vpop.permute.xlu1 %4164 }
0x3ca0   :  { %v4167_v51 = vmul.f32 %v4165_v4, %v4162_v1 }
0x3ca2   :  { %3116 = vrot.lane.b32.xlu0 %v6606_v26, %s5670_s18  ;;  %v4171_v23 = vadd.f32 %v4170_v49, %v4167_v51 }
0x3ca7   :  { %v3280_v50 = vpop.permute.xlu1 %3279 }
0x3ca8   :  { %3282 = vst.msk [vmem:[#allocation2 + $0x8] sm:$0x30] %vm484_vm1, %v3280_v50  ;;  %vm7045_vm1 = vcmask 254976  }
0x3caa   :  { %3609 = vrot.lane.b32.xlu0 %v6699_v37, %s5670_s18 }
0x3caf   :  { %v3842_v53 = vpop.permute.xlu1 %3841 }
0x3cb0   :  { %3844 = vst.msk [vmem:[#allocation2 + $0x8] sm:$0xc] %vm390_vm4, %v3842_v53 }
0x3cb2   :  { %4173 = vrot.lane.b32.xlu0 %v4171_v23, %s5671_s2 }
0x3d0c   :  { %v4620_v28 = vpop.permute.xlu0 %4619 }
0x3d0d   :  { %v4622_v26 = vmul.f32 %v4620_v28, %v4617_v27 }
0x3d0f   :  { %v4626_v8 = vadd.f32 %v4625_v3, %v4622_v26 }
0x3d11   :  { %v4628_v12 = vrot.slane %v4626_v8, 6 }
0x3d13   :  { %4629 = vrot.lane.b32.xlu2 %v4628_v12, %s5671_s2 }
0x3d14   :  { %v3117_v38 = vpop.permute.xlu0 %3116 }
0x3d15   :  { %3119 = vst.msk [vmem:[#allocation2 + $0x8] sm:$0xc0] %vm319_vm2, %v3117_v38  ;;  %vm7046_vm2 = vcmask 523264  }
0x3d16   :  { %vm7047_vm4 = vmmov %vm7046_vm2 }
0x3d1b   :  { %4007 = vrot.lane.b32.xlu2 %v6830_v48, %s5671_s2 }
0x3d1c   :  { %v3610_v37 = vpop.permute.xlu0 %3609 }
0x3d1d   :  { %3612 = vst.msk [vmem:[#allocation2 + $0x8] sm:$0x3] %vm818_vm3, %v3610_v37 }
0x3d1e   :  { %3682 = vst.msk [vmem:[#allocation2 + $0x8] sm:$0x3] %vm7045_vm1, %v6774_v55 }
0x3d24   :  { %v4174_v42 = vpop.permute.xlu0 %4173 }
0x3d25   :  { %4176 = vst.msk [vmem:[#allocation2 + $0x8] sm:$0xc0] %vm726_vm5, %v4174_v42 }
0x3d6d   :  { %v4630_v36 = vpop.permute.xlu2 %4629 }
0x3d6e   :  { %5083 = vmatmul.msk.f32.vlgmr.msra.gmra.mxu2 %vm160_vm13, %v4630_v36 }
0x3d75   :  { %v4008_v54 = vpop.permute.xlu2 %4007 }
0x3d76   :  { %4010 = vst.msk [vmem:[#allocation2 + $0x8] sm:$0x30] %vm558_vm15, %v4008_v54 }
0x3d7d   :  { %v4269_v15 = vld [vmem:[#allocation2 + $0x8] sm:$0xff] }
0x3d7e   :  { %5075 = vmatmul.msk.f32.gmra.mxu0 %vm7046_vm2, %v4269_v15  ;;  %5077 = vmatmul.msk.f32.gmra.mxu1 %vm7047_vm4, %v4269_v15  ;;  %v4354_v15 = vld [vmem:[#allocation8 + $0xb8] sm:$0xff] }
0x3d7f   :  { %4914 = vmatpush.msrb.mxu2 %v4354_v15 }
0x3df1   :  { %v4650_v48 = vpop.f32.mrf.mxu2 }
0x3df2   :  { %v4651_v24 = vadd.f32 %v6891_v0, %v4650_v48  ;;  %v4353_v48 = vld [vmem:[#allocation8 + $0xb0] sm:$0xff] }
0x3df3   :  { %4915 = vmatpush.msrb.mxu2 %v4353_v48 }
0x3df4   :  { %4674 = vrot.lane.b32.xlu1 %v4651_v24, %s5672_s21 }
0x3dfb   :  { %v4320_v55 = vpop.f32.mrf.mxu0 }
0x3dfc   :  { %v6977_v63 = vadd.f32 %v4320_v55, %v4290_v47  ;;  %v4351_v55 = vld [vmem:[#allocation8 + $0xa0] sm:$0xff] }
0x3dfe   :  { %v4653_v45 = vadd.f32 %v4651_v24, %v6977_v63  ;;  %v4352_v24 = vld [vmem:[#allocation8 + $0xa8] sm:$0xff] }
0x3dff   :  { %4916 = vmatpush.msrb.mxu2 %v4352_v24 }
0x3e00   :  { %v4654_v9 = vsub.f32 0.0, %v4653_v45 }
0x3e01   :  { %4917 = vmatpush.msrb.mxu2 %v4351_v55 }
0x3e02   :  { %v4655_v46 = vmul.f32 1.442695, %v4654_v9  ;;  %4918 = vmatmul.f32.vlgmr.msrb.gmra.mxu2 %v5669_v13 }
0x3e04   :  { %5515 = vpow2.f32 %v4655_v46 }
0x3e0a   :  { %v5516_v56 = vpop.eup %5515 }
0x3e0b   :  { %v4657_v10 = vadd.f32 1.0, %v5516_v56 }
0x3e0d   :  { %5517 = vrcp.f32 %v4657_v10  ;;  %v4669_v31 = vand.u32 2147483648, %v4657_v10  ;;  %vm4663_vm15 = vweird.f32 %v4657_v10  ;;  %v4667_v16 = vand.u32 2147483647, %v4657_v10 }
0x3e0f   :  { %v4670_v60 = vor.u32 1.1754944e-38, %v4669_v31  ;;  %vm4668_vm6 = vcmp.eq.f32.partialorder %v4667_v16, 8.507059e+37 }
0x3e13   :  { %v5518_v62 = vpop.eup %5517 }
0x3e14   :  { %v4659_v19 = vmul.f32 %v5518_v62, %v4657_v10  ;;  %vm4664_vm5 = vweird.f32 %v5518_v62 }
0x3e15   :  { %vm4665_vm3 = vmor %vm4663_vm15, %vm4664_vm5 }
0x3e16   :  { %v4660_v21 = vsub.f32 1.0, %v4659_v19 }
0x3e18   :  { %v4661_v41 = vmul.f32 %v5518_v62, %v4660_v21 }
0x3e1a   :  { %v4662_v33 = vadd.f32 %v5518_v62, %v4661_v41 }
0x3e1c   :  { %v4666_v47 = vsel %vm4665_vm3, %v5518_v62, %v4662_v33 }
0x3e1d   :  { %v4671_v43 = vsel %vm4668_vm6, %v4670_v60, %v4666_v47 }
0x3e1e   :  { %v4684_v57 = vsub.f32 1.0, %v4671_v43  ;;  %v4691_v61 = vmul.f32 %v4671_v43, %v4628_v12 }
0x3e66   :  { %v4675_v7 = vpop.permute.xlu1 %4674 }
0x3e67   :  { %v4677_v44 = vmul.f32 %v4675_v7, %v4671_v43 }
0x3e69   :  { %4679 = vrot.lane.b32.xlu2 %v4677_v44, %s5672_s21 }
0x3ec3   :  { %v4680_v29 = vpop.permute.xlu2 %4679 }
0x3ec4   :  { %v4682_v39 = vadd.f32 %v4680_v29, %v6977_v63  ;;  %v5106_v29 = vld [vmem:[%s7035_s8 + $0x5] ss:$0 sm:$0xff]  ;;  %s5673_s8 = smov [#allocation9]  }
0x3ec6   :  { %5519 = vtanh.f32 %v4682_v39 }
0x3ecc   :  { %v5520_v2 = vpop.eup %5519 }
0x3ecd   :  { %4686 = vrot.lane.b32.xlu0 %v5520_v2, %s5671_s2 }
0x3f3f   :  { %v4687_v34 = vpop.permute.xlu0 %4686 }
0x3f40   :  { %v4689_v22 = vmul.f32 %v4687_v34, %v4684_v57  ;;  %v4919_v57 = vpop.f32.mrf.mxu2 }
0x3f42   :  { %v4692_v32 = vadd.f32 %v4691_v61, %v4689_v22  ;;  %v4920_v61 = vadd.f32 %v5106_v29, %v4919_v57 }
0x3f44   :  { %4694 = vrot.lane.b32.xlu1 %v4692_v32, %s5671_s2  ;;  %v4757_v51 = vrot.slane %v4692_v32, 6  ;;  %v4923_v22 = vrot.slane %v4920_v61, 2 }
0x3fb6   :  { %v4695_v40 = vpop.permute.xlu1 %4694 }
0x3fb7   :  { %5084 = vmatmul.msk.f32.vlgmr.msra.gmra.mxu3 %vm160_vm13, %v4695_v40 }
0x403a   :  { %v4715_v35 = vpop.f32.mrf.mxu3 }
0x403b   :  { %v4716_v6 = vadd.f32 %v6891_v0, %v4715_v35 }
0x403d   :  { %v4719_v3 = vrot.slane %v4716_v6, 6 }
0x403f   :  { %v4721_v14 = vadd.f32 %v4719_v3, %v6977_v63  ;;  %4741 = vrot.lane.b32.xlu2 %v4719_v3, %s5672_s21 }
0x4041   :  { %v4722_v20 = vsub.f32 0.0, %v4721_v14 }
0x4043   :  { %v4723_v18 = vmul.f32 1.442695, %v4722_v20 }
0x4045   :  { %5521 = vpow2.f32 %v4723_v18 }
0x404b   :  { %v5522_v58 = vpop.eup %5521 }
0x404c   :  { %v4725_v52 = vadd.f32 1.0, %v5522_v58 }
0x404e   :  { %5523 = vrcp.f32 %v4725_v52  ;;  %v4737_v25 = vand.u32 2147483648, %v4725_v52  ;;  %v4735_v50 = vand.u32 2147483647, %v4725_v52  ;;  %vm4731_vm12 = vweird.f32 %v4725_v52 }
0x4050   :  { %v4738_v11 = vor.u32 1.1754944e-38, %v4737_v25  ;;  %vm4736_vm0 = vcmp.eq.f32.partialorder %v4735_v50, 8.507059e+37 }
0x4054   :  { %v5524_v17 = vpop.eup %5523 }
0x4055   :  { %v4727_v5 = vmul.f32 %v5524_v17, %v4725_v52  ;;  %vm4732_vm11 = vweird.f32 %v5524_v17 }
0x4056   :  { %vm4733_vm14 = vmor %vm4731_vm12, %vm4732_vm11 }
0x4057   :  { %v4728_v30 = vsub.f32 1.0, %v4727_v5 }
0x4059   :  { %v4729_v4 = vmul.f32 %v5524_v17, %v4728_v30 }
0x405b   :  { %v4730_v1 = vadd.f32 %v5524_v17, %v4729_v4 }
0x405d   :  { %v4734_v49 = vsel %vm4733_vm14, %v5524_v17, %v4730_v1 }
0x405e   :  { %v4739_v53 = vsel %vm4736_vm0, %v4738_v11, %v4734_v49  ;;  %v4342_v49 = vpop.f32.mrf.mxu1 }
0x405f   :  { %v4759_v23 = vmul.f32 %v4757_v51, %v4739_v53  ;;  %v4751_v38 = vsub.f32 1.0, %v4739_v53 }
0x4099   :  { %v4742_v27 = vpop.permute.xlu2 %4741 }
0x409a   :  { %v4744_v28 = vmul.f32 %v4742_v27, %v4739_v53 }
0x409c   :  { %4746 = vrot.lane.b32.xlu0 %v4744_v28, %s5672_s21 }
0x410e   :  { %v4747_v26 = vpop.permute.xlu0 %4746 }
0x410f   :  { %v4749_v8 = vadd.f32 %v4747_v26, %v6977_v63 }
0x4111   :  { %5525 = vtanh.f32 %v4749_v8 }
0x4117   :  { %v5526_v12 = vpop.eup %5525 }
0x4118   :  { %4753 = vrot.lane.b32.xlu1 %v5526_v12, %s5671_s2 }
0x418a   :  { %v4754_v37 = vpop.permute.xlu1 %4753 }
0x418b   :  { %v4756_v42 = vmul.f32 %v4754_v37, %v4751_v38 }
0x418d   :  { %v4760_v36 = vadd.f32 %v4759_v23, %v4756_v42 }
0x418f   :  { %v4762_v54 = vrot.slane %v4760_v36, 2  ;;  %v4826_v6 = vrot.slane %v4760_v36, 6 }
0x4191   :  { %4763 = vrot.lane.b32.xlu2 %v4762_v54, %s5671_s2 }
0x41eb   :  { %v4764_v45 = vpop.permute.xlu2 %4763 }
0x41ec   :  { %5085 = vmatmul.msk.f32.vlgmr.msra.gmra.mxu0 %vm160_vm13, %v4764_v45 }
0x4269   :  { %v4784_v9 = vpop.f32.mrf.mxu0 }
0x426a   :  { %v4785_v46 = vadd.f32 %v6891_v0, %v4784_v9 }
0x426c   :  { %v4788_v56 = vrot.slane %v4785_v46, 4 }
0x426e   :  { %4810 = vrot.lane.b32.xlu0 %v4788_v56, %s5672_s21  ;;  %v4790_v10 = vadd.f32 %v4788_v56, %v6977_v63 }
0x4270   :  { %v4791_v62 = vsub.f32 0.0, %v4790_v10 }
0x4272   :  { %v4792_v19 = vmul.f32 1.442695, %v4791_v62 }
0x4274   :  { %5527 = vpow2.f32 %v4792_v19 }
0x427a   :  { %v5528_v21 = vpop.eup %5527 }
0x427b   :  { %v4794_v41 = vadd.f32 1.0, %v5528_v21 }
0x427d   :  { %5529 = vrcp.f32 %v4794_v41  ;;  %v4806_v60 = vand.u32 2147483648, %v4794_v41  ;;  %vm4800_vm7 = vweird.f32 %v4794_v41  ;;  %v4804_v7 = vand.u32 2147483647, %v4794_v41 }
0x427f   :  { %v4807_v44 = vor.u32 1.1754944e-38, %v4806_v60  ;;  %vm4805_vm10 = vcmp.eq.f32.partialorder %v4804_v7, 8.507059e+37  ;;  %v4291_v7 = vperm.slane %v6898_v59, 1 }
0x4283   :  { %v5530_v33 = vpop.eup %5529 }
0x4284   :  { %v4796_v31 = vmul.f32 %v5530_v33, %v4794_v41  ;;  %vm4801_vm8 = vweird.f32 %v5530_v33 }
0x4285   :  { %vm4802_vm9 = vmor %vm4800_vm7, %vm4801_vm8  ;;  %vm4994_vm7 = vcmask 523270  }
0x4286   :  { %v4797_v13 = vsub.f32 1.0, %v4796_v31 }
0x4288   :  { %v4798_v16 = vmul.f32 %v5530_v33, %v4797_v13 }
0x428a   :  { %v4799_v47 = vadd.f32 %v5530_v33, %v4798_v16 }
0x428c   :  { %v4803_v43 = vsel %vm4802_vm9, %v5530_v33, %v4799_v47 }
0x428d   :  { %v4808_v2 = vsel %vm4805_vm10, %v4807_v44, %v4803_v43  ;;  %v4343_v43 = vadd.f32 %v4342_v49, %v4291_v7 }
0x428e   :  { %v4820_v3 = vsub.f32 1.0, %v4808_v2  ;;  %v4828_v20 = vmul.f32 %v4826_v6, %v4808_v2 }
0x42e0   :  { %v4811_v39 = vpop.permute.xlu0 %4810 }
0x42e1   :  { %v4813_v34 = vmul.f32 %v4811_v39, %v4808_v2 }
0x42e3   :  { %4815 = vrot.lane.b32.xlu1 %v4813_v34, %s5672_s21 }
0x42eb   :  { %4924 = vrot.lane.b32.xlu1 %v4923_v22, %s5671_s2 }
0x4355   :  { %v4816_v32 = vpop.permute.xlu1 %4815 }
0x4356   :  { %v4818_v40 = vadd.f32 %v4816_v32, %v6977_v63 }
0x4358   :  { %5531 = vtanh.f32 %v4818_v40 }
0x435d   :  { %v7007_v5 = vpop.permute.xlu1 %4924 }
0x435e   :  { %v5532_v35 = vpop.eup %5531  ;;  %v4927_v30 = vadd.f32 %v7007_v5, %v6977_v63  ;;  %v4947_v2 = vadd.f32 %v7007_v5, %v4343_v43 }
0x435f   :  { %4822 = vrot.lane.b32.xlu2 %v5532_v35, %s5671_s2 }
0x4360   :  { %v4928_v25 = vsub.f32 0.0, %v4927_v30  ;;  %v4948_v57 = vsub.f32 0.0, %v4947_v2 }
0x4362   :  { %v4929_v4 = vmul.f32 1.442695, %v4928_v25  ;;  %v4949_v34 = vmul.f32 1.442695, %v4948_v57 }
0x4364   :  { %5533 = vpow2.f32 %v4929_v4 }
0x436a   :  { %v5534_v50 = vpop.eup %5533 }
0x436b   :  { %v4931_v1 = vadd.f32 1.0, %v5534_v50 }
0x436d   :  { %5535 = vrcp.f32 %v4931_v1  ;;  %v4943_v12 = vand.u32 2147483648, %v4931_v1  ;;  %vm4937_vm2 = vweird.f32 %v4931_v1  ;;  %v4941_v38 = vand.u32 2147483647, %v4931_v1 }
0x436f   :  { %v4944_v15 = vor.u32 1.1754944e-38, %v4943_v12  ;;  %vm4942_vm5 = vcmp.eq.f32.partialorder %v4941_v38, 8.507059e+37 }
0x4373   :  { %v5536_v11 = vpop.eup %5535 }
0x4374   :  { %v4933_v51 = vmul.f32 %v5536_v11, %v4931_v1  ;;  %vm4938_vm1 = vweird.f32 %v5536_v11 }
0x4375   :  { %vm4939_vm4 = vmor %vm4937_vm2, %vm4938_vm1 }
0x4376   :  { %v4934_v53 = vsub.f32 1.0, %v4933_v51 }
0x4378   :  { %v4935_v23 = vmul.f32 %v5536_v11, %v4934_v53 }
0x437a   :  { %v4936_v26 = vadd.f32 %v5536_v11, %v4935_v23 }
0x437c   :  { %v4940_v42 = vsel %vm4939_vm4, %v5536_v11, %v4936_v26 }
0x437d   :  { %v4945_v24 = vsel %vm4942_vm5, %v4944_v15, %v4940_v42 }
0x43b9   :  { %v4823_v14 = vpop.permute.xlu2 %4822 }
0x43ba   :  { %v4825_v18 = vmul.f32 %v4823_v14, %v4820_v3 }
0x43bc   :  { %v4829_v58 = vadd.f32 %v4828_v20, %v4825_v18 }
0x43be   :  { %v4831_v52 = vrot.slane %v4829_v58, 4  ;;  %v4895_v33 = vrot.slane %v4829_v58, 6 }
0x43c0   :  { %4832 = vrot.lane.b32.xlu0 %v4831_v52, %s5671_s2 }
0x43c8   :  { %4967 = vrot.lane.b32.xlu0 %v4923_v22, %s5670_s18 }
0x4432   :  { %v4833_v17 = vpop.permute.xlu0 %4832 }
0x4433   :  { %5086 = vmatmul.msk.f32.vlgmr.msra.gmra.mxu1 %vm160_vm13, %v4833_v17 }
0x443a   :  { %v4968_v54 = vpop.permute.xlu0 %4967 }
0x443b   :  { %v4970_v55 = vmul.f32 %v4968_v54, %v4945_v24 }
0x44b0   :  { %v4853_v27 = vpop.f32.mrf.mxu1 }
0x44b1   :  { %v4854_v28 = vadd.f32 %v6891_v0, %v4853_v27 }
0x44b3   :  { %v4857_v8 = vrot.slane %v4854_v28, 2 }
0x44b5   :  { %v4859_v37 = vadd.f32 %v4857_v8, %v6977_v63  ;;  %4879 = vrot.lane.b32.xlu2 %v4857_v8, %s5672_s21 }
0x44b7   :  { %v4860_v36 = vsub.f32 0.0, %v4859_v37 }
0x44b9   :  { %v4861_v48 = vmul.f32 1.442695, %v4860_v36 }
0x44bb   :  { %5537 = vpow2.f32 %v4861_v48 }
0x44bd   :  { %4972 = vrot.lane.b32.xlu2 %v4970_v55, %s5672_s21 }
0x44c1   :  { %v5538_v0 = vpop.eup %5537 }
0x44c2   :  { %v4863_v45 = vadd.f32 1.0, %v5538_v0 }
0x44c4   :  { %5539 = vrcp.f32 %v4863_v45  ;;  %v4875_v10 = vand.u32 2147483648, %v4863_v45  ;;  %v4873_v19 = vand.u32 2147483647, %v4863_v45  ;;  %vm4869_vm3 = vweird.f32 %v4863_v45 }
0x44c6   :  { %v4876_v41 = vor.u32 1.1754944e-38, %v4875_v10  ;;  %vm4874_vm11 = vcmp.eq.f32.partialorder %v4873_v19, 8.507059e+37 }
0x44ca   :  { %v5540_v9 = vpop.eup %5539 }
0x44cb   :  { %v4865_v46 = vmul.f32 %v5540_v9, %v4863_v45  ;;  %vm4870_vm15 = vweird.f32 %v5540_v9 }
0x44cc   :  { %vm4871_vm6 = vmor %vm4869_vm3, %vm4870_vm15 }
0x44cd   :  { %v4866_v56 = vsub.f32 1.0, %v4865_v46 }
0x44cf   :  { %v4867_v62 = vmul.f32 %v5540_v9, %v4866_v56 }
0x44d1   :  { %v4868_v21 = vadd.f32 %v5540_v9, %v4867_v62 }
0x44d3   :  { %v4872_v31 = vsel %vm4871_vm6, %v5540_v9, %v4868_v21 }
0x44d4   :  { %v4877_v13 = vsel %vm4874_vm11, %v4876_v41, %v4872_v31 }
0x44d5   :  { %v4897_v16 = vmul.f32 %v4895_v33, %v4877_v13 }
0x450f   :  { %v4880_v47 = vpop.permute.xlu2 %4879 }
0x4510   :  { %v4882_v60 = vmul.f32 %v4880_v47, %v4877_v13 }
0x4512   :  { %4884 = vrot.lane.b32.xlu1 %v4882_v60, %s5672_s21  ;;  %s5001_s21 = sshll.u32 %s5673_s8, 4  ;;  %s5002_s21 = int_to_ptr.vmem [resolvable:$true] %s5001_s21 }
0x4517   :  { %v4973_v44 = vpop.permute.xlu2 %4972 }
0x4518   :  { %v4975_v29 = vadd.f32 %v4973_v44, %v4343_v43 }
0x451a   :  { %5541 = vtanh.f32 %v4975_v29 }
0x451b   :  { %5543 = vpow2.f32 %v4949_v34 }
0x4520   :  { %v5542_v39 = vpop.eup %5541 }
0x4521   :  { %4979 = vrot.lane.b32.xlu1 %v5542_v39, %s5671_s2  ;;  %v5544_v61 = vpop.eup %5543 }
0x4522   :  { %v4951_v22 = vadd.f32 1.0, %v5544_v61 }
0x4524   :  { %5545 = vrcp.f32 %v4951_v22  ;;  %v4963_v20 = vand.u32 2147483648, %v4951_v22  ;;  %vm4957_vm14 = vweird.f32 %v4951_v22  ;;  %v4961_v18 = vand.u32 2147483647, %v4951_v22 }
0x4526   :  { %v4964_v17 = vor.u32 1.1754944e-38, %v4963_v20  ;;  %vm4962_vm8 = vcmp.eq.f32.partialorder %v4961_v18, 8.507059e+37 }
0x452a   :  { %v5546_v32 = vpop.eup %5545 }
0x452b   :  { %v4953_v40 = vmul.f32 %v5546_v32, %v4951_v22  ;;  %vm4958_vm12 = vweird.f32 %v5546_v32 }
0x452c   :  { %vm4959_vm0 = vmor %vm4957_vm14, %vm4958_vm12 }
0x452d   :  { %v4954_v59 = vsub.f32 1.0, %v4953_v40 }
0x452f   :  { %v4955_v6 = vmul.f32 %v5546_v32, %v4954_v59 }
0x4531   :  { %v4956_v14 = vadd.f32 %v5546_v32, %v4955_v6 }
0x4533   :  { %v4960_v58 = vsel %vm4959_vm0, %v5546_v32, %v4956_v14 }
0x4534   :  { %v4965_v5 = vsel %vm4962_vm8, %v4964_v17, %v4960_v58 }
0x4535   :  { %v4977_v30 = vsub.f32 1.0, %v4965_v5  ;;  %v4983_v4 = vmul.f32 0.0, %v4965_v5 }
0x4584   :  { %v4885_v35 = vpop.permute.xlu1 %4884 }
0x4585   :  { %v4887_v3 = vadd.f32 %v4885_v35, %v6977_v63  ;;  %v4889_v63 = vsub.f32 1.0, %v4877_v13 }
0x4587   :  { %5547 = vtanh.f32 %v4887_v3 }
0x458d   :  { %v5548_v52 = vpop.eup %5547 }
0x458e   :  { %4891 = vrot.lane.b32.xlu0 %v5548_v52, %s5671_s2 }
0x4593   :  { %v4980_v25 = vpop.permute.xlu1 %4979 }
0x4594   :  { %v4982_v50 = vmul.f32 %v4980_v25, %v4977_v30 }
0x4596   :  { %v4984_v1 = vadd.f32 %v4983_v4, %v4982_v50 }
0x4598   :  { %4990 = vrot.lane.b32.xlu0 %v4984_v1, %s5670_s18 }
0x4600   :  { %v4892_v11 = vpop.permute.xlu0 %4891 }
0x4601   :  { %v4894_v51 = vmul.f32 %v4892_v11, %v4889_v63 }
0x4603   :  { %v4898_v49 = vadd.f32 %v4897_v16, %v4894_v51 }
0x4605   :  { %4986 = vrot.lane.b32.xlu2 %v4898_v49, %s5671_s2 }
0x460a   :  { %v4991_v53 = vpop.permute.xlu0 %4990 }
0x465f   :  { %v4987_v23 = vpop.permute.xlu2 %4986 }
0x4660   :  { %v4993_v27 = vsel %vm160_vm13, %v4987_v23, %v4991_v53 }
0x4661   :  { %4995 = vst.msk [vmem:[#allocation9 - $0x6] sm:$0xc0] %vm4994_vm7, %v4993_v27 }
0x4662   :  { %5006 = dma.vmem_to_hbm [thread:$0]  %s5002_s21, 32, %s5004_s7, [#allocation5]  }
0x4663   :  { %5660 = dma.done.wait [#allocation5], 32  }
0x4664   :  { %5661 = vsyncadd [#allocation5], 4294967264 }
0x4665   :  { %5011 = vsyncpa [#allocation4], 1 }
0x4666   :  { %5012 = vsyncpa [#allocation7], 1 }
0x4667   :  { %5013 = vsyncpa [#allocation5], 1 }

</bundles_post_ra>
